<compile_context>
chip_gen: v7x
topology: tpu7x:2x2x1
jax: 0.10.0
libtpu: 0.0.40
codegen_flags: <defaults>
</compile_context>

<pallas_src>
import functools

import jax
import jax.numpy as jnp
from jax.experimental import pallas as pl
from jax.experimental.pallas import tpu as pltpu

LN_EPS = 1e-5   # torch.nn.LayerNorm default eps
HPAD = 128      # lane-padded width for mu / log_var / z (h_dims << 128)


# ----------------------------- kernel -------------------------------------- #
def _ln_relu(y, g, beta):
    mean = jnp.mean(y, axis=-1, keepdims=True)
    mean2 = jnp.mean(y * y, axis=-1, keepdims=True)
    var = mean2 - mean * mean
    yn = (y - mean) * jax.lax.rsqrt(var + LN_EPS)
    return jnp.maximum(yn * g + beta, 0.0)


def _block(h, w_ref, b_ref, g_ref, beta_ref):
    """Fused Linear -> LayerNorm -> ReLU -> Dropout(eval=identity)."""
    y = jnp.dot(h, w_ref[...], preferred_element_type=jnp.float32) + b_ref[...]
    return _ln_relu(y, g_ref[...], beta_ref[...])


def vae_fused_kernel(
    # batch-tiled inputs
    x_ref, eps_ref,
    # encoder blocks (w, b, gamma, beta) x 4
    ew0, eb0, eg0, ez0,
    ew1, eb1, eg1, ez1,
    ew2, eb2, eg2, ez2,
    ew3, eb3, eg3, ez3,
    # concatenated fc_mu|fc_log_var (lane-padded to 2*HPAD)
    wmv, bmv,
    # in_decoder (rows padded to HPAD)
    wid, bid,
    # decoder blocks (w, b, gamma, beta) x 3
    dw0, db0, dg0, dz0,
    dw1, db1, dg1, dz1,
    dw2, db2, dg2, dz2,
    # final Linear(1024 -> in_dims)
    wout, bout,
    # outputs
    recon_ref, mu_ref, lv_ref,
):
    h = x_ref[...]
    h = _block(h, ew0, eb0, eg0, ez0)
    h = _block(h, ew1, eb1, eg1, ez1)
    h = _block(h, ew2, eb2, eg2, ez2)
    h = _block(h, ew3, eb3, eg3, ez3)

    mv = jnp.dot(h, wmv[...], preferred_element_type=jnp.float32) + bmv[...]
    mu = mv[:, :HPAD]
    lv = mv[:, HPAD:]
    mu_ref[...] = mu
    lv_ref[...] = lv

    # TODO(synk): training-mode nn.Dropout(0.1) not implemented (eval semantics).
    z = mu + eps_ref[...] * jnp.exp(0.5 * lv)   # padded cols killed by wid zeros

    y = jnp.dot(z, wid[...], preferred_element_type=jnp.float32) + bid[...]
    y = _block(y, dw0, db0, dg0, dz0)
    y = _block(y, dw1, db1, dg1, dz1)
    y = _block(y, dw2, db2, dg2, dz2)
    recon_ref[...] = (
        jnp.dot(y, wout[...], preferred_element_type=jnp.float32) + bout[...]
    )


# ----------------------------- params -------------------------------------- #
def xavier_normal(key, out_f, in_f):
    std = (2.0 / (in_f + out_f)) ** 0.5
    return std * jax.random.normal(key, (out_f, in_f), jnp.float32)


def init_params(key, in_dims, h_dims):
    """Matches VAE.init_weights: xavier_normal weights, zero biases,
    LayerNorm gamma=1 beta=0.  Linear weights stored transposed as (in, out)."""
    enc_dims = [(in_dims, 1024), (1024, 512), (512, 256), (256, 128)]
    dec_dims = [(128, 256), (256, 512), (512, 1024)]
    keys = iter(jax.random.split(key, 16))

    def linear(i, o):
        w = xavier_normal(next(keys), o, i)  # torch weight shape (out, in)
        return w.T, jnp.zeros((1, o), jnp.float32)

    def block(i, o):
        w_t, b = linear(i, o)
        return {"w": w_t, "b": b,
                "g": jnp.ones((1, o), jnp.float32),
                "beta": jnp.zeros((1, o), jnp.float32)}

    p = {}
    p["enc"] = [block(i, o) for i, o in enc_dims]
    p["fc_mu"] = linear(128, h_dims)
    p["fc_log_var"] = linear(128, h_dims)
    p["in_decoder"] = linear(h_dims, 128)
    p["dec"] = [block(i, o) for i, o in dec_dims]
    p["dec_out"] = linear(1024, in_dims)  # bias_last_fc=True
    return p


def _pack_params(p, h_dims):
    """Flat weight list for the fused kernel; mu/log_var lane-padded to HPAD,
    in_decoder row-padded to HPAD (zero rows kill the padded z columns)."""
    def pad_cols(w, b):
        wp = jnp.zeros((w.shape[0], HPAD), jnp.float32).at[:, :h_dims].set(w)
        bp = jnp.zeros((1, HPAD), jnp.float32).at[:, :h_dims].set(b)
        return wp, bp

    w_mu, b_mu = p["fc_mu"]
    w_lv, b_lv = p["fc_log_var"]
    w_mu_p, b_mu_p = pad_cols(w_mu, b_mu)
    w_lv_p, b_lv_p = pad_cols(w_lv, b_lv)
    wmv = jnp.concatenate([w_mu_p, w_lv_p], axis=1)   # (128, 2*HPAD)
    bmv = jnp.concatenate([b_mu_p, b_lv_p], axis=1)   # (1, 2*HPAD)

    w_id, b_id = p["in_decoder"]                      # (h_dims, 128), (1, 128)
    wid = jnp.zeros((HPAD, 128), jnp.float32).at[:h_dims, :].set(w_id)

    flat = []
    for blk in p["enc"]:
        flat += [blk["w"], blk["b"], blk["g"], blk["beta"]]
    flat += [wmv, bmv, wid, b_id]
    for blk in p["dec"]:
        flat += [blk["w"], blk["b"], blk["g"], blk["beta"]]
    flat += list(p["dec_out"])
    return flat


# ----------------------------- forward -------------------------------------- #
def vae_forward(params, x_in, eps_key, h_dims, image=True, tile_b=None):
    if image:
        B, C, H, W = x_in.shape
        assert C == 1, "torch reference squeezes away a size-1 channel dim"
        x = x_in.reshape(B, H * W)              # 'B C H W -> B C (H W)' + squeeze(1)
    else:
        x = jnp.squeeze(x_in, axis=1)           # (B, 1, SR) -> (B, SR)
    B, in_dims = x.shape

    # Batch tile: multiple of 8 sublanes; larger tiles for larger batches.
    tile_b = tile_b or (8 if B <= 256 else 256)
    b_pad = pl.cdiv(B, tile_b) * tile_b
    if b_pad != B:
        x = jnp.pad(x, ((0, b_pad - B), (0, 0)))
    # eps ~ N(0,1); lane-padded to HPAD (padded cols are inert, see wid zeros).
    eps = jax.random.normal(eps_key, (b_pad, HPAD), jnp.float32)

    flat_w = _pack_params(params, h_dims)

    def batch_spec(width):
        return pl.BlockSpec((tile_b, width), lambda i: (i, 0))

    weight_specs = [pl.BlockSpec(w.shape, lambda i: (0, 0)) for w in flat_w]

    # Advisory cost estimate for XLA scheduling.
    mm = (in_dims * 1024 + 1024 * 512 + 512 * 256 + 256 * 128
          + 128 * 2 * HPAD + HPAD * 128
          + 128 * 256 + 256 * 512 + 512 * 1024 + 1024 * in_dims)
    weight_bytes = sum(int(w.size) for w in flat_w) * 4
    cost = pl.CostEstimate(
        flops=2 * b_pad * mm,
        transcendentals=b_pad * (7 + HPAD),  # 7 rsqrt rows + exp(0.5*logvar)
        bytes_accessed=weight_bytes
        + 4 * b_pad * (in_dims + HPAD)            # x, eps in
        + 4 * b_pad * (in_dims + 2 * HPAD),       # recon, mu, log_var out
    )

    recon, mu_p, lv_p = pl.pallas_call(
        vae_fused_kernel,
        out_shape=(
            jax.ShapeDtypeStruct((b_pad, in_dims), jnp.float32),
            jax.ShapeDtypeStruct((b_pad, HPAD), jnp.float32),
            jax.ShapeDtypeStruct((b_pad, HPAD), jnp.float32),
        ),
        grid_spec=pltpu.PrefetchScalarGridSpec(
            num_scalar_prefetch=0,
            grid=(b_pad // tile_b,),
            in_specs=[batch_spec(in_dims), batch_spec(HPAD)] + weight_specs,
            out_specs=[batch_spec(in_dims), batch_spec(HPAD), batch_spec(HPAD)],
        ),
        compiler_params=pltpu.CompilerParams(
            dimension_semantics=("parallel",),     # batch tiles split across TCs
            vmem_limit_bytes=48 * 1024 * 1024,     # fits v5e/v6e/v7x (<64 MiB phys)
        ),
        cost_estimate=cost,
    )(x, eps, *flat_w)

    return recon[:B], mu_p[:B, :h_dims], lv_p[:B, :h_dims]


# ----------------------------- main ----------------------------------------- #
if __name__ == "__main__":
    B, C, H, W = 2, 1, 16, 16   # C must be 1 (the torch code squeezes it away)
    in_dims = H * W             # 256
    h_dims = 10

    key = jax.random.PRNGKey(0)
    pkey, xkey, ekey = jax.random.split(key, 3)

    params = init_params(pkey, in_dims, h_dims)
    x = jax.random.normal(xkey, (B, C, H, W), jnp.float32)

    fwd = jax.jit(functools.partial(vae_forward, params, h_dims=h_dims))
    reconstructed, mu, log_var = fwd(x, ekey)
    jax.block_until_ready((reconstructed, mu, log_var))

    assert reconstructed.shape == (B, in_dims)
    assert mu.shape == (B, h_dims)
    assert log_var.shape == (B, h_dims)
    assert jnp.all(jnp.isfinite(reconstructed))
    assert jnp.all(jnp.isfinite(mu))
    assert jnp.all(jnp.isfinite(log_var))

    print("KERNEL_OK")
</pallas_src>

<mosaic_0001>
module attributes {stable_mosaic.version = 11 : i64} {
  func.func @vae_fused_kernel(%arg0: i32, %arg1: memref<8x256xf32, #tpu.memory_space<vmem>>, %arg2: memref<8x128xf32, #tpu.memory_space<vmem>>, %arg3: memref<256x1024xf32, #tpu.memory_space<vmem>>, %arg4: memref<1x1024xf32, #tpu.memory_space<vmem>>, %arg5: memref<1x1024xf32, #tpu.memory_space<vmem>>, %arg6: memref<1x1024xf32, #tpu.memory_space<vmem>>, %arg7: memref<1024x512xf32, #tpu.memory_space<vmem>>, %arg8: memref<1x512xf32, #tpu.memory_space<vmem>>, %arg9: memref<1x512xf32, #tpu.memory_space<vmem>>, %arg10: memref<1x512xf32, #tpu.memory_space<vmem>>, %arg11: memref<512x256xf32, #tpu.memory_space<vmem>>, %arg12: memref<1x256xf32, #tpu.memory_space<vmem>>, %arg13: memref<1x256xf32, #tpu.memory_space<vmem>>, %arg14: memref<1x256xf32, #tpu.memory_space<vmem>>, %arg15: memref<256x128xf32, #tpu.memory_space<vmem>>, %arg16: memref<1x128xf32, #tpu.memory_space<vmem>>, %arg17: memref<1x128xf32, #tpu.memory_space<vmem>>, %arg18: memref<1x128xf32, #tpu.memory_space<vmem>>, %arg19: memref<128x256xf32, #tpu.memory_space<vmem>>, %arg20: memref<1x256xf32, #tpu.memory_space<vmem>>, %arg21: memref<128x128xf32, #tpu.memory_space<vmem>>, %arg22: memref<1x128xf32, #tpu.memory_space<vmem>>, %arg23: memref<128x256xf32, #tpu.memory_space<vmem>>, %arg24: memref<1x256xf32, #tpu.memory_space<vmem>>, %arg25: memref<1x256xf32, #tpu.memory_space<vmem>>, %arg26: memref<1x256xf32, #tpu.memory_space<vmem>>, %arg27: memref<256x512xf32, #tpu.memory_space<vmem>>, %arg28: memref<1x512xf32, #tpu.memory_space<vmem>>, %arg29: memref<1x512xf32, #tpu.memory_space<vmem>>, %arg30: memref<1x512xf32, #tpu.memory_space<vmem>>, %arg31: memref<512x1024xf32, #tpu.memory_space<vmem>>, %arg32: memref<1x1024xf32, #tpu.memory_space<vmem>>, %arg33: memref<1x1024xf32, #tpu.memory_space<vmem>>, %arg34: memref<1x1024xf32, #tpu.memory_space<vmem>>, %arg35: memref<1024x256xf32, #tpu.memory_space<vmem>>, %arg36: memref<1x256xf32, #tpu.memory_space<vmem>>, %arg37: memref<8x256xf32, #tpu.memory_space<vmem>>, %arg38: memref<8x128xf32, #tpu.memory_space<vmem>>, %arg39: memref<8x128xf32, #tpu.memory_space<vmem>>) attributes {dimension_semantics = [#tpu.dimension_semantics<parallel>], iteration_bounds = array<i64: 1>, scalar_prefetch = 0 : i64, scratch_operands = 0 : i64, tpu.core_type = #tpu.core_type<tc>, window_params = [{transform_indices = @transform_0, window_bounds = array<i64: 8, 256>}, {transform_indices = @transform_1, window_bounds = array<i64: 8, 128>}, {pipeline_mode = #tpu.pipeline_mode<synchronous>, transform_indices = @transform_2, window_bounds = array<i64: 256, 1024>}, {pipeline_mode = #tpu.pipeline_mode<synchronous>, transform_indices = @transform_3, window_bounds = array<i64: 1, 1024>}, {pipeline_mode = #tpu.pipeline_mode<synchronous>, transform_indices = @transform_4, window_bounds = array<i64: 1, 1024>}, {pipeline_mode = #tpu.pipeline_mode<synchronous>, transform_indices = @transform_5, window_bounds = array<i64: 1, 1024>}, {pipeline_mode = #tpu.pipeline_mode<synchronous>, transform_indices = @transform_6, window_bounds = array<i64: 1024, 512>}, {pipeline_mode = #tpu.pipeline_mode<synchronous>, transform_indices = @transform_7, window_bounds = array<i64: 1, 512>}, {pipeline_mode = #tpu.pipeline_mode<synchronous>, transform_indices = @transform_8, window_bounds = array<i64: 1, 512>}, {pipeline_mode = #tpu.pipeline_mode<synchronous>, transform_indices = @transform_9, window_bounds = array<i64: 1, 512>}, {pipeline_mode = #tpu.pipeline_mode<synchronous>, transform_indices = @transform_10, window_bounds = array<i64: 512, 256>}, {pipeline_mode = #tpu.pipeline_mode<synchronous>, transform_indices = @transform_11, window_bounds = array<i64: 1, 256>}, {pipeline_mode = #tpu.pipeline_mode<synchronous>, transform_indices = @transform_12, window_bounds = array<i64: 1, 256>}, {pipeline_mode = #tpu.pipeline_mode<synchronous>, transform_indices = @transform_13, window_bounds = array<i64: 1, 256>}, {pipeline_mode = #tpu.pipeline_mode<synchronous>, transform_indices = @transform_14, window_bounds = array<i64: 256, 128>}, {pipeline_mode = #tpu.pipeline_mode<synchronous>, transform_indices = @transform_15, window_bounds = array<i64: 1, 128>}, {pipeline_mode = #tpu.pipeline_mode<synchronous>, transform_indices = @transform_16, window_bounds = array<i64: 1, 128>}, {pipeline_mode = #tpu.pipeline_mode<synchronous>, transform_indices = @transform_17, window_bounds = array<i64: 1, 128>}, {pipeline_mode = #tpu.pipeline_mode<synchronous>, transform_indices = @transform_18, window_bounds = array<i64: 128, 256>}, {pipeline_mode = #tpu.pipeline_mode<synchronous>, transform_indices = @transform_19, window_bounds = array<i64: 1, 256>}, {pipeline_mode = #tpu.pipeline_mode<synchronous>, transform_indices = @transform_20, window_bounds = array<i64: 128, 128>}, {pipeline_mode = #tpu.pipeline_mode<synchronous>, transform_indices = @transform_21, window_bounds = array<i64: 1, 128>}, {pipeline_mode = #tpu.pipeline_mode<synchronous>, transform_indices = @transform_22, window_bounds = array<i64: 128, 256>}, {pipeline_mode = #tpu.pipeline_mode<synchronous>, transform_indices = @transform_23, window_bounds = array<i64: 1, 256>}, {pipeline_mode = #tpu.pipeline_mode<synchronous>, transform_indices = @transform_24, window_bounds = array<i64: 1, 256>}, {pipeline_mode = #tpu.pipeline_mode<synchronous>, transform_indices = @transform_25, window_bounds = array<i64: 1, 256>}, {pipeline_mode = #tpu.pipeline_mode<synchronous>, transform_indices = @transform_26, window_bounds = array<i64: 256, 512>}, {pipeline_mode = #tpu.pipeline_mode<synchronous>, transform_indices = @transform_27, window_bounds = array<i64: 1, 512>}, {pipeline_mode = #tpu.pipeline_mode<synchronous>, transform_indices = @transform_28, window_bounds = array<i64: 1, 512>}, {pipeline_mode = #tpu.pipeline_mode<synchronous>, transform_indices = @transform_29, window_bounds = array<i64: 1, 512>}, {pipeline_mode = #tpu.pipeline_mode<synchronous>, transform_indices = @transform_30, window_bounds = array<i64: 512, 1024>}, {pipeline_mode = #tpu.pipeline_mode<synchronous>, transform_indices = @transform_31, window_bounds = array<i64: 1, 1024>}, {pipeline_mode = #tpu.pipeline_mode<synchronous>, transform_indices = @transform_32, window_bounds = array<i64: 1, 1024>}, {pipeline_mode = #tpu.pipeline_mode<synchronous>, transform_indices = @transform_33, window_bounds = array<i64: 1, 1024>}, {pipeline_mode = #tpu.pipeline_mode<synchronous>, transform_indices = @transform_34, window_bounds = array<i64: 1024, 256>}, {pipeline_mode = #tpu.pipeline_mode<synchronous>, transform_indices = @transform_35, window_bounds = array<i64: 1, 256>}, {transform_indices = @transform_36, window_bounds = array<i64: 8, 256>}, {transform_indices = @transform_37, window_bounds = array<i64: 8, 128>}, {transform_indices = @transform_38, window_bounds = array<i64: 8, 128>}]} {
    %c0 = arith.constant 0 : index
    %c0_0 = arith.constant 0 : index
    %0 = vector.load %arg1[%c0, %c0_0] : memref<8x256xf32, #tpu.memory_space<vmem>>, vector<8x256xf32>
    %c0_1 = arith.constant 0 : index
    %c0_2 = arith.constant 0 : index
    %1 = vector.load %arg3[%c0_1, %c0_2] : memref<256x1024xf32, #tpu.memory_space<vmem>>, vector<256x1024xf32>
    %cst = arith.constant dense<0.000000e+00> : vector<8x1024xf32>
    %2 = tpu.matmul %0, %1, %cst {dimension_numbers = #tpu.dot_dimension_numbers<[1], [0], [0], [1], [0, 0, 1, 1], [], []>} : vector<8x256xf32>, vector<256x1024xf32>, vector<8x1024xf32> -> vector<8x1024xf32>
    %c0_3 = arith.constant 0 : index
    %c0_4 = arith.constant 0 : index
    %3 = vector.load %arg4[%c0_3, %c0_4] : memref<1x1024xf32, #tpu.memory_space<vmem>>, vector<1x1024xf32>
    %4 = vector.broadcast %3 : vector<1x1024xf32> to vector<8x1024xf32>
    %5 = arith.addf %2, %4 : vector<8x1024xf32>
    %c0_5 = arith.constant 0 : index
    %c0_6 = arith.constant 0 : index
    %6 = vector.load %arg5[%c0_5, %c0_6] : memref<1x1024xf32, #tpu.memory_space<vmem>>, vector<1x1024xf32>
    %c0_7 = arith.constant 0 : index
    %c0_8 = arith.constant 0 : index
    %7 = vector.load %arg6[%c0_7, %c0_8] : memref<1x1024xf32, #tpu.memory_space<vmem>>, vector<1x1024xf32>
    %cst_9 = arith.constant dense<0.000000e+00> : vector<8xf32>
    %8 = vector.multi_reduction <add>, %5, %cst_9 [1] : vector<8x1024xf32> to vector<8xf32>
    %9 = vector.shape_cast %8 : vector<8xf32> to vector<8x1xf32>
    %cst_10 = arith.constant 1.024000e+03 : f32
    %10 = vector.broadcast %cst_10 : f32 to vector<8x1xf32>
    %11 = arith.divf %9, %10 : vector<8x1xf32>
    %12 = arith.mulf %5, %5 : vector<8x1024xf32>
    %cst_11 = arith.constant dense<0.000000e+00> : vector<8xf32>
    %13 = vector.multi_reduction <add>, %12, %cst_11 [1] : vector<8x1024xf32> to vector<8xf32>
    %14 = vector.shape_cast %13 : vector<8xf32> to vector<8x1xf32>
    %cst_12 = arith.constant 1.024000e+03 : f32
    %15 = vector.broadcast %cst_12 : f32 to vector<8x1xf32>
    %16 = arith.divf %14, %15 : vector<8x1xf32>
    %17 = arith.mulf %11, %11 : vector<8x1xf32>
    %18 = arith.subf %16, %17 : vector<8x1xf32>
    %19 = vector.broadcast %11 : vector<8x1xf32> to vector<8x1024xf32>
    %20 = arith.subf %5, %19 : vector<8x1024xf32>
    %cst_13 = arith.constant 9.99999974E-6 : f32
    %21 = vector.broadcast %cst_13 : f32 to vector<8x1xf32>
    %22 = arith.addf %18, %21 : vector<8x1xf32>
    %23 = math.rsqrt %22 : vector<8x1xf32>
    %24 = vector.broadcast %23 : vector<8x1xf32> to vector<8x1024xf32>
    %25 = arith.mulf %20, %24 : vector<8x1024xf32>
    %26 = vector.broadcast %6 : vector<1x1024xf32> to vector<8x1024xf32>
    %27 = arith.mulf %25, %26 : vector<8x1024xf32>
    %28 = vector.broadcast %7 : vector<1x1024xf32> to vector<8x1024xf32>
    %29 = arith.addf %27, %28 : vector<8x1024xf32>
    %cst_14 = arith.constant 0.000000e+00 : f32
    %30 = vector.broadcast %cst_14 : f32 to vector<8x1024xf32>
    %31 = arith.maximumf %29, %30 : vector<8x1024xf32>
    %c0_15 = arith.constant 0 : index
    %c0_16 = arith.constant 0 : index
    %32 = vector.load %arg7[%c0_15, %c0_16] : memref<1024x512xf32, #tpu.memory_space<vmem>>, vector<1024x512xf32>
    %cst_17 = arith.constant dense<0.000000e+00> : vector<8x512xf32>
    %33 = tpu.matmul %31, %32, %cst_17 {dimension_numbers = #tpu.dot_dimension_numbers<[1], [0], [0], [1], [0, 0, 1, 1], [], []>} : vector<8x1024xf32>, vector<1024x512xf32>, vector<8x512xf32> -> vector<8x512xf32>
    %c0_18 = arith.constant 0 : index
    %c0_19 = arith.constant 0 : index
    %34 = vector.load %arg8[%c0_18, %c0_19] : memref<1x512xf32, #tpu.memory_space<vmem>>, vector<1x512xf32>
    %35 = vector.broadcast %34 : vector<1x512xf32> to vector<8x512xf32>
    %36 = arith.addf %33, %35 : vector<8x512xf32>
    %c0_20 = arith.constant 0 : index
    %c0_21 = arith.constant 0 : index
    %37 = vector.load %arg9[%c0_20, %c0_21] : memref<1x512xf32, #tpu.memory_space<vmem>>, vector<1x512xf32>
    %c0_22 = arith.constant 0 : index
    %c0_23 = arith.constant 0 : index
    %38 = vector.load %arg10[%c0_22, %c0_23] : memref<1x512xf32, #tpu.memory_space<vmem>>, vector<1x512xf32>
    %cst_24 = arith.constant dense<0.000000e+00> : vector<8xf32>
    %39 = vector.multi_reduction <add>, %36, %cst_24 [1] : vector<8x512xf32> to vector<8xf32>
    %40 = vector.shape_cast %39 : vector<8xf32> to vector<8x1xf32>
    %cst_25 = arith.constant 5.120000e+02 : f32
    %41 = vector.broadcast %cst_25 : f32 to vector<8x1xf32>
    %42 = arith.divf %40, %41 : vector<8x1xf32>
    %43 = arith.mulf %36, %36 : vector<8x512xf32>
    %cst_26 = arith.constant dense<0.000000e+00> : vector<8xf32>
    %44 = vector.multi_reduction <add>, %43, %cst_26 [1] : vector<8x512xf32> to vector<8xf32>
    %45 = vector.shape_cast %44 : vector<8xf32> to vector<8x1xf32>
    %cst_27 = arith.constant 5.120000e+02 : f32
    %46 = vector.broadcast %cst_27 : f32 to vector<8x1xf32>
    %47 = arith.divf %45, %46 : vector<8x1xf32>
    %48 = arith.mulf %42, %42 : vector<8x1xf32>
    %49 = arith.subf %47, %48 : vector<8x1xf32>
    %50 = vector.broadcast %42 : vector<8x1xf32> to vector<8x512xf32>
    %51 = arith.subf %36, %50 : vector<8x512xf32>
    %cst_28 = arith.constant 9.99999974E-6 : f32
    %52 = vector.broadcast %cst_28 : f32 to vector<8x1xf32>
    %53 = arith.addf %49, %52 : vector<8x1xf32>
    %54 = math.rsqrt %53 : vector<8x1xf32>
    %55 = vector.broadcast %54 : vector<8x1xf32> to vector<8x512xf32>
    %56 = arith.mulf %51, %55 : vector<8x512xf32>
    %57 = vector.broadcast %37 : vector<1x512xf32> to vector<8x512xf32>
    %58 = arith.mulf %56, %57 : vector<8x512xf32>
    %59 = vector.broadcast %38 : vector<1x512xf32> to vector<8x512xf32>
    %60 = arith.addf %58, %59 : vector<8x512xf32>
    %cst_29 = arith.constant 0.000000e+00 : f32
    %61 = vector.broadcast %cst_29 : f32 to vector<8x512xf32>
    %62 = arith.maximumf %60, %61 : vector<8x512xf32>
    %c0_30 = arith.constant 0 : index
    %c0_31 = arith.constant 0 : index
    %63 = vector.load %arg11[%c0_30, %c0_31] : memref<512x256xf32, #tpu.memory_space<vmem>>, vector<512x256xf32>
    %cst_32 = arith.constant dense<0.000000e+00> : vector<8x256xf32>
    %64 = tpu.matmul %62, %63, %cst_32 {dimension_numbers = #tpu.dot_dimension_numbers<[1], [0], [0], [1], [0, 0, 1, 1], [], []>} : vector<8x512xf32>, vector<512x256xf32>, vector<8x256xf32> -> vector<8x256xf32>
    %c0_33 = arith.constant 0 : index
    %c0_34 = arith.constant 0 : index
    %65 = vector.load %arg12[%c0_33, %c0_34] : memref<1x256xf32, #tpu.memory_space<vmem>>, vector<1x256xf32>
    %66 = vector.broadcast %65 : vector<1x256xf32> to vector<8x256xf32>
    %67 = arith.addf %64, %66 : vector<8x256xf32>
    %c0_35 = arith.constant 0 : index
    %c0_36 = arith.constant 0 : index
    %68 = vector.load %arg13[%c0_35, %c0_36] : memref<1x256xf32, #tpu.memory_space<vmem>>, vector<1x256xf32>
    %c0_37 = arith.constant 0 : index
    %c0_38 = arith.constant 0 : index
    %69 = vector.load %arg14[%c0_37, %c0_38] : memref<1x256xf32, #tpu.memory_space<vmem>>, vector<1x256xf32>
    %cst_39 = arith.constant dense<0.000000e+00> : vector<8xf32>
    %70 = vector.multi_reduction <add>, %67, %cst_39 [1] : vector<8x256xf32> to vector<8xf32>
    %71 = vector.shape_cast %70 : vector<8xf32> to vector<8x1xf32>
    %cst_40 = arith.constant 2.560000e+02 : f32
    %72 = vector.broadcast %cst_40 : f32 to vector<8x1xf32>
    %73 = arith.divf %71, %72 : vector<8x1xf32>
    %74 = arith.mulf %67, %67 : vector<8x256xf32>
    %cst_41 = arith.constant dense<0.000000e+00> : vector<8xf32>
    %75 = vector.multi_reduction <add>, %74, %cst_41 [1] : vector<8x256xf32> to vector<8xf32>
    %76 = vector.shape_cast %75 : vector<8xf32> to vector<8x1xf32>
    %cst_42 = arith.constant 2.560000e+02 : f32
    %77 = vector.broadcast %cst_42 : f32 to vector<8x1xf32>
    %78 = arith.divf %76, %77 : vector<8x1xf32>
    %79 = arith.mulf %73, %73 : vector<8x1xf32>
    %80 = arith.subf %78, %79 : vector<8x1xf32>
    %81 = vector.broadcast %73 : vector<8x1xf32> to vector<8x256xf32>
    %82 = arith.subf %67, %81 : vector<8x256xf32>
    %cst_43 = arith.constant 9.99999974E-6 : f32
    %83 = vector.broadcast %cst_43 : f32 to vector<8x1xf32>
    %84 = arith.addf %80, %83 : vector<8x1xf32>
    %85 = math.rsqrt %84 : vector<8x1xf32>
    %86 = vector.broadcast %85 : vector<8x1xf32> to vector<8x256xf32>
    %87 = arith.mulf %82, %86 : vector<8x256xf32>
    %88 = vector.broadcast %68 : vector<1x256xf32> to vector<8x256xf32>
    %89 = arith.mulf %87, %88 : vector<8x256xf32>
    %90 = vector.broadcast %69 : vector<1x256xf32> to vector<8x256xf32>
    %91 = arith.addf %89, %90 : vector<8x256xf32>
    %cst_44 = arith.constant 0.000000e+00 : f32
    %92 = vector.broadcast %cst_44 : f32 to vector<8x256xf32>
    %93 = arith.maximumf %91, %92 : vector<8x256xf32>
    %c0_45 = arith.constant 0 : index
    %c0_46 = arith.constant 0 : index
    %94 = vector.load %arg15[%c0_45, %c0_46] : memref<256x128xf32, #tpu.memory_space<vmem>>, vector<256x128xf32>
    %cst_47 = arith.constant dense<0.000000e+00> : vector<8x128xf32>
    %95 = tpu.matmul %93, %94, %cst_47 {dimension_numbers = #tpu.dot_dimension_numbers<[1], [0], [0], [1], [0, 0, 1, 1], [], []>} : vector<8x256xf32>, vector<256x128xf32>, vector<8x128xf32> -> vector<8x128xf32>
    %c0_48 = arith.constant 0 : index
    %c0_49 = arith.constant 0 : index
    %96 = vector.load %arg16[%c0_48, %c0_49] : memref<1x128xf32, #tpu.memory_space<vmem>>, vector<1x128xf32>
    %97 = vector.broadcast %96 : vector<1x128xf32> to vector<8x128xf32>
    %98 = arith.addf %95, %97 : vector<8x128xf32>
    %c0_50 = arith.constant 0 : index
    %c0_51 = arith.constant 0 : index
    %99 = vector.load %arg17[%c0_50, %c0_51] : memref<1x128xf32, #tpu.memory_space<vmem>>, vector<1x128xf32>
    %c0_52 = arith.constant 0 : index
    %c0_53 = arith.constant 0 : index
    %100 = vector.load %arg18[%c0_52, %c0_53] : memref<1x128xf32, #tpu.memory_space<vmem>>, vector<1x128xf32>
    %cst_54 = arith.constant dense<0.000000e+00> : vector<8xf32>
    %101 = vector.multi_reduction <add>, %98, %cst_54 [1] : vector<8x128xf32> to vector<8xf32>
    %102 = vector.shape_cast %101 : vector<8xf32> to vector<8x1xf32>
    %cst_55 = arith.constant 1.280000e+02 : f32
    %103 = vector.broadcast %cst_55 : f32 to vector<8x1xf32>
    %104 = arith.divf %102, %103 : vector<8x1xf32>
    %105 = arith.mulf %98, %98 : vector<8x128xf32>
    %cst_56 = arith.constant dense<0.000000e+00> : vector<8xf32>
    %106 = vector.multi_reduction <add>, %105, %cst_56 [1] : vector<8x128xf32> to vector<8xf32>
    %107 = vector.shape_cast %106 : vector<8xf32> to vector<8x1xf32>
    %cst_57 = arith.constant 1.280000e+02 : f32
    %108 = vector.broadcast %cst_57 : f32 to vector<8x1xf32>
    %109 = arith.divf %107, %108 : vector<8x1xf32>
    %110 = arith.mulf %104, %104 : vector<8x1xf32>
    %111 = arith.subf %109, %110 : vector<8x1xf32>
    %112 = vector.broadcast %104 : vector<8x1xf32> to vector<8x128xf32>
    %113 = arith.subf %98, %112 : vector<8x128xf32>
    %cst_58 = arith.constant 9.99999974E-6 : f32
    %114 = vector.broadcast %cst_58 : f32 to vector<8x1xf32>
    %115 = arith.addf %111, %114 : vector<8x1xf32>
    %116 = math.rsqrt %115 : vector<8x1xf32>
    %117 = vector.broadcast %116 : vector<8x1xf32> to vector<8x128xf32>
    %118 = arith.mulf %113, %117 : vector<8x128xf32>
    %119 = vector.broadcast %99 : vector<1x128xf32> to vector<8x128xf32>
    %120 = arith.mulf %118, %119 : vector<8x128xf32>
    %121 = vector.broadcast %100 : vector<1x128xf32> to vector<8x128xf32>
    %122 = arith.addf %120, %121 : vector<8x128xf32>
    %cst_59 = arith.constant 0.000000e+00 : f32
    %123 = vector.broadcast %cst_59 : f32 to vector<8x128xf32>
    %124 = arith.maximumf %122, %123 : vector<8x128xf32>
    %c0_60 = arith.constant 0 : index
    %c0_61 = arith.constant 0 : index
    %125 = vector.load %arg19[%c0_60, %c0_61] : memref<128x256xf32, #tpu.memory_space<vmem>>, vector<128x256xf32>
    %cst_62 = arith.constant dense<0.000000e+00> : vector<8x256xf32>
    %126 = tpu.matmul %124, %125, %cst_62 {dimension_numbers = #tpu.dot_dimension_numbers<[1], [0], [0], [1], [0, 0, 1, 1], [], []>} : vector<8x128xf32>, vector<128x256xf32>, vector<8x256xf32> -> vector<8x256xf32>
    %c0_63 = arith.constant 0 : index
    %c0_64 = arith.constant 0 : index
    %127 = vector.load %arg20[%c0_63, %c0_64] : memref<1x256xf32, #tpu.memory_space<vmem>>, vector<1x256xf32>
    %128 = vector.broadcast %127 : vector<1x256xf32> to vector<8x256xf32>
    %129 = arith.addf %126, %128 : vector<8x256xf32>
    %130 = vector.extract_strided_slice %129 {offsets = [0, 0], sizes = [8, 128], strides = [1, 1]} : vector<8x256xf32> to vector<8x128xf32>
    %131 = vector.extract_strided_slice %129 {offsets = [0, 128], sizes = [8, 128], strides = [1, 1]} : vector<8x256xf32> to vector<8x128xf32>
    %c0_65 = arith.constant 0 : index
    %c0_66 = arith.constant 0 : index
    %132 = vector.load %arg38[%c0_65, %c0_66] : memref<8x128xf32, #tpu.memory_space<vmem>>, vector<8x128xf32>
    tpu.vector_store %arg38[%c0_65, %c0_66], %130 {strides = array<i32>} : memref<8x128xf32, #tpu.memory_space<vmem>>, vector<8x128xf32>,
    %c0_67 = arith.constant 0 : index
    %c0_68 = arith.constant 0 : index
    %133 = vector.load %arg39[%c0_67, %c0_68] : memref<8x128xf32, #tpu.memory_space<vmem>>, vector<8x128xf32>
    tpu.vector_store %arg39[%c0_67, %c0_68], %131 {strides = array<i32>} : memref<8x128xf32, #tpu.memory_space<vmem>>, vector<8x128xf32>,
    %c0_69 = arith.constant 0 : index
    %c0_70 = arith.constant 0 : index
    %134 = vector.load %arg2[%c0_69, %c0_70] : memref<8x128xf32, #tpu.memory_space<vmem>>, vector<8x128xf32>
    %cst_71 = arith.constant 5.000000e-01 : f32
    %135 = vector.broadcast %cst_71 : f32 to vector<8x128xf32>
    %136 = arith.mulf %135, %131 : vector<8x128xf32>
    %137 = math.exp %136 : vector<8x128xf32>
    %138 = arith.mulf %134, %137 : vector<8x128xf32>
    %139 = arith.addf %130, %138 : vector<8x128xf32>
    %c0_72 = arith.constant 0 : index
    %c0_73 = arith.constant 0 : index
    %140 = vector.load %arg21[%c0_72, %c0_73] : memref<128x128xf32, #tpu.memory_space<vmem>>, vector<128x128xf32>
    %cst_74 = arith.constant dense<0.000000e+00> : vector<8x128xf32>
    %141 = tpu.matmul %139, %140, %cst_74 {dimension_numbers = #tpu.dot_dimension_numbers<[1], [0], [0], [1], [0, 0, 1, 1], [], []>} : vector<8x128xf32>, vector<128x128xf32>, vector<8x128xf32> -> vector<8x128xf32>
    %c0_75 = arith.constant 0 : index
    %c0_76 = arith.constant 0 : index
    %142 = vector.load %arg22[%c0_75, %c0_76] : memref<1x128xf32, #tpu.memory_space<vmem>>, vector<1x128xf32>
    %143 = vector.broadcast %142 : vector<1x128xf32> to vector<8x128xf32>
    %144 = arith.addf %141, %143 : vector<8x128xf32>
    %c0_77 = arith.constant 0 : index
    %c0_78 = arith.constant 0 : index
    %145 = vector.load %arg23[%c0_77, %c0_78] : memref<128x256xf32, #tpu.memory_space<vmem>>, vector<128x256xf32>
    %cst_79 = arith.constant dense<0.000000e+00> : vector<8x256xf32>
    %146 = tpu.matmul %144, %145, %cst_79 {dimension_numbers = #tpu.dot_dimension_numbers<[1], [0], [0], [1], [0, 0, 1, 1], [], []>} : vector<8x128xf32>, vector<128x256xf32>, vector<8x256xf32> -> vector<8x256xf32>
    %c0_80 = arith.constant 0 : index
    %c0_81 = arith.constant 0 : index
    %147 = vector.load %arg24[%c0_80, %c0_81] : memref<1x256xf32, #tpu.memory_space<vmem>>, vector<1x256xf32>
    %148 = vector.broadcast %147 : vector<1x256xf32> to vector<8x256xf32>
    %149 = arith.addf %146, %148 : vector<8x256xf32>
    %c0_82 = arith.constant 0 : index
    %c0_83 = arith.constant 0 : index
    %150 = vector.load %arg25[%c0_82, %c0_83] : memref<1x256xf32, #tpu.memory_space<vmem>>, vector<1x256xf32>
    %c0_84 = arith.constant 0 : index
    %c0_85 = arith.constant 0 : index
    %151 = vector.load %arg26[%c0_84, %c0_85] : memref<1x256xf32, #tpu.memory_space<vmem>>, vector<1x256xf32>
    %cst_86 = arith.constant dense<0.000000e+00> : vector<8xf32>
    %152 = vector.multi_reduction <add>, %149, %cst_86 [1] : vector<8x256xf32> to vector<8xf32>
    %153 = vector.shape_cast %152 : vector<8xf32> to vector<8x1xf32>
    %cst_87 = arith.constant 2.560000e+02 : f32
    %154 = vector.broadcast %cst_87 : f32 to vector<8x1xf32>
    %155 = arith.divf %153, %154 : vector<8x1xf32>
    %156 = arith.mulf %149, %149 : vector<8x256xf32>
    %cst_88 = arith.constant dense<0.000000e+00> : vector<8xf32>
    %157 = vector.multi_reduction <add>, %156, %cst_88 [1] : vector<8x256xf32> to vector<8xf32>
    %158 = vector.shape_cast %157 : vector<8xf32> to vector<8x1xf32>
    %cst_89 = arith.constant 2.560000e+02 : f32
    %159 = vector.broadcast %cst_89 : f32 to vector<8x1xf32>
    %160 = arith.divf %158, %159 : vector<8x1xf32>
    %161 = arith.mulf %155, %155 : vector<8x1xf32>
    %162 = arith.subf %160, %161 : vector<8x1xf32>
    %163 = vector.broadcast %155 : vector<8x1xf32> to vector<8x256xf32>
    %164 = arith.subf %149, %163 : vector<8x256xf32>
    %cst_90 = arith.constant 9.99999974E-6 : f32
    %165 = vector.broadcast %cst_90 : f32 to vector<8x1xf32>
    %166 = arith.addf %162, %165 : vector<8x1xf32>
    %167 = math.rsqrt %166 : vector<8x1xf32>
    %168 = vector.broadcast %167 : vector<8x1xf32> to vector<8x256xf32>
    %169 = arith.mulf %164, %168 : vector<8x256xf32>
    %170 = vector.broadcast %150 : vector<1x256xf32> to vector<8x256xf32>
    %171 = arith.mulf %169, %170 : vector<8x256xf32>
    %172 = vector.broadcast %151 : vector<1x256xf32> to vector<8x256xf32>
    %173 = arith.addf %171, %172 : vector<8x256xf32>
    %cst_91 = arith.constant 0.000000e+00 : f32
    %174 = vector.broadcast %cst_91 : f32 to vector<8x256xf32>
    %175 = arith.maximumf %173, %174 : vector<8x256xf32>
    %c0_92 = arith.constant 0 : index
    %c0_93 = arith.constant 0 : index
    %176 = vector.load %arg27[%c0_92, %c0_93] : memref<256x512xf32, #tpu.memory_space<vmem>>, vector<256x512xf32>
    %cst_94 = arith.constant dense<0.000000e+00> : vector<8x512xf32>
    %177 = tpu.matmul %175, %176, %cst_94 {dimension_numbers = #tpu.dot_dimension_numbers<[1], [0], [0], [1], [0, 0, 1, 1], [], []>} : vector<8x256xf32>, vector<256x512xf32>, vector<8x512xf32> -> vector<8x512xf32>
    %c0_95 = arith.constant 0 : index
    %c0_96 = arith.constant 0 : index
    %178 = vector.load %arg28[%c0_95, %c0_96] : memref<1x512xf32, #tpu.memory_space<vmem>>, vector<1x512xf32>
    %179 = vector.broadcast %178 : vector<1x512xf32> to vector<8x512xf32>
    %180 = arith.addf %177, %179 : vector<8x512xf32>
    %c0_97 = arith.constant 0 : index
    %c0_98 = arith.constant 0 : index
    %181 = vector.load %arg29[%c0_97, %c0_98] : memref<1x512xf32, #tpu.memory_space<vmem>>, vector<1x512xf32>
    %c0_99 = arith.constant 0 : index
    %c0_100 = arith.constant 0 : index
    %182 = vector.load %arg30[%c0_99, %c0_100] : memref<1x512xf32, #tpu.memory_space<vmem>>, vector<1x512xf32>
    %cst_101 = arith.constant dense<0.000000e+00> : vector<8xf32>
    %183 = vector.multi_reduction <add>, %180, %cst_101 [1] : vector<8x512xf32> to vector<8xf32>
    %184 = vector.shape_cast %183 : vector<8xf32> to vector<8x1xf32>
    %cst_102 = arith.constant 5.120000e+02 : f32
    %185 = vector.broadcast %cst_102 : f32 to vector<8x1xf32>
    %186 = arith.divf %184, %185 : vector<8x1xf32>
    %187 = arith.mulf %180, %180 : vector<8x512xf32>
    %cst_103 = arith.constant dense<0.000000e+00> : vector<8xf32>
    %188 = vector.multi_reduction <add>, %187, %cst_103 [1] : vector<8x512xf32> to vector<8xf32>
    %189 = vector.shape_cast %188 : vector<8xf32> to vector<8x1xf32>
    %cst_104 = arith.constant 5.120000e+02 : f32
    %190 = vector.broadcast %cst_104 : f32 to vector<8x1xf32>
    %191 = arith.divf %189, %190 : vector<8x1xf32>
    %192 = arith.mulf %186, %186 : vector<8x1xf32>
    %193 = arith.subf %191, %192 : vector<8x1xf32>
    %194 = vector.broadcast %186 : vector<8x1xf32> to vector<8x512xf32>
    %195 = arith.subf %180, %194 : vector<8x512xf32>
    %cst_105 = arith.constant 9.99999974E-6 : f32
    %196 = vector.broadcast %cst_105 : f32 to vector<8x1xf32>
    %197 = arith.addf %193, %196 : vector<8x1xf32>
    %198 = math.rsqrt %197 : vector<8x1xf32>
    %199 = vector.broadcast %198 : vector<8x1xf32> to vector<8x512xf32>
    %200 = arith.mulf %195, %199 : vector<8x512xf32>
    %201 = vector.broadcast %181 : vector<1x512xf32> to vector<8x512xf32>
    %202 = arith.mulf %200, %201 : vector<8x512xf32>
    %203 = vector.broadcast %182 : vector<1x512xf32> to vector<8x512xf32>
    %204 = arith.addf %202, %203 : vector<8x512xf32>
    %cst_106 = arith.constant 0.000000e+00 : f32
    %205 = vector.broadcast %cst_106 : f32 to vector<8x512xf32>
    %206 = arith.maximumf %204, %205 : vector<8x512xf32>
    %c0_107 = arith.constant 0 : index
    %c0_108 = arith.constant 0 : index
    %207 = vector.load %arg31[%c0_107, %c0_108] : memref<512x1024xf32, #tpu.memory_space<vmem>>, vector<512x1024xf32>
    %cst_109 = arith.constant dense<0.000000e+00> : vector<8x1024xf32>
    %208 = tpu.matmul %206, %207, %cst_109 {dimension_numbers = #tpu.dot_dimension_numbers<[1], [0], [0], [1], [0, 0, 1, 1], [], []>} : vector<8x512xf32>, vector<512x1024xf32>, vector<8x1024xf32> -> vector<8x1024xf32>
    %c0_110 = arith.constant 0 : index
    %c0_111 = arith.constant 0 : index
    %209 = vector.load %arg32[%c0_110, %c0_111] : memref<1x1024xf32, #tpu.memory_space<vmem>>, vector<1x1024xf32>
    %210 = vector.broadcast %209 : vector<1x1024xf32> to vector<8x1024xf32>
    %211 = arith.addf %208, %210 : vector<8x1024xf32>
    %c0_112 = arith.constant 0 : index
    %c0_113 = arith.constant 0 : index
    %212 = vector.load %arg33[%c0_112, %c0_113] : memref<1x1024xf32, #tpu.memory_space<vmem>>, vector<1x1024xf32>
    %c0_114 = arith.constant 0 : index
    %c0_115 = arith.constant 0 : index
    %213 = vector.load %arg34[%c0_114, %c0_115] : memref<1x1024xf32, #tpu.memory_space<vmem>>, vector<1x1024xf32>
    %cst_116 = arith.constant dense<0.000000e+00> : vector<8xf32>
    %214 = vector.multi_reduction <add>, %211, %cst_116 [1] : vector<8x1024xf32> to vector<8xf32>
    %215 = vector.shape_cast %214 : vector<8xf32> to vector<8x1xf32>
    %cst_117 = arith.constant 1.024000e+03 : f32
    %216 = vector.broadcast %cst_117 : f32 to vector<8x1xf32>
    %217 = arith.divf %215, %216 : vector<8x1xf32>
    %218 = arith.mulf %211, %211 : vector<8x1024xf32>
    %cst_118 = arith.constant dense<0.000000e+00> : vector<8xf32>
    %219 = vector.multi_reduction <add>, %218, %cst_118 [1] : vector<8x1024xf32> to vector<8xf32>
    %220 = vector.shape_cast %219 : vector<8xf32> to vector<8x1xf32>
    %cst_119 = arith.constant 1.024000e+03 : f32
    %221 = vector.broadcast %cst_119 : f32 to vector<8x1xf32>
    %222 = arith.divf %220, %221 : vector<8x1xf32>
    %223 = arith.mulf %217, %217 : vector<8x1xf32>
    %224 = arith.subf %222, %223 : vector<8x1xf32>
    %225 = vector.broadcast %217 : vector<8x1xf32> to vector<8x1024xf32>
    %226 = arith.subf %211, %225 : vector<8x1024xf32>
    %cst_120 = arith.constant 9.99999974E-6 : f32
    %227 = vector.broadcast %cst_120 : f32 to vector<8x1xf32>
    %228 = arith.addf %224, %227 : vector<8x1xf32>
    %229 = math.rsqrt %228 : vector<8x1xf32>
    %230 = vector.broadcast %229 : vector<8x1xf32> to vector<8x1024xf32>
    %231 = arith.mulf %226, %230 : vector<8x1024xf32>
    %232 = vector.broadcast %212 : vector<1x1024xf32> to vector<8x1024xf32>
    %233 = arith.mulf %231, %232 : vector<8x1024xf32>
    %234 = vector.broadcast %213 : vector<1x1024xf32> to vector<8x1024xf32>
    %235 = arith.addf %233, %234 : vector<8x1024xf32>
    %cst_121 = arith.constant 0.000000e+00 : f32
    %236 = vector.broadcast %cst_121 : f32 to vector<8x1024xf32>
    %237 = arith.maximumf %235, %236 : vector<8x1024xf32>
    %c0_122 = arith.constant 0 : index
    %c0_123 = arith.constant 0 : index
    %238 = vector.load %arg35[%c0_122, %c0_123] : memref<1024x256xf32, #tpu.memory_space<vmem>>, vector<1024x256xf32>
    %cst_124 = arith.constant dense<0.000000e+00> : vector<8x256xf32>
    %239 = tpu.matmul %237, %238, %cst_124 {dimension_numbers = #tpu.dot_dimension_numbers<[1], [0], [0], [1], [0, 0, 1, 1], [], []>} : vector<8x1024xf32>, vector<1024x256xf32>, vector<8x256xf32> -> vector<8x256xf32>
    %c0_125 = arith.constant 0 : index
    %c0_126 = arith.constant 0 : index
    %240 = vector.load %arg36[%c0_125, %c0_126] : memref<1x256xf32, #tpu.memory_space<vmem>>, vector<1x256xf32>
    %241 = vector.broadcast %240 : vector<1x256xf32> to vector<8x256xf32>
    %242 = arith.addf %239, %241 : vector<8x256xf32>
    %c0_127 = arith.constant 0 : index
    %c0_128 = arith.constant 0 : index
    %243 = vector.load %arg37[%c0_127, %c0_128] : memref<8x256xf32, #tpu.memory_space<vmem>>, vector<8x256xf32>
    tpu.vector_store %arg37[%c0_127, %c0_128], %242 {strides = array<i32>} : memref<8x256xf32, #tpu.memory_space<vmem>>, vector<8x256xf32>,
    return
  }
  func.func @transform_0(%arg0: i32) -> (i32, i32) {
    %c0_i32 = arith.constant 0 : i32
    %c0_i32_0 = arith.constant 0 : i32
    return %arg0, %c0_i32 : i32, i32
  }
  func.func @transform_1(%arg0: i32) -> (i32, i32) {
    %c0_i32 = arith.constant 0 : i32
    %c0_i32_0 = arith.constant 0 : i32
    return %arg0, %c0_i32 : i32, i32
  }
  func.func @transform_2(%arg0: i32) -> (i32, i32) {
    %c0_i32 = arith.constant 0 : i32
    %c0_i32_0 = arith.constant 0 : i32
    %c0_i32_1 = arith.constant 0 : i32
    return %c0_i32, %c0_i32_0 : i32, i32
  }
  func.func @transform_3(%arg0: i32) -> (i32, i32) {
    %c0_i32 = arith.constant 0 : i32
    %c0_i32_0 = arith.constant 0 : i32
    %c0_i32_1 = arith.constant 0 : i32
    return %c0_i32, %c0_i32_0 : i32, i32
  }
  func.func @transform_4(%arg0: i32) -> (i32, i32) {
    %c0_i32 = arith.constant 0 : i32
    %c0_i32_0 = arith.constant 0 : i32
    %c0_i32_1 = arith.constant 0 : i32
    return %c0_i32, %c0_i32_0 : i32, i32
  }
  func.func @transform_5(%arg0: i32) -> (i32, i32) {
    %c0_i32 = arith.constant 0 : i32
    %c0_i32_0 = arith.constant 0 : i32
    %c0_i32_1 = arith.constant 0 : i32
    return %c0_i32, %c0_i32_0 : i32, i32
  }
  func.func @transform_6(%arg0: i32) -> (i32, i32) {
    %c0_i32 = arith.constant 0 : i32
    %c0_i32_0 = arith.constant 0 : i32
    %c0_i32_1 = arith.constant 0 : i32
    return %c0_i32, %c0_i32_0 : i32, i32
  }
  func.func @transform_7(%arg0: i32) -> (i32, i32) {
    %c0_i32 = arith.constant 0 : i32
    %c0_i32_0 = arith.constant 0 : i32
    %c0_i32_1 = arith.constant 0 : i32
    return %c0_i32, %c0_i32_0 : i32, i32
  }
  func.func @transform_8(%arg0: i32) -> (i32, i32) {
    %c0_i32 = arith.constant 0 : i32
    %c0_i32_0 = arith.constant 0 : i32
    %c0_i32_1 = arith.constant 0 : i32
    return %c0_i32, %c0_i32_0 : i32, i32
  }
  func.func @transform_9(%arg0: i32) -> (i32, i32) {
    %c0_i32 = arith.constant 0 : i32
    %c0_i32_0 = arith.constant 0 : i32
    %c0_i32_1 = arith.constant 0 : i32
    return %c0_i32, %c0_i32_0 : i32, i32
  }
  func.func @transform_10(%arg0: i32) -> (i32, i32) {
    %c0_i32 = arith.constant 0 : i32
    %c0_i32_0 = arith.constant 0 : i32
    %c0_i32_1 = arith.constant 0 : i32
    return %c0_i32, %c0_i32_0 : i32, i32
  }
  func.func @transform_11(%arg0: i32) -> (i32, i32) {
    %c0_i32 = arith.constant 0 : i32
    %c0_i32_0 = arith.constant 0 : i32
    %c0_i32_1 = arith.constant 0 : i32
    return %c0_i32, %c0_i32_0 : i32, i32
  }
  func.func @transform_12(%arg0: i32) -> (i32, i32) {
    %c0_i32 = arith.constant 0 : i32
    %c0_i32_0 = arith.constant 0 : i32
    %c0_i32_1 = arith.constant 0 : i32
    return %c0_i32, %c0_i32_0 : i32, i32
  }
  func.func @transform_13(%arg0: i32) -> (i32, i32) {
    %c0_i32 = arith.constant 0 : i32
    %c0_i32_0 = arith.constant 0 : i32
    %c0_i32_1 = arith.constant 0 : i32
    return %c0_i32, %c0_i32_0 : i32, i32
  }
  func.func @transform_14(%arg0: i32) -> (i32, i32) {
    %c0_i32 = arith.constant 0 : i32
    %c0_i32_0 = arith.constant 0 : i32
    %c0_i32_1 = arith.constant 0 : i32
    return %c0_i32, %c0_i32_0 : i32, i32
  }
  func.func @transform_15(%arg0: i32) -> (i32, i32) {
    %c0_i32 = arith.constant 0 : i32
    %c0_i32_0 = arith.constant 0 : i32
    %c0_i32_1 = arith.constant 0 : i32
    return %c0_i32, %c0_i32_0 : i32, i32
  }
  func.func @transform_16(%arg0: i32) -> (i32, i32) {
    %c0_i32 = arith.constant 0 : i32
    %c0_i32_0 = arith.constant 0 : i32
    %c0_i32_1 = arith.constant 0 : i32
    return %c0_i32, %c0_i32_0 : i32, i32
  }
  func.func @transform_17(%arg0: i32) -> (i32, i32) {
    %c0_i32 = arith.constant 0 : i32
    %c0_i32_0 = arith.constant 0 : i32
    %c0_i32_1 = arith.constant 0 : i32
    return %c0_i32, %c0_i32_0 : i32, i32
  }
  func.func @transform_18(%arg0: i32) -> (i32, i32) {
    %c0_i32 = arith.constant 0 : i32
    %c0_i32_0 = arith.constant 0 : i32
    %c0_i32_1 = arith.constant 0 : i32
    return %c0_i32, %c0_i32_0 : i32, i32
  }
  func.func @transform_19(%arg0: i32) -> (i32, i32) {
    %c0_i32 = arith.constant 0 : i32
    %c0_i32_0 = arith.constant 0 : i32
    %c0_i32_1 = arith.constant 0 : i32
    return %c0_i32, %c0_i32_0 : i32, i32
  }
  func.func @transform_20(%arg0: i32) -> (i32, i32) {
    %c0_i32 = arith.constant 0 : i32
    %c0_i32_0 = arith.constant 0 : i32
    %c0_i32_1 = arith.constant 0 : i32
    return %c0_i32, %c0_i32_0 : i32, i32
  }
  func.func @transform_21(%arg0: i32) -> (i32, i32) {
    %c0_i32 = arith.constant 0 : i32
    %c0_i32_0 = arith.constant 0 : i32
    %c0_i32_1 = arith.constant 0 : i32
    return %c0_i32, %c0_i32_0 : i32, i32
  }
  func.func @transform_22(%arg0: i32) -> (i32, i32) {
    %c0_i32 = arith.constant 0 : i32
    %c0_i32_0 = arith.constant 0 : i32
    %c0_i32_1 = arith.constant 0 : i32
    return %c0_i32, %c0_i32_0 : i32, i32
  }
  func.func @transform_23(%arg0: i32) -> (i32, i32) {
    %c0_i32 = arith.constant 0 : i32
    %c0_i32_0 = arith.constant 0 : i32
    %c0_i32_1 = arith.constant 0 : i32
    return %c0_i32, %c0_i32_0 : i32, i32
  }
  func.func @transform_24(%arg0: i32) -> (i32, i32) {
    %c0_i32 = arith.constant 0 : i32
    %c0_i32_0 = arith.constant 0 : i32
    %c0_i32_1 = arith.constant 0 : i32
    return %c0_i32, %c0_i32_0 : i32, i32
  }
  func.func @transform_25(%arg0: i32) -> (i32, i32) {
    %c0_i32 = arith.constant 0 : i32
    %c0_i32_0 = arith.constant 0 : i32
    %c0_i32_1 = arith.constant 0 : i32
    return %c0_i32, %c0_i32_0 : i32, i32
  }
  func.func @transform_26(%arg0: i32) -> (i32, i32) {
    %c0_i32 = arith.constant 0 : i32
    %c0_i32_0 = arith.constant 0 : i32
    %c0_i32_1 = arith.constant 0 : i32
    return %c0_i32, %c0_i32_0 : i32, i32
  }
  func.func @transform_27(%arg0: i32) -> (i32, i32) {
    %c0_i32 = arith.constant 0 : i32
    %c0_i32_0 = arith.constant 0 : i32
    %c0_i32_1 = arith.constant 0 : i32
    return %c0_i32, %c0_i32_0 : i32, i32
  }
  func.func @transform_28(%arg0: i32) -> (i32, i32) {
    %c0_i32 = arith.constant 0 : i32
    %c0_i32_0 = arith.constant 0 : i32
    %c0_i32_1 = arith.constant 0 : i32
    return %c0_i32, %c0_i32_0 : i32, i32
  }
  func.func @transform_29(%arg0: i32) -> (i32, i32) {
    %c0_i32 = arith.constant 0 : i32
    %c0_i32_0 = arith.constant 0 : i32
    %c0_i32_1 = arith.constant 0 : i32
    return %c0_i32, %c0_i32_0 : i32, i32
  }
  func.func @transform_30(%arg0: i32) -> (i32, i32) {
    %c0_i32 = arith.constant 0 : i32
    %c0_i32_0 = arith.constant 0 : i32
    %c0_i32_1 = arith.constant 0 : i32
    return %c0_i32, %c0_i32_0 : i32, i32
  }
  func.func @transform_31(%arg0: i32) -> (i32, i32) {
    %c0_i32 = arith.constant 0 : i32
    %c0_i32_0 = arith.constant 0 : i32
    %c0_i32_1 = arith.constant 0 : i32
    return %c0_i32, %c0_i32_0 : i32, i32
  }
  func.func @transform_32(%arg0: i32) -> (i32, i32) {
    %c0_i32 = arith.constant 0 : i32
    %c0_i32_0 = arith.constant 0 : i32
    %c0_i32_1 = arith.constant 0 : i32
    return %c0_i32, %c0_i32_0 : i32, i32
  }
  func.func @transform_33(%arg0: i32) -> (i32, i32) {
    %c0_i32 = arith.constant 0 : i32
    %c0_i32_0 = arith.constant 0 : i32
    %c0_i32_1 = arith.constant 0 : i32
    return %c0_i32, %c0_i32_0 : i32, i32
  }
  func.func @transform_34(%arg0: i32) -> (i32, i32) {
    %c0_i32 = arith.constant 0 : i32
    %c0_i32_0 = arith.constant 0 : i32
    %c0_i32_1 = arith.constant 0 : i32
    return %c0_i32, %c0_i32_0 : i32, i32
  }
  func.func @transform_35(%arg0: i32) -> (i32, i32) {
    %c0_i32 = arith.constant 0 : i32
    %c0_i32_0 = arith.constant 0 : i32
    %c0_i32_1 = arith.constant 0 : i32
    return %c0_i32, %c0_i32_0 : i32, i32
  }
  func.func @transform_36(%arg0: i32) -> (i32, i32) {
    %c0_i32 = arith.constant 0 : i32
    %c0_i32_0 = arith.constant 0 : i32
    return %arg0, %c0_i32 : i32, i32
  }
  func.func @transform_37(%arg0: i32) -> (i32, i32) {
    %c0_i32 = arith.constant 0 : i32
    %c0_i32_0 = arith.constant 0 : i32
    return %arg0, %c0_i32 : i32, i32
  }
  func.func @transform_38(%arg0: i32) -> (i32, i32) {
    %c0_i32 = arith.constant 0 : i32
    %c0_i32_0 = arith.constant 0 : i32
    return %arg0, %c0_i32 : i32, i32
  }
}

</mosaic_0001>

<bundles_post_ra>
// kernel: vae_forward.1
= control target key start
LH: loop header
LB: loop body
LE: loop exit
PB: predicated region body
PF: predicated region fallthrough
CT: control target
= control target key end

     0   :  { %s7647_s6 = smov 1   ;;  %s7648_s10 = smov 2   ;;  %s8466_s0 = inlined_call_operand.smem [shape: u32[39], index: -1, kind: input, shape index: {}] }
   0x1   :  { %s7713_s5 = sld [smem:[%s8466_s0]]   ;;  %s7649_s14 = smov 3  }
   0x2   :  { %s7718_s9 = sld [smem:[%s8466_s0 + %s7647_s6]]   ;;  %s7650_s18 = smov 4  }
   0x3   :  { %s7723_s13 = sld [smem:[%s8466_s0 + %s7648_s10]]   ;;  %s7651_s22 = smov 5  }
   0x4   :  { %s7728_s17 = sld [smem:[%s8466_s0 + %s7649_s14]]   ;;  %s7652_s26 = smov 6  }
   0x5   :  { %s7733_s21 = sld [smem:[%s8466_s0 + %s7650_s18]]   ;;  %s7653_s30 = smov 7  }
   0x6   :  { %s7738_s25 = sld [smem:[%s8466_s0 + %s7651_s22]]   ;;  %s7654_s4 = smov 8  }
   0x7   :  { %s7743_s29 = sld [smem:[%s8466_s0 + %s7652_s26]]   ;;  %s7655_s10 = smov 9  }
   0x8   :  { %8468 = sst [smem:[#allocation21_spill]] %s7718_s9  ;;  %s7656_s15 = smov 10  }
   0x9   :  { %s7748_s3 = sld [smem:[%s8466_s0 + %s7653_s30]]   ;;  %s7657_s20 = smov 11  }
   0xa   :  { %s7753_s8 = sld [smem:[%s8466_s0 + %s7654_s4]]   ;;  %s7658_s26 = smov 12  }
   0xb   :  { %s7758_s14 = sld [smem:[%s8466_s0 + %s7655_s10]]   ;;  %s7659_s1 = smov 13  }
   0xc   :  { %s7763_s19 = sld [smem:[%s8466_s0 + %s7656_s15]]   ;;  %s7660_s7 = smov 14  }
   0xd   :  { %s7768_s24 = sld [smem:[%s8466_s0 + %s7657_s20]]   ;;  %s7661_s15 = smov 15  }
   0xe   :  { %s7773_s30 = sld [smem:[%s8466_s0 + %s7658_s26]]   ;;  %s7662_s22 = smov 16  }
   0xf   :  { %s7778_s6 = sld [smem:[%s8466_s0 + %s7659_s1]]   ;;  %s7663_s28 = smov 17  }
  0x10   :  { %8469 = sst [smem:[#allocation22_spill]] %s7753_s8 }
  0x11   :  { %8470 = sst [smem:[#allocation23_spill]] %s7758_s14 }
  0x12   :  { %s7783_s12 = sld [smem:[%s8466_s0 + %s7660_s7]]   ;;  %s7664_s7 = smov 18  }
  0x13   :  { %8471 = sst [smem:[#allocation24_spill]] %s7768_s24 }
  0x14   :  { %8472 = sst [smem:[#allocation25_spill]] %s7773_s30 }
  0x15   :  { %8473 = sst [smem:[#allocation26_spill]] %s7778_s6 }
  0x16   :  { %s7788_s20 = sld [smem:[%s8466_s0 + %s7661_s15]]   ;;  %s7665_s15 = smov 19  }
  0x17   :  { %s7793_s27 = sld [smem:[%s8466_s0 + %s7662_s22]]   ;;  %s7666_s22 = smov 20  }
  0x18   :  { %s7798_s4 = sld [smem:[%s8466_s0 + %s7663_s28]]   ;;  %s7667_s28 = smov 21  }
  0x19   :  { %s7803_s9 = sld [smem:[%s8466_s0 + %s7664_s7]]   ;;  %s7668_s7 = smov 22  }
  0x1c   :  { %8474 = sst [smem:[#allocation27_spill]] %s7788_s20 }
  0x1d   :  { %8475 = sst [smem:[#allocation28_spill]] %s7793_s27 }
  0x1e   :  { %8476 = sst [smem:[#allocation29_spill]] %s7798_s4 }
  0x1f   :  { %8477 = sst [smem:[#allocation30_spill]] %s7803_s9 }
  0x20   :  { %s7808_s20 = sld [smem:[%s8466_s0 + %s7665_s15]]   ;;  %s7669_s15 = smov 23  }
  0x21   :  { %s7813_s27 = sld [smem:[%s8466_s0 + %s7666_s22]]   ;;  %s7670_s22 = smov 24  }
  0x22   :  { %s7818_s4 = sld [smem:[%s8466_s0 + %s7667_s28]]   ;;  %s7671_s28 = smov 25  }
  0x23   :  { %s7823_s9 = sld [smem:[%s8466_s0 + %s7668_s7]]   ;;  %s7672_s7 = smov 26  }
  0x24   :  { %s7833_s6 = sld [smem:[%s8466_s0 + %s7670_s22]]   ;;  %s7674_s22 = smov 28  }
  0x25   :  { %s7843_s30 = sld [smem:[%s8466_s0 + %s7672_s7]]   ;;  %s7676_s7 = smov 30  }
  0x26   :  { %8478 = sst [smem:[#allocation31_spill]] %s7808_s20 }
  0x27   :  { %s7828_s20 = sld [smem:[%s8466_s0 + %s7669_s15]]   ;;  %s7673_s15 = smov 27  }
  0x28   :  { %8479 = sst [smem:[#allocation32_spill]] %s7818_s4 }
  0x29   :  { %s7838_s4 = sld [smem:[%s8466_s0 + %s7671_s28]]   ;;  %s7675_s28 = smov 29  }
  0x2a   :  { %8481 = sst [smem:[#allocation34_spill]] %s7833_s6 }
  0x2b   :  { %s7853_s6 = sld [smem:[%s8466_s0 + %s7674_s22]]   ;;  %s7678_s22 = smov 32  }
  0x2c   :  { %s7863_s24 = sld [smem:[%s8466_s0 + %s7676_s7]]   ;;  %s7680_s7 = smov 34  }
  0x2d   :  { %8480 = sst [smem:[#allocation33_spill]] %s7828_s20 }
  0x2e   :  { %s7848_s20 = sld [smem:[%s8466_s0 + %s7673_s15]]   ;;  %s7677_s15 = smov 31  }
  0x2f   :  { %8482 = sst [smem:[#allocation35_spill]] %s7838_s4 }
  0x30   :  { %s7858_s4 = sld [smem:[%s8466_s0 + %s7675_s28]]   ;;  %s7679_s28 = smov 33  }
  0x31   :  { %8484 = sst [smem:[#allocation37_spill]] %s7853_s6 }
  0x32   :  { %s7873_s6 = sld [smem:[%s8466_s0 + %s7678_s22]]   ;;  %s7682_s22 = smov 36  }
  0x33   :  { %s7883_s14 = sld [smem:[%s8466_s0 + %s7680_s7]]   ;;  %s7684_s7 = smov 38  }
  0x34   :  { %8483 = sst [smem:[#allocation36_spill]] %s7848_s20 }
  0x35   :  { %s7868_s20 = sld [smem:[%s8466_s0 + %s7677_s15]]   ;;  %s7681_s15 = smov 35  }
  0x36   :  { %8485 = sst [smem:[#allocation38_spill]] %s7858_s4 }
  0x37   :  { %s7878_s4 = sld [smem:[%s8466_s0 + %s7679_s28]]   ;;  %s7683_s28 = smov 37  }
  0x38   :  { %8487 = sst [smem:[#allocation40_spill]] %s7873_s6 }
  0x39   :  { %s7893_s6 = sld [smem:[%s8466_s0 + %s7682_s22]]  }
  0x3a   :  { %s7903_s8 = sld [smem:[%s8466_s0 + %s7684_s7]]  }
  0x3b   :  { %8486 = sst [smem:[#allocation39_spill]] %s7868_s20 }
  0x3c   :  { %s7888_s20 = sld [smem:[%s8466_s0 + %s7681_s15]]  }
  0x3d   :  { %8488 = sst [smem:[#allocation41_spill]] %s7878_s4 }
  0x3e   :  { %s7898_s4 = sld [smem:[%s8466_s0 + %s7683_s28]]  }
  0x3f   :  { %83 = vsyncpa [#allocation3], 0 }
  0x40   :  { %84 = vsyncpa [#allocation5], 0 }
  0x41   :  { %85 = vsyncpa [#allocation8], 0 }
  0x42   :  { %86 = vsyncpa [#allocation11], 0 }
  0x43   :  { %87 = vsyncpa [#allocation14], 0  ;;  %s7685_s15 = smov [#allocation4]   ;;  %s7439_s18 = scalar_lea.hbm %s7743_s29, 65536 }
  0x44   :  { %s115_s16 = sshll.u32 %s7685_s15, 4  ;;  %p7440_p0 = scmp.ne.s32.totalorder %s7743_s29, %s7439_s18  ;;  %s116_s16 = int_to_ptr.vmem [resolvable:$true] %s115_s16 }
  0x45   :  { %p7443_p1 = scmp.lt.u32.totalorder %s7439_s18, %s7743_s29 }
  0x47   :  { %p7445_p2 = pnand %p7443_p1, %p7440_p0 }
  0x49   :  { %7448 = shalt.err (!%p7445_p2)
}
  0x4a   :  { %s7449_s22 = scalar_lea.vmem %s116_s16, 65536  ;;  %p7454_p4 = scmp.lt.s32.totalorder %s116_s16, %s116_s16 }
  0x4b   :  { %p7450_p3 = scmp.ne.s32.totalorder %s116_s16, %s7449_s22  ;;  %p7455_p5 = scmp.lt.s32.totalorder %s7449_s22, %s7449_s22 }
  0x4d   :  { %p7456_p6 = por %p7455_p5, %p7454_p4 }
  0x4f   :  { %p7457_p7 = pnand %p7456_p6, %p7450_p3 }
  0x51   :  { %7460 = shalt.err (!%p7457_p7)
}
  0x52   :  { %s7686_s0 = smov 512   ;;  %s7687_s23 = smov 32  }
  0x53   :  { %121 = dma.hbm_to_vmem [thread:$0]  %s7743_s29, 65536, %s116_s16, [#allocation5], %s7686_s0, %s7686_s0, %s7687_s23  }
  0x54   :  { %s7688_s26 = smov [#allocation7]   ;;  %s7461_s1 = scalar_lea.hbm %s7783_s12, 4096 }
  0x55   :  { %s151_s28 = sshll.u32 %s7688_s26, 4  ;;  %p7462_p8 = scmp.ne.s32.totalorder %s7783_s12, %s7461_s1  ;;  %s152_s28 = int_to_ptr.vmem [resolvable:$true] %s151_s28 }
  0x56   :  { %p7465_p9 = scmp.lt.u32.totalorder %s7461_s1, %s7783_s12 }
  0x58   :  { %p7467_p10 = pnand %p7465_p9, %p7462_p8 }
  0x5a   :  { %7470 = shalt.err (!%p7467_p10)
}
  0x5b   :  { %s7471_s2 = scalar_lea.vmem %s152_s28, 4096  ;;  %p7476_p12 = scmp.lt.s32.totalorder %s152_s28, %s152_s28 }
  0x5c   :  { %p7472_p11 = scmp.ne.s32.totalorder %s152_s28, %s7471_s2  ;;  %p7477_p13 = scmp.lt.s32.totalorder %s7471_s2, %s7471_s2 }
  0x5e   :  { %p7478_p0 = por %p7477_p13, %p7476_p12 }
  0x60   :  { %p7479_p1 = pnand %p7478_p0, %p7472_p11 }
  0x62   :  { %7482 = shalt.err (!%p7479_p1)
}
  0x63   :  { %s7689_s7 = smov 128   ;;  %s7690_s29 = smov 8  }
  0x64   :  { %157 = dma.hbm_to_vmem [thread:$0]  %s7783_s12, 4096, %s152_s28, [#allocation8], %s7689_s7, %s7689_s7, %s7690_s29  }
  0x65   :  { %s7691_s10 = smov [#allocation10]   ;;  %s7483_s15 = scalar_lea.hbm %s7823_s9, 4096 }
  0x66   :  { %s187_s11 = sshll.u32 %s7691_s10, 4  ;;  %p7484_p2 = scmp.ne.s32.totalorder %s7823_s9, %s7483_s15  ;;  %s188_s11 = int_to_ptr.vmem [resolvable:$true] %s187_s11 }
  0x67   :  { %p7487_p3 = scmp.lt.u32.totalorder %s7483_s15, %s7823_s9 }
  0x69   :  { %p7489_p4 = pnand %p7487_p3, %p7484_p2 }
  0x6b   :  { %7492 = shalt.err (!%p7489_p4)
}
  0x6c   :  { %s7493_s16 = scalar_lea.vmem %s188_s11, 4096  ;;  %p7498_p6 = scmp.lt.s32.totalorder %s188_s11, %s188_s11 }
  0x6d   :  { %p7494_p5 = scmp.ne.s32.totalorder %s188_s11, %s7493_s16  ;;  %p7499_p7 = scmp.lt.s32.totalorder %s7493_s16, %s7493_s16 }
  0x6f   :  { %p7500_p8 = por %p7499_p7, %p7498_p6 }
  0x71   :  { %p7501_p9 = pnand %p7500_p8, %p7494_p5 }
  0x73   :  { %7504 = shalt.err (!%p7501_p9)
}
  0x74   :  { %s7692_s18 = smov 256   ;;  %s7693_s12 = smov 16  }
  0x75   :  { %193 = dma.hbm_to_vmem [thread:$0]  %s7823_s9, 4096, %s188_s11, [#allocation11], %s7692_s18, %s7692_s18, %s7693_s12  }
  0x76   :  { %s7694_s22 = smov [#allocation13]   ;;  %s7695_s28 = smov [#allocation2]  }
  0x77   :  { %s223_s26 = sshll.u32 %s7694_s22, 4  ;;  %s97_s1 = sshll.u32 %s7695_s28, 4  ;;  %s224_s26 = int_to_ptr.vmem [resolvable:$true] %s223_s26  ;;  %s98_s1 = int_to_ptr.vmem [resolvable:$true] %s97_s1 }
  0x78   :  { %s7505_s2 = scalar_lea.hbm %s7863_s24, 65536 }
  0x79   :  { %p7506_p10 = scmp.ne.s32.totalorder %s7863_s24, %s7505_s2  ;;  %p7509_p11 = scmp.lt.u32.totalorder %s7505_s2, %s7863_s24 }
  0x7b   :  { %p7511_p12 = pnand %p7509_p11, %p7506_p10 }
  0x7d   :  { %7514 = shalt.err (!%p7511_p12)
}
  0x7e   :  { %s7515_s10 = scalar_lea.vmem %s224_s26, 65536  ;;  %p7520_p0 = scmp.lt.s32.totalorder %s224_s26, %s224_s26 }
  0x7f   :  { %p7516_p13 = scmp.ne.s32.totalorder %s224_s26, %s7515_s10  ;;  %p7521_p1 = scmp.lt.s32.totalorder %s7515_s10, %s7515_s10 }
  0x81   :  { %p7522_p2 = por %p7521_p1, %p7520_p0 }
  0x83   :  { %p7523_p3 = pnand %p7522_p2, %p7516_p13 }
  0x85   :  { %7526 = shalt.err (!%p7523_p3)
}
  0x86   :  { %s7696_s15 = smov 1024   ;;  %s7697_s9 = smov 64  }
  0x87   :  { %229 = dma.hbm_to_vmem [thread:$0]  %s7863_s24, 65536, %s224_s26, [#allocation14], %s7696_s15, %s7696_s15, %s7697_s9  }
  0x88   :  { %s7527_s11 = scalar_lea.hbm %s7723_s13, 32768 }
  0x89   :  { %p7528_p4 = scmp.ne.s32.totalorder %s7723_s13, %s7527_s11  ;;  %p7531_p5 = scmp.lt.u32.totalorder %s7527_s11, %s7723_s13 }
  0x8b   :  { %p7533_p6 = pnand %p7531_p5, %p7528_p4 }
  0x8d   :  { %7536 = shalt.err (!%p7533_p6)
}
  0x8e   :  { %s7537_s16 = scalar_lea.vmem %s98_s1, 32768  ;;  %p7542_p8 = scmp.lt.s32.totalorder %s98_s1, %s98_s1 }
  0x8f   :  { %p7538_p7 = scmp.ne.s32.totalorder %s98_s1, %s7537_s16  ;;  %p7543_p9 = scmp.lt.s32.totalorder %s7537_s16, %s7537_s16 }
  0x91   :  { %p7544_p10 = por %p7543_p9, %p7542_p8 }
  0x93   :  { %p7545_p11 = pnand %p7544_p10, %p7538_p7 }
  0x95   :  { %7548 = shalt.err (!%p7545_p11)
}
  0x96   :  { %103 = dma.hbm_to_vmem [thread:$0]  %s7723_s13, 32768, %s98_s1, [#allocation3], %s7696_s15, %s7696_s15, %s7697_s9  }
  0x97   :  { %s7698_s22 = smov [#allocation6]   ;;  %s7699_s26 = smov [#allocation9]  }
  0x98   :  { %s133_s24 = sshll.u32 %s7698_s22, 4  ;;  %s173_s28 = sshll.u32 %s7699_s26, 4  ;;  %s134_s24 = int_to_ptr.vmem [resolvable:$true] %s133_s24  ;;  %s174_s28 = int_to_ptr.vmem [resolvable:$true] %s173_s28 }
  0x99   :  { %s7549_s2 = scalar_lea.hbm %s7763_s19, 16384 }
  0x9a   :  { %p7550_p12 = scmp.ne.s32.totalorder %s7763_s19, %s7549_s2  ;;  %p7553_p13 = scmp.lt.u32.totalorder %s7549_s2, %s7763_s19 }
  0x9c   :  { %p7555_p0 = pnand %p7553_p13, %p7550_p12 }
  0x9e   :  { %7558 = shalt.err (!%p7555_p0)
}
  0x9f   :  { %s7559_s10 = scalar_lea.vmem %s134_s24, 16384  ;;  %p7564_p2 = scmp.lt.s32.totalorder %s134_s24, %s134_s24 }
  0xa0   :  { %p7560_p1 = scmp.ne.s32.totalorder %s134_s24, %s7559_s10  ;;  %p7565_p3 = scmp.lt.s32.totalorder %s7559_s10, %s7559_s10 }
  0xa2   :  { %p7566_p4 = por %p7565_p3, %p7564_p2 }
  0xa4   :  { %p7567_p5 = pnand %p7566_p4, %p7560_p1 }
  0xa6   :  { %7570 = shalt.err (!%p7567_p5)
}
  0xa7   :  { %139 = dma.hbm_to_vmem [thread:$0]  %s7763_s19, 16384, %s134_s24, [#allocation5], %s7692_s18, %s7692_s18, %s7693_s12  }
  0xa8   :  { %s7571_s13 = scalar_lea.hbm %s7813_s27, 2048 }
  0xa9   :  { %p7572_p6 = scmp.ne.s32.totalorder %s7813_s27, %s7571_s13  ;;  %p7575_p7 = scmp.lt.u32.totalorder %s7571_s13, %s7813_s27 }
  0xab   :  { %p7577_p8 = pnand %p7575_p7, %p7572_p6 }
  0xad   :  { %7580 = shalt.err (!%p7577_p8)
}
  0xae   :  { %s7581_s1 = scalar_lea.vmem %s174_s28, 2048  ;;  %p7586_p10 = scmp.lt.s32.totalorder %s174_s28, %s174_s28 }
  0xaf   :  { %p7582_p9 = scmp.ne.s32.totalorder %s174_s28, %s7581_s1  ;;  %p7587_p11 = scmp.lt.s32.totalorder %s7581_s1, %s7581_s1 }
  0xb1   :  { %p7588_p12 = por %p7587_p11, %p7586_p10 }
  0xb3   :  { %p7589_p13 = pnand %p7588_p12, %p7582_p9 }
  0xb5   :  { %7592 = shalt.err (!%p7589_p13)
}
  0xb6   :  { %179 = dma.hbm_to_vmem [thread:$0]  %s7813_s27, 2048, %s174_s28, [#allocation8], %s7689_s7, %s7689_s7, %s7690_s29  }
  0xb7   :  { %s7700_s19 = smov [#allocation12]   ;;  %s7701_s9 = smov [#allocation15]  }
  0xb8   :  { %s205_s15 = sshll.u32 %s7700_s19, 4  ;;  %s241_s11 = sshll.u32 %s7701_s9, 4  ;;  %s206_s15 = int_to_ptr.vmem [resolvable:$true] %s205_s15  ;;  %s242_s11 = int_to_ptr.vmem [resolvable:$true] %s241_s11 }
  0xb9   :  { %s7593_s16 = scalar_lea.hbm %s7843_s30, 16384 }
  0xba   :  { %p7594_p0 = scmp.ne.s32.totalorder %s7843_s30, %s7593_s16  ;;  %p7597_p1 = scmp.lt.u32.totalorder %s7593_s16, %s7843_s30 }
  0xbc   :  { %p7599_p2 = pnand %p7597_p1, %p7594_p0 }
  0xbe   :  { %7602 = shalt.err (!%p7599_p2)
}
  0xbf   :  { %s7603_s22 = scalar_lea.vmem %s206_s15, 16384  ;;  %p7608_p4 = scmp.lt.s32.totalorder %s206_s15, %s206_s15 }
  0xc0   :  { %p7604_p3 = scmp.ne.s32.totalorder %s206_s15, %s7603_s22  ;;  %p7609_p5 = scmp.lt.s32.totalorder %s7603_s22, %s7603_s22 }
  0xc2   :  { %p7610_p6 = por %p7609_p5, %p7608_p4 }
  0xc4   :  { %p7611_p7 = pnand %p7610_p6, %p7604_p3 }
  0xc6   :  { %7614 = shalt.err (!%p7611_p7)
}
  0xc7   :  { %211 = dma.hbm_to_vmem [thread:$0]  %s7843_s30, 16384, %s206_s15, [#allocation11], %s7686_s0, %s7686_s0, %s7687_s23  }
  0xc8   :  { %s7615_s27 = scalar_lea.hbm %s7883_s14, 32768 }
  0xc9   :  { %p7616_p8 = scmp.ne.s32.totalorder %s7883_s14, %s7615_s27  ;;  %p7619_p9 = scmp.lt.u32.totalorder %s7615_s27, %s7883_s14 }
  0xcb   :  { %p7621_p10 = pnand %p7619_p9, %p7616_p8 }
  0xcd   :  { %7624 = shalt.err (!%p7621_p10)
}
  0xce   :  { %s7625_s7 = scalar_lea.vmem %s242_s11, 32768  ;;  %p7630_p12 = scmp.lt.s32.totalorder %s242_s11, %s242_s11 }
  0xcf   :  { %p7626_p11 = scmp.ne.s32.totalorder %s242_s11, %s7625_s7  ;;  %p7631_p13 = scmp.lt.s32.totalorder %s7625_s7, %s7625_s7 }
  0xd1   :  { %p7632_p0 = por %p7631_p13, %p7630_p12 }
  0xd3   :  { %p7633_p1 = pnand %p7632_p0, %p7626_p11 }
  0xd5   :  { %7636 = shalt.err (!%p7633_p1)
}
  0xd6   :  { %247 = dma.hbm_to_vmem [thread:$0]  %s7883_s14, 32768, %s242_s11, [#allocation14], %s7692_s18, %s7692_s18, %s7693_s12  }
  0xd7   :  { %7637 = dma.done.wait [#allocation3], 32768  }
  0xd8   :  { %7638 = vsyncadd [#allocation3], 4294934528 }
  0xd9   :  { %7639 = dma.done.wait [#allocation5], 81920  }
  0xda   :  { %7640 = vsyncadd [#allocation5], 4294885376 }
  0xdb   :  { %7641 = dma.done.wait [#allocation8], 6144  }
  0xdc   :  { %7642 = vsyncadd [#allocation8], 4294961152 }
  0xdd   :  { %7643 = dma.done.wait [#allocation11], 20480  }
  0xde   :  { %7644 = vsyncadd [#allocation11], 4294946816 }
  0xdf   :  { %7645 = dma.done.wait [#allocation14], 98304  }
  0xe0   :  { %7646 = vsyncadd [#allocation14], 4294868992  ;;  %v280_v0 = vld [vmem:[#allocation2 + $0x8] sm:$0xff]  ;;  %v279_v2 = vld [vmem:[#allocation2] sm:$0xff]  ;;  %s8494_s14 = sld [smem:[#allocation30_spill]]  ;;  %s8495_s30 = sld [smem:[#allocation27_spill]] }
  0xe1   :  { %v288_v1 = vld [vmem:[#allocation2 + $0x48] sm:$0xff]  ;;  %v287_v4 = vld [vmem:[#allocation2 + $0x40] sm:$0xff]  ;;  %s8496_s0 = sld [smem:[#allocation28_spill]]  ;;  %s8497_s23 = sld [smem:[#allocation29_spill]]  ;;  %vm7704_vm0 = vmmov 0  }
  0xe2   :  { %v5409_v3 = vpack.c.bf16 %v288_v1, %v280_v0  ;;  %v296_v5 = vld [vmem:[#allocation2 + $0x88] sm:$0xff]  ;;  %v5411_v7 = vpack.c.bf16 %v287_v4, %v279_v2  ;;  %v295_v9 = vld [vmem:[#allocation2 + $0x80] sm:$0xff]  ;;  %s8498_s29 = sld [smem:[#allocation31_spill]]  ;;  %s8499_s18 = sld [smem:[#allocation21_spill]] }
  0xe3   :  { %v304_v6 = vld [vmem:[#allocation2 + $0xc8] sm:$0xff]  ;;  %v303_v10 = vld [vmem:[#allocation2 + $0xc0] sm:$0xff]  ;;  %s8502_s12 = sld [smem:[#allocation34_spill]]  ;;  %s8503_s24 = sld [smem:[#allocation35_spill]] }
  0xe4   :  { %v5413_v8 = vpack.c.bf16 %v304_v6, %v296_v5  ;;  %v312_v11 = vld [vmem:[#allocation2 + $0x108] sm:$0xff]  ;;  %5410 = vmatprep.subr.bf16.mxu1 %v5409_v3  ;;  %v5415_v13 = vpack.c.bf16 %v303_v10, %v295_v9  ;;  %v311_v15 = vld [vmem:[#allocation2 + $0x100] sm:$0xff]  ;;  %s8504_s26 = sld [smem:[#allocation36_spill]]  ;;  %s8505_s28 = sld [smem:[#allocation37_spill]] }
  0xe5   :  { %v320_v12 = vld [vmem:[#allocation2 + $0x148] sm:$0xff]  ;;  %5412 = vmatpush1.bf16.msra.mxu1 %v5411_v7  ;;  %v319_v16 = vld [vmem:[#allocation2 + $0x140] sm:$0xff]  ;;  %s8506_s2 = sld [smem:[#allocation38_spill]]  ;;  %s8507_s10 = sld [smem:[#allocation39_spill]] }
  0xe6   :  { %5414 = vmatprep.subr.bf16.mxu1 %v5413_v8  ;;  %v5417_v14 = vpack.c.bf16 %v320_v12, %v312_v11  ;;  %v328_v17 = vld [vmem:[#allocation2 + $0x188] sm:$0xff]  ;;  %v5419_v19 = vpack.c.bf16 %v319_v16, %v311_v15  ;;  %v327_v21 = vld [vmem:[#allocation2 + $0x180] sm:$0xff]  ;;  %s8508_s13 = sld [smem:[#allocation40_spill]]  ;;  %s8509_s1 = sld [smem:[#allocation41_spill]] }
  0xe7   :  { %v336_v18 = vld [vmem:[#allocation2 + $0x1c8] sm:$0xff]  ;;  %v335_v22 = vld [vmem:[#allocation2 + $0x1c0] sm:$0xff] }
  0xe8   :  { %v5421_v20 = vpack.c.bf16 %v336_v18, %v328_v17  ;;  %v344_v23 = vld [vmem:[#allocation2 + $0x208] sm:$0xff]  ;;  %v5423_v25 = vpack.c.bf16 %v335_v22, %v327_v21  ;;  %v343_v27 = vld [vmem:[#allocation2 + $0x200] sm:$0xff] }
  0xe9   :  { %5416 = vmatpush1.bf16.msra.mxu1 %v5415_v13  ;;  %v352_v24 = vld [vmem:[#allocation2 + $0x248] sm:$0xff]  ;;  %v351_v28 = vld [vmem:[#allocation2 + $0x240] sm:$0xff] }
  0xea   :  { %5418 = vmatprep.subr.bf16.mxu1 %v5417_v14  ;;  %v5425_v26 = vpack.c.bf16 %v352_v24, %v344_v23  ;;  %v360_v29 = vld [vmem:[#allocation2 + $0x288] sm:$0xff]  ;;  %v5427_v31 = vpack.c.bf16 %v351_v28, %v343_v27  ;;  %v359_v33 = vld [vmem:[#allocation2 + $0x280] sm:$0xff] }
  0xeb   :  { %v368_v30 = vld [vmem:[#allocation2 + $0x2c8] sm:$0xff]  ;;  %v367_v34 = vld [vmem:[#allocation2 + $0x2c0] sm:$0xff] }
  0xec   :  { %v5429_v32 = vpack.c.bf16 %v368_v30, %v360_v29  ;;  %v376_v35 = vld [vmem:[#allocation2 + $0x308] sm:$0xff]  ;;  %v5431_v37 = vpack.c.bf16 %v367_v34, %v359_v33  ;;  %v375_v39 = vld [vmem:[#allocation2 + $0x300] sm:$0xff]  ;;  %v290_v33 = vld [vmem:[#allocation2 + $0x58] sm:$0xff] }
  0xed   :  { %5420 = vmatpush1.bf16.msra.mxu1 %v5419_v19  ;;  %v384_v36 = vld [vmem:[#allocation2 + $0x348] sm:$0xff]  ;;  %v383_v40 = vld [vmem:[#allocation2 + $0x340] sm:$0xff] }
  0xee   :  { %5422 = vmatprep.subr.bf16.mxu1 %v5421_v20  ;;  %v5433_v38 = vpack.c.bf16 %v384_v36, %v376_v35  ;;  %v7963_v41 = vld [vmem:[%s7713_s5 + $0x8] sm:$0xff]  ;;  %v5435_v44 = vpack.c.bf16 %v383_v40, %v375_v39  ;;  %v391_v46 = vld [vmem:[#allocation2 + $0x380] sm:$0xff]  ;;  %v281_v36 = vld [vmem:[#allocation2 + $0x10] sm:$0xff] }
  0xef   :  { %v392_v42 = vld [vmem:[#allocation2 + $0x388] sm:$0xff]  ;;  %641 = vmatprep.mubr.f32.mxu1 %v7963_v41  ;;  %v399_v47 = vld [vmem:[#allocation2 + $0x3c0] sm:$0xff]  ;;  %v306_v39 = vld [vmem:[#allocation2 + $0xd8] sm:$0xff] }
  0xf0   :  { %v400_v43 = vld [vmem:[#allocation2 + $0x3c8] sm:$0xff]  ;;  %v5439_v50 = vpack.c.bf16 %v399_v47, %v391_v46  ;;  %v407_v52 = vld [vmem:[#allocation2 + $0x400] sm:$0xff]  ;;  %v314_v46 = vld [vmem:[#allocation2 + $0x118] sm:$0xff] }
  0xf1   :  { %5424 = vmatpush1.bf16.msra.mxu1 %v5423_v25  ;;  %v5437_v45 = vpack.c.bf16 %v400_v43, %v392_v42  ;;  %v408_v48 = vld [vmem:[#allocation2 + $0x408] sm:$0xff]  ;;  %v415_v53 = vld [vmem:[#allocation2 + $0x440] sm:$0xff]  ;;  %v322_v47 = vld [vmem:[#allocation2 + $0x158] sm:$0xff] }
  0xf2   :  { %5426 = vmatprep.subr.bf16.mxu1 %v5425_v26  ;;  %v416_v49 = vld [vmem:[#allocation2 + $0x448] sm:$0xff]  ;;  %v5443_v56 = vpack.c.bf16 %v415_v53, %v407_v52  ;;  %v423_v58 = vld [vmem:[#allocation2 + $0x480] sm:$0xff]  ;;  %v330_v52 = vld [vmem:[#allocation2 + $0x198] sm:$0xff] }
  0xf3   :  { %v5441_v51 = vpack.c.bf16 %v416_v49, %v408_v48  ;;  %v424_v54 = vld [vmem:[#allocation2 + $0x488] sm:$0xff]  ;;  %v431_v59 = vld [vmem:[#allocation2 + $0x4c0] sm:$0xff]  ;;  %v5481_v49 = vpack.c.bf16 %v322_v47, %v314_v46  ;;  %v338_v53 = vld [vmem:[#allocation2 + $0x1d8] sm:$0xff] }
  0xf4   :  { %v432_v55 = vld [vmem:[#allocation2 + $0x4c8] sm:$0xff]  ;;  %v5447_v62 = vpack.c.bf16 %v431_v59, %v423_v58  ;;  %v439_v0 = vld [vmem:[#allocation2 + $0x500] sm:$0xff]  ;;  %v346_v58 = vld [vmem:[#allocation2 + $0x218] sm:$0xff] }
  0xf5   :  { %5428 = vmatpush1.bf16.msra.mxu1 %v5427_v31  ;;  %v5445_v57 = vpack.c.bf16 %v432_v55, %v424_v54  ;;  %v440_v60 = vld [vmem:[#allocation2 + $0x508] sm:$0xff]  ;;  %v447_v1 = vld [vmem:[#allocation2 + $0x540] sm:$0xff]  ;;  %v5485_v55 = vpack.c.bf16 %v338_v53, %v330_v52  ;;  %v354_v59 = vld [vmem:[#allocation2 + $0x258] sm:$0xff] }
  0xf6   :  { %5430 = vmatprep.subr.bf16.mxu1 %v5429_v32  ;;  %v448_v61 = vld [vmem:[#allocation2 + $0x548] sm:$0xff]  ;;  %v5451_v4 = vpack.c.bf16 %v447_v1, %v439_v0  ;;  %v455_v6 = vld [vmem:[#allocation2 + $0x580] sm:$0xff]  ;;  %v282_v32 = vld [vmem:[#allocation2 + $0x18] sm:$0xff] }
  0xf7   :  { %v5449_v63 = vpack.c.bf16 %v448_v61, %v440_v60  ;;  %v456_v2 = vld [vmem:[#allocation2 + $0x588] sm:$0xff]  ;;  %v463_v7 = vld [vmem:[#allocation2 + $0x5c0] sm:$0xff]  ;;  %v5473_v35 = vpack.c.bf16 %v290_v33, %v282_v32  ;;  %v5489_v61 = vpack.c.bf16 %v354_v59, %v346_v58  ;;  %v362_v0 = vld [vmem:[#allocation2 + $0x298] sm:$0xff] }
  0xf8   :  { %v464_v3 = vld [vmem:[#allocation2 + $0x5c8] sm:$0xff]  ;;  %v5455_v10 = vpack.c.bf16 %v463_v7, %v455_v6  ;;  %v471_v12 = vld [vmem:[#allocation2 + $0x600] sm:$0xff]  ;;  %v370_v1 = vld [vmem:[#allocation2 + $0x2d8] sm:$0xff] }
  0xf9   :  { %5432 = vmatpush1.bf16.msra.mxu1 %v5431_v37  ;;  %v5453_v5 = vpack.c.bf16 %v464_v3, %v456_v2  ;;  %v472_v8 = vld [vmem:[#allocation2 + $0x608] sm:$0xff]  ;;  %v479_v13 = vld [vmem:[#allocation2 + $0x640] sm:$0xff]  ;;  %v289_v37 = vld [vmem:[#allocation2 + $0x50] sm:$0xff]  ;;  %v5493_v3 = vpack.c.bf16 %v370_v1, %v362_v0 }
  0xfa   :  { %5434 = vmatprep.subr.bf16.mxu1 %v5433_v38  ;;  %v480_v9 = vld [vmem:[#allocation2 + $0x648] sm:$0xff]  ;;  %v5459_v16 = vpack.c.bf16 %v479_v13, %v471_v12  ;;  %v487_v18 = vld [vmem:[#allocation2 + $0x680] sm:$0xff]  ;;  %v298_v38 = vld [vmem:[#allocation2 + $0x98] sm:$0xff]  ;;  %v5475_v42 = vpack.c.bf16 %v289_v37, %v281_v36 }
  0xfb   :  { %v5457_v11 = vpack.c.bf16 %v480_v9, %v472_v8  ;;  %v488_v14 = vld [vmem:[#allocation2 + $0x688] sm:$0xff]  ;;  %v495_v19 = vld [vmem:[#allocation2 + $0x6c0] sm:$0xff]  ;;  %v5477_v43 = vpack.c.bf16 %v306_v39, %v298_v38  ;;  %v378_v6 = vld [vmem:[#allocation2 + $0x318] sm:$0xff] }
  0xfc   :  { %v496_v15 = vld [vmem:[#allocation2 + $0x6c8] sm:$0xff]  ;;  %v5463_v22 = vpack.c.bf16 %v495_v19, %v487_v18  ;;  %v503_v24 = vld [vmem:[#allocation2 + $0x700] sm:$0xff]  ;;  %v386_v7 = vld [vmem:[#allocation2 + $0x358] sm:$0xff] }
  0xfd   :  { %5436 = vmatpush1.bf16.msra.mxu1 %v5435_v44  ;;  %v5461_v17 = vpack.c.bf16 %v496_v15, %v488_v14  ;;  %v504_v20 = vld [vmem:[#allocation2 + $0x708] sm:$0xff]  ;;  %v511_v25 = vld [vmem:[#allocation2 + $0x740] sm:$0xff]  ;;  %v297_v44 = vld [vmem:[#allocation2 + $0x90] sm:$0xff]  ;;  %v5497_v9 = vpack.c.bf16 %v386_v7, %v378_v6 }
  0xfe   :  { %5438 = vmatprep.subr.bf16.mxu1 %v5437_v45  ;;  %v512_v21 = vld [vmem:[#allocation2 + $0x748] sm:$0xff]  ;;  %v5467_v28 = vpack.c.bf16 %v511_v25, %v503_v24  ;;  %v519_v30 = vld [vmem:[#allocation2 + $0x780] sm:$0xff]  ;;  %v305_v45 = vld [vmem:[#allocation2 + $0xd0] sm:$0xff] }
  0xff   :  { %v5465_v23 = vpack.c.bf16 %v512_v21, %v504_v20  ;;  %v520_v26 = vld [vmem:[#allocation2 + $0x788] sm:$0xff]  ;;  %v527_v31 = vld [vmem:[#allocation2 + $0x7c0] sm:$0xff]  ;;  %v5479_v48 = vpack.c.bf16 %v305_v45, %v297_v44  ;;  %v394_v12 = vld [vmem:[#allocation2 + $0x398] sm:$0xff] }
 0x100   :  { %v528_v27 = vld [vmem:[#allocation2 + $0x7c8] sm:$0xff]  ;;  %v5471_v34 = vpack.c.bf16 %v527_v31, %v519_v30  ;;  %v7967_v40 = vld [vmem:[%s7713_s5] sm:$0xff]  ;;  %v402_v13 = vld [vmem:[#allocation2 + $0x3d8] sm:$0xff]  ;;  %s8489_s5 = sld [smem:[#allocation22_spill]] }
 0x101   :  { %5440 = vmatpush1.bf16.msra.mxu1 %v5439_v50  ;;  %v5469_v29 = vpack.c.bf16 %v528_v27, %v520_v26  ;;  %v313_v50 = vld [vmem:[#allocation2 + $0x110] sm:$0xff]  ;;  %v5501_v15 = vpack.c.bf16 %v402_v13, %v394_v12  ;;  %v410_v18 = vld [vmem:[#allocation2 + $0x418] sm:$0xff] }
 0x102   :  { %5442 = vmatprep.subr.bf16.mxu1 %v5441_v51  ;;  %v321_v51 = vld [vmem:[#allocation2 + $0x150] sm:$0xff]  ;;  %v418_v19 = vld [vmem:[#allocation2 + $0x458] sm:$0xff] }
 0x103   :  { %v5483_v54 = vpack.c.bf16 %v321_v51, %v313_v50  ;;  %v5505_v21 = vpack.c.bf16 %v418_v19, %v410_v18  ;;  %v426_v24 = vld [vmem:[#allocation2 + $0x498] sm:$0xff] }
 0x104   :  { %v434_v25 = vld [vmem:[#allocation2 + $0x4d8] sm:$0xff] }
 0x105   :  { %5444 = vmatpush1.bf16.msra.mxu1 %v5443_v56  ;;  %v329_v56 = vld [vmem:[#allocation2 + $0x190] sm:$0xff]  ;;  %v5509_v27 = vpack.c.bf16 %v434_v25, %v426_v24  ;;  %v442_v30 = vld [vmem:[#allocation2 + $0x518] sm:$0xff] }
 0x106   :  { %5446 = vmatprep.subr.bf16.mxu1 %v5445_v57  ;;  %v337_v57 = vld [vmem:[#allocation2 + $0x1d0] sm:$0xff]  ;;  %v450_v31 = vld [vmem:[#allocation2 + $0x558] sm:$0xff] }
 0x107   :  { %v5487_v60 = vpack.c.bf16 %v337_v57, %v329_v56  ;;  %v5513_v33 = vpack.c.bf16 %v450_v31, %v442_v30  ;;  %v458_v36 = vld [vmem:[#allocation2 + $0x598] sm:$0xff] }
 0x108   :  { %v466_v37 = vld [vmem:[#allocation2 + $0x5d8] sm:$0xff] }
 0x109   :  { %5448 = vmatpush1.bf16.msra.mxu1 %v5447_v62  ;;  %v345_v62 = vld [vmem:[#allocation2 + $0x210] sm:$0xff]  ;;  %v5517_v39 = vpack.c.bf16 %v466_v37, %v458_v36  ;;  %v474_v44 = vld [vmem:[#allocation2 + $0x618] sm:$0xff] }
 0x10a   :  { %5450 = vmatprep.subr.bf16.mxu1 %v5449_v63  ;;  %v353_v63 = vld [vmem:[#allocation2 + $0x250] sm:$0xff]  ;;  %v482_v45 = vld [vmem:[#allocation2 + $0x658] sm:$0xff] }
 0x10b   :  { %v5491_v2 = vpack.c.bf16 %v353_v63, %v345_v62  ;;  %v5521_v47 = vpack.c.bf16 %v482_v45, %v474_v44  ;;  %v490_v50 = vld [vmem:[#allocation2 + $0x698] sm:$0xff] }
 0x10c   :  { %v498_v51 = vld [vmem:[#allocation2 + $0x6d8] sm:$0xff] }
 0x10d   :  { %5452 = vmatpush1.bf16.msra.mxu1 %v5451_v4  ;;  %v361_v4 = vld [vmem:[#allocation2 + $0x290] sm:$0xff]  ;;  %v5525_v53 = vpack.c.bf16 %v498_v51, %v490_v50  ;;  %v506_v56 = vld [vmem:[#allocation2 + $0x718] sm:$0xff] }
 0x10e   :  { %5454 = vmatprep.subr.bf16.mxu1 %v5453_v5  ;;  %v369_v5 = vld [vmem:[#allocation2 + $0x2d0] sm:$0xff]  ;;  %v514_v57 = vld [vmem:[#allocation2 + $0x758] sm:$0xff] }
 0x10f   :  { %v5495_v8 = vpack.c.bf16 %v369_v5, %v361_v4  ;;  %v5529_v59 = vpack.c.bf16 %v514_v57, %v506_v56  ;;  %v522_v62 = vld [vmem:[#allocation2 + $0x798] sm:$0xff]  ;;  %v284_v4 = vld [vmem:[#allocation2 + $0x28] sm:$0xff] }
 0x110   :  { %v530_v63 = vld [vmem:[#allocation2 + $0x7d8] sm:$0xff]  ;;  %v292_v5 = vld [vmem:[#allocation2 + $0x68] sm:$0xff] }
 0x111   :  { %5456 = vmatpush1.bf16.msra.mxu1 %v5455_v10  ;;  %v377_v10 = vld [vmem:[#allocation2 + $0x310] sm:$0xff]  ;;  %v5533_v1 = vpack.c.bf16 %v530_v63, %v522_v62  ;;  %v5537_v7 = vpack.c.bf16 %v292_v5, %v284_v4 }
 0x112   :  { %5458 = vmatprep.subr.bf16.mxu1 %v5457_v11  ;;  %v385_v11 = vld [vmem:[#allocation2 + $0x350] sm:$0xff] }
 0x113   :  { %v5499_v14 = vpack.c.bf16 %v385_v11, %v377_v10  ;;  %v300_v10 = vld [vmem:[#allocation2 + $0xa8] sm:$0xff] }
 0x114   :  { %v308_v11 = vld [vmem:[#allocation2 + $0xe8] sm:$0xff] }
 0x115   :  { %5460 = vmatpush1.bf16.msra.mxu1 %v5459_v16  ;;  %v393_v16 = vld [vmem:[#allocation2 + $0x390] sm:$0xff]  ;;  %v5541_v13 = vpack.c.bf16 %v308_v11, %v300_v10 }
 0x116   :  { %5462 = vmatprep.subr.bf16.mxu1 %v5461_v17  ;;  %v401_v17 = vld [vmem:[#allocation2 + $0x3d0] sm:$0xff] }
 0x117   :  { %v5503_v20 = vpack.c.bf16 %v401_v17, %v393_v16  ;;  %v316_v16 = vld [vmem:[#allocation2 + $0x128] sm:$0xff] }
 0x118   :  { %v324_v17 = vld [vmem:[#allocation2 + $0x168] sm:$0xff] }
 0x119   :  { %5464 = vmatpush1.bf16.msra.mxu1 %v5463_v22  ;;  %v409_v22 = vld [vmem:[#allocation2 + $0x410] sm:$0xff]  ;;  %v5545_v19 = vpack.c.bf16 %v324_v17, %v316_v16 }
 0x11a   :  { %5466 = vmatprep.subr.bf16.mxu1 %v5465_v23  ;;  %v417_v23 = vld [vmem:[#allocation2 + $0x450] sm:$0xff] }
 0x11b   :  { %v5507_v26 = vpack.c.bf16 %v417_v23, %v409_v22  ;;  %v332_v22 = vld [vmem:[#allocation2 + $0x1a8] sm:$0xff] }
 0x11c   :  { %v340_v23 = vld [vmem:[#allocation2 + $0x1e8] sm:$0xff] }
 0x11d   :  { %5468 = vmatpush1.bf16.msra.mxu1 %v5467_v28  ;;  %v425_v28 = vld [vmem:[#allocation2 + $0x490] sm:$0xff]  ;;  %v5549_v25 = vpack.c.bf16 %v340_v23, %v332_v22 }
 0x11e   :  { %5470 = vmatprep.subr.bf16.mxu1 %v5469_v29  ;;  %v433_v29 = vld [vmem:[#allocation2 + $0x4d0] sm:$0xff] }
 0x11f   :  { %v5511_v32 = vpack.c.bf16 %v433_v29, %v425_v28  ;;  %v348_v28 = vld [vmem:[#allocation2 + $0x228] sm:$0xff] }
 0x120   :  { %v356_v29 = vld [vmem:[#allocation2 + $0x268] sm:$0xff] }
 0x121   :  { %5472 = vmatpush1.bf16.msra.mxu1 %v5471_v34  ;;  %v441_v34 = vld [vmem:[#allocation2 + $0x510] sm:$0xff]  ;;  %v5553_v31 = vpack.c.bf16 %v356_v29, %v348_v28 }
 0x122   :  { %5474 = vmatprep.subr.bf16.mxu1 %v5473_v35  ;;  %v449_v35 = vld [vmem:[#allocation2 + $0x550] sm:$0xff] }
 0x123   :  { %v5515_v38 = vpack.c.bf16 %v449_v35, %v441_v34  ;;  %v364_v34 = vld [vmem:[#allocation2 + $0x2a8] sm:$0xff] }
 0x124   :  { %642 = vmatmul.mubr.f32.vlgmr.msra.gmra.mrb[0].mxu1 %v7967_v40  ;;  %v372_v35 = vld [vmem:[#allocation2 + $0x2e8] sm:$0xff] }
 0x125   :  { %5476 = vmatpush1.bf16.msra.mxu1 %v5475_v42  ;;  %712 = vmatprep.mubr.f32.mxu1 %v7963_v41  ;;  %v457_v42 = vld [vmem:[#allocation2 + $0x590] sm:$0xff]  ;;  %v5557_v37 = vpack.c.bf16 %v372_v35, %v364_v34 }
 0x126   :  { %5478 = vmatprep.subr.bf16.mxu1 %v5477_v43  ;;  %v465_v43 = vld [vmem:[#allocation2 + $0x5d0] sm:$0xff] }
 0x127   :  { %v5519_v46 = vpack.c.bf16 %v465_v43, %v457_v42  ;;  %v380_v42 = vld [vmem:[#allocation2 + $0x328] sm:$0xff] }
 0x128   :  { %v388_v43 = vld [vmem:[#allocation2 + $0x368] sm:$0xff] }
 0x129   :  { %5480 = vmatpush1.bf16.msra.mxu1 %v5479_v48  ;;  %v473_v48 = vld [vmem:[#allocation2 + $0x610] sm:$0xff]  ;;  %v5561_v45 = vpack.c.bf16 %v388_v43, %v380_v42 }
 0x12a   :  { %5482 = vmatprep.subr.bf16.mxu1 %v5481_v49  ;;  %v481_v49 = vld [vmem:[#allocation2 + $0x650] sm:$0xff] }
 0x12b   :  { %v5523_v52 = vpack.c.bf16 %v481_v49, %v473_v48  ;;  %v396_v48 = vld [vmem:[#allocation2 + $0x3a8] sm:$0xff] }
 0x12c   :  { %v404_v49 = vld [vmem:[#allocation2 + $0x3e8] sm:$0xff] }
 0x12d   :  { %5484 = vmatpush1.bf16.msra.mxu1 %v5483_v54  ;;  %v489_v54 = vld [vmem:[#allocation2 + $0x690] sm:$0xff]  ;;  %v5565_v51 = vpack.c.bf16 %v404_v49, %v396_v48 }
 0x12e   :  { %5486 = vmatprep.subr.bf16.mxu1 %v5485_v55  ;;  %v497_v55 = vld [vmem:[#allocation2 + $0x6d0] sm:$0xff] }
 0x12f   :  { %v5527_v58 = vpack.c.bf16 %v497_v55, %v489_v54  ;;  %v412_v54 = vld [vmem:[#allocation2 + $0x428] sm:$0xff] }
 0x130   :  { %v420_v55 = vld [vmem:[#allocation2 + $0x468] sm:$0xff] }
 0x131   :  { %5488 = vmatpush1.bf16.msra.mxu1 %v5487_v60  ;;  %v505_v60 = vld [vmem:[#allocation2 + $0x710] sm:$0xff]  ;;  %v5569_v57 = vpack.c.bf16 %v420_v55, %v412_v54 }
 0x132   :  { %5490 = vmatprep.subr.bf16.mxu1 %v5489_v61  ;;  %v513_v61 = vld [vmem:[#allocation2 + $0x750] sm:$0xff] }
 0x133   :  { %v5531_v0 = vpack.c.bf16 %v513_v61, %v505_v60  ;;  %v428_v60 = vld [vmem:[#allocation2 + $0x4a8] sm:$0xff] }
 0x134   :  { %v436_v61 = vld [vmem:[#allocation2 + $0x4e8] sm:$0xff] }
 0x135   :  { %5492 = vmatpush1.bf16.msra.mxu1 %v5491_v2  ;;  %v521_v2 = vld [vmem:[#allocation2 + $0x790] sm:$0xff]  ;;  %v5573_v63 = vpack.c.bf16 %v436_v61, %v428_v60 }
 0x136   :  { %5494 = vmatprep.subr.bf16.mxu1 %v5493_v3  ;;  %v529_v3 = vld [vmem:[#allocation2 + $0x7d0] sm:$0xff] }
 0x137   :  { %v5535_v6 = vpack.c.bf16 %v529_v3, %v521_v2  ;;  %v444_v2 = vld [vmem:[#allocation2 + $0x528] sm:$0xff] }
 0x138   :  { %v452_v3 = vld [vmem:[#allocation2 + $0x568] sm:$0xff] }
 0x139   :  { %5496 = vmatpush1.bf16.msra.mxu1 %v5495_v8  ;;  %v283_v8 = vld [vmem:[#allocation2 + $0x20] sm:$0xff]  ;;  %v5577_v5 = vpack.c.bf16 %v452_v3, %v444_v2 }
 0x13a   :  { %5498 = vmatprep.subr.bf16.mxu1 %v5497_v9  ;;  %v291_v9 = vld [vmem:[#allocation2 + $0x60] sm:$0xff] }
 0x13b   :  { %v5539_v12 = vpack.c.bf16 %v291_v9, %v283_v8  ;;  %v460_v8 = vld [vmem:[#allocation2 + $0x5a8] sm:$0xff] }
 0x13c   :  { %v468_v9 = vld [vmem:[#allocation2 + $0x5e8] sm:$0xff] }
 0x13d   :  { %5500 = vmatpush1.bf16.msra.mxu1 %v5499_v14  ;;  %v299_v14 = vld [vmem:[#allocation2 + $0xa0] sm:$0xff]  ;;  %v5581_v11 = vpack.c.bf16 %v468_v9, %v460_v8  ;;  %v365_v9 = vld [vmem:[#allocation2 + $0x2b0] sm:$0xff] }
 0x13e   :  { %5502 = vmatprep.subr.bf16.mxu1 %v5501_v15  ;;  %v307_v15 = vld [vmem:[#allocation2 + $0xe0] sm:$0xff] }
 0x13f   :  { %v5543_v18 = vpack.c.bf16 %v307_v15, %v299_v14  ;;  %v476_v14 = vld [vmem:[#allocation2 + $0x628] sm:$0xff] }
 0x140   :  { %v484_v15 = vld [vmem:[#allocation2 + $0x668] sm:$0xff] }
 0x141   :  { %5504 = vmatpush1.bf16.msra.mxu1 %v5503_v20  ;;  %v315_v20 = vld [vmem:[#allocation2 + $0x120] sm:$0xff]  ;;  %v5585_v17 = vpack.c.bf16 %v484_v15, %v476_v14  ;;  %v381_v15 = vld [vmem:[#allocation2 + $0x330] sm:$0xff] }
 0x142   :  { %5506 = vmatprep.subr.bf16.mxu1 %v5505_v21  ;;  %v323_v21 = vld [vmem:[#allocation2 + $0x160] sm:$0xff] }
 0x143   :  { %v5547_v24 = vpack.c.bf16 %v323_v21, %v315_v20  ;;  %v492_v20 = vld [vmem:[#allocation2 + $0x6a8] sm:$0xff] }
 0x144   :  { %v500_v21 = vld [vmem:[#allocation2 + $0x6e8] sm:$0xff] }
 0x145   :  { %5508 = vmatpush1.bf16.msra.mxu1 %v5507_v26  ;;  %v331_v26 = vld [vmem:[#allocation2 + $0x1a0] sm:$0xff]  ;;  %v5589_v23 = vpack.c.bf16 %v500_v21, %v492_v20  ;;  %v397_v21 = vld [vmem:[#allocation2 + $0x3b0] sm:$0xff] }
 0x146   :  { %5510 = vmatprep.subr.bf16.mxu1 %v5509_v27  ;;  %v339_v27 = vld [vmem:[#allocation2 + $0x1e0] sm:$0xff] }
 0x147   :  { %v5551_v30 = vpack.c.bf16 %v339_v27, %v331_v26  ;;  %v508_v26 = vld [vmem:[#allocation2 + $0x728] sm:$0xff] }
 0x148   :  { %v516_v27 = vld [vmem:[#allocation2 + $0x768] sm:$0xff] }
 0x149   :  { %5512 = vmatpush1.bf16.msra.mxu1 %v5511_v32  ;;  %v347_v32 = vld [vmem:[#allocation2 + $0x220] sm:$0xff]  ;;  %v5593_v29 = vpack.c.bf16 %v516_v27, %v508_v26  ;;  %v413_v27 = vld [vmem:[#allocation2 + $0x430] sm:$0xff] }
 0x14a   :  { %5514 = vmatprep.subr.bf16.mxu1 %v5513_v33  ;;  %v355_v33 = vld [vmem:[#allocation2 + $0x260] sm:$0xff] }
 0x14b   :  { %v5555_v36 = vpack.c.bf16 %v355_v33, %v347_v32  ;;  %v524_v32 = vld [vmem:[#allocation2 + $0x7a8] sm:$0xff] }
 0x14c   :  { %v532_v33 = vld [vmem:[#allocation2 + $0x7e8] sm:$0xff] }
 0x14d   :  { %5516 = vmatpush1.bf16.msra.mxu1 %v5515_v38  ;;  %v363_v38 = vld [vmem:[#allocation2 + $0x2a0] sm:$0xff]  ;;  %v5597_v35 = vpack.c.bf16 %v532_v33, %v524_v32  ;;  %v429_v33 = vld [vmem:[#allocation2 + $0x4b0] sm:$0xff] }
 0x14e   :  { %5518 = vmatprep.subr.bf16.mxu1 %v5517_v39  ;;  %v371_v39 = vld [vmem:[#allocation2 + $0x2e0] sm:$0xff] }
 0x14f   :  { %v5559_v44 = vpack.c.bf16 %v371_v39, %v363_v38  ;;  %v286_v38 = vld [vmem:[#allocation2 + $0x38] sm:$0xff] }
 0x150   :  { %v294_v39 = vld [vmem:[#allocation2 + $0x78] sm:$0xff] }
 0x151   :  { %5520 = vmatpush1.bf16.msra.mxu1 %v5519_v46  ;;  %v379_v46 = vld [vmem:[#allocation2 + $0x320] sm:$0xff]  ;;  %v5601_v43 = vpack.c.bf16 %v294_v39, %v286_v38  ;;  %v445_v39 = vld [vmem:[#allocation2 + $0x530] sm:$0xff] }
 0x152   :  { %5522 = vmatprep.subr.bf16.mxu1 %v5521_v47  ;;  %v387_v47 = vld [vmem:[#allocation2 + $0x360] sm:$0xff] }
 0x153   :  { %v5563_v50 = vpack.c.bf16 %v387_v47, %v379_v46  ;;  %v302_v46 = vld [vmem:[#allocation2 + $0xb8] sm:$0xff] }
 0x154   :  { %v310_v47 = vld [vmem:[#allocation2 + $0xf8] sm:$0xff] }
 0x155   :  { %5524 = vmatpush1.bf16.msra.mxu1 %v5523_v52  ;;  %v395_v52 = vld [vmem:[#allocation2 + $0x3a0] sm:$0xff]  ;;  %v5605_v49 = vpack.c.bf16 %v310_v47, %v302_v46  ;;  %v461_v47 = vld [vmem:[#allocation2 + $0x5b0] sm:$0xff] }
 0x156   :  { %5526 = vmatprep.subr.bf16.mxu1 %v5525_v53  ;;  %v403_v53 = vld [vmem:[#allocation2 + $0x3e0] sm:$0xff] }
 0x157   :  { %v5567_v56 = vpack.c.bf16 %v403_v53, %v395_v52  ;;  %v318_v52 = vld [vmem:[#allocation2 + $0x138] sm:$0xff] }
 0x158   :  { %v326_v53 = vld [vmem:[#allocation2 + $0x178] sm:$0xff] }
 0x159   :  { %5528 = vmatpush1.bf16.msra.mxu1 %v5527_v58  ;;  %v411_v58 = vld [vmem:[#allocation2 + $0x420] sm:$0xff]  ;;  %v5609_v55 = vpack.c.bf16 %v326_v53, %v318_v52  ;;  %v477_v53 = vld [vmem:[#allocation2 + $0x630] sm:$0xff] }
 0x15a   :  { %5530 = vmatprep.subr.bf16.mxu1 %v5529_v59  ;;  %v419_v59 = vld [vmem:[#allocation2 + $0x460] sm:$0xff] }
 0x15b   :  { %v5571_v62 = vpack.c.bf16 %v419_v59, %v411_v58  ;;  %v334_v58 = vld [vmem:[#allocation2 + $0x1b8] sm:$0xff] }
 0x15c   :  { %v342_v59 = vld [vmem:[#allocation2 + $0x1f8] sm:$0xff] }
 0x15d   :  { %5532 = vmatpush1.bf16.msra.mxu1 %v5531_v0  ;;  %v427_v0 = vld [vmem:[#allocation2 + $0x4a0] sm:$0xff]  ;;  %v5613_v61 = vpack.c.bf16 %v342_v59, %v334_v58  ;;  %v493_v59 = vld [vmem:[#allocation2 + $0x6b0] sm:$0xff] }
 0x15e   :  { %5534 = vmatprep.subr.bf16.mxu1 %v5533_v1  ;;  %v435_v1 = vld [vmem:[#allocation2 + $0x4e0] sm:$0xff] }
 0x15f   :  { %v5575_v4 = vpack.c.bf16 %v435_v1, %v427_v0  ;;  %v350_v0 = vld [vmem:[#allocation2 + $0x238] sm:$0xff] }
 0x160   :  { %v358_v1 = vld [vmem:[#allocation2 + $0x278] sm:$0xff] }
 0x161   :  { %5536 = vmatpush1.bf16.msra.mxu1 %v5535_v6  ;;  %v443_v6 = vld [vmem:[#allocation2 + $0x520] sm:$0xff]  ;;  %v5617_v3 = vpack.c.bf16 %v358_v1, %v350_v0  ;;  %v509_v1 = vld [vmem:[#allocation2 + $0x730] sm:$0xff] }
 0x162   :  { %5538 = vmatprep.subr.bf16.mxu1 %v5537_v7  ;;  %v451_v7 = vld [vmem:[#allocation2 + $0x560] sm:$0xff] }
 0x163   :  { %v5579_v10 = vpack.c.bf16 %v451_v7, %v443_v6  ;;  %v374_v6 = vld [vmem:[#allocation2 + $0x2f8] sm:$0xff] }
 0x164   :  { %713 = vmatmul.mubr.f32.vlgmr.msra.gmra.mrb[2].mxu1 %v7967_v40 }
 0x165   :  { %5540 = vmatpush1.bf16.msra.mxu1 %v5539_v12  ;;  %783 = vmatprep.mubr.f32.mxu1 %v7963_v41  ;;  %v459_v12 = vld [vmem:[#allocation2 + $0x5a0] sm:$0xff] }
 0x166   :  { %5542 = vmatprep.subr.bf16.mxu1 %v5541_v13  ;;  %v467_v13 = vld [vmem:[#allocation2 + $0x5e0] sm:$0xff] }
 0x167   :  { %v5583_v16 = vpack.c.bf16 %v467_v13, %v459_v12  ;;  %v390_v12 = vld [vmem:[#allocation2 + $0x378] sm:$0xff] }
 0x169   :  { %5544 = vmatpush1.bf16.msra.mxu1 %v5543_v18  ;;  %v475_v18 = vld [vmem:[#allocation2 + $0x620] sm:$0xff] }
 0x16a   :  { %5546 = vmatprep.subr.bf16.mxu1 %v5545_v19  ;;  %v483_v19 = vld [vmem:[#allocation2 + $0x660] sm:$0xff] }
 0x16b   :  { %v5587_v22 = vpack.c.bf16 %v483_v19, %v475_v18  ;;  %v406_v18 = vld [vmem:[#allocation2 + $0x3f8] sm:$0xff] }
 0x16d   :  { %5548 = vmatpush1.bf16.msra.mxu1 %v5547_v24  ;;  %v491_v24 = vld [vmem:[#allocation2 + $0x6a0] sm:$0xff] }
 0x16e   :  { %5550 = vmatprep.subr.bf16.mxu1 %v5549_v25  ;;  %v499_v25 = vld [vmem:[#allocation2 + $0x6e0] sm:$0xff] }
 0x16f   :  { %v5591_v28 = vpack.c.bf16 %v499_v25, %v491_v24  ;;  %v422_v24 = vld [vmem:[#allocation2 + $0x478] sm:$0xff] }
 0x171   :  { %5552 = vmatpush1.bf16.msra.mxu1 %v5551_v30  ;;  %v507_v30 = vld [vmem:[#allocation2 + $0x720] sm:$0xff] }
 0x172   :  { %5554 = vmatprep.subr.bf16.mxu1 %v5553_v31  ;;  %v515_v31 = vld [vmem:[#allocation2 + $0x760] sm:$0xff] }
 0x173   :  { %v5595_v34 = vpack.c.bf16 %v515_v31, %v507_v30  ;;  %v438_v30 = vld [vmem:[#allocation2 + $0x4f8] sm:$0xff] }
 0x175   :  { %5556 = vmatpush1.bf16.msra.mxu1 %v5555_v36  ;;  %v523_v36 = vld [vmem:[#allocation2 + $0x7a0] sm:$0xff] }
 0x176   :  { %5558 = vmatprep.subr.bf16.mxu1 %v5557_v37  ;;  %v531_v37 = vld [vmem:[#allocation2 + $0x7e0] sm:$0xff] }
 0x177   :  { %v5599_v42 = vpack.c.bf16 %v531_v37, %v523_v36  ;;  %v454_v36 = vld [vmem:[#allocation2 + $0x578] sm:$0xff] }
 0x179   :  { %5560 = vmatpush1.bf16.msra.mxu1 %v5559_v44  ;;  %v285_v44 = vld [vmem:[#allocation2 + $0x30] sm:$0xff] }
 0x17a   :  { %5562 = vmatprep.subr.bf16.mxu1 %v5561_v45  ;;  %v293_v45 = vld [vmem:[#allocation2 + $0x70] sm:$0xff] }
 0x17b   :  { %v5603_v48 = vpack.c.bf16 %v293_v45, %v285_v44  ;;  %v470_v44 = vld [vmem:[#allocation2 + $0x5f8] sm:$0xff] }
 0x17d   :  { %5564 = vmatpush1.bf16.msra.mxu1 %v5563_v50  ;;  %v301_v50 = vld [vmem:[#allocation2 + $0xb0] sm:$0xff] }
 0x17e   :  { %5566 = vmatprep.subr.bf16.mxu1 %v5565_v51  ;;  %v309_v51 = vld [vmem:[#allocation2 + $0xf0] sm:$0xff] }
 0x17f   :  { %v5607_v54 = vpack.c.bf16 %v309_v51, %v301_v50  ;;  %v486_v50 = vld [vmem:[#allocation2 + $0x678] sm:$0xff] }
 0x181   :  { %5568 = vmatpush1.bf16.msra.mxu1 %v5567_v56  ;;  %v317_v56 = vld [vmem:[#allocation2 + $0x130] sm:$0xff] }
 0x182   :  { %5570 = vmatprep.subr.bf16.mxu1 %v5569_v57  ;;  %v325_v57 = vld [vmem:[#allocation2 + $0x170] sm:$0xff] }
 0x183   :  { %v5611_v60 = vpack.c.bf16 %v325_v57, %v317_v56  ;;  %v502_v56 = vld [vmem:[#allocation2 + $0x6f8] sm:$0xff] }
 0x185   :  { %5572 = vmatpush1.bf16.msra.mxu1 %v5571_v62  ;;  %v333_v62 = vld [vmem:[#allocation2 + $0x1b0] sm:$0xff] }
 0x186   :  { %5574 = vmatprep.subr.bf16.mxu1 %v5573_v63  ;;  %v341_v63 = vld [vmem:[#allocation2 + $0x1f0] sm:$0xff] }
 0x187   :  { %v5615_v2 = vpack.c.bf16 %v341_v63, %v333_v62  ;;  %v518_v62 = vld [vmem:[#allocation2 + $0x778] sm:$0xff] }
 0x189   :  { %5576 = vmatpush1.bf16.msra.mxu1 %v5575_v4  ;;  %v349_v4 = vld [vmem:[#allocation2 + $0x230] sm:$0xff] }
 0x18a   :  { %5578 = vmatprep.subr.bf16.mxu1 %v5577_v5  ;;  %v366_v5 = vld [vmem:[#allocation2 + $0x2b8] sm:$0xff] }
 0x18b   :  { %v5621_v8 = vpack.c.bf16 %v374_v6, %v366_v5  ;;  %v525_v6 = vld [vmem:[#allocation2 + $0x7b0] sm:$0xff] }
 0x18d   :  { %5580 = vmatpush1.bf16.msra.mxu1 %v5579_v10  ;;  %v373_v10 = vld [vmem:[#allocation2 + $0x2f0] sm:$0xff] }
 0x18e   :  { %5582 = vmatprep.subr.bf16.mxu1 %v5581_v11  ;;  %v382_v11 = vld [vmem:[#allocation2 + $0x338] sm:$0xff]  ;;  %v5623_v13 = vpack.c.bf16 %v373_v10, %v365_v9 }
 0x18f   :  { %v5625_v14 = vpack.c.bf16 %v390_v12, %v382_v11 }
 0x191   :  { %5584 = vmatpush1.bf16.msra.mxu1 %v5583_v16  ;;  %v389_v16 = vld [vmem:[#allocation2 + $0x370] sm:$0xff] }
 0x192   :  { %5586 = vmatprep.subr.bf16.mxu1 %v5585_v17  ;;  %v398_v17 = vld [vmem:[#allocation2 + $0x3b8] sm:$0xff]  ;;  %v5627_v19 = vpack.c.bf16 %v389_v16, %v381_v15 }
 0x193   :  { %v5629_v20 = vpack.c.bf16 %v406_v18, %v398_v17  ;;  %v1021_v15 = vld [vmem:[#allocation4 + $0x18] sm:$0xff]  ;;  %v1018_v18 = vld [vmem:[#allocation4] sm:$0xff] }
 0x194   :  { %v1025_v17 = vld [vmem:[#allocation4 + $0x38] sm:$0xff] }
 0x195   :  { %5588 = vmatpush1.bf16.msra.mxu1 %v5587_v22  ;;  %v405_v22 = vld [vmem:[#allocation2 + $0x3f0] sm:$0xff] }
 0x196   :  { %5590 = vmatprep.subr.bf16.mxu1 %v5589_v23  ;;  %v414_v23 = vld [vmem:[#allocation2 + $0x438] sm:$0xff]  ;;  %v5631_v25 = vpack.c.bf16 %v405_v22, %v397_v21  ;;  %v1020_v22 = vld [vmem:[#allocation4 + $0x10] sm:$0xff] }
 0x197   :  { %v5633_v26 = vpack.c.bf16 %v422_v24, %v414_v23  ;;  %v1024_v23 = vld [vmem:[#allocation4 + $0x30] sm:$0xff] }
 0x198   :  { %v5923_v24 = vpack.c.bf16 %v1024_v23, %v1020_v22  ;;  %v1064_v22 = vld [vmem:[#allocation4 + $0x170] sm:$0xff]  ;;  %v1067_v23 = vld [vmem:[#allocation4 + $0x188] sm:$0xff] }
 0x199   :  { %5592 = vmatpush1.bf16.msra.mxu1 %v5591_v28  ;;  %v421_v28 = vld [vmem:[#allocation2 + $0x470] sm:$0xff] }
 0x19a   :  { %5594 = vmatprep.subr.bf16.mxu1 %v5593_v29  ;;  %v430_v29 = vld [vmem:[#allocation2 + $0x4b8] sm:$0xff]  ;;  %v5635_v31 = vpack.c.bf16 %v421_v28, %v413_v27 }
 0x19b   :  { %v5637_v32 = vpack.c.bf16 %v438_v30, %v430_v29  ;;  %v1033_v27 = vld [vmem:[#allocation4 + $0x78] sm:$0xff]  ;;  %v1026_v30 = vld [vmem:[#allocation4 + $0x40] sm:$0xff] }
 0x19d   :  { %5596 = vmatpush1.bf16.msra.mxu1 %v5595_v34  ;;  %v437_v34 = vld [vmem:[#allocation2 + $0x4f0] sm:$0xff] }
 0x19e   :  { %5598 = vmatprep.subr.bf16.mxu1 %v5597_v35  ;;  %v446_v35 = vld [vmem:[#allocation2 + $0x538] sm:$0xff]  ;;  %v5639_v37 = vpack.c.bf16 %v437_v34, %v429_v33  ;;  %v1032_v34 = vld [vmem:[#allocation4 + $0x70] sm:$0xff] }
 0x19f   :  { %v5641_v38 = vpack.c.bf16 %v454_v36, %v446_v35  ;;  %v1035_v35 = vld [vmem:[#allocation4 + $0x88] sm:$0xff] }
 0x1a0   :  { %v1039_v36 = vld [vmem:[#allocation4 + $0xa8] sm:$0xff] }
 0x1a1   :  { %5600 = vmatpush1.bf16.msra.mxu1 %v5599_v42  ;;  %v453_v42 = vld [vmem:[#allocation2 + $0x570] sm:$0xff] }
 0x1a2   :  { %5602 = vmatprep.subr.bf16.mxu1 %v5601_v43  ;;  %v462_v43 = vld [vmem:[#allocation2 + $0x5b8] sm:$0xff]  ;;  %v5643_v45 = vpack.c.bf16 %v453_v42, %v445_v39 }
 0x1a3   :  { %v5645_v46 = vpack.c.bf16 %v470_v44, %v462_v43  ;;  %v1037_v39 = vld [vmem:[#allocation4 + $0x98] sm:$0xff]  ;;  %v1034_v43 = vld [vmem:[#allocation4 + $0x80] sm:$0xff] }
 0x1a4   :  { %784 = vmatmul.mubr.f32.vlgmr.msra.gmra.mrb[4].mxu1 %v7967_v40  ;;  %v1041_v42 = vld [vmem:[#allocation4 + $0xb8] sm:$0xff] }
 0x1a5   :  { %5604 = vmatpush1.bf16.msra.mxu1 %v5603_v48  ;;  %854 = vmatprep.mubr.f32.mxu1 %v7963_v41  ;;  %v357_v41 = vld [vmem:[#allocation2 + $0x270] sm:$0xff]  ;;  %v5929_v44 = vpack.c.bf16 %v1041_v42, %v1037_v39 }
 0x1a6   :  { %5606 = vmatprep.subr.bf16.mxu1 %v5605_v49  ;;  %v5619_v7 = vpack.c.bf16 %v357_v41, %v349_v4  ;;  %v469_v48 = vld [vmem:[#allocation2 + $0x5f0] sm:$0xff]  ;;  %v478_v49 = vld [vmem:[#allocation2 + $0x638] sm:$0xff] }
 0x1a7   :  { %v5647_v51 = vpack.c.bf16 %v469_v48, %v461_v47  ;;  %v5649_v52 = vpack.c.bf16 %v486_v50, %v478_v49  ;;  %v534_v4 = vld [vmem:[#allocation2 + $0x7f8] sm:$0xff]  ;;  %v1040_v47 = vld [vmem:[#allocation4 + $0xb0] sm:$0xff]  ;;  %v1043_v49 = vld [vmem:[#allocation4 + $0xc8] sm:$0xff] }
 0x1a8   :  { %v1047_v50 = vld [vmem:[#allocation4 + $0xe8] sm:$0xff] }
 0x1a9   :  { %5608 = vmatpush1.bf16.msra.mxu1 %v5607_v54  ;;  %v485_v54 = vld [vmem:[#allocation2 + $0x670] sm:$0xff] }
 0x1aa   :  { %5610 = vmatprep.subr.bf16.mxu1 %v5609_v55  ;;  %v494_v55 = vld [vmem:[#allocation2 + $0x6b8] sm:$0xff]  ;;  %v5651_v57 = vpack.c.bf16 %v485_v54, %v477_v53  ;;  %v5677_v53 = vpack.c.bf16 %v1047_v50, %v1043_v49  ;;  %v1087_v49 = vld [vmem:[#allocation4 + $0x228] sm:$0xff] }
 0x1ab   :  { %v5653_v58 = vpack.c.bf16 %v502_v56, %v494_v55  ;;  %v1049_v54 = vld [vmem:[#allocation4 + $0xf8] sm:$0xff]  ;;  %v1042_v55 = vld [vmem:[#allocation4 + $0xc0] sm:$0xff] }
 0x1ac   :  { %v1046_v56 = vld [vmem:[#allocation4 + $0xe0] sm:$0xff]  ;;  %v1085_v50 = vld [vmem:[#allocation4 + $0x218] sm:$0xff] }
 0x1ad   :  { %5612 = vmatpush1.bf16.msra.mxu1 %v5611_v60  ;;  %v501_v60 = vld [vmem:[#allocation2 + $0x6f0] sm:$0xff] }
 0x1ae   :  { %5614 = vmatprep.subr.bf16.mxu1 %v5613_v61  ;;  %v510_v61 = vld [vmem:[#allocation2 + $0x738] sm:$0xff]  ;;  %v5655_v63 = vpack.c.bf16 %v501_v60, %v493_v59  ;;  %v1048_v59 = vld [vmem:[#allocation4 + $0xf0] sm:$0xff]  ;;  %v1051_v60 = vld [vmem:[#allocation4 + $0x108] sm:$0xff] }
 0x1af   :  { %v5657_v0 = vpack.c.bf16 %v518_v62, %v510_v61  ;;  %v1055_v61 = vld [vmem:[#allocation4 + $0x128] sm:$0xff]  ;;  %v1053_v62 = vld [vmem:[#allocation4 + $0x118] sm:$0xff] }
 0x1b1   :  { %5616 = vmatpush1.bf16.msra.mxu1 %v5615_v2  ;;  %v517_v2 = vld [vmem:[#allocation2 + $0x770] sm:$0xff] }
 0x1b2   :  { %5618 = vmatprep.subr.bf16.mxu1 %v5617_v3  ;;  %v526_v3 = vld [vmem:[#allocation2 + $0x7b8] sm:$0xff]  ;;  %v5659_v41 = vpack.c.bf16 %v517_v2, %v509_v1  ;;  %v5681_v2 = vpack.c.bf16 %v1055_v61, %v1051_v60 }
 0x1b3   :  { %v5661_v5 = vpack.c.bf16 %v534_v4, %v526_v3  ;;  %v1050_v3 = vld [vmem:[#allocation4 + $0x100] sm:$0xff] }
 0x1b4   :  { %v1054_v4 = vld [vmem:[#allocation4 + $0x120] sm:$0xff] }
 0x1b5   :  { %5620 = vmatpush1.bf16.msra.mxu1 %v5619_v7  ;;  %v533_v7 = vld [vmem:[#allocation2 + $0x7f0] sm:$0xff] }
 0x1b6   :  { %5622 = vmatprep.subr.bf16.mxu1 %v5621_v8  ;;  %v5663_v8 = vpack.c.bf16 %v533_v7, %v525_v6  ;;  %v1056_v6 = vld [vmem:[#allocation4 + $0x130] sm:$0xff]  ;;  %v1059_v7 = vld [vmem:[#allocation4 + $0x148] sm:$0xff] }
 0x1b9   :  { %5624 = vmatpush1.bf16.msra.mxu1 %v5623_v13  ;;  %v1019_v13 = vld [vmem:[#allocation4 + $0x8] sm:$0xff] }
 0x1ba   :  { %5626 = vmatprep.subr.bf16.mxu1 %v5625_v14  ;;  %v1023_v14 = vld [vmem:[#allocation4 + $0x28] sm:$0xff] }
 0x1bb   :  { %v5665_v16 = vpack.c.bf16 %v1023_v14, %v1019_v13  ;;  %v1061_v13 = vld [vmem:[#allocation4 + $0x158] sm:$0xff] }
 0x1bc   :  { %v1065_v14 = vld [vmem:[#allocation4 + $0x178] sm:$0xff] }
 0x1bd   :  { %5628 = vmatpush1.bf16.msra.mxu1 %v5627_v19  ;;  %v1022_v19 = vld [vmem:[#allocation4 + $0x20] sm:$0xff]  ;;  %5666 = vmatprep.subr.bf16.mxu0 %v5665_v16 }
 0x1be   :  { %5630 = vmatprep.subr.bf16.mxu1 %v5629_v20  ;;  %v5921_v20 = vpack.c.bf16 %v1025_v17, %v1021_v15  ;;  %v5667_v21 = vpack.c.bf16 %v1022_v19, %v1018_v18  ;;  %v5683_v15 = vpack.c.bf16 %v1054_v4, %v1050_v3  ;;  %v1058_v18 = vld [vmem:[#allocation4 + $0x140] sm:$0xff] }
 0x1bf   :  { %v1062_v19 = vld [vmem:[#allocation4 + $0x160] sm:$0xff] }
 0x1c0   :  { %5668 = vmatpush1.bf16.msra.mxu0 %v5667_v21  ;;  %v5941_v21 = vpack.c.bf16 %v1065_v14, %v1061_v13  ;;  %v535_v4 = vld [vmem:[%s7728_s17] sm:$0xff]  ;;  %s8490_s17 = sld [smem:[#allocation23_spill]] }
 0x1c1   :  { %5632 = vmatpush1.bf16.msra.mxu1 %v5631_v25  ;;  %v1031_v25 = vld [vmem:[#allocation4 + $0x68] sm:$0xff] }
 0x1c2   :  { %5634 = vmatprep.subr.bf16.mxu1 %v5633_v26  ;;  %v1029_v26 = vld [vmem:[#allocation4 + $0x58] sm:$0xff] }
 0x1c3   :  { %v5925_v29 = vpack.c.bf16 %v1033_v27, %v1029_v26  ;;  %v5687_v26 = vpack.c.bf16 %v1062_v19, %v1058_v18 }
 0x1c5   :  { %5636 = vmatpush1.bf16.msra.mxu1 %v5635_v31  ;;  %v1030_v31 = vld [vmem:[#allocation4 + $0x60] sm:$0xff] }
 0x1c6   :  { %5638 = vmatprep.subr.bf16.mxu1 %v5637_v32  ;;  %v1028_v32 = vld [vmem:[#allocation4 + $0x50] sm:$0xff]  ;;  %v5671_v33 = vpack.c.bf16 %v1030_v31, %v1026_v30  ;;  %v1070_v30 = vld [vmem:[#allocation4 + $0x1a0] sm:$0xff] }
 0x1c7   :  { %v1068_v31 = vld [vmem:[#allocation4 + $0x190] sm:$0xff] }
 0x1c9   :  { %5640 = vmatpush1.bf16.msra.mxu1 %v5639_v37  ;;  %v5927_v37 = vpack.c.bf16 %v1032_v34, %v1028_v32  ;;  %v1075_v34 = vld [vmem:[#allocation4 + $0x1c8] sm:$0xff] }
 0x1ca   :  { %5642 = vmatprep.subr.bf16.mxu1 %v5641_v38  ;;  %v5673_v38 = vpack.c.bf16 %v1039_v36, %v1035_v35  ;;  %v1079_v35 = vld [vmem:[#allocation4 + $0x1e8] sm:$0xff]  ;;  %v1077_v36 = vld [vmem:[#allocation4 + $0x1d8] sm:$0xff] }
 0x1cb   :  { %v5693_v42 = vpack.c.bf16 %v1079_v35, %v1075_v34 }
 0x1cd   :  { %5644 = vmatpush1.bf16.msra.mxu1 %v5643_v45  ;;  %v1038_v45 = vld [vmem:[#allocation4 + $0xa0] sm:$0xff] }
 0x1ce   :  { %5646 = vmatprep.subr.bf16.mxu1 %v5645_v46  ;;  %v1036_v46 = vld [vmem:[#allocation4 + $0x90] sm:$0xff]  ;;  %v5675_v48 = vpack.c.bf16 %v1038_v45, %v1034_v43  ;;  %v1074_v43 = vld [vmem:[#allocation4 + $0x1c0] sm:$0xff] }
 0x1cf   :  { %v1076_v45 = vld [vmem:[#allocation4 + $0x1d0] sm:$0xff] }
 0x1d1   :  { %5648 = vmatpush1.bf16.msra.mxu1 %v5647_v51  ;;  %v1045_v51 = vld [vmem:[#allocation4 + $0xd8] sm:$0xff] }
 0x1d2   :  { %5650 = vmatprep.subr.bf16.mxu1 %v5649_v52  ;;  %v5931_v52 = vpack.c.bf16 %v1040_v47, %v1036_v46  ;;  %v1080_v47 = vld [vmem:[#allocation4 + $0x1f0] sm:$0xff] }
 0x1d5   :  { %5652 = vmatpush1.bf16.msra.mxu1 %v5651_v57  ;;  %v5933_v57 = vpack.c.bf16 %v1049_v54, %v1045_v51  ;;  %v1089_v51 = vld [vmem:[#allocation4 + $0x238] sm:$0xff] }
 0x1d6   :  { %5654 = vmatprep.subr.bf16.mxu1 %v5653_v58  ;;  %v1044_v58 = vld [vmem:[#allocation4 + $0xd0] sm:$0xff] }
 0x1d7   :  { %v5935_v1 = vpack.c.bf16 %v1048_v59, %v1044_v58  ;;  %v1084_v58 = vld [vmem:[#allocation4 + $0x210] sm:$0xff] }
 0x1d8   :  { %v1088_v59 = vld [vmem:[#allocation4 + $0x230] sm:$0xff] }
 0x1d9   :  { %5656 = vmatpush1.bf16.msra.mxu1 %v5655_v63  ;;  %v1057_v63 = vld [vmem:[#allocation4 + $0x138] sm:$0xff]  ;;  %v5955_v61 = vpack.c.bf16 %v1088_v59, %v1084_v58 }
 0x1da   :  { %5658 = vmatprep.subr.bf16.mxu1 %v5657_v0  ;;  %v5679_v0 = vpack.c.bf16 %v1046_v56, %v1042_v55  ;;  %v1082_v55 = vld [vmem:[#allocation4 + $0x200] sm:$0xff] }
 0x1db   :  { %v1086_v56 = vld [vmem:[#allocation4 + $0x220] sm:$0xff] }
 0x1dc   :  { %v5699_v60 = vpack.c.bf16 %v1086_v56, %v1082_v55  ;;  %v1097_v55 = vld [vmem:[#allocation4 + $0x278] sm:$0xff]  ;;  %v1090_v56 = vld [vmem:[#allocation4 + $0x240] sm:$0xff] }
 0x1dd   :  { %5660 = vmatpush1.bf16.msra.mxu1 %v5659_v41  ;;  %v1052_v41 = vld [vmem:[#allocation4 + $0x110] sm:$0xff] }
 0x1de   :  { %5662 = vmatprep.subr.bf16.mxu1 %v5661_v5  ;;  %v5937_v5 = vpack.c.bf16 %v1057_v63, %v1053_v62  ;;  %v5939_v16 = vpack.c.bf16 %v1056_v6, %v1052_v41 }
 0x1e1   :  { %5664 = vmatpush1.bf16.msra.mxu1 %v5663_v8  ;;  %v1063_v8 = vld [vmem:[#allocation4 + $0x168] sm:$0xff] }
 0x1e2   :  { %5922 = vmatprep.subr.bf16.mxu1 %v5921_v20  ;;  %v5685_v17 = vpack.c.bf16 %v1063_v8, %v1059_v7  ;;  %v1060_v20 = vld [vmem:[#allocation4 + $0x150] sm:$0xff] }
 0x1e3   :  { %v5943_v27 = vpack.c.bf16 %v1064_v22, %v1060_v20 }
 0x1e4   :  { %855 = vmatmul.mubr.f32.vlgmr.msra.gmra.mrb[6].mxu1 %v7967_v40  ;;  %v1027_v40 = vld [vmem:[#allocation4 + $0x48] sm:$0xff] }
 0x1e5   :  { %v5669_v28 = vpack.c.bf16 %v1031_v25, %v1027_v40  ;;  %5924 = vmatpush1.bf16.msra.mxu1 %v5923_v24  ;;  %v1071_v40 = vld [vmem:[#allocation4 + $0x1a8] sm:$0xff]  ;;  %v1069_v24 = vld [vmem:[#allocation4 + $0x198] sm:$0xff] }
 0x1e6   :  { %5926 = vmatprep.subr.bf16.mxu1 %v5925_v29  ;;  %v1073_v25 = vld [vmem:[#allocation4 + $0x1b8] sm:$0xff]  ;;  %v1066_v29 = vld [vmem:[#allocation4 + $0x180] sm:$0xff] }
 0x1e7   :  { %5670 = vmatprep.subr.bf16.mxu0 %v5669_v28  ;;  %v5689_v28 = vpack.c.bf16 %v1071_v40, %v1067_v23  ;;  %v5945_v32 = vpack.c.bf16 %v1073_v25, %v1069_v24 }
 0x1e8   :  { %5672 = vmatpush1.bf16.msra.mxu0 %v5671_v33  ;;  %v1072_v33 = vld [vmem:[#allocation4 + $0x1b0] sm:$0xff] }
 0x1e9   :  { %5928 = vmatpush1.bf16.msra.mxu1 %v5927_v37  ;;  %5674 = vmatprep.subr.bf16.mxu0 %v5673_v38  ;;  %v1081_v37 = vld [vmem:[#allocation4 + $0x1f8] sm:$0xff]  ;;  %v5691_v38 = vpack.c.bf16 %v1070_v30, %v1066_v29  ;;  %v5947_v39 = vpack.c.bf16 %v1072_v33, %v1068_v31 }
 0x1ea   :  { %5930 = vmatprep.subr.bf16.mxu1 %v5929_v44  ;;  %v1078_v44 = vld [vmem:[#allocation4 + $0x1e0] sm:$0xff]  ;;  %v5949_v46 = vpack.c.bf16 %v1081_v37, %v1077_v36 }
 0x1ec   :  { %5676 = vmatpush1.bf16.msra.mxu0 %v5675_v48  ;;  %v1083_v48 = vld [vmem:[#allocation4 + $0x208] sm:$0xff] }
 0x1ed   :  { %5932 = vmatpush1.bf16.msra.mxu1 %v5931_v52  ;;  %5678 = vmatprep.subr.bf16.mxu0 %v5677_v53  ;;  %v5695_v52 = vpack.c.bf16 %v1078_v44, %v1074_v43  ;;  %v5951_v53 = vpack.c.bf16 %v1080_v47, %v1076_v45  ;;  %v5697_v54 = vpack.c.bf16 %v1087_v49, %v1083_v48 }
 0x1ee   :  { %5934 = vmatprep.subr.bf16.mxu1 %v5933_v57  ;;  %v5953_v57 = vpack.c.bf16 %v1089_v51, %v1085_v50  ;;  %v1091_v51 = vld [vmem:[#allocation4 + $0x248] sm:$0xff] }
 0x1f0   :  { %5680 = vmatpush1.bf16.msra.mxu0 %v5679_v0  ;;  %v537_v0 = vlaneseq }
 0x1f1   :  { %5936 = vmatpush1.bf16.msra.mxu1 %v5935_v1  ;;  %5682 = vmatprep.subr.bf16.mxu0 %v5681_v2 }
 0x1f2   :  { %5938 = vmatprep.subr.bf16.mxu1 %v5937_v5  ;;  %v538_v1 = vshrl.u32 %v537_v0, 7  ;;  %v1103_v0 = vld [vmem:[#allocation4 + $0x2a8] sm:$0xff] }
 0x1f4   :  { %5684 = vmatpush1.bf16.msra.mxu0 %v5683_v15  ;;  %v7984_v2 = vsub.s32 0, %v538_v1  ;;  %v7986_v3 = vsub.s32 1, %v538_v1  ;;  %v7989_v41 = vsub.s32 2, %v538_v1  ;;  %v7994_v8 = vsub.s32 3, %v538_v1 }
 0x1f5   :  { %5940 = vmatpush1.bf16.msra.mxu1 %v5939_v16  ;;  %5686 = vmatprep.subr.bf16.mxu0 %v5685_v17  ;;  %v8002_v15 = vsub.s32 4, %v538_v1 }
 0x1f6   :  { %5942 = vmatprep.subr.bf16.mxu1 %v5941_v21  ;;  %v540_v5 = vrot.slane %v535_v4, %v7984_v2  ;;  %v544_v6 = vrot.slane %v535_v4, %v7986_v3  ;;  %v548_v7 = vrot.slane %v535_v4, %v7989_v41  ;;  %v552_v17 = vrot.slane %v535_v4, %v7994_v8 }
 0x1f7   :  { %v7976_v9 = vpop.f32.mrb[0].mxu1  ;;  %v556_v20 = vrot.slane %v535_v4, %v8002_v15 }
 0x1f8   :  { %v7978_v10 = vpop.f32.mrb[1].mxu1  ;;  %5688 = vmatpush1.bf16.msra.mxu0 %v5687_v26  ;;  %v7997_v13 = vadd.f32 %v7976_v9, %v540_v5  ;;  %v8013_v9 = vsub.s32 5, %v538_v1  ;;  %v1105_v5 = vld [vmem:[#allocation4 + $0x2b8] sm:$0xff] }
 0x1f9   :  { %5944 = vmatpush1.bf16.msra.mxu1 %v5943_v27  ;;  %5690 = vmatprep.subr.bf16.mxu0 %v5689_v28  ;;  %v8000_v14 = vadd.f32 %v7978_v10, %v544_v6  ;;  %v8028_v27 = vsub.s32 6, %v538_v1  ;;  %v8030_v28 = vsub.s32 7, %v538_v1  ;;  %v1101_v1 = vld [vmem:[#allocation4 + $0x298] sm:$0xff]  ;;  %v1098_v6 = vld [vmem:[#allocation4 + $0x280] sm:$0xff] }
 0x1fa   :  { %5946 = vmatprep.subr.bf16.mxu1 %v5945_v32  ;;  %v874_v18 = vmul.f32 %v7997_v13, %v7997_v13  ;;  %v560_v24 = vrot.slane %v535_v4, %v8013_v9 }
 0x1fb   :  { %v875_v19 = vmul.f32 %v8000_v14, %v8000_v14  ;;  %v863_v10 = vadd.f32 %v8000_v14, %v7997_v13  ;;  %v564_v33 = vrot.slane %v535_v4, %v8028_v27  ;;  %v568_v34 = vrot.slane %v535_v4, %v8030_v28 }
 0x1fc   :  { %5692 = vmatpush1.bf16.msra.mxu0 %v5691_v38 }
 0x1fd   :  { %5948 = vmatpush1.bf16.msra.mxu1 %v5947_v39  ;;  %5694 = vmatprep.subr.bf16.mxu0 %v5693_v42  ;;  %v882_v22 = vadd.f32 %v875_v19, %v874_v18  ;;  %v1100_v19 = vld [vmem:[#allocation4 + $0x290] sm:$0xff] }
 0x1fe   :  { %5950 = vmatprep.subr.bf16.mxu1 %v5949_v46 }
 0x200   :  { %5696 = vmatpush1.bf16.msra.mxu0 %v5695_v52  ;;  %v1095_v52 = vld [vmem:[#allocation4 + $0x268] sm:$0xff] }
 0x201   :  { %5952 = vmatpush1.bf16.msra.mxu1 %v5951_v53  ;;  %5698 = vmatprep.subr.bf16.mxu0 %v5697_v54  ;;  %v1093_v53 = vld [vmem:[#allocation4 + $0x258] sm:$0xff]  ;;  %v5701_v54 = vpack.c.bf16 %v1095_v52, %v1091_v51  ;;  %v1127_v52 = vld [vmem:[#allocation4 + $0x368] sm:$0xff] }
 0x202   :  { %5954 = vmatprep.subr.bf16.mxu1 %v5953_v57  ;;  %v1094_v57 = vld [vmem:[#allocation4 + $0x260] sm:$0xff]  ;;  %v5957_v58 = vpack.c.bf16 %v1097_v55, %v1093_v53  ;;  %v1125_v53 = vld [vmem:[#allocation4 + $0x358] sm:$0xff] }
 0x203   :  { %v5703_v59 = vpack.c.bf16 %v1094_v57, %v1090_v56  ;;  %v1122_v57 = vld [vmem:[#allocation4 + $0x340] sm:$0xff] }
 0x204   :  { %5700 = vmatpush1.bf16.msra.mxu0 %v5699_v60  ;;  %v1092_v60 = vld [vmem:[#allocation4 + $0x250] sm:$0xff] }
 0x205   :  { %5956 = vmatpush1.bf16.msra.mxu1 %v5955_v61  ;;  %v1096_v61 = vld [vmem:[#allocation4 + $0x270] sm:$0xff]  ;;  %5702 = vmatprep.subr.bf16.mxu0 %v5701_v54  ;;  %v1129_v54 = vld [vmem:[#allocation4 + $0x378] sm:$0xff] }
 0x206   :  { %5958 = vmatprep.subr.bf16.mxu1 %v5957_v58  ;;  %v5973_v56 = vpack.c.bf16 %v1129_v54, %v1125_v53  ;;  %v1126_v58 = vld [vmem:[#allocation4 + $0x360] sm:$0xff] }
 0x207   :  { %v8061_v53 = vld [vmem:[%s7738_s25] sm:$0xff]  ;;  %s8492_s25 = sld [smem:[#allocation25_spill]] }
 0x208   :  { %5704 = vmatpush1.bf16.msra.mxu0 %v5703_v59  ;;  %v1124_v59 = vld [vmem:[#allocation4 + $0x350] sm:$0xff] }
 0x237   :  { %v7980_v11 = vpop.f32.mrb[2].mxu1 }
 0x238   :  { %v7982_v12 = vpop.f32.mrb[3].mxu1  ;;  %v8005_v16 = vadd.f32 %v7980_v11, %v548_v7  ;;  %v1102_v7 = vld [vmem:[#allocation4 + $0x2a0] sm:$0xff] }
 0x239   :  { %v8020_v11 = vadd.f32 %v7982_v12, %v552_v17  ;;  %v5961_v17 = vpack.c.bf16 %v1105_v5, %v1101_v1  ;;  %v5707_v18 = vpack.c.bf16 %v1102_v7, %v1098_v6  ;;  %v1137_v5 = vld [vmem:[#allocation4 + $0x3b8] sm:$0xff]  ;;  %v1130_v6 = vld [vmem:[#allocation4 + $0x380] sm:$0xff] }
 0x23a   :  { %v876_v21 = vmul.f32 %v8005_v16, %v8005_v16  ;;  %v864_v23 = vadd.f32 %v863_v10, %v8005_v16 }
 0x23b   :  { %v877_v26 = vmul.f32 %v8020_v11, %v8020_v11 }
 0x23c   :  { %v883_v25 = vadd.f32 %v882_v22, %v876_v21  ;;  %v865_v29 = vadd.f32 %v864_v23, %v8020_v11  ;;  %v1107_v21 = vld [vmem:[#allocation4 + $0x2c8] sm:$0xff]  ;;  %v1109_v23 = vld [vmem:[#allocation4 + $0x2d8] sm:$0xff] }
 0x23d   :  { %v1111_v22 = vld [vmem:[#allocation4 + $0x2e8] sm:$0xff] }
 0x23e   :  { %v884_v31 = vadd.f32 %v883_v25, %v877_v26  ;;  %v1113_v25 = vld [vmem:[#allocation4 + $0x2f8] sm:$0xff]  ;;  %v1106_v26 = vld [vmem:[#allocation4 + $0x2c0] sm:$0xff] }
 0x277   :  { %v785_v62 = vpop.f32.mrb[4].mxu1 }
 0x278   :  { %v787_v63 = vpop.f32.mrb[5].mxu1  ;;  %v8023_v40 = vadd.f32 %v785_v62, %v556_v20  ;;  %v5959_v62 = vpack.c.bf16 %v1096_v61, %v1092_v60  ;;  %v1104_v20 = vld [vmem:[#allocation4 + $0x2b0] sm:$0xff]  ;;  %v5719_v60 = vpack.c.bf16 %v1126_v58, %v1122_v57  ;;  %v969_v58 = vrot.slane %v8061_v53, %v7986_v3 }
 0x279   :  { %v8035_v30 = vadd.f32 %v787_v63, %v560_v24  ;;  %v1099_v63 = vld [vmem:[#allocation4 + $0x288] sm:$0xff]  ;;  %v5963_v10 = vpack.c.bf16 %v1104_v20, %v1100_v19  ;;  %v5709_v24 = vpack.c.bf16 %v1111_v22, %v1107_v21  ;;  %v1128_v61 = vld [vmem:[#allocation4 + $0x370] sm:$0xff]  ;;  %v1141_v22 = vld [vmem:[#allocation4 + $0x3d8] sm:$0xff] }
 0x27a   :  { %v878_v12 = vmul.f32 %v8023_v40, %v8023_v40  ;;  %v866_v32 = vadd.f32 %v865_v29, %v8023_v40  ;;  %5960 = vmatpush1.bf16.msra.mxu1 %v5959_v62  ;;  %v5705_v4 = vpack.c.bf16 %v1103_v0, %v1099_v63  ;;  %v1110_v29 = vld [vmem:[#allocation4 + $0x2e0] sm:$0xff]  ;;  %v1131_v62 = vld [vmem:[#allocation4 + $0x388] sm:$0xff]  ;;  %v5975_v0 = vpack.c.bf16 %v1128_v61, %v1124_v59  ;;  %v1136_v19 = vld [vmem:[#allocation4 + $0x3b0] sm:$0xff] }
 0x27b   :  { %v879_v36 = vmul.f32 %v8035_v30, %v8035_v30  ;;  %5962 = vmatprep.subr.bf16.mxu1 %v5961_v17  ;;  %v1135_v63 = vld [vmem:[#allocation4 + $0x3a8] sm:$0xff]  ;;  %v1134_v17 = vld [vmem:[#allocation4 + $0x3a0] sm:$0xff]  ;;  %v965_v59 = vrot.slane %v8061_v53, %v7984_v2 }
 0x27c   :  { %v885_v35 = vadd.f32 %v884_v31, %v878_v12  ;;  %v867_v42 = vadd.f32 %v866_v32, %v8035_v30  ;;  %5706 = vmatprep.subr.bf16.mxu0 %v5705_v4  ;;  %v5965_v12 = vpack.c.bf16 %v1113_v25, %v1109_v23  ;;  %v5711_v31 = vpack.c.bf16 %v1110_v29, %v1106_v26  ;;  %v1108_v32 = vld [vmem:[#allocation4 + $0x2d0] sm:$0xff]  ;;  %v1133_v4 = vld [vmem:[#allocation4 + $0x398] sm:$0xff]  ;;  %v1143_v21 = vld [vmem:[#allocation4 + $0x3e8] sm:$0xff] }
 0x27d   :  { %5708 = vmatpush1.bf16.msra.mxu0 %v5707_v18  ;;  %v5721_v1 = vpack.c.bf16 %v1135_v63, %v1131_v62  ;;  %v5977_v7 = vpack.c.bf16 %v1137_v5, %v1133_v4  ;;  %v1132_v18 = vld [vmem:[#allocation4 + $0x390] sm:$0xff]  ;;  %v5723_v20 = vpack.c.bf16 %v1134_v17, %v1130_v6  ;;  %v1145_v25 = vld [vmem:[#allocation4 + $0x3f8] sm:$0xff]  ;;  %v1138_v26 = vld [vmem:[#allocation4 + $0x3c0] sm:$0xff]  ;;  %v973_v5 = vrot.slane %v8061_v53, %v7989_v41 }
 0x27e   :  { %v886_v46 = vadd.f32 %v885_v35, %v879_v36  ;;  %5964 = vmatpush1.bf16.msra.mxu1 %v5963_v10  ;;  %5710 = vmatprep.subr.bf16.mxu0 %v5709_v24  ;;  %v1115_v35 = vld [vmem:[#allocation4 + $0x308] sm:$0xff]  ;;  %v5979_v23 = vpack.c.bf16 %v1136_v19, %v1132_v18  ;;  %v1142_v29 = vld [vmem:[#allocation4 + $0x3e0] sm:$0xff] }
 0x27f   :  { %5966 = vmatprep.subr.bf16.mxu1 %v5965_v12  ;;  %v1119_v36 = vld [vmem:[#allocation4 + $0x328] sm:$0xff]  ;;  %v5981_v12 = vpack.c.bf16 %v1145_v25, %v1141_v22  ;;  %v1146_v18 = vld [vmem:[#allocation4 + $0x400] sm:$0xff]  ;;  %v1152_v25 = vld [vmem:[#allocation4 + $0x430] sm:$0xff] }
 0x280   :  { %v1139_v10 = vld [vmem:[#allocation4 + $0x3c8] sm:$0xff] }
 0x281   :  { %5712 = vmatpush1.bf16.msra.mxu0 %v5711_v31  ;;  %v5725_v24 = vpack.c.bf16 %v1143_v21, %v1139_v10  ;;  %v1140_v31 = vld [vmem:[#allocation4 + $0x3d0] sm:$0xff] }
 0x2b7   :  { %v856_v37 = vpop.f32.mrb[6].mxu1 }
 0x2b8   :  { %v8042_v38 = vadd.f32 %v856_v37, %v564_v33  ;;  %v858_v39 = vpop.f32.mrb[7].mxu1  ;;  %v1112_v33 = vld [vmem:[#allocation4 + $0x2f0] sm:$0xff]  ;;  %v1117_v37 = vld [vmem:[#allocation4 + $0x318] sm:$0xff] }
 0x2b9   :  { %v8045_v43 = vadd.f32 %v858_v39, %v568_v34  ;;  %v5967_v34 = vpack.c.bf16 %v1112_v33, %v1108_v32  ;;  %v5713_v39 = vpack.c.bf16 %v1119_v36, %v1115_v35  ;;  %v1144_v32 = vld [vmem:[#allocation4 + $0x3f0] sm:$0xff]  ;;  %v5727_v33 = vpack.c.bf16 %v1142_v29, %v1138_v26  ;;  %v1147_v35 = vld [vmem:[#allocation4 + $0x408] sm:$0xff] }
 0x2ba   :  { %v880_v44 = vmul.f32 %v8042_v38, %v8042_v38  ;;  %v868_v45 = vadd.f32 %v867_v42, %v8042_v38  ;;  %v1121_v42 = vld [vmem:[#allocation4 + $0x338] sm:$0xff]  ;;  %v1151_v36 = vld [vmem:[#allocation4 + $0x428] sm:$0xff] }
 0x2bb   :  { %v881_v48 = vmul.f32 %v8045_v43, %v8045_v43  ;;  %5968 = vmatpush1.bf16.msra.mxu1 %v5967_v34  ;;  %5714 = vmatprep.subr.bf16.mxu0 %v5713_v39  ;;  %v5983_v34 = vpack.c.bf16 %v1144_v32, %v1140_v31  ;;  %v5729_v39 = vpack.c.bf16 %v1151_v36, %v1147_v35  ;;  %v1155_v36 = vld [vmem:[#allocation4 + $0x448] sm:$0xff] }
 0x2bc   :  { %v869_v47 = vadd.f32 %v868_v45, %v8045_v43  ;;  %v887_v49 = vadd.f32 %v886_v46, %v880_v44  ;;  %v1114_v44 = vld [vmem:[#allocation4 + $0x300] sm:$0xff]  ;;  %v5969_v46 = vpack.c.bf16 %v1121_v42, %v1117_v37  ;;  %v1149_v37 = vld [vmem:[#allocation4 + $0x418] sm:$0xff] }
 0x2bd   :  { %v1118_v45 = vld [vmem:[#allocation4 + $0x320] sm:$0xff]  ;;  %v1153_v42 = vld [vmem:[#allocation4 + $0x438] sm:$0xff] }
 0x2be   :  { %870 = vadd.xlane.f32.xlu0 %v869_v47  ;;  %v888_v50 = vadd.f32 %v887_v49, %v881_v48  ;;  %v5715_v47 = vpack.c.bf16 %v1118_v45, %v1114_v44  ;;  %v1116_v48 = vld [vmem:[#allocation4 + $0x310] sm:$0xff]  ;;  %5970 = vmatprep.subr.bf16.mxu1 %v5969_v46  ;;  %v5985_v44 = vpack.c.bf16 %v1153_v42, %v1149_v37  ;;  %v1159_v42 = vld [vmem:[#allocation4 + $0x468] sm:$0xff] }
 0x2bf   :  { %v1120_v49 = vld [vmem:[#allocation4 + $0x330] sm:$0xff] }
 0x2c0   :  { %v5971_v51 = vpack.c.bf16 %v1120_v49, %v1116_v48  ;;  %5716 = vmatpush1.bf16.msra.mxu0 %v5715_v47 }
 0x2c2   :  { %889 = vadd.xlane.f32.xlu0 %v888_v50  ;;  %v1123_v50 = vld [vmem:[#allocation4 + $0x348] sm:$0xff]  ;;  %5972 = vmatpush1.bf16.msra.mxu1 %v5971_v51 }
 0x2c3   :  { %v5717_v55 = vpack.c.bf16 %v1127_v52, %v1123_v50  ;;  %5974 = vmatprep.subr.bf16.mxu1 %v5973_v56  ;;  %v8058_v52 = vld [vmem:[%s7733_s21] sm:$0xff]  ;;  %s8491_s21 = sld [smem:[#allocation24_spill]] }
 0x2c4   :  { %v920_v54 = vrot.slane %v8058_v52, %v7986_v3  ;;  %v928_v56 = vrot.slane %v8058_v52, %v7994_v8  ;;  %v924_v57 = vrot.slane %v8058_v52, %v7989_v41  ;;  %v936_v61 = vrot.slane %v8058_v52, %v8013_v9 }
 0x2c5   :  { %5718 = vmatprep.subr.bf16.mxu0 %v5717_v55  ;;  %v916_v55 = vrot.slane %v8058_v52, %v7984_v2 }
 0x2c6   :  { %5720 = vmatpush1.bf16.msra.mxu0 %v5719_v60  ;;  %5976 = vmatpush1.bf16.msra.mxu1 %v5975_v0  ;;  %v977_v60 = vrot.slane %v8061_v53, %v7994_v8 }
 0x2c7   :  { %5722 = vmatprep.subr.bf16.mxu0 %v5721_v1  ;;  %5978 = vmatprep.subr.bf16.mxu1 %v5977_v7  ;;  %v985_v7 = vrot.slane %v8061_v53, %v8013_v9 }
 0x2ca   :  { %5724 = vmatpush1.bf16.msra.mxu0 %v5723_v20  ;;  %5980 = vmatpush1.bf16.msra.mxu1 %v5979_v23 }
 0x2cb   :  { %5726 = vmatprep.subr.bf16.mxu0 %v5725_v24  ;;  %5982 = vmatprep.subr.bf16.mxu1 %v5981_v12  ;;  %v1148_v24 = vld [vmem:[#allocation4 + $0x410] sm:$0xff] }
 0x2cc   :  { %v5987_v37 = vpack.c.bf16 %v1152_v25, %v1148_v24  ;;  %v1170_v25 = vld [vmem:[#allocation4 + $0x4c0] sm:$0xff] }
 0x2ce   :  { %5728 = vmatpush1.bf16.msra.mxu0 %v5727_v33  ;;  %5984 = vmatpush1.bf16.msra.mxu1 %v5983_v34 }
 0x2cf   :  { %5730 = vmatprep.subr.bf16.mxu0 %v5729_v39  ;;  %5986 = vmatprep.subr.bf16.mxu1 %v5985_v44  ;;  %v1157_v44 = vld [vmem:[#allocation4 + $0x458] sm:$0xff] }
 0x34b   :  { %v871_v45 = vpop.xlane.xlu0 %870 }
 0x34c   :  { %v8053_v46 = vmul.f32 0.0009765625, %v871_v45  ;;  %v1161_v45 = vld [vmem:[#allocation4 + $0x478] sm:$0xff] }
 0x34e   :  { %v892_v48 = vmul.f32 %v8053_v46, %v8053_v46  ;;  %v895_v62 = vsub.f32 %v8000_v14, %v8053_v46  ;;  %v894_v63 = vsub.f32 %v7997_v13, %v8053_v46  ;;  %v897_v0 = vsub.f32 %v8020_v11, %v8053_v46  ;;  %v1150_v11 = vld [vmem:[#allocation4 + $0x420] sm:$0xff] }
 0x34f   :  { %v890_v47 = vpop.xlane.xlu0 %889  ;;  %v896_v1 = vsub.f32 %v8005_v16, %v8053_v46  ;;  %v899_v6 = vsub.f32 %v8035_v30, %v8053_v46  ;;  %v932_v14 = vrot.slane %v8058_v52, %v8002_v15  ;;  %v898_v10 = vsub.f32 %v8023_v40, %v8053_v46 }
 0x350   :  { %v891_v49 = vmul.f32 0.0009765625, %v890_v47  ;;  %v901_v21 = vsub.f32 %v8045_v43, %v8053_v46  ;;  %v944_v30 = vrot.slane %v8058_v52, %v8030_v28  ;;  %v5731_v12 = vpack.c.bf16 %v1150_v11, %v1146_v18 }
 0x351   :  { %v981_v43 = vrot.slane %v8061_v53, %v8002_v15 }
 0x352   :  { %v893_v50 = vsub.f32 %v891_v49, %v892_v48  ;;  %v993_v48 = vrot.slane %v8061_v53, %v8030_v28 }
 0x354   :  { %v902_v51 = vadd.f32 1e-05, %v893_v50 }
 0x356   :  { %7423 = vrsqrt.f32 %v902_v51  ;;  %v1154_v51 = vld [vmem:[#allocation4 + $0x440] sm:$0xff] }
 0x360   :  { %v7424_v4 = vpop.eup %7423 }
 0x361   :  { %v905_v13 = vmul.f32 %v7424_v4, %v895_v62  ;;  %v904_v17 = vmul.f32 %v7424_v4, %v894_v63  ;;  %v907_v19 = vmul.f32 %v7424_v4, %v897_v0  ;;  %v906_v20 = vmul.f32 %v7424_v4, %v896_v1  ;;  %v1167_v1 = vld [vmem:[#allocation4 + $0x4a8] sm:$0xff] }
 0x362   :  { %v909_v16 = vmul.f32 %v7424_v4, %v899_v6  ;;  %v908_v32 = vmul.f32 %v7424_v4, %v898_v10  ;;  %v911_v33 = vmul.f32 %v7424_v4, %v901_v21  ;;  %v989_v62 = vrot.slane %v8061_v53, %v8028_v27  ;;  %v1169_v6 = vld [vmem:[#allocation4 + $0x4b8] sm:$0xff]  ;;  %v1162_v53 = vld [vmem:[#allocation4 + $0x480] sm:$0xff]  ;;  %v1175_v10 = vld [vmem:[#allocation4 + $0x4e8] sm:$0xff] }
 0x363   :  { %v954_v22 = vmul.f32 %v920_v54, %v905_v13  ;;  %v953_v23 = vmul.f32 %v916_v55, %v904_v17  ;;  %v956_v26 = vmul.f32 %v928_v56, %v907_v19  ;;  %v955_v29 = vmul.f32 %v924_v57, %v906_v20  ;;  %v1158_v54 = vld [vmem:[#allocation4 + $0x460] sm:$0xff]  ;;  %v1156_v57 = vld [vmem:[#allocation4 + $0x450] sm:$0xff]  ;;  %v1173_v21 = vld [vmem:[#allocation4 + $0x4d8] sm:$0xff] }
 0x364   :  { %v958_v31 = vmul.f32 %v936_v61, %v909_v16  ;;  %v900_v55 = vsub.f32 %v8042_v38, %v8053_v46  ;;  %v940_v56 = vrot.slane %v8058_v52, %v8028_v27  ;;  %v960_v61 = vmul.f32 %v944_v30, %v911_v33  ;;  %v1166_v17 = vld [vmem:[#allocation4 + $0x4a0] sm:$0xff]  ;;  %v1164_v20 = vld [vmem:[#allocation4 + $0x490] sm:$0xff]  ;;  %v1171_v16 = vld [vmem:[#allocation4 + $0x4c8] sm:$0xff] }
 0x365   :  { %v1003_v34 = vadd.f32 %v969_v58, %v954_v22  ;;  %v1002_v35 = vadd.f32 %v965_v59, %v953_v23  ;;  %v8101_v40 = vadd.f32 %v973_v5, %v955_v29  ;;  %v1005_v39 = vadd.f32 %v977_v60, %v956_v26  ;;  %v1160_v58 = vld [vmem:[#allocation4 + $0x470] sm:$0xff]  ;;  %v1163_v59 = vld [vmem:[#allocation4 + $0x488] sm:$0xff]  ;;  %v1165_v5 = vld [vmem:[#allocation4 + $0x498] sm:$0xff] }
 0x366   :  { %v8105_v47 = vadd.f32 %v985_v7, %v958_v31  ;;  %v957_v60 = vmul.f32 %v932_v14, %v908_v32  ;;  %v5733_v63 = vpack.c.bf16 %v1159_v42, %v1155_v36  ;;  %v5989_v0 = vpack.c.bf16 %v1161_v45, %v1157_v44  ;;  %v1177_v30 = vld [vmem:[#allocation4 + $0x4f8] sm:$0xff]  ;;  %v1174_v26 = vld [vmem:[#allocation4 + $0x4e0] sm:$0xff]  ;;  %v1172_v31 = vld [vmem:[#allocation4 + $0x4d0] sm:$0xff] }
 0x367   :  { %v1011_v49 = vmax.f32 %v1003_v34, 0.0  ;;  %v1010_v50 = vmax.f32 %v1002_v35, 0.0  ;;  %v910_v7 = vmul.f32 %v7424_v4, %v900_v55  ;;  %v1013_v38 = vmax.f32 %v1005_v39, 0.0  ;;  %v1168_v4 = vld [vmem:[#allocation4 + $0x4b0] sm:$0xff]  ;;  %v1179_v33 = vld [vmem:[#allocation4 + $0x508] sm:$0xff]  ;;  %v1181_v35 = vld [vmem:[#allocation4 + $0x518] sm:$0xff] }
 0x368   :  { %v8115_v46 = vadd.f32 %v981_v43, %v957_v60  ;;  %v8117_v52 = vadd.f32 %v993_v48, %v960_v61  ;;  %v5735_v14 = vpack.c.bf16 %v1158_v54, %v1154_v51  ;;  %v5991_v13 = vpack.c.bf16 %v1160_v58, %v1156_v57  ;;  %v1176_v32 = vld [vmem:[#allocation4 + $0x4f0] sm:$0xff]  ;;  %v1183_v34 = vld [vmem:[#allocation4 + $0x528] sm:$0xff]  ;;  %v1185_v36 = vld [vmem:[#allocation4 + $0x538] sm:$0xff] }
 0x369   :  { %1616 = vmatprep.mubr.f32.mxu0 %v1011_v49  ;;  %1900 = vmatprep.mubr.f32.mxu1 %v1011_v49  ;;  %v959_v18 = vmul.f32 %v940_v56, %v910_v7  ;;  %v5737_v11 = vpack.c.bf16 %v1167_v1, %v1163_v59  ;;  %v5993_v19 = vpack.c.bf16 %v1169_v6, %v1165_v5  ;;  %v1178_v39 = vld [vmem:[#allocation4 + $0x500] sm:$0xff]  ;;  %v1180_v48 = vld [vmem:[#allocation4 + $0x510] sm:$0xff]  ;;  %v1191_v51 = vld [vmem:[#allocation4 + $0x568] sm:$0xff] }
 0x36a   :  { %1617 = vmatmul.mubr.f32.vlgmr.msra.gmra.mrb[0].mxu0 %v1010_v50  ;;  %1901 = vmatmul.mubr.f32.vlgmr.msra.gmra.mrb[8].mxu1 %v1010_v50  ;;  %v5739_v23 = vpack.c.bf16 %v1166_v17, %v1162_v53  ;;  %v5995_v24 = vpack.c.bf16 %v1168_v4, %v1164_v20  ;;  %v5741_v29 = vpack.c.bf16 %v1175_v10, %v1171_v16  ;;  %v1182_v42 = vld [vmem:[#allocation4 + $0x520] sm:$0xff]  ;;  %v1184_v49 = vld [vmem:[#allocation4 + $0x530] sm:$0xff]  ;;  %v1187_v50 = vld [vmem:[#allocation4 + $0x548] sm:$0xff] }
 0x36b   :  { %5732 = vmatpush1.bf16.msra.mxu0 %v5731_v12  ;;  %5988 = vmatpush1.bf16.msra.mxu1 %v5987_v37  ;;  %v8119_v22 = vadd.f32 %v989_v62, %v959_v18  ;;  %v5997_v12 = vpack.c.bf16 %v1177_v30, %v1173_v21  ;;  %v5743_v43 = vpack.c.bf16 %v1174_v26, %v1170_v25  ;;  %v1189_v54 = vld [vmem:[#allocation4 + $0x558] sm:$0xff]  ;;  %v1186_v58 = vld [vmem:[#allocation4 + $0x540] sm:$0xff]  ;;  %v1188_v62 = vld [vmem:[#allocation4 + $0x550] sm:$0xff] }
 0x36c   :  { %1687 = vmatprep.mubr.f32.mxu0 %v1013_v38  ;;  %1971 = vmatprep.mubr.f32.mxu1 %v1013_v38  ;;  %v5999_v37 = vpack.c.bf16 %v1176_v32, %v1172_v31  ;;  %v5745_v44 = vpack.c.bf16 %v1183_v34, %v1179_v33  ;;  %v6001_v45 = vpack.c.bf16 %v1185_v36, %v1181_v35  ;;  %v1193_v55 = vld [vmem:[#allocation4 + $0x578] sm:$0xff]  ;;  %v1190_v59 = vld [vmem:[#allocation4 + $0x560] sm:$0xff]  ;;  %v1199_v1 = vld [vmem:[#allocation4 + $0x5a8] sm:$0xff] }
 0x36d   :  { %5734 = vmatprep.subr.bf16.mxu0 %v5733_v63  ;;  %5990 = vmatprep.subr.bf16.mxu1 %v5989_v0  ;;  %v5747_v56 = vpack.c.bf16 %v1182_v42, %v1178_v39  ;;  %v6003_v57 = vpack.c.bf16 %v1184_v49, %v1180_v48  ;;  %v5749_v60 = vpack.c.bf16 %v1191_v51, %v1187_v50  ;;  %v1192_v63 = vld [vmem:[#allocation4 + $0x570] sm:$0xff]  ;;  %v1195_v0 = vld [vmem:[#allocation4 + $0x588] sm:$0xff]  ;;  %v1197_v5 = vld [vmem:[#allocation4 + $0x598] sm:$0xff] }
 0x36e   :  { %v6005_v61 = vpack.c.bf16 %v1193_v55, %v1189_v54  ;;  %v1201_v6 = vld [vmem:[#allocation4 + $0x5b8] sm:$0xff]  ;;  %v5751_v7 = vpack.c.bf16 %v1190_v59, %v1186_v58  ;;  %v6007_v38 = vpack.c.bf16 %v1192_v63, %v1188_v62  ;;  %v5753_v53 = vpack.c.bf16 %v1199_v1, %v1195_v0  ;;  %v1196_v18 = vld [vmem:[#allocation4 + $0x590] sm:$0xff]  ;;  %v1207_v20 = vld [vmem:[#allocation4 + $0x5e8] sm:$0xff] }
 0x36f   :  { %5736 = vmatpush1.bf16.msra.mxu0 %v5735_v14  ;;  %5992 = vmatpush1.bf16.msra.mxu1 %v5991_v13  ;;  %v1194_v14 = vld [vmem:[#allocation4 + $0x580] sm:$0xff]  ;;  %v6009_v17 = vpack.c.bf16 %v1201_v6, %v1197_v5  ;;  %v1205_v4 = vld [vmem:[#allocation4 + $0x5d8] sm:$0xff]  ;;  %v1204_v26 = vld [vmem:[#allocation4 + $0x5d0] sm:$0xff] }
 0x370   :  { %5738 = vmatprep.subr.bf16.mxu0 %v5737_v11  ;;  %5994 = vmatprep.subr.bf16.mxu1 %v5993_v19  ;;  %v1198_v13 = vld [vmem:[#allocation4 + $0x5a0] sm:$0xff]  ;;  %v1200_v11 = vld [vmem:[#allocation4 + $0x5b0] sm:$0xff]  ;;  %v1203_v19 = vld [vmem:[#allocation4 + $0x5c8] sm:$0xff] }
 0x371   :  { %v1209_v16 = vld [vmem:[#allocation4 + $0x5f8] sm:$0xff]  ;;  %v5755_v10 = vpack.c.bf16 %v1198_v13, %v1194_v14  ;;  %v6011_v21 = vpack.c.bf16 %v1200_v11, %v1196_v18  ;;  %v1202_v30 = vld [vmem:[#allocation4 + $0x5c0] sm:$0xff]  ;;  %v1215_v31 = vld [vmem:[#allocation4 + $0x628] sm:$0xff] }
 0x372   :  { %v6013_v25 = vpack.c.bf16 %v1209_v16, %v1205_v4  ;;  %v1213_v32 = vld [vmem:[#allocation4 + $0x618] sm:$0xff]  ;;  %v1210_v36 = vld [vmem:[#allocation4 + $0x600] sm:$0xff]  ;;  %v1212_v42 = vld [vmem:[#allocation4 + $0x610] sm:$0xff] }
 0x373   :  { %5740 = vmatpush1.bf16.msra.mxu0 %v5739_v23  ;;  %5996 = vmatpush1.bf16.msra.mxu1 %v5995_v24  ;;  %v1206_v23 = vld [vmem:[#allocation4 + $0x5e0] sm:$0xff]  ;;  %v5757_v24 = vpack.c.bf16 %v1207_v20, %v1203_v19  ;;  %v1217_v33 = vld [vmem:[#allocation4 + $0x638] sm:$0xff]  ;;  %v1223_v48 = vld [vmem:[#allocation4 + $0x668] sm:$0xff] }
 0x374   :  { %5742 = vmatprep.subr.bf16.mxu0 %v5741_v29  ;;  %5998 = vmatprep.subr.bf16.mxu1 %v5997_v12  ;;  %v1208_v29 = vld [vmem:[#allocation4 + $0x5f0] sm:$0xff]  ;;  %v1211_v12 = vld [vmem:[#allocation4 + $0x608] sm:$0xff]  ;;  %v5759_v34 = vpack.c.bf16 %v1206_v23, %v1202_v30  ;;  %v6017_v39 = vpack.c.bf16 %v1217_v33, %v1213_v32  ;;  %v1221_v49 = vld [vmem:[#allocation4 + $0x658] sm:$0xff] }
 0x375   :  { %v6015_v35 = vpack.c.bf16 %v1208_v29, %v1204_v26  ;;  %v1225_v50 = vld [vmem:[#allocation4 + $0x678] sm:$0xff]  ;;  %v1218_v55 = vld [vmem:[#allocation4 + $0x640] sm:$0xff]  ;;  %v1220_v59 = vld [vmem:[#allocation4 + $0x650] sm:$0xff] }
 0x376   :  { %v6021_v58 = vpack.c.bf16 %v1225_v50, %v1221_v49  ;;  %v1231_v62 = vld [vmem:[#allocation4 + $0x6a8] sm:$0xff]  ;;  %v1229_v63 = vld [vmem:[#allocation4 + $0x698] sm:$0xff]  ;;  %v1226_v6 = vld [vmem:[#allocation4 + $0x680] sm:$0xff] }
 0x377   :  { %5744 = vmatpush1.bf16.msra.mxu0 %v5743_v43  ;;  %6000 = vmatpush1.bf16.msra.mxu1 %v5999_v37  ;;  %v1214_v43 = vld [vmem:[#allocation4 + $0x620] sm:$0xff]  ;;  %v5761_v37 = vpack.c.bf16 %v1215_v31, %v1211_v12  ;;  %v1233_v0 = vld [vmem:[#allocation4 + $0x6b8] sm:$0xff]  ;;  %v1228_v13 = vld [vmem:[#allocation4 + $0x690] sm:$0xff] }
 0x378   :  { %5746 = vmatprep.subr.bf16.mxu0 %v5745_v44  ;;  %6002 = vmatprep.subr.bf16.mxu1 %v6001_v45  ;;  %v1216_v44 = vld [vmem:[#allocation4 + $0x630] sm:$0xff]  ;;  %v1219_v45 = vld [vmem:[#allocation4 + $0x648] sm:$0xff]  ;;  %v5763_v51 = vpack.c.bf16 %v1214_v43, %v1210_v36  ;;  %v6025_v14 = vpack.c.bf16 %v1233_v0, %v1229_v63  ;;  %v1237_v11 = vld [vmem:[#allocation4 + $0x6d8] sm:$0xff] }
 0x379   :  { %v6019_v54 = vpack.c.bf16 %v1216_v44, %v1212_v42  ;;  %v1239_v18 = vld [vmem:[#allocation4 + $0x6e8] sm:$0xff]  ;;  %v1241_v19 = vld [vmem:[#allocation4 + $0x6f8] sm:$0xff]  ;;  %v1234_v16 = vld [vmem:[#allocation4 + $0x6c0] sm:$0xff] }
 0x37a   :  { %v6029_v30 = vpack.c.bf16 %v1241_v19, %v1237_v11  ;;  %v1236_v23 = vld [vmem:[#allocation4 + $0x6d0] sm:$0xff]  ;;  %v1247_v26 = vld [vmem:[#allocation4 + $0x728] sm:$0xff]  ;;  %v1245_v29 = vld [vmem:[#allocation4 + $0x718] sm:$0xff] }
 0x37b   :  { %5748 = vmatpush1.bf16.msra.mxu0 %v5747_v56  ;;  %6004 = vmatpush1.bf16.msra.mxu1 %v6003_v57  ;;  %v1222_v56 = vld [vmem:[#allocation4 + $0x660] sm:$0xff]  ;;  %v5765_v57 = vpack.c.bf16 %v1223_v48, %v1219_v45  ;;  %v1249_v12 = vld [vmem:[#allocation4 + $0x738] sm:$0xff]  ;;  %v1244_v43 = vld [vmem:[#allocation4 + $0x710] sm:$0xff] }
 0x37c   :  { %5750 = vmatprep.subr.bf16.mxu0 %v5749_v60  ;;  %6006 = vmatprep.subr.bf16.mxu1 %v6005_v61  ;;  %v1224_v60 = vld [vmem:[#allocation4 + $0x670] sm:$0xff]  ;;  %v1227_v61 = vld [vmem:[#allocation4 + $0x688] sm:$0xff]  ;;  %v5767_v1 = vpack.c.bf16 %v1222_v56, %v1218_v55  ;;  %v1242_v33 = vld [vmem:[#allocation4 + $0x700] sm:$0xff]  ;;  %v6033_v36 = vpack.c.bf16 %v1249_v12, %v1245_v29 }
 0x37d   :  { %v6023_v5 = vpack.c.bf16 %v1224_v60, %v1220_v59  ;;  %v1255_v42 = vld [vmem:[#allocation4 + $0x768] sm:$0xff]  ;;  %v1253_v44 = vld [vmem:[#allocation4 + $0x758] sm:$0xff]  ;;  %v1250_v50 = vld [vmem:[#allocation4 + $0x740] sm:$0xff] }
 0x37e   :  { %v1257_v45 = vld [vmem:[#allocation4 + $0x778] sm:$0xff]  ;;  %v1252_v56 = vld [vmem:[#allocation4 + $0x750] sm:$0xff]  ;;  %v1263_v59 = vld [vmem:[#allocation4 + $0x7a8] sm:$0xff] }
 0x37f   :  { %5752 = vmatpush1.bf16.msra.mxu0 %v5751_v7  ;;  %6008 = vmatpush1.bf16.msra.mxu1 %v6007_v38  ;;  %v1230_v7 = vld [vmem:[#allocation4 + $0x6a0] sm:$0xff]  ;;  %v5769_v38 = vpack.c.bf16 %v1231_v62, %v1227_v61  ;;  %v6037_v55 = vpack.c.bf16 %v1257_v45, %v1253_v44  ;;  %v1261_v60 = vld [vmem:[#allocation4 + $0x798] sm:$0xff]  ;;  %v1012_v44 = vmax.f32 %v8101_v40, 0.0 }
 0x380   :  { %5754 = vmatprep.subr.bf16.mxu0 %v5753_v53  ;;  %6010 = vmatprep.subr.bf16.mxu1 %v6009_v17  ;;  %v1232_v53 = vld [vmem:[#allocation4 + $0x6b0] sm:$0xff]  ;;  %v1235_v17 = vld [vmem:[#allocation4 + $0x6c8] sm:$0xff]  ;;  %v5771_v20 = vpack.c.bf16 %v1230_v7, %v1226_v6  ;;  %v1265_v61 = vld [vmem:[#allocation4 + $0x7b8] sm:$0xff] }
 0x381   :  { %v6027_v4 = vpack.c.bf16 %v1232_v53, %v1228_v13  ;;  %v1258_v0 = vld [vmem:[#allocation4 + $0x780] sm:$0xff]  ;;  %v6041_v6 = vpack.c.bf16 %v1265_v61, %v1261_v60  ;;  %v1260_v7 = vld [vmem:[#allocation4 + $0x790] sm:$0xff]  ;;  %v1271_v13 = vld [vmem:[#allocation4 + $0x7e8] sm:$0xff] }
 0x382   :  { %v1269_v53 = vld [vmem:[#allocation4 + $0x7d8] sm:$0xff]  ;;  %v1266_v19 = vld [vmem:[#allocation4 + $0x7c0] sm:$0xff] }
 0x383   :  { %5756 = vmatpush1.bf16.msra.mxu0 %v5755_v10  ;;  %6012 = vmatpush1.bf16.msra.mxu1 %v6011_v21  ;;  %v1238_v10 = vld [vmem:[#allocation4 + $0x6e0] sm:$0xff]  ;;  %v5773_v21 = vpack.c.bf16 %v1239_v18, %v1235_v17  ;;  %v1273_v17 = vld [vmem:[#allocation4 + $0x7f8] sm:$0xff] }
 0x384   :  { %5758 = vmatprep.subr.bf16.mxu0 %v5757_v24  ;;  %6014 = vmatprep.subr.bf16.mxu1 %v6013_v25  ;;  %v1240_v24 = vld [vmem:[#allocation4 + $0x6f0] sm:$0xff]  ;;  %v1243_v25 = vld [vmem:[#allocation4 + $0x708] sm:$0xff]  ;;  %v5775_v31 = vpack.c.bf16 %v1238_v10, %v1234_v16  ;;  %v6045_v16 = vpack.c.bf16 %v1273_v17, %v1269_v53  ;;  %v1297_v60 = vld [vmem:[#allocation4 + $0x8b8] sm:$0xff] }
 0x385   :  { %v6031_v32 = vpack.c.bf16 %v1240_v24, %v1236_v23  ;;  %v1268_v10 = vld [vmem:[#allocation4 + $0x7d0] sm:$0xff]  ;;  %v1279_v23 = vld [vmem:[#allocation4 + $0x828] sm:$0xff]  ;;  %v1277_v24 = vld [vmem:[#allocation4 + $0x818] sm:$0xff] }
 0x387   :  { %5760 = vmatpush1.bf16.msra.mxu0 %v5759_v34  ;;  %6016 = vmatpush1.bf16.msra.mxu1 %v6015_v35  ;;  %v1246_v34 = vld [vmem:[#allocation4 + $0x720] sm:$0xff]  ;;  %v5777_v35 = vpack.c.bf16 %v1247_v26, %v1243_v25  ;;  %v1281_v25 = vld [vmem:[#allocation4 + $0x838] sm:$0xff] }
 0x388   :  { %5762 = vmatprep.subr.bf16.mxu0 %v5761_v37  ;;  %6018 = vmatprep.subr.bf16.mxu1 %v6017_v39  ;;  %v1248_v37 = vld [vmem:[#allocation4 + $0x730] sm:$0xff]  ;;  %v1251_v39 = vld [vmem:[#allocation4 + $0x748] sm:$0xff]  ;;  %v5779_v48 = vpack.c.bf16 %v1246_v34, %v1242_v33  ;;  %v1278_v33 = vld [vmem:[#allocation4 + $0x820] sm:$0xff] }
 0x389   :  { %v6035_v49 = vpack.c.bf16 %v1248_v37, %v1244_v43  ;;  %v1276_v34 = vld [vmem:[#allocation4 + $0x810] sm:$0xff]  ;;  %v1287_v43 = vld [vmem:[#allocation4 + $0x868] sm:$0xff]  ;;  %v1285_v37 = vld [vmem:[#allocation4 + $0x858] sm:$0xff] }
 0x38b   :  { %5764 = vmatpush1.bf16.msra.mxu0 %v5763_v51  ;;  %6020 = vmatpush1.bf16.msra.mxu1 %v6019_v54  ;;  %v1254_v51 = vld [vmem:[#allocation4 + $0x760] sm:$0xff]  ;;  %v5781_v54 = vpack.c.bf16 %v1255_v42, %v1251_v39  ;;  %v1289_v39 = vld [vmem:[#allocation4 + $0x878] sm:$0xff] }
 0x38c   :  { %5766 = vmatprep.subr.bf16.mxu0 %v5765_v57  ;;  %6022 = vmatprep.subr.bf16.mxu1 %v6021_v58  ;;  %v1256_v57 = vld [vmem:[#allocation4 + $0x770] sm:$0xff]  ;;  %v1259_v58 = vld [vmem:[#allocation4 + $0x788] sm:$0xff]  ;;  %v5783_v62 = vpack.c.bf16 %v1254_v51, %v1250_v50  ;;  %v1015_v51 = vmax.f32 %v8105_v47, 0.0 }
 0x38d   :  { %v6039_v63 = vpack.c.bf16 %v1256_v57, %v1252_v56  ;;  %v1284_v50 = vld [vmem:[#allocation4 + $0x850] sm:$0xff]  ;;  %v1291_v57 = vld [vmem:[#allocation4 + $0x888] sm:$0xff] }
 0x38e   :  { %v1288_v56 = vld [vmem:[#allocation4 + $0x870] sm:$0xff] }
 0x38f   :  { %5768 = vmatpush1.bf16.msra.mxu0 %v5767_v1  ;;  %6024 = vmatpush1.bf16.msra.mxu1 %v6023_v5  ;;  %v1262_v1 = vld [vmem:[#allocation4 + $0x7a0] sm:$0xff]  ;;  %v5785_v5 = vpack.c.bf16 %v1263_v59, %v1259_v58  ;;  %v1295_v58 = vld [vmem:[#allocation4 + $0x8a8] sm:$0xff]  ;;  %v1293_v59 = vld [vmem:[#allocation4 + $0x898] sm:$0xff]  ;;  %v6055_v61 = vpack.c.bf16 %v1288_v56, %v1284_v50 }
 0x390   :  { %5770 = vmatprep.subr.bf16.mxu0 %v5769_v38  ;;  %6026 = vmatprep.subr.bf16.mxu1 %v6025_v14  ;;  %v1264_v38 = vld [vmem:[#allocation4 + $0x7b0] sm:$0xff]  ;;  %v1267_v14 = vld [vmem:[#allocation4 + $0x7c8] sm:$0xff]  ;;  %v5787_v18 = vpack.c.bf16 %v1262_v1, %v1258_v0  ;;  %v1294_v0 = vld [vmem:[#allocation4 + $0x8a0] sm:$0xff]  ;;  %v6057_v47 = vpack.c.bf16 %v1297_v60, %v1293_v59 }
 0x391   :  { %v6043_v11 = vpack.c.bf16 %v1264_v38, %v1260_v7  ;;  %v1292_v1 = vld [vmem:[#allocation4 + $0x890] sm:$0xff]  ;;  %v1303_v7 = vld [vmem:[#allocation4 + $0x8e8] sm:$0xff]  ;;  %v1301_v38 = vld [vmem:[#allocation4 + $0x8d8] sm:$0xff] }
 0x392   :  { %v1323_v50 = vld [vmem:[#allocation4 + $0x988] sm:$0xff]  ;;  %v1322_v59 = vld [vmem:[#allocation4 + $0x980] sm:$0xff] }
 0x393   :  { %5772 = vmatpush1.bf16.msra.mxu0 %v5771_v20  ;;  %6028 = vmatpush1.bf16.msra.mxu1 %v6027_v4  ;;  %v1270_v20 = vld [vmem:[#allocation4 + $0x7e0] sm:$0xff]  ;;  %v5789_v4 = vpack.c.bf16 %v1271_v13, %v1267_v14  ;;  %v1305_v14 = vld [vmem:[#allocation4 + $0x8f8] sm:$0xff] }
 0x394   :  { %5774 = vmatprep.subr.bf16.mxu0 %v5773_v21  ;;  %6030 = vmatprep.subr.bf16.mxu1 %v6029_v30  ;;  %v1272_v21 = vld [vmem:[#allocation4 + $0x7f0] sm:$0xff]  ;;  %v1275_v30 = vld [vmem:[#allocation4 + $0x808] sm:$0xff]  ;;  %v5791_v26 = vpack.c.bf16 %v1270_v20, %v1266_v19  ;;  %v6061_v20 = vpack.c.bf16 %v1305_v14, %v1301_v38  ;;  %v1326_v60 = vld [vmem:[#allocation4 + $0x9a0] sm:$0xff] }
 0x395   :  { %v6047_v29 = vpack.c.bf16 %v1272_v21, %v1268_v10  ;;  %v5793_v12 = vpack.c.bf16 %v1279_v23, %v1275_v30  ;;  %v1300_v19 = vld [vmem:[#allocation4 + $0x8d0] sm:$0xff]  ;;  %v1311_v10 = vld [vmem:[#allocation4 + $0x928] sm:$0xff]  ;;  %v1309_v21 = vld [vmem:[#allocation4 + $0x918] sm:$0xff] }
 0x396   :  { %v1313_v30 = vld [vmem:[#allocation4 + $0x938] sm:$0xff]  ;;  %v1330_v38 = vld [vmem:[#allocation4 + $0x9c0] sm:$0xff] }
 0x397   :  { %5776 = vmatpush1.bf16.msra.mxu0 %v5775_v31  ;;  %6032 = vmatpush1.bf16.msra.mxu1 %v6031_v32  ;;  %v6049_v31 = vpack.c.bf16 %v1281_v25, %v1277_v24  ;;  %v1274_v32 = vld [vmem:[#allocation4 + $0x800] sm:$0xff] }
 0x398   :  { %5778 = vmatprep.subr.bf16.mxu0 %v5777_v35  ;;  %6034 = vmatprep.subr.bf16.mxu1 %v6033_v36  ;;  %v1280_v35 = vld [vmem:[#allocation4 + $0x830] sm:$0xff]  ;;  %v1283_v36 = vld [vmem:[#allocation4 + $0x848] sm:$0xff]  ;;  %v5795_v42 = vpack.c.bf16 %v1278_v33, %v1274_v32  ;;  %v1334_v14 = vld [vmem:[#allocation4 + $0x9e0] sm:$0xff] }
 0x399   :  { %v6051_v45 = vpack.c.bf16 %v1280_v35, %v1276_v34  ;;  %v1312_v32 = vld [vmem:[#allocation4 + $0x930] sm:$0xff]  ;;  %v1315_v33 = vld [vmem:[#allocation4 + $0x948] sm:$0xff]  ;;  %v1317_v35 = vld [vmem:[#allocation4 + $0x958] sm:$0xff] }
 0x39a   :  { %v1319_v34 = vld [vmem:[#allocation4 + $0x968] sm:$0xff] }
 0x39b   :  { %5780 = vmatpush1.bf16.msra.mxu0 %v5779_v48  ;;  %6036 = vmatpush1.bf16.msra.mxu1 %v6035_v49  ;;  %v1282_v48 = vld [vmem:[#allocation4 + $0x840] sm:$0xff] }
 0x39c   :  { %5782 = vmatprep.subr.bf16.mxu0 %v5781_v54  ;;  %6038 = vmatprep.subr.bf16.mxu1 %v6037_v55  ;;  %v1286_v49 = vld [vmem:[#allocation4 + $0x860] sm:$0xff]  ;;  %v5797_v54 = vpack.c.bf16 %v1287_v43, %v1283_v36  ;;  %v6053_v55 = vpack.c.bf16 %v1289_v39, %v1285_v37  ;;  %v1321_v36 = vld [vmem:[#allocation4 + $0x978] sm:$0xff]  ;;  %v5813_v39 = vpack.c.bf16 %v1319_v34, %v1315_v33 }
 0x39d   :  { %v5799_v40 = vpack.c.bf16 %v1286_v49, %v1282_v48  ;;  %v6069_v48 = vpack.c.bf16 %v1321_v36, %v1317_v35  ;;  %v1320_v49 = vld [vmem:[#allocation4 + $0x970] sm:$0xff]  ;;  %v1346_v35 = vld [vmem:[#allocation4 + $0xa40] sm:$0xff] }
 0x39e   :  { %v1350_v36 = vld [vmem:[#allocation4 + $0xa60] sm:$0xff] }
 0x39f   :  { %5784 = vmatpush1.bf16.msra.mxu0 %v5783_v62  ;;  %6040 = vmatpush1.bf16.msra.mxu1 %v6039_v63  ;;  %v5801_v62 = vpack.c.bf16 %v1295_v58, %v1291_v57  ;;  %v1290_v63 = vld [vmem:[#allocation4 + $0x880] sm:$0xff] }
 0x3a0   :  { %5786 = vmatprep.subr.bf16.mxu0 %v5785_v5  ;;  %6042 = vmatprep.subr.bf16.mxu1 %v6041_v6  ;;  %v1296_v5 = vld [vmem:[#allocation4 + $0x8b0] sm:$0xff]  ;;  %v1299_v6 = vld [vmem:[#allocation4 + $0x8c8] sm:$0xff]  ;;  %v5803_v13 = vpack.c.bf16 %v1294_v0, %v1290_v63 }
 0x3a1   :  { %v6059_v53 = vpack.c.bf16 %v1296_v5, %v1292_v1  ;;  %v5805_v17 = vpack.c.bf16 %v1303_v7, %v1299_v6  ;;  %v1331_v63 = vld [vmem:[#allocation4 + $0x9c8] sm:$0xff]  ;;  %v1333_v1 = vld [vmem:[#allocation4 + $0x9d8] sm:$0xff]  ;;  %v5819_v5 = vpack.c.bf16 %v1326_v60, %v1322_v59 }
 0x3a2   :  { %v1335_v0 = vld [vmem:[#allocation4 + $0x9e8] sm:$0xff] }
 0x3a3   :  { %5788 = vmatpush1.bf16.msra.mxu0 %v5787_v18  ;;  %6044 = vmatpush1.bf16.msra.mxu1 %v6043_v11  ;;  %v1298_v18 = vld [vmem:[#allocation4 + $0x8c0] sm:$0xff]  ;;  %v5821_v7 = vpack.c.bf16 %v1335_v0, %v1331_v63  ;;  %v1363_v59 = vld [vmem:[#allocation4 + $0xac8] sm:$0xff] }
 0x3a4   :  { %5790 = vmatprep.subr.bf16.mxu0 %v5789_v4  ;;  %6046 = vmatprep.subr.bf16.mxu1 %v6045_v16  ;;  %v1302_v11 = vld [vmem:[#allocation4 + $0x8e0] sm:$0xff]  ;;  %v1304_v4 = vld [vmem:[#allocation4 + $0x8f0] sm:$0xff]  ;;  %v1307_v16 = vld [vmem:[#allocation4 + $0x908] sm:$0xff] }
 0x3a5   :  { %v5807_v23 = vpack.c.bf16 %v1302_v11, %v1298_v18  ;;  %v6063_v24 = vpack.c.bf16 %v1304_v4, %v1300_v19  ;;  %v5809_v25 = vpack.c.bf16 %v1311_v10, %v1307_v16  ;;  %v1339_v18 = vld [vmem:[#allocation4 + $0xa08] sm:$0xff]  ;;  %v1341_v19 = vld [vmem:[#allocation4 + $0xa18] sm:$0xff]  ;;  %v5823_v4 = vpack.c.bf16 %v1334_v14, %v1330_v38 }
 0x3a6   :  { %v1343_v11 = vld [vmem:[#allocation4 + $0xa28] sm:$0xff] }
 0x3a7   :  { %5792 = vmatpush1.bf16.msra.mxu0 %v5791_v26  ;;  %6048 = vmatpush1.bf16.msra.mxu1 %v6047_v29  ;;  %v1306_v26 = vld [vmem:[#allocation4 + $0x900] sm:$0xff]  ;;  %v5825_v10 = vpack.c.bf16 %v1343_v11, %v1339_v18  ;;  %v1367_v60 = vld [vmem:[#allocation4 + $0xae8] sm:$0xff] }
 0x3a8   :  { %5794 = vmatprep.subr.bf16.mxu0 %v5793_v12  ;;  %6050 = vmatprep.subr.bf16.mxu1 %v6049_v31  ;;  %v1310_v29 = vld [vmem:[#allocation4 + $0x920] sm:$0xff]  ;;  %v1308_v12 = vld [vmem:[#allocation4 + $0x910] sm:$0xff]  ;;  %v6065_v31 = vpack.c.bf16 %v1313_v30, %v1309_v21  ;;  %v5837_v0 = vpack.c.bf16 %v1367_v60, %v1363_v59  ;;  %v1371_v38 = vld [vmem:[#allocation4 + $0xb08] sm:$0xff] }
 0x3a9   :  { %v5811_v43 = vpack.c.bf16 %v1310_v29, %v1306_v26  ;;  %v6067_v37 = vpack.c.bf16 %v1312_v32, %v1308_v12  ;;  %v1338_v21 = vld [vmem:[#allocation4 + $0xa00] sm:$0xff]  ;;  %v1347_v26 = vld [vmem:[#allocation4 + $0xa48] sm:$0xff]  ;;  %v1349_v12 = vld [vmem:[#allocation4 + $0xa58] sm:$0xff] }
 0x3aa   :  { %1688 = vmatmul.mubr.f32.vlgmr.msra.gmra.mrb[0].mxu0 %v1012_v44  ;;  %1972 = vmatmul.mubr.f32.vlgmr.msra.gmra.mrb[8].mxu1 %v1012_v44  ;;  %v1318_v44 = vld [vmem:[#allocation4 + $0x960] sm:$0xff]  ;;  %v1351_v29 = vld [vmem:[#allocation4 + $0xa68] sm:$0xff] }
 0x3ab   :  { %5796 = vmatpush1.bf16.msra.mxu0 %v5795_v42  ;;  %1758 = vmatprep.mubr.f32.mxu0 %v1015_v51  ;;  %v1314_v42 = vld [vmem:[#allocation4 + $0x940] sm:$0xff]  ;;  %v5829_v34 = vpack.c.bf16 %v1351_v29, %v1347_v26  ;;  %v1375_v14 = vld [vmem:[#allocation4 + $0xb28] sm:$0xff] }
 0x3ac   :  { %6052 = vmatpush1.bf16.msra.mxu1 %v6051_v45  ;;  %2042 = vmatprep.mubr.f32.mxu1 %v1015_v51  ;;  %v1316_v45 = vld [vmem:[#allocation4 + $0x950] sm:$0xff]  ;;  %v1327_v51 = vld [vmem:[#allocation4 + $0x9a8] sm:$0xff]  ;;  %v5815_v56 = vpack.c.bf16 %v1318_v44, %v1314_v42  ;;  %v1342_v30 = vld [vmem:[#allocation4 + $0xa20] sm:$0xff]  ;;  %v5841_v11 = vpack.c.bf16 %v1375_v14, %v1371_v38 }
 0x3ad   :  { %5798 = vmatprep.subr.bf16.mxu0 %v5797_v54  ;;  %6054 = vmatprep.subr.bf16.mxu1 %v6053_v55  ;;  %v1325_v54 = vld [vmem:[#allocation4 + $0x998] sm:$0xff]  ;;  %v6071_v57 = vpack.c.bf16 %v1320_v49, %v1316_v45  ;;  %v5817_v58 = vpack.c.bf16 %v1327_v51, %v1323_v50  ;;  %v5827_v32 = vpack.c.bf16 %v1342_v30, %v1338_v21  ;;  %v1355_v42 = vld [vmem:[#allocation4 + $0xa88] sm:$0xff] }
 0x3ae   :  { %v1329_v55 = vld [vmem:[#allocation4 + $0x9b8] sm:$0xff]  ;;  %v1359_v44 = vld [vmem:[#allocation4 + $0xaa8] sm:$0xff]  ;;  %v5831_v49 = vpack.c.bf16 %v1350_v36, %v1346_v35 }
 0x3af   :  { %5800 = vmatpush1.bf16.msra.mxu0 %v5799_v40  ;;  %v1324_v40 = vld [vmem:[#allocation4 + $0x990] sm:$0xff]  ;;  %v1357_v45 = vld [vmem:[#allocation4 + $0xa98] sm:$0xff]  ;;  %v5833_v51 = vpack.c.bf16 %v1359_v44, %v1355_v42  ;;  %v1379_v21 = vld [vmem:[#allocation4 + $0xb48] sm:$0xff] }
 0x3b0   :  { %6056 = vmatpush1.bf16.msra.mxu1 %v6055_v61  ;;  %5802 = vmatprep.subr.bf16.mxu0 %v5801_v62  ;;  %v6073_v61 = vpack.c.bf16 %v1329_v55, %v1325_v54  ;;  %v1328_v62 = vld [vmem:[#allocation4 + $0x9b0] sm:$0xff]  ;;  %v1354_v54 = vld [vmem:[#allocation4 + $0xa80] sm:$0xff]  ;;  %v1383_v30 = vld [vmem:[#allocation4 + $0xb68] sm:$0xff] }
 0x3b1   :  { %6058 = vmatprep.subr.bf16.mxu1 %v6057_v47  ;;  %v1337_v47 = vld [vmem:[#allocation4 + $0x9f8] sm:$0xff]  ;;  %v6075_v6 = vpack.c.bf16 %v1328_v62, %v1324_v40  ;;  %v1358_v55 = vld [vmem:[#allocation4 + $0xaa0] sm:$0xff]  ;;  %v5845_v29 = vpack.c.bf16 %v1383_v30, %v1379_v21  ;;  %v1387_v35 = vld [vmem:[#allocation4 + $0xb88] sm:$0xff]  ;;  %v1014_v21 = vmax.f32 %v8115_v46, 0.0 }
 0x3b2   :  { %v1365_v40 = vld [vmem:[#allocation4 + $0xad8] sm:$0xff]  ;;  %v5835_v62 = vpack.c.bf16 %v1358_v55, %v1354_v54  ;;  %v1391_v36 = vld [vmem:[#allocation4 + $0xba8] sm:$0xff] }
 0x3b3   :  { %5804 = vmatpush1.bf16.msra.mxu0 %v5803_v13  ;;  %v1332_v13 = vld [vmem:[#allocation4 + $0x9d0] sm:$0xff]  ;;  %v5849_v44 = vpack.c.bf16 %v1391_v36, %v1387_v35  ;;  %v1395_v54 = vld [vmem:[#allocation4 + $0xbc8] sm:$0xff]  ;;  %v1425_v35 = vld [vmem:[#allocation4 + $0xcb8] sm:$0xff] }
 0x3b4   :  { %6060 = vmatpush1.bf16.msra.mxu1 %v6059_v53  ;;  %5806 = vmatprep.subr.bf16.mxu0 %v5805_v17  ;;  %v6077_v53 = vpack.c.bf16 %v1337_v47, %v1333_v1  ;;  %v1336_v17 = vld [vmem:[#allocation4 + $0x9f0] sm:$0xff]  ;;  %v1362_v1 = vld [vmem:[#allocation4 + $0xac0] sm:$0xff]  ;;  %v1399_v55 = vld [vmem:[#allocation4 + $0xbe8] sm:$0xff] }
 0x3b5   :  { %6062 = vmatprep.subr.bf16.mxu1 %v6061_v20  ;;  %v1345_v20 = vld [vmem:[#allocation4 + $0xa38] sm:$0xff]  ;;  %v6079_v16 = vpack.c.bf16 %v1336_v17, %v1332_v13  ;;  %v1366_v47 = vld [vmem:[#allocation4 + $0xae0] sm:$0xff]  ;;  %v5853_v60 = vpack.c.bf16 %v1399_v55, %v1395_v54 }
 0x3b6   :  { %v1373_v13 = vld [vmem:[#allocation4 + $0xb18] sm:$0xff]  ;;  %v5839_v17 = vpack.c.bf16 %v1366_v47, %v1362_v1  ;;  %v1403_v1 = vld [vmem:[#allocation4 + $0xc08] sm:$0xff] }
 0x3b7   :  { %5808 = vmatpush1.bf16.msra.mxu0 %v5807_v23  ;;  %v1340_v23 = vld [vmem:[#allocation4 + $0xa10] sm:$0xff]  ;;  %v1407_v47 = vld [vmem:[#allocation4 + $0xc28] sm:$0xff] }
 0x3b8   :  { %6064 = vmatpush1.bf16.msra.mxu1 %v6063_v24  ;;  %5810 = vmatprep.subr.bf16.mxu0 %v5809_v25  ;;  %v6081_v24 = vpack.c.bf16 %v1345_v20, %v1341_v19  ;;  %v1344_v25 = vld [vmem:[#allocation4 + $0xa30] sm:$0xff]  ;;  %v1370_v19 = vld [vmem:[#allocation4 + $0xb00] sm:$0xff]  ;;  %v5857_v14 = vpack.c.bf16 %v1407_v47, %v1403_v1 }
 0x3b9   :  { %6066 = vmatprep.subr.bf16.mxu1 %v6065_v31  ;;  %v1353_v31 = vld [vmem:[#allocation4 + $0xa78] sm:$0xff]  ;;  %v6083_v33 = vpack.c.bf16 %v1344_v25, %v1340_v23  ;;  %v1374_v20 = vld [vmem:[#allocation4 + $0xb20] sm:$0xff] }
 0x3ba   :  { %v1381_v23 = vld [vmem:[#allocation4 + $0xb58] sm:$0xff]  ;;  %v5843_v25 = vpack.c.bf16 %v1374_v20, %v1370_v19  ;;  %v1411_v19 = vld [vmem:[#allocation4 + $0xc48] sm:$0xff] }
 0x3bb   :  { %5812 = vmatpush1.bf16.msra.mxu0 %v5811_v43  ;;  %v1348_v43 = vld [vmem:[#allocation4 + $0xa50] sm:$0xff]  ;;  %v1415_v20 = vld [vmem:[#allocation4 + $0xc68] sm:$0xff] }
 0x3bc   :  { %6068 = vmatpush1.bf16.msra.mxu1 %v6067_v37  ;;  %5814 = vmatprep.subr.bf16.mxu0 %v5813_v39  ;;  %v6085_v37 = vpack.c.bf16 %v1353_v31, %v1349_v12  ;;  %v1352_v39 = vld [vmem:[#allocation4 + $0xa70] sm:$0xff]  ;;  %v1378_v12 = vld [vmem:[#allocation4 + $0xb40] sm:$0xff] }
 0x3bd   :  { %6070 = vmatprep.subr.bf16.mxu1 %v6069_v48  ;;  %v1361_v48 = vld [vmem:[#allocation4 + $0xab8] sm:$0xff]  ;;  %v6087_v50 = vpack.c.bf16 %v1352_v39, %v1348_v43  ;;  %v1382_v31 = vld [vmem:[#allocation4 + $0xb60] sm:$0xff] }
 0x3be   :  { %v1389_v43 = vld [vmem:[#allocation4 + $0xb98] sm:$0xff]  ;;  %v5847_v39 = vpack.c.bf16 %v1382_v31, %v1378_v12  ;;  %v1419_v12 = vld [vmem:[#allocation4 + $0xc88] sm:$0xff] }
 0x3bf   :  { %5816 = vmatpush1.bf16.msra.mxu0 %v5815_v56  ;;  %v1356_v56 = vld [vmem:[#allocation4 + $0xa90] sm:$0xff]  ;;  %v1423_v31 = vld [vmem:[#allocation4 + $0xca8] sm:$0xff] }
 0x3c0   :  { %6072 = vmatpush1.bf16.msra.mxu1 %v6071_v57  ;;  %5818 = vmatprep.subr.bf16.mxu0 %v5817_v58  ;;  %v6089_v57 = vpack.c.bf16 %v1361_v48, %v1357_v45  ;;  %v1360_v58 = vld [vmem:[#allocation4 + $0xab0] sm:$0xff]  ;;  %v1386_v45 = vld [vmem:[#allocation4 + $0xb80] sm:$0xff] }
 0x3c1   :  { %6074 = vmatprep.subr.bf16.mxu1 %v6073_v61  ;;  %v1369_v61 = vld [vmem:[#allocation4 + $0xaf8] sm:$0xff]  ;;  %v6091_v63 = vpack.c.bf16 %v1360_v58, %v1356_v56  ;;  %v1390_v48 = vld [vmem:[#allocation4 + $0xba0] sm:$0xff] }
 0x3c2   :  { %v1397_v56 = vld [vmem:[#allocation4 + $0xbd8] sm:$0xff]  ;;  %v5851_v58 = vpack.c.bf16 %v1390_v48, %v1386_v45  ;;  %v1424_v45 = vld [vmem:[#allocation4 + $0xcb0] sm:$0xff]  ;;  %v1427_v48 = vld [vmem:[#allocation4 + $0xcc8] sm:$0xff] }
 0x3c3   :  { %5820 = vmatpush1.bf16.msra.mxu0 %v5819_v5  ;;  %v1364_v5 = vld [vmem:[#allocation4 + $0xad0] sm:$0xff] }
 0x3c4   :  { %6076 = vmatpush1.bf16.msra.mxu1 %v6075_v6  ;;  %5822 = vmatprep.subr.bf16.mxu0 %v5821_v7  ;;  %v6093_v6 = vpack.c.bf16 %v1369_v61, %v1365_v40  ;;  %v1368_v7 = vld [vmem:[#allocation4 + $0xaf0] sm:$0xff]  ;;  %v1394_v40 = vld [vmem:[#allocation4 + $0xbc0] sm:$0xff] }
 0x3c5   :  { %6078 = vmatprep.subr.bf16.mxu1 %v6077_v53  ;;  %v1377_v53 = vld [vmem:[#allocation4 + $0xb38] sm:$0xff]  ;;  %v6095_v18 = vpack.c.bf16 %v1368_v7, %v1364_v5  ;;  %v1398_v61 = vld [vmem:[#allocation4 + $0xbe0] sm:$0xff] }
 0x3c6   :  { %v1405_v5 = vld [vmem:[#allocation4 + $0xc18] sm:$0xff]  ;;  %v5855_v7 = vpack.c.bf16 %v1398_v61, %v1394_v40  ;;  %v1435_v40 = vld [vmem:[#allocation4 + $0xd08] sm:$0xff] }
 0x3c7   :  { %5824 = vmatpush1.bf16.msra.mxu0 %v5823_v4  ;;  %v1372_v4 = vld [vmem:[#allocation4 + $0xb10] sm:$0xff]  ;;  %v1439_v61 = vld [vmem:[#allocation4 + $0xd28] sm:$0xff] }
 0x3c8   :  { %6080 = vmatpush1.bf16.msra.mxu1 %v6079_v16  ;;  %5826 = vmatprep.subr.bf16.mxu0 %v5825_v10  ;;  %v6097_v16 = vpack.c.bf16 %v1377_v53, %v1373_v13  ;;  %v1376_v10 = vld [vmem:[#allocation4 + $0xb30] sm:$0xff]  ;;  %v1402_v13 = vld [vmem:[#allocation4 + $0xc00] sm:$0xff]  ;;  %v5873_v47 = vpack.c.bf16 %v1439_v61, %v1435_v40 }
 0x3c9   :  { %6082 = vmatprep.subr.bf16.mxu1 %v6081_v24  ;;  %v1385_v24 = vld [vmem:[#allocation4 + $0xb78] sm:$0xff]  ;;  %v6099_v26 = vpack.c.bf16 %v1376_v10, %v1372_v4  ;;  %v1406_v53 = vld [vmem:[#allocation4 + $0xc20] sm:$0xff] }
 0x3ca   :  { %v5859_v4 = vpack.c.bf16 %v1406_v53, %v1402_v13  ;;  %v1417_v10 = vld [vmem:[#allocation4 + $0xc78] sm:$0xff]  ;;  %v1443_v13 = vld [vmem:[#allocation4 + $0xd48] sm:$0xff]  ;;  %v1466_v40 = vld [vmem:[#allocation4 + $0xe00] sm:$0xff] }
 0x3cb   :  { %5828 = vmatpush1.bf16.msra.mxu0 %v5827_v32  ;;  %v1380_v32 = vld [vmem:[#allocation4 + $0xb50] sm:$0xff]  ;;  %v1447_v53 = vld [vmem:[#allocation4 + $0xd68] sm:$0xff]  ;;  %v1470_v61 = vld [vmem:[#allocation4 + $0xe20] sm:$0xff] }
 0x3cc   :  { %6084 = vmatpush1.bf16.msra.mxu1 %v6083_v33  ;;  %5830 = vmatprep.subr.bf16.mxu0 %v5829_v34  ;;  %v6101_v33 = vpack.c.bf16 %v1385_v24, %v1381_v23  ;;  %v1384_v34 = vld [vmem:[#allocation4 + $0xb70] sm:$0xff]  ;;  %v1410_v23 = vld [vmem:[#allocation4 + $0xc40] sm:$0xff] }
 0x3cd   :  { %6086 = vmatprep.subr.bf16.mxu1 %v6085_v37  ;;  %v1393_v37 = vld [vmem:[#allocation4 + $0xbb8] sm:$0xff]  ;;  %v6103_v42 = vpack.c.bf16 %v1384_v34, %v1380_v32  ;;  %v1414_v24 = vld [vmem:[#allocation4 + $0xc60] sm:$0xff]  ;;  %v1017_v32 = vmax.f32 %v8117_v52, 0.0 }
 0x3ce   :  { %v1421_v34 = vld [vmem:[#allocation4 + $0xc98] sm:$0xff]  ;;  %v5863_v36 = vpack.c.bf16 %v1414_v24, %v1410_v23  ;;  %v1451_v23 = vld [vmem:[#allocation4 + $0xd88] sm:$0xff] }
 0x3cf   :  { %5832 = vmatpush1.bf16.msra.mxu0 %v5831_v49  ;;  %v1388_v49 = vld [vmem:[#allocation4 + $0xb90] sm:$0xff]  ;;  %v1429_v52 = vld [vmem:[#allocation4 + $0xcd8] sm:$0xff]  ;;  %v1455_v24 = vld [vmem:[#allocation4 + $0xda8] sm:$0xff] }
 0x3d0   :  { %6088 = vmatpush1.bf16.msra.mxu1 %v6087_v50  ;;  %5834 = vmatprep.subr.bf16.mxu0 %v5833_v51  ;;  %v6105_v50 = vpack.c.bf16 %v1393_v37, %v1389_v43  ;;  %v1392_v51 = vld [vmem:[#allocation4 + $0xbb0] sm:$0xff]  ;;  %v5865_v43 = vpack.c.bf16 %v1423_v31, %v1419_v12  ;;  %v1418_v37 = vld [vmem:[#allocation4 + $0xc80] sm:$0xff]  ;;  %v5881_v31 = vpack.c.bf16 %v1455_v24, %v1451_v23 }
 0x3d1   :  { %6090 = vmatprep.subr.bf16.mxu1 %v6089_v57  ;;  %v1401_v57 = vld [vmem:[#allocation4 + $0xbf8] sm:$0xff]  ;;  %v6107_v59 = vpack.c.bf16 %v1392_v51, %v1388_v49  ;;  %v1431_v49 = vld [vmem:[#allocation4 + $0xce8] sm:$0xff]  ;;  %v1482_v23 = vld [vmem:[#allocation4 + $0xe80] sm:$0xff] }
 0x3d2   :  { %v5869_v55 = vpack.c.bf16 %v1431_v49, %v1427_v48  ;;  %v1458_v48 = vld [vmem:[#allocation4 + $0xdc0] sm:$0xff] }
 0x3d3   :  { %5836 = vmatpush1.bf16.msra.mxu0 %v5835_v62  ;;  %v1396_v62 = vld [vmem:[#allocation4 + $0xbd0] sm:$0xff]  ;;  %v1462_v49 = vld [vmem:[#allocation4 + $0xde0] sm:$0xff] }
 0x3d4   :  { %6092 = vmatpush1.bf16.msra.mxu1 %v6091_v63  ;;  %5838 = vmatprep.subr.bf16.mxu0 %v5837_v0  ;;  %v6109_v63 = vpack.c.bf16 %v1401_v57, %v1397_v56  ;;  %v1400_v0 = vld [vmem:[#allocation4 + $0xbf0] sm:$0xff]  ;;  %v1426_v56 = vld [vmem:[#allocation4 + $0xcc0] sm:$0xff] }
 0x3d5   :  { %6094 = vmatprep.subr.bf16.mxu1 %v6093_v6  ;;  %v1409_v6 = vld [vmem:[#allocation4 + $0xc38] sm:$0xff]  ;;  %v6111_v38 = vpack.c.bf16 %v1400_v0, %v1396_v62  ;;  %v1430_v57 = vld [vmem:[#allocation4 + $0xce0] sm:$0xff] }
 0x3d6   :  { %v1437_v62 = vld [vmem:[#allocation4 + $0xd18] sm:$0xff]  ;;  %v5871_v0 = vpack.c.bf16 %v1430_v57, %v1426_v56  ;;  %v1486_v24 = vld [vmem:[#allocation4 + $0xea0] sm:$0xff] }
 0x3d7   :  { %5840 = vmatpush1.bf16.msra.mxu0 %v5839_v17  ;;  %v6113_v17 = vpack.c.bf16 %v1409_v6, %v1405_v5  ;;  %v1434_v5 = vld [vmem:[#allocation4 + $0xd00] sm:$0xff]  ;;  %v1469_v56 = vld [vmem:[#allocation4 + $0xe18] sm:$0xff] }
 0x3d8   :  { %6096 = vmatpush1.bf16.msra.mxu1 %v6095_v18  ;;  %5842 = vmatprep.subr.bf16.mxu0 %v5841_v11  ;;  %v1404_v18 = vld [vmem:[#allocation4 + $0xc10] sm:$0xff]  ;;  %v1438_v6 = vld [vmem:[#allocation4 + $0xd20] sm:$0xff]  ;;  %v1473_v57 = vld [vmem:[#allocation4 + $0xe38] sm:$0xff] }
 0x3d9   :  { %6098 = vmatprep.subr.bf16.mxu1 %v6097_v16  ;;  %v1408_v11 = vld [vmem:[#allocation4 + $0xc30] sm:$0xff]  ;;  %v1413_v16 = vld [vmem:[#allocation4 + $0xc58] sm:$0xff] }
 0x3da   :  { %v6115_v30 = vpack.c.bf16 %v1408_v11, %v1404_v18  ;;  %v1449_v18 = vld [vmem:[#allocation4 + $0xd78] sm:$0xff]  ;;  %v5875_v11 = vpack.c.bf16 %v1438_v6, %v1434_v5 }
 0x3db   :  { %5844 = vmatpush1.bf16.msra.mxu0 %v5843_v25  ;;  %v1412_v25 = vld [vmem:[#allocation4 + $0xc50] sm:$0xff]  ;;  %v1477_v5 = vld [vmem:[#allocation4 + $0xe58] sm:$0xff] }
 0x3dc   :  { %6100 = vmatpush1.bf16.msra.mxu1 %v6099_v26  ;;  %5846 = vmatprep.subr.bf16.mxu0 %v5845_v29  ;;  %v5861_v26 = vpack.c.bf16 %v1415_v20, %v1411_v19  ;;  %v1416_v29 = vld [vmem:[#allocation4 + $0xc70] sm:$0xff]  ;;  %v5877_v20 = vpack.c.bf16 %v1447_v53, %v1443_v13  ;;  %v1481_v6 = vld [vmem:[#allocation4 + $0xe78] sm:$0xff]  ;;  %v1474_v13 = vld [vmem:[#allocation4 + $0xe40] sm:$0xff] }
 0x3dd   :  { %6102 = vmatprep.subr.bf16.mxu1 %v6101_v33  ;;  %v6117_v33 = vpack.c.bf16 %v1417_v10, %v1413_v16  ;;  %v6119_v46 = vpack.c.bf16 %v1416_v29, %v1412_v25  ;;  %v1446_v16 = vld [vmem:[#allocation4 + $0xd60] sm:$0xff]  ;;  %v1444_v10 = vld [vmem:[#allocation4 + $0xd50] sm:$0xff]  ;;  %v1453_v25 = vld [vmem:[#allocation4 + $0xd98] sm:$0xff] }
 0x3de   :  { %v1478_v53 = vld [vmem:[#allocation4 + $0xe60] sm:$0xff] }
 0x3df   :  { %5848 = vmatpush1.bf16.msra.mxu0 %v5847_v39  ;;  %v1422_v39 = vld [vmem:[#allocation4 + $0xca0] sm:$0xff] }
 0x3e0   :  { %6104 = vmatpush1.bf16.msra.mxu1 %v6103_v42  ;;  %5850 = vmatprep.subr.bf16.mxu0 %v5849_v44  ;;  %v1420_v42 = vld [vmem:[#allocation4 + $0xc90] sm:$0xff]  ;;  %v6121_v44 = vpack.c.bf16 %v1425_v35, %v1421_v34  ;;  %v5867_v51 = vpack.c.bf16 %v1422_v39, %v1418_v37  ;;  %v1461_v37 = vld [vmem:[#allocation4 + $0xdd8] sm:$0xff] }
 0x3e1   :  { %6106 = vmatprep.subr.bf16.mxu1 %v6105_v50  ;;  %v1433_v50 = vld [vmem:[#allocation4 + $0xcf8] sm:$0xff]  ;;  %v6123_v54 = vpack.c.bf16 %v1424_v45, %v1420_v42  ;;  %v1452_v34 = vld [vmem:[#allocation4 + $0xd90] sm:$0xff] }
 0x3e2   :  { %v1465_v39 = vld [vmem:[#allocation4 + $0xdf8] sm:$0xff] }
 0x3e3   :  { %5852 = vmatpush1.bf16.msra.mxu0 %v5851_v58  ;;  %v1428_v58 = vld [vmem:[#allocation4 + $0xcd0] sm:$0xff] }
 0x3e4   :  { %6108 = vmatpush1.bf16.msra.mxu1 %v6107_v59  ;;  %5854 = vmatprep.subr.bf16.mxu0 %v5853_v60  ;;  %v6125_v59 = vpack.c.bf16 %v1433_v50, %v1429_v52  ;;  %v1432_v60 = vld [vmem:[#allocation4 + $0xcf0] sm:$0xff]  ;;  %v6141_v50 = vpack.c.bf16 %v1465_v39, %v1461_v37 }
 0x3e5   :  { %6110 = vmatprep.subr.bf16.mxu1 %v6109_v63  ;;  %v1441_v63 = vld [vmem:[#allocation4 + $0xd38] sm:$0xff]  ;;  %v6127_v1 = vpack.c.bf16 %v1432_v60, %v1428_v58  ;;  %v1460_v52 = vld [vmem:[#allocation4 + $0xdd0] sm:$0xff]  ;;  %v5887_v58 = vpack.c.bf16 %v1462_v49, %v1458_v48 }
 0x3e6   :  { %v1492_v37 = vld [vmem:[#allocation4 + $0xed0] sm:$0xff]  ;;  %v1501_v48 = vld [vmem:[#allocation4 + $0xf18] sm:$0xff] }
 0x3e7   :  { %5856 = vmatpush1.bf16.msra.mxu0 %v5855_v7  ;;  %v1436_v7 = vld [vmem:[#allocation4 + $0xd10] sm:$0xff]  ;;  %v1505_v49 = vld [vmem:[#allocation4 + $0xf38] sm:$0xff] }
 0x3e8   :  { %6112 = vmatpush1.bf16.msra.mxu1 %v6111_v38  ;;  %5858 = vmatprep.subr.bf16.mxu0 %v5857_v14  ;;  %v6129_v38 = vpack.c.bf16 %v1441_v63, %v1437_v62  ;;  %v1440_v14 = vld [vmem:[#allocation4 + $0xd30] sm:$0xff]  ;;  %v6145_v63 = vpack.c.bf16 %v1473_v57, %v1469_v56  ;;  %v6161_v57 = vpack.c.bf16 %v1505_v49, %v1501_v48  ;;  %v2212_v48 = vld [vmem:[#allocation6 + $0x38] sm:$0xff] }
 0x3e9   :  { %6114 = vmatprep.subr.bf16.mxu1 %v6113_v17  ;;  %v1445_v17 = vld [vmem:[#allocation4 + $0xd58] sm:$0xff]  ;;  %v6131_v19 = vpack.c.bf16 %v1440_v14, %v1436_v7  ;;  %v1468_v62 = vld [vmem:[#allocation4 + $0xe10] sm:$0xff]  ;;  %v5891_v7 = vpack.c.bf16 %v1470_v61, %v1466_v40 }
 0x3ea   :  { %1759 = vmatmul.mubr.f32.vlgmr.msra.gmra.mrb[0].mxu0 %v1014_v21  ;;  %v1500_v56 = vld [vmem:[#allocation4 + $0xf10] sm:$0xff]  ;;  %v1509_v40 = vld [vmem:[#allocation4 + $0xf58] sm:$0xff] }
 0x3eb   :  { %2043 = vmatmul.mubr.f32.vlgmr.msra.gmra.mrb[8].mxu1 %v1014_v21  ;;  %5860 = vmatpush1.bf16.msra.mxu0 %v5859_v4  ;;  %v1442_v4 = vld [vmem:[#allocation4 + $0xd40] sm:$0xff]  ;;  %v6133_v21 = vpack.c.bf16 %v1449_v18, %v1445_v17  ;;  %v1476_v17 = vld [vmem:[#allocation4 + $0xe50] sm:$0xff]  ;;  %v6149_v18 = vpack.c.bf16 %v1481_v6, %v1477_v5  ;;  %v1513_v61 = vld [vmem:[#allocation4 + $0xf78] sm:$0xff] }
 0x3ec   :  { %1829 = vmatprep.mubr.f32.mxu0 %v1017_v32  ;;  %6116 = vmatpush1.bf16.msra.mxu1 %v6115_v30  ;;  %v1448_v30 = vld [vmem:[#allocation4 + $0xd70] sm:$0xff]  ;;  %v5879_v29 = vpack.c.bf16 %v1446_v16, %v1442_v4  ;;  %v1485_v4 = vld [vmem:[#allocation4 + $0xe98] sm:$0xff]  ;;  %v6165_v6 = vpack.c.bf16 %v1513_v61, %v1509_v40 }
 0x3ed   :  { %2113 = vmatprep.mubr.f32.mxu1 %v1017_v32  ;;  %5862 = vmatprep.subr.bf16.mxu0 %v5861_v26  ;;  %v1457_v26 = vld [vmem:[#allocation4 + $0xdb8] sm:$0xff]  ;;  %v6135_v12 = vpack.c.bf16 %v1448_v30, %v1444_v10  ;;  %v1450_v32 = vld [vmem:[#allocation4 + $0xd80] sm:$0xff]  ;;  %v5895_v10 = vpack.c.bf16 %v1478_v53, %v1474_v13  ;;  %v1508_v5 = vld [vmem:[#allocation4 + $0xf50] sm:$0xff] }
 0x3ee   :  { %6118 = vmatprep.subr.bf16.mxu1 %v6117_v33  ;;  %v1454_v33 = vld [vmem:[#allocation4 + $0xda0] sm:$0xff]  ;;  %v6137_v35 = vpack.c.bf16 %v1457_v26, %v1453_v25  ;;  %v1489_v16 = vld [vmem:[#allocation4 + $0xeb8] sm:$0xff]  ;;  %v1484_v25 = vld [vmem:[#allocation4 + $0xe90] sm:$0xff] }
 0x3ef   :  { %5864 = vmatpush1.bf16.msra.mxu0 %v5863_v36  ;;  %v1456_v36 = vld [vmem:[#allocation4 + $0xdb0] sm:$0xff]  ;;  %v5883_v42 = vpack.c.bf16 %v1454_v33, %v1450_v32  ;;  %v6153_v26 = vpack.c.bf16 %v1489_v16, %v1485_v4  ;;  %v1493_v32 = vld [vmem:[#allocation4 + $0xed8] sm:$0xff] }
 0x3f0   :  { %6120 = vmatpush1.bf16.msra.mxu1 %v6119_v46  ;;  %5866 = vmatprep.subr.bf16.mxu0 %v5865_v43  ;;  %v1459_v46 = vld [vmem:[#allocation4 + $0xdc8] sm:$0xff]  ;;  %v1497_v33 = vld [vmem:[#allocation4 + $0xef8] sm:$0xff]  ;;  %v1516_v4 = vld [vmem:[#allocation4 + $0xf90] sm:$0xff] }
 0x3f1   :  { %6122 = vmatprep.subr.bf16.mxu1 %v6121_v44  ;;  %v1463_v43 = vld [vmem:[#allocation4 + $0xde8] sm:$0xff]  ;;  %v6139_v44 = vpack.c.bf16 %v1456_v36, %v1452_v34  ;;  %v5899_v34 = vpack.c.bf16 %v1486_v24, %v1482_v23  ;;  %v6157_v39 = vpack.c.bf16 %v1497_v33, %v1493_v32  ;;  %v1517_v13 = vld [vmem:[#allocation4 + $0xf98] sm:$0xff]  ;;  %v1524_v33 = vld [vmem:[#allocation4 + $0xfd0] sm:$0xff] }
 0x3f2   :  { %v5885_v45 = vpack.c.bf16 %v1463_v43, %v1459_v46  ;;  %v1490_v46 = vld [vmem:[#allocation4 + $0xec0] sm:$0xff]  ;;  %v1521_v53 = vld [vmem:[#allocation4 + $0xfb8] sm:$0xff] }
 0x3f3   :  { %5868 = vmatpush1.bf16.msra.mxu0 %v5867_v51  ;;  %v1464_v51 = vld [vmem:[#allocation4 + $0xdf0] sm:$0xff]  ;;  %v1494_v43 = vld [vmem:[#allocation4 + $0xee0] sm:$0xff]  ;;  %v6169_v16 = vpack.c.bf16 %v1521_v53, %v1517_v13  ;;  %v1525_v23 = vld [vmem:[#allocation4 + $0xfd8] sm:$0xff] }
 0x3f4   :  { %6124 = vmatpush1.bf16.msra.mxu1 %v6123_v54  ;;  %5870 = vmatprep.subr.bf16.mxu0 %v5869_v55  ;;  %v1467_v54 = vld [vmem:[#allocation4 + $0xe08] sm:$0xff]  ;;  %v1529_v24 = vld [vmem:[#allocation4 + $0xff8] sm:$0xff] }
 0x3f5   :  { %6126 = vmatprep.subr.bf16.mxu1 %v6125_v59  ;;  %v1471_v55 = vld [vmem:[#allocation4 + $0xe28] sm:$0xff]  ;;  %v6143_v59 = vpack.c.bf16 %v1464_v51, %v1460_v52  ;;  %v5903_v52 = vpack.c.bf16 %v1494_v43, %v1490_v46  ;;  %v6173_v32 = vpack.c.bf16 %v1529_v24, %v1525_v23  ;;  %v1016_v46 = vmax.f32 %v8119_v22, 0.0 }
 0x3f6   :  { %v5889_v60 = vpack.c.bf16 %v1471_v55, %v1467_v54  ;;  %v1498_v54 = vld [vmem:[#allocation4 + $0xf00] sm:$0xff]  ;;  %v2206_v43 = vld [vmem:[#allocation6 + $0x8] sm:$0xff] }
 0x3f7   :  { %5872 = vmatpush1.bf16.msra.mxu0 %v5871_v0  ;;  %v1472_v0 = vld [vmem:[#allocation4 + $0xe30] sm:$0xff]  ;;  %v1502_v55 = vld [vmem:[#allocation4 + $0xf20] sm:$0xff] }
 0x3f8   :  { %6128 = vmatpush1.bf16.msra.mxu1 %v6127_v1  ;;  %5874 = vmatprep.subr.bf16.mxu0 %v5873_v47  ;;  %v1475_v1 = vld [vmem:[#allocation4 + $0xe48] sm:$0xff] }
 0x3f9   :  { %6130 = vmatprep.subr.bf16.mxu1 %v6129_v38  ;;  %v1479_v47 = vld [vmem:[#allocation4 + $0xe68] sm:$0xff]  ;;  %v6147_v38 = vpack.c.bf16 %v1472_v0, %v1468_v62  ;;  %v5907_v62 = vpack.c.bf16 %v1502_v55, %v1498_v54  ;;  %v2216_v55 = vld [vmem:[#allocation6 + $0x58] sm:$0xff] }
 0x3fa   :  { %v5893_v14 = vpack.c.bf16 %v1479_v47, %v1475_v1  ;;  %v1506_v1 = vld [vmem:[#allocation4 + $0xf40] sm:$0xff]  ;;  %v2214_v54 = vld [vmem:[#allocation6 + $0x48] sm:$0xff] }
 0x3fb   :  { %5876 = vmatpush1.bf16.msra.mxu0 %v5875_v11  ;;  %v1480_v11 = vld [vmem:[#allocation4 + $0xe70] sm:$0xff]  ;;  %v1510_v47 = vld [vmem:[#allocation4 + $0xf60] sm:$0xff]  ;;  %v6185_v22 = vpack.c.bf16 %v2216_v55, %v2214_v54 }
 0x3fc   :  { %6132 = vmatpush1.bf16.msra.mxu1 %v6131_v19  ;;  %5878 = vmatprep.subr.bf16.mxu0 %v5877_v20  ;;  %v1483_v19 = vld [vmem:[#allocation4 + $0xe88] sm:$0xff] }
 0x3fd   :  { %6134 = vmatprep.subr.bf16.mxu1 %v6133_v21  ;;  %v1487_v20 = vld [vmem:[#allocation4 + $0xea8] sm:$0xff]  ;;  %v6151_v21 = vpack.c.bf16 %v1480_v11, %v1476_v17  ;;  %v5911_v17 = vpack.c.bf16 %v1510_v47, %v1506_v1  ;;  %v2224_v1 = vld [vmem:[#allocation6 + $0x98] sm:$0xff] }
 0x3fe   :  { %v5897_v30 = vpack.c.bf16 %v1487_v20, %v1483_v19  ;;  %v1514_v19 = vld [vmem:[#allocation4 + $0xf80] sm:$0xff] }
 0x3ff   :  { %5880 = vmatpush1.bf16.msra.mxu0 %v5879_v29  ;;  %v1488_v29 = vld [vmem:[#allocation4 + $0xeb0] sm:$0xff]  ;;  %v1518_v20 = vld [vmem:[#allocation4 + $0xfa0] sm:$0xff] }
 0x400   :  { %6136 = vmatpush1.bf16.msra.mxu1 %v6135_v12  ;;  %5882 = vmatprep.subr.bf16.mxu0 %v5881_v31  ;;  %v1491_v12 = vld [vmem:[#allocation4 + $0xec8] sm:$0xff] }
 0x401   :  { %6138 = vmatprep.subr.bf16.mxu1 %v6137_v35  ;;  %v1495_v31 = vld [vmem:[#allocation4 + $0xee8] sm:$0xff]  ;;  %v6155_v35 = vpack.c.bf16 %v1488_v29, %v1484_v25  ;;  %v5915_v25 = vpack.c.bf16 %v1518_v20, %v1514_v19  ;;  %v2232_v19 = vld [vmem:[#allocation6 + $0xd8] sm:$0xff] }
 0x402   :  { %v5901_v36 = vpack.c.bf16 %v1495_v31, %v1491_v12  ;;  %v1522_v12 = vld [vmem:[#allocation4 + $0xfc0] sm:$0xff] }
 0x403   :  { %5884 = vmatpush1.bf16.msra.mxu0 %v5883_v42  ;;  %v1496_v42 = vld [vmem:[#allocation4 + $0xef0] sm:$0xff]  ;;  %v1526_v31 = vld [vmem:[#allocation4 + $0xfe0] sm:$0xff] }
 0x404   :  { %6140 = vmatpush1.bf16.msra.mxu1 %v6139_v44  ;;  %5886 = vmatprep.subr.bf16.mxu0 %v5885_v45  ;;  %v1499_v44 = vld [vmem:[#allocation4 + $0xf08] sm:$0xff] }
 0x405   :  { %6142 = vmatprep.subr.bf16.mxu1 %v6141_v50  ;;  %v1503_v45 = vld [vmem:[#allocation4 + $0xf28] sm:$0xff]  ;;  %v6159_v50 = vpack.c.bf16 %v1496_v42, %v1492_v37  ;;  %v2208_v37 = vld [vmem:[#allocation6 + $0x18] sm:$0xff] }
 0x406   :  { %v5905_v51 = vpack.c.bf16 %v1503_v45, %v1499_v44  ;;  %v6177_v42 = vpack.c.bf16 %v2208_v37, %v2206_v43  ;;  %v2207_v44 = vld [vmem:[#allocation6 + $0x10] sm:$0xff]  ;;  %v2210_v45 = vld [vmem:[#allocation6 + $0x28] sm:$0xff] }
 0x407   :  { %5888 = vmatpush1.bf16.msra.mxu0 %v5887_v58  ;;  %v1504_v58 = vld [vmem:[#allocation4 + $0xf30] sm:$0xff] }
 0x408   :  { %6144 = vmatpush1.bf16.msra.mxu1 %v6143_v59  ;;  %5890 = vmatprep.subr.bf16.mxu0 %v5889_v60  ;;  %v1507_v59 = vld [vmem:[#allocation4 + $0xf48] sm:$0xff] }
 0x409   :  { %6146 = vmatprep.subr.bf16.mxu1 %v6145_v63  ;;  %v1511_v60 = vld [vmem:[#allocation4 + $0xf68] sm:$0xff]  ;;  %v6163_v63 = vpack.c.bf16 %v1504_v58, %v1500_v56  ;;  %v2215_v58 = vld [vmem:[#allocation6 + $0x50] sm:$0xff] }
 0x40a   :  { %v5909_v0 = vpack.c.bf16 %v1511_v60, %v1507_v59  ;;  %v2218_v59 = vld [vmem:[#allocation6 + $0x68] sm:$0xff]  ;;  %v2220_v60 = vld [vmem:[#allocation6 + $0x78] sm:$0xff] }
 0x40b   :  { %5892 = vmatpush1.bf16.msra.mxu0 %v5891_v7  ;;  %v1512_v7 = vld [vmem:[#allocation4 + $0xf70] sm:$0xff]  ;;  %v6189_v61 = vpack.c.bf16 %v2220_v60, %v2218_v59 }
 0x40c   :  { %6148 = vmatpush1.bf16.msra.mxu1 %v6147_v38  ;;  %5894 = vmatprep.subr.bf16.mxu0 %v5893_v14  ;;  %v1515_v38 = vld [vmem:[#allocation4 + $0xf88] sm:$0xff] }
 0x40d   :  { %6150 = vmatprep.subr.bf16.mxu1 %v6149_v18  ;;  %v1519_v14 = vld [vmem:[#allocation4 + $0xfa8] sm:$0xff]  ;;  %v6167_v18 = vpack.c.bf16 %v1512_v7, %v1508_v5  ;;  %v2223_v7 = vld [vmem:[#allocation6 + $0x90] sm:$0xff] }
 0x40e   :  { %v5913_v11 = vpack.c.bf16 %v1519_v14, %v1515_v38  ;;  %v2226_v38 = vld [vmem:[#allocation6 + $0xa8] sm:$0xff]  ;;  %v2228_v14 = vld [vmem:[#allocation6 + $0xb8] sm:$0xff] }
 0x40f   :  { %5896 = vmatpush1.bf16.msra.mxu0 %v5895_v10  ;;  %v1520_v10 = vld [vmem:[#allocation4 + $0xfb0] sm:$0xff]  ;;  %v6197_v53 = vpack.c.bf16 %v2228_v14, %v2226_v38  ;;  %v2245_v14 = vld [vmem:[#allocation6 + $0x140] sm:$0xff] }
 0x410   :  { %6152 = vmatpush1.bf16.msra.mxu1 %v6151_v21  ;;  %5898 = vmatprep.subr.bf16.mxu0 %v5897_v30  ;;  %v1523_v21 = vld [vmem:[#allocation4 + $0xfc8] sm:$0xff] }
 0x411   :  { %6154 = vmatprep.subr.bf16.mxu1 %v6153_v26  ;;  %v1527_v30 = vld [vmem:[#allocation4 + $0xfe8] sm:$0xff]  ;;  %v6171_v26 = vpack.c.bf16 %v1520_v10, %v1516_v4  ;;  %v2231_v10 = vld [vmem:[#allocation6 + $0xd0] sm:$0xff] }
 0x412   :  { %v5917_v29 = vpack.c.bf16 %v1527_v30, %v1523_v21  ;;  %v2234_v21 = vld [vmem:[#allocation6 + $0xe8] sm:$0xff]  ;;  %v2236_v30 = vld [vmem:[#allocation6 + $0xf8] sm:$0xff] }
 0x413   :  { %5900 = vmatpush1.bf16.msra.mxu0 %v5899_v34  ;;  %v1528_v34 = vld [vmem:[#allocation4 + $0xff0] sm:$0xff]  ;;  %v6205_v24 = vpack.c.bf16 %v2236_v30, %v2234_v21  ;;  %v2253_v30 = vld [vmem:[#allocation6 + $0x180] sm:$0xff] }
 0x414   :  { %6156 = vmatpush1.bf16.msra.mxu1 %v6155_v35  ;;  %5902 = vmatprep.subr.bf16.mxu0 %v5901_v36  ;;  %v5919_v35 = vpack.c.bf16 %v1526_v31, %v1522_v12  ;;  %v6175_v36 = vpack.c.bf16 %v1528_v34, %v1524_v33  ;;  %v2240_v12 = vld [vmem:[#allocation6 + $0x118] sm:$0xff]  ;;  %v2237_v33 = vld [vmem:[#allocation6 + $0x100] sm:$0xff]  ;;  %v2239_v34 = vld [vmem:[#allocation6 + $0x110] sm:$0xff] }
 0x415   :  { %6158 = vmatprep.subr.bf16.mxu1 %v6157_v39  ;;  %v2205_v39 = vld [vmem:[#allocation6] sm:$0xff] }
 0x416   :  { %v6179_v49 = vpack.c.bf16 %v2207_v44, %v2205_v39 }
 0x417   :  { %5904 = vmatpush1.bf16.msra.mxu0 %v5903_v52  ;;  %v6181_v52 = vpack.c.bf16 %v2212_v48, %v2210_v45 }
 0x418   :  { %6160 = vmatpush1.bf16.msra.mxu1 %v6159_v50  ;;  %5906 = vmatprep.subr.bf16.mxu0 %v5905_v51  ;;  %v2209_v50 = vld [vmem:[#allocation6 + $0x20] sm:$0xff]  ;;  %v2211_v51 = vld [vmem:[#allocation6 + $0x30] sm:$0xff] }
 0x419   :  { %6162 = vmatprep.subr.bf16.mxu1 %v6161_v57  ;;  %v6183_v56 = vpack.c.bf16 %v2211_v51, %v2209_v50  ;;  %v2213_v57 = vld [vmem:[#allocation6 + $0x40] sm:$0xff] }
 0x41a   :  { %v6187_v40 = vpack.c.bf16 %v2215_v58, %v2213_v57 }
 0x41b   :  { %5908 = vmatpush1.bf16.msra.mxu0 %v5907_v62  ;;  %v2217_v62 = vld [vmem:[#allocation6 + $0x60] sm:$0xff] }
 0x41c   :  { %6164 = vmatpush1.bf16.msra.mxu1 %v6163_v63  ;;  %5910 = vmatprep.subr.bf16.mxu0 %v5909_v0  ;;  %v2219_v63 = vld [vmem:[#allocation6 + $0x70] sm:$0xff]  ;;  %v2222_v0 = vld [vmem:[#allocation6 + $0x88] sm:$0xff] }
 0x41d   :  { %6166 = vmatprep.subr.bf16.mxu1 %v6165_v6  ;;  %v6191_v47 = vpack.c.bf16 %v2219_v63, %v2217_v62  ;;  %v6193_v5 = vpack.c.bf16 %v2224_v1, %v2222_v0  ;;  %v2221_v6 = vld [vmem:[#allocation6 + $0x80] sm:$0xff]  ;;  %v2242_v62 = vld [vmem:[#allocation6 + $0x128] sm:$0xff]  ;;  %v2244_v63 = vld [vmem:[#allocation6 + $0x138] sm:$0xff] }
 0x41e   :  { %v6195_v13 = vpack.c.bf16 %v2223_v7, %v2221_v6  ;;  %v2241_v0 = vld [vmem:[#allocation6 + $0x120] sm:$0xff]  ;;  %v6213_v1 = vpack.c.bf16 %v2244_v63, %v2242_v62  ;;  %v2246_v6 = vld [vmem:[#allocation6 + $0x148] sm:$0xff]  ;;  %v2248_v7 = vld [vmem:[#allocation6 + $0x158] sm:$0xff] }
 0x41f   :  { %5912 = vmatpush1.bf16.msra.mxu0 %v5911_v17  ;;  %v2225_v17 = vld [vmem:[#allocation6 + $0xa0] sm:$0xff]  ;;  %v6217_v38 = vpack.c.bf16 %v2248_v7, %v2246_v6 }
 0x420   :  { %6168 = vmatpush1.bf16.msra.mxu1 %v6167_v18  ;;  %5914 = vmatprep.subr.bf16.mxu0 %v5913_v11  ;;  %v2227_v18 = vld [vmem:[#allocation6 + $0xb0] sm:$0xff]  ;;  %v2230_v11 = vld [vmem:[#allocation6 + $0xc8] sm:$0xff]  ;;  %v2120_v62 = vld [vmem:[%s8489_s5] sm:$0xf] }
 0x421   :  { %6170 = vmatprep.subr.bf16.mxu1 %v6169_v16  ;;  %v6199_v20 = vpack.c.bf16 %v2227_v18, %v2225_v17  ;;  %v6201_v4 = vpack.c.bf16 %v2232_v19, %v2230_v11  ;;  %v2229_v16 = vld [vmem:[#allocation6 + $0xc0] sm:$0xff]  ;;  %v2252_v18 = vld [vmem:[#allocation6 + $0x178] sm:$0xff]  ;;  %v2251_v19 = vld [vmem:[#allocation6 + $0x170] sm:$0xff] }
 0x422   :  { %v6203_v23 = vpack.c.bf16 %v2231_v10, %v2229_v16  ;;  %v2249_v11 = vld [vmem:[#allocation6 + $0x160] sm:$0xff]  ;;  %v2256_v16 = vld [vmem:[#allocation6 + $0x198] sm:$0xff] }
 0x423   :  { %5916 = vmatpush1.bf16.msra.mxu0 %v5915_v25  ;;  %v2233_v25 = vld [vmem:[#allocation6 + $0xe0] sm:$0xff]  ;;  %v6223_v10 = vpack.c.bf16 %v2251_v19, %v2249_v11 }
 0x424   :  { %6172 = vmatpush1.bf16.msra.mxu1 %v6171_v26  ;;  %5918 = vmatprep.subr.bf16.mxu0 %v5917_v29  ;;  %v2235_v26 = vld [vmem:[#allocation6 + $0xf0] sm:$0xff]  ;;  %v2238_v29 = vld [vmem:[#allocation6 + $0x108] sm:$0xff]  ;;  %v2121_v63 = vld [vmem:[%s8490_s17] sm:$0xf] }
 0x425   :  { %6174 = vmatprep.subr.bf16.mxu1 %v6173_v32  ;;  %v6207_v31 = vpack.c.bf16 %v2235_v26, %v2233_v25  ;;  %v6209_v32 = vpack.c.bf16 %v2240_v12, %v2238_v29  ;;  %v2260_v25 = vld [vmem:[#allocation6 + $0x1b8] sm:$0xff]  ;;  %v2257_v12 = vld [vmem:[#allocation6 + $0x1a0] sm:$0xff]  ;;  %v2188_v11 = vrot.slane %v2121_v63, %v7989_v41 }
 0x427   :  { %5920 = vmatpush1.bf16.msra.mxu0 %v5919_v35  ;;  %v6211_v35 = vpack.c.bf16 %v2239_v34, %v2237_v33  ;;  %v2264_v33 = vld [vmem:[#allocation6 + $0x1d8] sm:$0xff] }
 0x428   :  { %6176 = vmatpush1.bf16.msra.mxu1 %v6175_v36  ;;  %6178 = vmatprep.subr.bf16.mxu0 %v6177_v42  ;;  %v1530_v36 = vld [vmem:[%s7748_s3] sm:$0xf]  ;;  %s8493_s3 = sld [smem:[#allocation26_spill]] }
 0x429   :  { %v1543_v43 = vrot.slane %v1530_v36, %v7989_v41  ;;  %v1539_v37 = vrot.slane %v1530_v36, %v7986_v3 }
 0x42a   :  { %1830 = vmatmul.mubr.f32.vlgmr.msra.gmra.mrb[0].mxu0 %v1016_v46 }
 0x42b   :  { %2114 = vmatmul.mubr.f32.vlgmr.msra.gmra.mrb[8].mxu1 %v1016_v46  ;;  %6180 = vmatpush1.bf16.msra.mxu0 %v6179_v49  ;;  %v1535_v46 = vrot.slane %v1530_v36, %v7984_v2 }
 0x42c   :  { %6182 = vmatprep.subr.bf16.mxu0 %v6181_v52  ;;  %v1547_v52 = vrot.slane %v1530_v36, %v7994_v8  ;;  %v2261_v36 = vld [vmem:[#allocation6 + $0x1c0] sm:$0xff] }
 0x42f   :  { %6184 = vmatpush1.bf16.msra.mxu0 %v6183_v56 }
 0x430   :  { %6186 = vmatprep.subr.bf16.mxu0 %v6185_v22 }
 0x433   :  { %6188 = vmatpush1.bf16.msra.mxu0 %v6187_v40 }
 0x434   :  { %6190 = vmatprep.subr.bf16.mxu0 %v6189_v61 }
 0x437   :  { %6192 = vmatpush1.bf16.msra.mxu0 %v6191_v47  ;;  %v2243_v47 = vld [vmem:[#allocation6 + $0x130] sm:$0xff] }
 0x438   :  { %6194 = vmatprep.subr.bf16.mxu0 %v6193_v5  ;;  %v6215_v5 = vpack.c.bf16 %v2243_v47, %v2241_v0  ;;  %v2159_v0 = vrot.slane %v2120_v62, %v7986_v3  ;;  %v2167_v47 = vrot.slane %v2120_v62, %v7994_v8 }
 0x43b   :  { %6196 = vmatpush1.bf16.msra.mxu0 %v6195_v13  ;;  %v2247_v13 = vld [vmem:[#allocation6 + $0x150] sm:$0xff] }
 0x43c   :  { %6198 = vmatprep.subr.bf16.mxu0 %v6197_v53  ;;  %v2250_v53 = vld [vmem:[#allocation6 + $0x168] sm:$0xff]  ;;  %v6219_v17 = vpack.c.bf16 %v2247_v13, %v2245_v14 }
 0x43f   :  { %6200 = vmatpush1.bf16.msra.mxu0 %v6199_v20  ;;  %v6221_v20 = vpack.c.bf16 %v2252_v18, %v2250_v53  ;;  %v2184_v53 = vrot.slane %v2121_v63, %v7986_v3  ;;  %v2192_v18 = vrot.slane %v2121_v63, %v7994_v8 }
 0x440   :  { %6202 = vmatprep.subr.bf16.mxu0 %v6201_v4  ;;  %v2254_v4 = vld [vmem:[#allocation6 + $0x188] sm:$0xff] }
 0x441   :  { %v6225_v21 = vpack.c.bf16 %v2256_v16, %v2254_v4 }
 0x443   :  { %6204 = vmatpush1.bf16.msra.mxu0 %v6203_v23  ;;  %v2255_v23 = vld [vmem:[#allocation6 + $0x190] sm:$0xff] }
 0x444   :  { %6206 = vmatprep.subr.bf16.mxu0 %v6205_v24  ;;  %v2258_v24 = vld [vmem:[#allocation6 + $0x1a8] sm:$0xff]  ;;  %v6227_v26 = vpack.c.bf16 %v2255_v23, %v2253_v30  ;;  %v2271_v30 = vld [vmem:[#allocation6 + $0x210] sm:$0xff] }
 0x445   :  { %v6229_v29 = vpack.c.bf16 %v2260_v25, %v2258_v24  ;;  %v2274_v25 = vld [vmem:[#allocation6 + $0x228] sm:$0xff] }
 0x447   :  { %6208 = vmatpush1.bf16.msra.mxu0 %v6207_v31  ;;  %v2259_v31 = vld [vmem:[#allocation6 + $0x1b0] sm:$0xff] }
 0x448   :  { %6210 = vmatprep.subr.bf16.mxu0 %v6209_v32  ;;  %v2262_v32 = vld [vmem:[#allocation6 + $0x1c8] sm:$0xff]  ;;  %v6231_v34 = vpack.c.bf16 %v2259_v31, %v2257_v12 }
 0x44b   :  { %6212 = vmatpush1.bf16.msra.mxu0 %v6211_v35  ;;  %v6233_v35 = vpack.c.bf16 %v2264_v33, %v2262_v32 }
 0x44c   :  { %6214 = vmatprep.subr.bf16.mxu0 %v6213_v1  ;;  %v2155_v1 = vrot.slane %v2120_v62, %v7984_v2 }
 0x44f   :  { %6216 = vmatpush1.bf16.msra.mxu0 %v6215_v5  ;;  %v2163_v5 = vrot.slane %v2120_v62, %v7989_v41  ;;  %v2290_v62 = vld [vmem:[#allocation6 + $0x2a8] sm:$0xff] }
 0x450   :  { %6218 = vmatprep.subr.bf16.mxu0 %v6217_v38 }
 0x453   :  { %6220 = vmatpush1.bf16.msra.mxu0 %v6219_v17  ;;  %v2180_v17 = vrot.slane %v2121_v63, %v7984_v2  ;;  %v2292_v63 = vld [vmem:[#allocation6 + $0x2b8] sm:$0xff] }
 0x454   :  { %6222 = vmatprep.subr.bf16.mxu0 %v6221_v20 }
 0x457   :  { %6224 = vmatpush1.bf16.msra.mxu0 %v6223_v10 }
 0x458   :  { %6226 = vmatprep.subr.bf16.mxu0 %v6225_v21 }
 0x45b   :  { %6228 = vmatpush1.bf16.msra.mxu0 %v6227_v26  ;;  %v2276_v26 = vld [vmem:[#allocation6 + $0x238] sm:$0xff] }
 0x45c   :  { %6230 = vmatprep.subr.bf16.mxu0 %v6229_v29  ;;  %v6245_v33 = vpack.c.bf16 %v2276_v26, %v2274_v25  ;;  %v2305_v25 = vld [vmem:[#allocation6 + $0x320] sm:$0xff]  ;;  %v2307_v26 = vld [vmem:[#allocation6 + $0x330] sm:$0xff] }
 0x45f   :  { %6232 = vmatpush1.bf16.msra.mxu0 %v6231_v34  ;;  %v2273_v34 = vld [vmem:[#allocation6 + $0x220] sm:$0xff] }
 0x460   :  { %6234 = vmatprep.subr.bf16.mxu0 %v6233_v35  ;;  %v2275_v35 = vld [vmem:[#allocation6 + $0x230] sm:$0xff] }
 0x4fd   :  { %v1831_v39 = vpop.f32.mrb[0].mxu0 }
 0x4fe   :  { %v8130_v42 = vadd.f32 %v1831_v39, %v1535_v46  ;;  %v2115_v44 = vpop.f32.mrb[8].mxu1  ;;  %v1833_v45 = vpop.f32.mrb[1].mxu0  ;;  %v2263_v46 = vld [vmem:[#allocation6 + $0x1d0] sm:$0xff] }
 0x4ff   :  { %v8132_v48 = vadd.f32 %v2115_v44, %v1543_v43  ;;  %v8134_v49 = vadd.f32 %v1833_v45, %v1539_v37  ;;  %v2117_v50 = vpop.f32.mrb[9].mxu1  ;;  %v2266_v43 = vld [vmem:[#allocation6 + $0x1e8] sm:$0xff]  ;;  %v2268_v37 = vld [vmem:[#allocation6 + $0x1f8] sm:$0xff]  ;;  %v6235_v39 = vpack.c.bf16 %v2263_v46, %v2261_v36  ;;  %v2265_v45 = vld [vmem:[#allocation6 + $0x1e0] sm:$0xff] }
 0x500   :  { %v2129_v51 = vmul.f32 %v8130_v42, %v8130_v42  ;;  %v8145_v22 = vadd.f32 %v2117_v50, %v1547_v52  ;;  %v6237_v44 = vpack.c.bf16 %v2268_v37, %v2266_v43  ;;  %v2267_v52 = vld [vmem:[#allocation6 + $0x1f0] sm:$0xff]  ;;  %v2278_v46 = vld [vmem:[#allocation6 + $0x248] sm:$0xff]  ;;  %v2280_v43 = vld [vmem:[#allocation6 + $0x258] sm:$0xff]  ;;  %v6247_v37 = vpack.c.bf16 %v2275_v35, %v2273_v34 }
 0x501   :  { %v2130_v54 = vmul.f32 %v8134_v49, %v8134_v49  ;;  %v2122_v55 = vadd.f32 %v8134_v49, %v8130_v42  ;;  %v2131_v56 = vmul.f32 %v8132_v48, %v8132_v48  ;;  %6236 = vmatpush1.bf16.msra.mxu0 %v6235_v39  ;;  %v6239_v50 = vpack.c.bf16 %v2267_v52, %v2265_v45  ;;  %v2279_v45 = vld [vmem:[#allocation6 + $0x250] sm:$0xff]  ;;  %v2282_v52 = vld [vmem:[#allocation6 + $0x268] sm:$0xff]  ;;  %v2309_v34 = vld [vmem:[#allocation6 + $0x340] sm:$0xff] }
 0x502   :  { %v2132_v40 = vmul.f32 %v8145_v22, %v8145_v22  ;;  %6238 = vmatprep.subr.bf16.mxu0 %v6237_v44  ;;  %v6249_v39 = vpack.c.bf16 %v2280_v43, %v2278_v46  ;;  %v2277_v44 = vld [vmem:[#allocation6 + $0x240] sm:$0xff]  ;;  %v2311_v35 = vld [vmem:[#allocation6 + $0x350] sm:$0xff]  ;;  %v2316_v46 = vld [vmem:[#allocation6 + $0x378] sm:$0xff] }
 0x503   :  { %v2123_v57 = vadd.f32 %v8132_v48, %v2122_v55  ;;  %v2133_v58 = vadd.f32 %v2130_v54, %v2129_v51  ;;  %v2270_v51 = vld [vmem:[#allocation6 + $0x208] sm:$0xff]  ;;  %v2272_v54 = vld [vmem:[#allocation6 + $0x218] sm:$0xff]  ;;  %v6283_v43 = vpack.c.bf16 %v2311_v35, %v2309_v34  ;;  %v2556_v35 = vld [vmem:[#allocation7 + $0xa0] sm:$0xff] }
 0x504   :  { %v6241_v55 = vpack.c.bf16 %v2272_v54, %v2270_v51  ;;  %v6251_v51 = vpack.c.bf16 %v2279_v45, %v2277_v44  ;;  %v2315_v44 = vld [vmem:[#allocation6 + $0x370] sm:$0xff]  ;;  %v2318_v45 = vld [vmem:[#allocation6 + $0x388] sm:$0xff] }
 0x505   :  { %v2124_v59 = vadd.f32 %v8145_v22, %v2123_v57  ;;  %v2134_v60 = vadd.f32 %v2133_v58, %v2131_v56  ;;  %6240 = vmatpush1.bf16.msra.mxu0 %v6239_v50  ;;  %v2284_v50 = vld [vmem:[#allocation6 + $0x278] sm:$0xff] }
 0x506   :  { %6242 = vmatprep.subr.bf16.mxu0 %v6241_v55  ;;  %v6253_v54 = vpack.c.bf16 %v2284_v50, %v2282_v52  ;;  %v2281_v55 = vld [vmem:[#allocation6 + $0x260] sm:$0xff]  ;;  %v2320_v52 = vld [vmem:[#allocation6 + $0x398] sm:$0xff] }
 0x507   :  { %2125 = vadd.xlane.f32.xlu1 %v2124_v59  ;;  %v2135_v61 = vadd.f32 %v2134_v60, %v2132_v40 }
 0x50b   :  { %2136 = vadd.xlane.f32.xlu1 %v2135_v61 }
 0x594   :  { %v2126_v56 = vpop.xlane.xlu1 %2125 }
 0x595   :  { %v2128_v57 = vmul.f32 0.001953125, %v2126_v56  ;;  %v2283_v56 = vld [vmem:[#allocation6 + $0x270] sm:$0xff] }
 0x597   :  { %v2139_v59 = vmul.f32 %v2128_v57, %v2128_v57  ;;  %v2141_v6 = vsub.f32 %v8130_v42, %v2128_v57  ;;  %v2143_v7 = vsub.f32 %v8132_v48, %v2128_v57  ;;  %v2142_v38 = vsub.f32 %v8134_v49, %v2128_v57  ;;  %v2269_v49 = vld [vmem:[#allocation6 + $0x200] sm:$0xff] }
 0x598   :  { %v2137_v58 = vpop.xlane.xlu1 %2136  ;;  %v2144_v14 = vsub.f32 %v8145_v22, %v2128_v57  ;;  %v6243_v32 = vpack.c.bf16 %v2271_v30, %v2269_v49  ;;  %v2286_v57 = vld [vmem:[#allocation6 + $0x288] sm:$0xff]  ;;  %v2303_v49 = vld [vmem:[#allocation6 + $0x310] sm:$0xff] }
 0x599   :  { %v2138_v60 = vmul.f32 0.001953125, %v2137_v58  ;;  %v2288_v58 = vld [vmem:[#allocation6 + $0x298] sm:$0xff]  ;;  %v2306_v30 = vld [vmem:[#allocation6 + $0x328] sm:$0xff] }
 0x59b   :  { %v2140_v40 = vsub.f32 %v2138_v60, %v2139_v59  ;;  %v6255_v59 = vpack.c.bf16 %v2283_v56, %v2281_v55  ;;  %v6257_v60 = vpack.c.bf16 %v2288_v58, %v2286_v57  ;;  %v2319_v55 = vld [vmem:[#allocation6 + $0x390] sm:$0xff]  ;;  %v2322_v56 = vld [vmem:[#allocation6 + $0x3a8] sm:$0xff]  ;;  %v2324_v57 = vld [vmem:[#allocation6 + $0x3b8] sm:$0xff] }
 0x59d   :  { %v2145_v61 = vadd.f32 1e-05, %v2140_v40  ;;  %v2285_v40 = vld [vmem:[#allocation6 + $0x280] sm:$0xff] }
 0x59f   :  { %7425 = vrsqrt.f32 %v2145_v61  ;;  %v2287_v61 = vld [vmem:[#allocation6 + $0x290] sm:$0xff] }
 0x5a9   :  { %v7426_v13 = vpop.eup %7425 }
 0x5aa   :  { %v2148_v19 = vmul.f32 %v7426_v13, %v2142_v38  ;;  %v2147_v20 = vmul.f32 %v7426_v13, %v2141_v6  ;;  %v2150_v4 = vmul.f32 %v7426_v13, %v2144_v14  ;;  %v2149_v16 = vmul.f32 %v7426_v13, %v2143_v7  ;;  %v2294_v6 = vld [vmem:[#allocation6 + $0x2c8] sm:$0xff]  ;;  %v2296_v7 = vld [vmem:[#allocation6 + $0x2d8] sm:$0xff]  ;;  %v2293_v13 = vld [vmem:[#allocation6 + $0x2c0] sm:$0xff] }
 0x5ab   :  { %v6265_v14 = vpack.c.bf16 %v2296_v7, %v2294_v6  ;;  %v2332_v6 = vld [vmem:[#allocation6 + $0x3f8] sm:$0xff] }
 0x5ac   :  { %v2173_v42 = vmul.f32 %v2159_v0, %v2148_v19  ;;  %v2172_v10 = vmul.f32 %v2155_v1, %v2147_v20  ;;  %v2175_v48 = vmul.f32 %v2167_v47, %v2150_v4  ;;  %v2174_v21 = vmul.f32 %v2163_v5, %v2149_v16  ;;  %v2289_v47 = vld [vmem:[#allocation6 + $0x2a0] sm:$0xff]  ;;  %v2291_v5 = vld [vmem:[#allocation6 + $0x2b0] sm:$0xff]  ;;  %v2302_v16 = vld [vmem:[#allocation6 + $0x308] sm:$0xff] }
 0x5ad   :  { %v6259_v0 = vpack.c.bf16 %v2287_v61, %v2285_v40  ;;  %v6261_v1 = vpack.c.bf16 %v2292_v63, %v2290_v62  ;;  %v6263_v38 = vpack.c.bf16 %v2291_v5, %v2289_v47  ;;  %v2297_v20 = vld [vmem:[#allocation6 + $0x2e0] sm:$0xff]  ;;  %v2299_v4 = vld [vmem:[#allocation6 + $0x2f0] sm:$0xff]  ;;  %v2326_v61 = vld [vmem:[#allocation6 + $0x3c8] sm:$0xff] }
 0x5ae   :  { %v2198_v22 = vadd.f32 %v2184_v53, %v2173_v42  ;;  %v2197_v23 = vadd.f32 %v2180_v17, %v2172_v10  ;;  %v2200_v24 = vadd.f32 %v2192_v18, %v2175_v48  ;;  %v8165_v29 = vadd.f32 %v2188_v11, %v2174_v21  ;;  %v2295_v53 = vld [vmem:[#allocation6 + $0x2d0] sm:$0xff]  ;;  %v2298_v17 = vld [vmem:[#allocation6 + $0x2e8] sm:$0xff]  ;;  %v2300_v18 = vld [vmem:[#allocation6 + $0x2f8] sm:$0xff] }
 0x5af   :  { %v6267_v11 = vpack.c.bf16 %v2295_v53, %v2293_v13  ;;  %v6269_v19 = vpack.c.bf16 %v2300_v18, %v2298_v17  ;;  %v2304_v42 = vld [vmem:[#allocation6 + $0x318] sm:$0xff]  ;;  %v6271_v10 = vpack.c.bf16 %v2299_v4, %v2297_v20  ;;  %v2301_v21 = vld [vmem:[#allocation6 + $0x300] sm:$0xff]  ;;  %v2323_v40 = vld [vmem:[#allocation6 + $0x3b0] sm:$0xff] }
 0x5b0   :  { %v2202_v12 = vmax.f32 %v2198_v22, 0.0  ;;  %v2201_v31 = vmax.f32 %v2197_v23, 0.0  ;;  %v2204_v36 = vmax.f32 %v2200_v24, 0.0  ;;  %v6273_v48 = vpack.c.bf16 %v2304_v42, %v2302_v16  ;;  %v2308_v22 = vld [vmem:[#allocation6 + $0x338] sm:$0xff]  ;;  %v2327_v47 = vld [vmem:[#allocation6 + $0x3d0] sm:$0xff]  ;;  %v2330_v5 = vld [vmem:[#allocation6 + $0x3e8] sm:$0xff] }
 0x5b1   :  { %v6275_v23 = vpack.c.bf16 %v2303_v49, %v2301_v21  ;;  %v6277_v24 = vpack.c.bf16 %v2308_v22, %v2306_v30  ;;  %v2328_v62 = vld [vmem:[#allocation6 + $0x3d8] sm:$0xff]  ;;  %v2331_v13 = vld [vmem:[#allocation6 + $0x3f0] sm:$0xff]  ;;  %v2203_v17 = vmax.f32 %v8165_v29, 0.0  ;;  %v2552_v18 = vld [vmem:[#allocation7 + $0x80] sm:$0xff] }
 0x5b2   :  { %2409 = vmatprep.mubr.f32.mxu0 %v2202_v12  ;;  %v2310_v12 = vld [vmem:[#allocation6 + $0x348] sm:$0xff]  ;;  %v2333_v42 = vld [vmem:[%s8491_s21] sm:$0x3] }
 0x5b3   :  { %2410 = vmatmul.mubr.f32.vlgmr.msra.gmra.mrb[2].mxu0 %v2201_v31  ;;  %v2312_v31 = vld [vmem:[#allocation6 + $0x358] sm:$0xff]  ;;  %v2537_v4 = vld [vmem:[#allocation7 + $0x8] sm:$0xff] }
 0x5b4   :  { %6244 = vmatpush1.bf16.msra.mxu0 %v6243_v32  ;;  %2480 = vmatprep.mubr.f32.mxu0 %v2204_v36  ;;  %v6279_v32 = vpack.c.bf16 %v2307_v26, %v2305_v25  ;;  %v2314_v36 = vld [vmem:[#allocation6 + $0x368] sm:$0xff]  ;;  %v2554_v26 = vld [vmem:[#allocation7 + $0x90] sm:$0xff] }
 0x5b5   :  { %6246 = vmatprep.subr.bf16.mxu0 %v6245_v33  ;;  %v6281_v33 = vpack.c.bf16 %v2312_v31, %v2310_v12  ;;  %v2555_v12 = vld [vmem:[#allocation7 + $0x98] sm:$0xff]  ;;  %v2538_v31 = vld [vmem:[#allocation7 + $0x10] sm:$0xff] }
 0x5b8   :  { %6248 = vmatpush1.bf16.msra.mxu0 %v6247_v37  ;;  %v6285_v37 = vpack.c.bf16 %v2316_v46, %v2314_v36  ;;  %v2557_v36 = vld [vmem:[#allocation7 + $0xa8] sm:$0xff] }
 0x5b9   :  { %6250 = vmatprep.subr.bf16.mxu0 %v6249_v39  ;;  %v2313_v39 = vld [vmem:[#allocation6 + $0x360] sm:$0xff]  ;;  %v6313_v46 = vpack.c.bf16 %v2557_v36, %v2556_v35 }
 0x5ba   :  { %v6287_v50 = vpack.c.bf16 %v2315_v44, %v2313_v39  ;;  %v2558_v39 = vld [vmem:[#allocation7 + $0xb0] sm:$0xff] }
 0x5bc   :  { %6252 = vmatpush1.bf16.msra.mxu0 %v6251_v51  ;;  %v6289_v51 = vpack.c.bf16 %v2320_v52, %v2318_v45  ;;  %v2559_v45 = vld [vmem:[#allocation7 + $0xb8] sm:$0xff]  ;;  %v2542_v52 = vld [vmem:[#allocation7 + $0x30] sm:$0xff] }
 0x5bd   :  { %6254 = vmatprep.subr.bf16.mxu0 %v6253_v54  ;;  %v2317_v54 = vld [vmem:[#allocation6 + $0x380] sm:$0xff] }
 0x5be   :  { %v6291_v58 = vpack.c.bf16 %v2319_v55, %v2317_v54  ;;  %v2560_v54 = vld [vmem:[#allocation7 + $0xc0] sm:$0xff]  ;;  %v2561_v55 = vld [vmem:[#allocation7 + $0xc8] sm:$0xff] }
 0x5c0   :  { %6256 = vmatpush1.bf16.msra.mxu0 %v6255_v59  ;;  %v6293_v59 = vpack.c.bf16 %v2324_v57, %v2322_v56  ;;  %v6321_v57 = vpack.c.bf16 %v2561_v55, %v2560_v54 }
 0x5c1   :  { %6258 = vmatprep.subr.bf16.mxu0 %v6257_v60  ;;  %v2321_v60 = vld [vmem:[#allocation6 + $0x3a0] sm:$0xff] }
 0x5c2   :  { %v6295_v63 = vpack.c.bf16 %v2323_v40, %v2321_v60  ;;  %v2562_v60 = vld [vmem:[#allocation7 + $0xd0] sm:$0xff]  ;;  %v2563_v40 = vld [vmem:[#allocation7 + $0xd8] sm:$0xff] }
 0x5c4   :  { %6260 = vmatpush1.bf16.msra.mxu0 %v6259_v0  ;;  %v6297_v0 = vpack.c.bf16 %v2328_v62, %v2326_v61  ;;  %v6325_v62 = vpack.c.bf16 %v2563_v40, %v2562_v60 }
 0x5c5   :  { %6262 = vmatprep.subr.bf16.mxu0 %v6261_v1  ;;  %v2325_v1 = vld [vmem:[#allocation6 + $0x3c0] sm:$0xff] }
 0x5c6   :  { %v6299_v7 = vpack.c.bf16 %v2327_v47, %v2325_v1  ;;  %v2564_v1 = vld [vmem:[#allocation7 + $0xe0] sm:$0xff]  ;;  %v2565_v47 = vld [vmem:[#allocation7 + $0xe8] sm:$0xff] }
 0x5c8   :  { %6264 = vmatpush1.bf16.msra.mxu0 %v6263_v38  ;;  %v6301_v38 = vpack.c.bf16 %v2332_v6, %v2330_v5  ;;  %v6329_v6 = vpack.c.bf16 %v2565_v47, %v2564_v1  ;;  %v2687_v1 = vld [vmem:[%s8494_s14 + $0x58] sm:$0xff] }
 0x5c9   :  { %6266 = vmatprep.subr.bf16.mxu0 %v6265_v14  ;;  %v2329_v14 = vld [vmem:[#allocation6 + $0x3e0] sm:$0xff] }
 0x5ca   :  { %v6303_v53 = vpack.c.bf16 %v2331_v13, %v2329_v14  ;;  %v2566_v14 = vld [vmem:[#allocation7 + $0xf0] sm:$0xff]  ;;  %v2567_v13 = vld [vmem:[#allocation7 + $0xf8] sm:$0xff] }
 0x5cc   :  { %6268 = vmatpush1.bf16.msra.mxu0 %v6267_v11  ;;  %v2553_v11 = vld [vmem:[#allocation7 + $0x88] sm:$0xff] }
 0x5cd   :  { %6270 = vmatprep.subr.bf16.mxu0 %v6269_v19  ;;  %v2536_v19 = vld [vmem:[#allocation7] sm:$0xff]  ;;  %v6305_v20 = vpack.c.bf16 %v2553_v11, %v2552_v18  ;;  %v2550_v18 = vld [vmem:[#allocation7 + $0x70] sm:$0xff]  ;;  %v2551_v11 = vld [vmem:[#allocation7 + $0x78] sm:$0xff] }
 0x5ce   :  { %v6307_v16 = vpack.c.bf16 %v2537_v4, %v2536_v19  ;;  %v6335_v19 = vpack.c.bf16 %v2551_v11, %v2550_v18  ;;  %v2693_v18 = vld [vmem:[%s8494_s14 + $0x88] sm:$0xff]  ;;  %v2695_v11 = vld [vmem:[%s8494_s14 + $0x98] sm:$0xff] }
 0x5cf   :  { %6306 = vmatprep.subr.bf16.mxu1 %v6305_v20 }
 0x5d0   :  { %6272 = vmatpush1.bf16.msra.mxu0 %v6271_v10  ;;  %6308 = vmatpush3.bf16.msra.mxu1 %v6307_v16  ;;  %v2338_v10 = vrot.slane %v2333_v42, %v7984_v2 }
 0x5d1   :  { %6274 = vmatprep.subr.bf16.mxu0 %v6273_v48  ;;  %v2342_v48 = vrot.slane %v2333_v42, %v7986_v3 }
 0x5d4   :  { %6276 = vmatpush1.bf16.msra.mxu0 %v6275_v23 }
 0x5d5   :  { %6278 = vmatprep.subr.bf16.mxu0 %v6277_v24 }
 0x5d8   :  { %6280 = vmatpush1.bf16.msra.mxu0 %v6279_v32  ;;  %v6309_v32 = vpack.c.bf16 %v2555_v12, %v2554_v26 }
 0x5d9   :  { %6282 = vmatprep.subr.bf16.mxu0 %v6281_v33  ;;  %v2539_v33 = vld [vmem:[#allocation7 + $0x18] sm:$0xff] }
 0x5da   :  { %v6311_v34 = vpack.c.bf16 %v2539_v33, %v2538_v31  ;;  %6310 = vmatprep.subr.bf16.mxu1 %v6309_v32 }
 0x5dc   :  { %6284 = vmatpush1.bf16.msra.mxu0 %v6283_v43  ;;  %6312 = vmatpush3.bf16.msra.mxu1 %v6311_v34  ;;  %v2540_v43 = vld [vmem:[#allocation7 + $0x20] sm:$0xff] }
 0x5dd   :  { %6286 = vmatprep.subr.bf16.mxu0 %v6285_v37  ;;  %v2541_v37 = vld [vmem:[#allocation7 + $0x28] sm:$0xff]  ;;  %6314 = vmatprep.subr.bf16.mxu1 %v6313_v46 }
 0x5de   :  { %v6315_v44 = vpack.c.bf16 %v2541_v37, %v2540_v43  ;;  %v2677_v37 = vld [vmem:[%s8494_s14 + $0x8] sm:$0xff] }
 0x5e0   :  { %6288 = vmatpush1.bf16.msra.mxu0 %v6287_v50  ;;  %v2543_v50 = vld [vmem:[#allocation7 + $0x38] sm:$0xff]  ;;  %6316 = vmatpush3.bf16.msra.mxu1 %v6315_v44  ;;  %v2676_v44 = vld [vmem:[%s8494_s14] sm:$0xff] }
 0x5e1   :  { %6290 = vmatprep.subr.bf16.mxu0 %v6289_v51  ;;  %v6317_v51 = vpack.c.bf16 %v2559_v45, %v2558_v39  ;;  %v6319_v56 = vpack.c.bf16 %v2543_v50, %v2542_v52  ;;  %v2679_v39 = vld [vmem:[%s8494_s14 + $0x18] sm:$0xff]  ;;  %v2678_v52 = vld [vmem:[%s8494_s14 + $0x10] sm:$0xff]  ;;  %v2681_v50 = vld [vmem:[%s8494_s14 + $0x28] sm:$0xff] }
 0x5e2   :  { %v6337_v45 = vpack.c.bf16 %v2679_v39, %v2677_v37  ;;  %v6339_v54 = vpack.c.bf16 %v2678_v52, %v2676_v44 }
 0x5e3   :  { %6318 = vmatprep.subr.bf16.mxu1 %v6317_v51  ;;  %v2683_v51 = vld [vmem:[%s8494_s14 + $0x38] sm:$0xff] }
 0x5e4   :  { %6292 = vmatpush1.bf16.msra.mxu0 %v6291_v58  ;;  %v2544_v58 = vld [vmem:[#allocation7 + $0x40] sm:$0xff]  ;;  %6320 = vmatpush3.bf16.msra.mxu1 %v6319_v56  ;;  %v6341_v55 = vpack.c.bf16 %v2683_v51, %v2681_v50 }
 0x5e5   :  { %6294 = vmatprep.subr.bf16.mxu0 %v6293_v59  ;;  %v2545_v59 = vld [vmem:[#allocation7 + $0x48] sm:$0xff]  ;;  %6322 = vmatprep.subr.bf16.mxu1 %v6321_v57  ;;  %v5318_v57 = vld [vmem:[%s8495_s30] ss:$0 sm:$0xff] }
 0x5e6   :  { %v6323_v61 = vpack.c.bf16 %v2545_v59, %v2544_v58 }
 0x5e8   :  { %6296 = vmatpush1.bf16.msra.mxu0 %v6295_v63  ;;  %v2546_v63 = vld [vmem:[#allocation7 + $0x50] sm:$0xff]  ;;  %6324 = vmatpush3.bf16.msra.mxu1 %v6323_v61  ;;  %v2680_v61 = vld [vmem:[%s8494_s14 + $0x20] sm:$0xff] }
 0x5e9   :  { %6298 = vmatprep.subr.bf16.mxu0 %v6297_v0  ;;  %v2547_v0 = vld [vmem:[#allocation7 + $0x58] sm:$0xff]  ;;  %6326 = vmatprep.subr.bf16.mxu1 %v6325_v62  ;;  %v2682_v62 = vld [vmem:[%s8494_s14 + $0x30] sm:$0xff] }
 0x5ea   :  { %v6327_v5 = vpack.c.bf16 %v2547_v0, %v2546_v63  ;;  %v6343_v63 = vpack.c.bf16 %v2682_v62, %v2680_v61  ;;  %v2685_v0 = vld [vmem:[%s8494_s14 + $0x48] sm:$0xff] }
 0x5eb   :  { %v6345_v47 = vpack.c.bf16 %v2687_v1, %v2685_v0  ;;  %v2800_v61 = vld [vmem:[#allocation9 + $0x8] sm:$0xff]  ;;  %v2801_v1 = vld [vmem:[#allocation9 + $0x10] sm:$0xff] }
 0x5ec   :  { %6300 = vmatpush1.bf16.msra.mxu0 %v6299_v7  ;;  %v2548_v7 = vld [vmem:[#allocation7 + $0x60] sm:$0xff]  ;;  %6328 = vmatpush3.bf16.msra.mxu1 %v6327_v5 }
 0x5ed   :  { %6302 = vmatprep.subr.bf16.mxu0 %v6301_v38  ;;  %v2549_v38 = vld [vmem:[#allocation7 + $0x68] sm:$0xff]  ;;  %6330 = vmatprep.subr.bf16.mxu1 %v6329_v6  ;;  %v2684_v5 = vld [vmem:[%s8494_s14 + $0x40] sm:$0xff]  ;;  %v2686_v6 = vld [vmem:[%s8494_s14 + $0x50] sm:$0xff] }
 0x5f0   :  { %6304 = vmatpush1.bf16.msra.mxu0 %v6303_v53  ;;  %v6331_v53 = vpack.c.bf16 %v2549_v38, %v2548_v7  ;;  %v6347_v7 = vpack.c.bf16 %v2686_v6, %v2684_v5  ;;  %v2689_v38 = vld [vmem:[%s8494_s14 + $0x68] sm:$0xff]  ;;  %v2803_v6 = vld [vmem:[#allocation9 + $0x20] sm:$0xff] }
 0x5f2   :  { %6332 = vmatpush3.bf16.msra.mxu1 %v6331_v53 }
 0x5f3   :  { %2481 = vmatmul.mubr.f32.vlgmr.msra.gmra.mrb[2].mxu0 %v2203_v17  ;;  %v6333_v17 = vpack.c.bf16 %v2567_v13, %v2566_v14  ;;  %v2691_v14 = vld [vmem:[%s8494_s14 + $0x78] sm:$0xff]  ;;  %v2688_v13 = vld [vmem:[%s8494_s14 + $0x60] sm:$0xff] }
 0x5f4   :  { %v6349_v53 = vpack.c.bf16 %v2691_v14, %v2689_v38  ;;  %v2805_v38 = vld [vmem:[#allocation9 + $0x30] sm:$0xff]  ;;  %v2806_v14 = vld [vmem:[#allocation9 + $0x38] sm:$0xff] }
 0x5f5   :  { %6334 = vmatprep.subr.bf16.mxu1 %v6333_v17  ;;  %v2690_v17 = vld [vmem:[%s8494_s14 + $0x70] sm:$0xff] }
 0x5f6   :  { %6336 = vmatpush3.bf16.msra.mxu1 %v6335_v19  ;;  %v7702_v19 = vmov 0.0  }
 0x5f7   :  { %6338 = vmatprep.subr.bf16.mxu1 %v6337_v45 }
 0x6c6   :  { %v2482_v21 = vpop.f32.mrb[2].mxu0 }
 0x6c7   :  { %v8171_v49 = vadd.f32 %v2482_v21, %v2338_v10  ;;  %v2484_v30 = vpop.f32.mrb[3].mxu0 }
 0x6c8   :  { %v8173_v22 = vadd.f32 %v2484_v30, %v2342_v48  ;;  %v2487_v30 = vld [vmem:[%s8492_s25] sm:$0x3] }
 0x6c9   :  { %v2494_v29 = vmul.f32 %v8171_v49, %v8171_v49  ;;  %v2516_v26 = vrot.slane %v2487_v30, %v7986_v3 }
 0x6ca   :  { %v2489_v23 = vadd.f32 %v8173_v22, %v8171_v49  ;;  %v2495_v24 = vmul.f32 %v8173_v22, %v8173_v22 }
 0x6cc   :  { %2490 = vadd.xlane.f32.xlu0 %v2489_v23  ;;  %v2496_v25 = vadd.f32 %v2495_v24, %v2494_v29  ;;  %v2488_v29 = vld [vmem:[%s8493_s3] sm:$0x3] }
 0x6cd   :  { %v2525_v32 = vrot.slane %v2488_v29, %v7984_v2  ;;  %v2529_v33 = vrot.slane %v2488_v29, %v7986_v3  ;;  %v2696_v29 = vld [vmem:[%s8494_s14 + $0xa0] sm:$0xff] }
 0x6ce   :  { %2497 = vadd.xlane.f32.xlu1 %v2496_v25  ;;  %v2512_v25 = vrot.slane %v2487_v30, %v7984_v2 }
 0x759   :  { %v2491_v20 = vpop.xlane.xlu0 %2490 }
 0x75a   :  { %v2493_v4 = vmul.f32 0.00390625, %v2491_v20  ;;  %v6351_v20 = vpack.c.bf16 %v2690_v17, %v2688_v13  ;;  %v6379_v13 = vpack.c.bf16 %v2806_v14, %v2805_v38  ;;  %v2808_v17 = vld [vmem:[#allocation9 + $0x48] sm:$0xff]  ;;  %v2908_v38 = vld [vmem:[#allocation10 + $0x80] sm:$0xff] }
 0x75b   :  { %v2498_v16 = vpop.xlane.xlu1 %2497  ;;  %v2913_v14 = vld [vmem:[#allocation10 + $0xa8] sm:$0xff] }
 0x75c   :  { %v2499_v42 = vmul.f32 0.00390625, %v2498_v16  ;;  %v2500_v10 = vmul.f32 %v2493_v4, %v2493_v4  ;;  %v2502_v23 = vsub.f32 %v8171_v49, %v2493_v4  ;;  %v2503_v24 = vsub.f32 %v8173_v22, %v2493_v4  ;;  %v2692_v16 = vld [vmem:[%s8494_s14 + $0x80] sm:$0xff] }
 0x75d   :  { %v6353_v4 = vpack.c.bf16 %v2695_v11, %v2693_v18  ;;  %v2809_v11 = vld [vmem:[#allocation9 + $0x50] sm:$0xff] }
 0x75e   :  { %v2501_v48 = vsub.f32 %v2499_v42, %v2500_v10  ;;  %v2694_v42 = vld [vmem:[%s8494_s14 + $0x90] sm:$0xff]  ;;  %v2697_v10 = vld [vmem:[%s8494_s14 + $0xa8] sm:$0xff] }
 0x760   :  { %v2504_v21 = vadd.f32 1e-05, %v2501_v48  ;;  %v2699_v48 = vld [vmem:[%s8494_s14 + $0xb8] sm:$0xff] }
 0x761   :  { %v6357_v30 = vpack.c.bf16 %v2699_v48, %v2697_v10  ;;  %v2813_v48 = vld [vmem:[#allocation9 + $0x70] sm:$0xff] }
 0x762   :  { %7427 = vrsqrt.f32 %v2504_v21  ;;  %v6355_v21 = vpack.c.bf16 %v2694_v42, %v2692_v16  ;;  %v2811_v16 = vld [vmem:[#allocation9 + $0x60] sm:$0xff]  ;;  %v2812_v42 = vld [vmem:[#allocation9 + $0x68] sm:$0xff] }
 0x763   :  { %v6388_v10 = vpack.c.bf16 %v2812_v42, %v2811_v16 }
 0x76c   :  { %v7428_v12 = vpop.eup %7427 }
 0x76d   :  { %v2507_v31 = vmul.f32 %v7428_v12, %v2503_v24  ;;  %v2506_v34 = vmul.f32 %v7428_v12, %v2502_v23  ;;  %v2698_v23 = vld [vmem:[%s8494_s14 + $0xb0] sm:$0xff]  ;;  %v2701_v24 = vld [vmem:[%s8494_s14 + $0xc8] sm:$0xff] }
 0x76f   :  { %v2520_v49 = vmul.f32 %v2516_v26, %v2507_v31  ;;  %v2519_v35 = vmul.f32 %v2512_v25, %v2506_v34  ;;  %v2703_v25 = vld [vmem:[%s8494_s14 + $0xd8] sm:$0xff]  ;;  %v6359_v26 = vpack.c.bf16 %v2698_v23, %v2696_v29  ;;  %v2700_v31 = vld [vmem:[%s8494_s14 + $0xc0] sm:$0xff]  ;;  %v2893_v29 = vld [vmem:[#allocation10 + $0x8] sm:$0xff] }
 0x770   :  { %v6361_v12 = vpack.c.bf16 %v2703_v25, %v2701_v24  ;;  %v2707_v34 = vld [vmem:[%s8494_s14 + $0xf8] sm:$0xff]  ;;  %v2708_v25 = vld [vmem:[%s8498_s29] sm:$0x3] }
 0x771   :  { %v2533_v22 = vadd.f32 %v2529_v33, %v2520_v49  ;;  %v2532_v36 = vadd.f32 %v2525_v32, %v2519_v35  ;;  %v2702_v32 = vld [vmem:[%s8494_s14 + $0xd0] sm:$0xff]  ;;  %v2705_v33 = vld [vmem:[%s8494_s14 + $0xe8] sm:$0xff]  ;;  %v2895_v23 = vld [vmem:[#allocation10 + $0x18] sm:$0xff] }
 0x772   :  { %v6363_v49 = vpack.c.bf16 %v2702_v32, %v2700_v31  ;;  %v6365_v35 = vpack.c.bf16 %v2707_v34, %v2705_v33  ;;  %v6393_v24 = vpack.c.bf16 %v2895_v23, %v2893_v29 }
 0x773   :  { %v2535_v46 = vmax.f32 %v2533_v22, 0.0  ;;  %v2534_v43 = vmax.f32 %v2532_v36, 0.0  ;;  %v2704_v22 = vld [vmem:[%s8494_s14 + $0xe0] sm:$0xff]  ;;  %v2706_v36 = vld [vmem:[%s8494_s14 + $0xf0] sm:$0xff] }
 0x775   :  { %2639 = vmatprep.mubr.f32.mxu1 %v2535_v46  ;;  %v6367_v46 = vpack.c.bf16 %v2706_v36, %v2704_v22  ;;  %v2793_v22 = vld [vmem:[%s8499_s18] sm:$0xff] }
 0x776   :  { %2640 = vmatmul.mubr.f32.vlgmr.msra.gmra.mrb[10].mxu1 %v2534_v43  ;;  %v7703_v43 = vmov 0.0|0.0   ;;  %v2892_v36 = vld [vmem:[#allocation10] sm:$0xff] }
 0x777   :  { %6340 = vmatpush1.bf16.msra.mxu1 %v6339_v54  ;;  %2784 = vmatprep.mubr.f32.mxu1 %v7702_v19 }
 0x778   :  { %6342 = vmatprep.subr.bf16.mxu1 %v6341_v55 }
 0x77b   :  { %6344 = vmatpush1.bf16.msra.mxu1 %v6343_v63 }
 0x77c   :  { %6346 = vmatprep.subr.bf16.mxu1 %v6345_v47  ;;  %v2802_v47 = vld [vmem:[#allocation9 + $0x18] sm:$0xff] }
 0x77d   :  { %v6373_v5 = vpack.c.bf16 %v2802_v47, %v2801_v1  ;;  %v2904_v1 = vld [vmem:[#allocation10 + $0x60] sm:$0xff]  ;;  %v2906_v47 = vld [vmem:[#allocation10 + $0x70] sm:$0xff] }
 0x77f   :  { %6348 = vmatpush1.bf16.msra.mxu1 %v6347_v7 }
 0x780   :  { %6350 = vmatprep.subr.bf16.mxu1 %v6349_v53  ;;  %v2807_v53 = vld [vmem:[#allocation9 + $0x40] sm:$0xff] }
 0x781   :  { %v6382_v18 = vpack.c.bf16 %v2808_v17, %v2807_v53 }
 0x783   :  { %6352 = vmatpush1.bf16.msra.mxu1 %v6351_v20  ;;  %v2810_v20 = vld [vmem:[#allocation9 + $0x58] sm:$0xff] }
 0x784   :  { %6354 = vmatprep.subr.bf16.mxu1 %v6353_v4  ;;  %v6385_v4 = vpack.c.bf16 %v2810_v20, %v2809_v11  ;;  %v2914_v11 = vld [vmem:[#allocation10 + $0xb0] sm:$0xff]  ;;  %v2917_v20 = vld [vmem:[#allocation10 + $0xc8] sm:$0xff] }
 0x787   :  { %6356 = vmatpush1.bf16.msra.mxu1 %v6355_v21  ;;  %v2814_v21 = vld [vmem:[#allocation9 + $0x78] sm:$0xff] }
 0x788   :  { %6358 = vmatprep.subr.bf16.mxu1 %v6357_v30  ;;  %v6391_v30 = vpack.c.bf16 %v2814_v21, %v2813_v48  ;;  %v2918_v48 = vld [vmem:[#allocation10 + $0xd0] sm:$0xff]  ;;  %v2921_v21 = vld [vmem:[#allocation10 + $0xe8] sm:$0xff] }
 0x78b   :  { %6360 = vmatpush1.bf16.msra.mxu1 %v6359_v26  ;;  %v2713_v26 = vrot.slane %v2708_v25, %v7984_v2 }
 0x78c   :  { %6362 = vmatprep.subr.bf16.mxu1 %v6361_v12  ;;  %v2717_v12 = vrot.slane %v2708_v25, %v7986_v3  ;;  %v2922_v25 = vld [vmem:[#allocation10 + $0xf0] sm:$0xff] }
 0x78f   :  { %6364 = vmatpush1.bf16.msra.mxu1 %v6363_v49 }
 0x790   :  { %6366 = vmatprep.subr.bf16.mxu1 %v6365_v35 }
 0x793   :  { %6368 = vmatpush1.bf16.msra.mxu1 %v6367_v46  ;;  %v2894_v46 = vld [vmem:[#allocation10 + $0x10] sm:$0xff] }
 0x794   :  { %6369 = vmatprep.subr.bf16.mxu1 %v7703_v43 }
 0x849   :  { %v5354_v56 = vpop.f32.mrb[10].mxu1 }
 0x84a   :  { %v5355_v58 = vpop.f32.mrb[11].mxu1 }
 0x84b   :  { %v5356_v59 = vadd.f32 %v5355_v58, %v5354_v56  ;;  %v5319_v56 = vld [vmem:[%s8496_s0] ss:$0 sm:$0xff] }
 0x84c   :  { %v5320_v58 = vld [vmem:[%s8497_s23] ss:$0 sm:$0xff] }
 0x84d   :  { %v8196_v60 = vadd.f32 %v5356_v59, %v5318_v57 }
 0x84f   :  { %2647 = vadd.xlane.f32.xlu0 %v8196_v60  ;;  %v2651_v40 = vmul.f32 %v8196_v60, %v8196_v60 }
 0x851   :  { %2652 = vadd.xlane.f32.xlu1 %v2651_v40  ;;  %v2799_v40 = vld [vmem:[#allocation9] sm:$0xff] }
 0x852   :  { %v6370_v63 = vpack.c.bf16 %v2800_v61, %v2799_v40  ;;  %v2902_v40 = vld [vmem:[#allocation10 + $0x50] sm:$0xff]  ;;  %v2905_v61 = vld [vmem:[#allocation10 + $0x68] sm:$0xff] }
 0x8dc   :  { %v2648_v37 = vpop.xlane.xlu0 %2647 }
 0x8dd   :  { %v2650_v39 = vmul.f32 0.0078125, %v2648_v37  ;;  %v2897_v37 = vld [vmem:[#allocation10 + $0x28] sm:$0xff] }
 0x8de   :  { %v2653_v44 = vpop.xlane.xlu1 %2652 }
 0x8df   :  { %v2655_v45 = vmul.f32 %v2650_v39, %v2650_v39  ;;  %v2654_v52 = vmul.f32 0.0078125, %v2653_v44  ;;  %v2657_v54 = vsub.f32 %v8196_v60, %v2650_v39  ;;  %v2804_v60 = vld [vmem:[#allocation9 + $0x28] sm:$0xff]  ;;  %v2899_v39 = vld [vmem:[#allocation10 + $0x38] sm:$0xff] }
 0x8e0   :  { %v6376_v7 = vpack.c.bf16 %v2804_v60, %v2803_v6  ;;  %v2911_v6 = vld [vmem:[#allocation10 + $0x98] sm:$0xff]  ;;  %v6407_v60 = vpack.c.bf16 %v2906_v47, %v2904_v1 }
 0x8e1   :  { %v2656_v50 = vsub.f32 %v2654_v52, %v2655_v45  ;;  %v6395_v45 = vpack.c.bf16 %v2894_v46, %v2892_v36  ;;  %v3062_v36 = vld [vmem:[#allocation12 + $0x38] sm:$0xff]  ;;  %v3055_v46 = vld [vmem:[#allocation12] sm:$0xff] }
 0x8e3   :  { %v2658_v51 = vadd.f32 1e-05, %v2656_v50  ;;  %v6397_v50 = vpack.c.bf16 %v2899_v39, %v2897_v37 }
 0x8e5   :  { %7429 = vrsqrt.f32 %v2658_v51  ;;  %v2896_v51 = vld [vmem:[#allocation10 + $0x20] sm:$0xff] }
 0x8ef   :  { %v7430_v55 = vpop.eup %7429 }
 0x8f0   :  { %v2660_v57 = vmul.f32 %v7430_v55, %v2657_v54  ;;  %v2898_v54 = vld [vmem:[#allocation10 + $0x30] sm:$0xff]  ;;  %v2901_v55 = vld [vmem:[#allocation10 + $0x48] sm:$0xff] }
 0x8f2   :  { %v2667_v59 = vmul.f32 %v5319_v56, %v2660_v57  ;;  %v2903_v56 = vld [vmem:[#allocation10 + $0x58] sm:$0xff]  ;;  %v6399_v57 = vpack.c.bf16 %v2898_v54, %v2896_v51  ;;  %v3068_v51 = vld [vmem:[#allocation12 + $0x68] sm:$0xff] }
 0x8f3   :  { %v3066_v54 = vld [vmem:[#allocation12 + $0x58] sm:$0xff] }
 0x8f4   :  { %v2674_v62 = vadd.f32 %v5320_v58, %v2667_v59  ;;  %v6401_v58 = vpack.c.bf16 %v2903_v56, %v2901_v55  ;;  %v2900_v59 = vld [vmem:[#allocation10 + $0x40] sm:$0xff]  ;;  %v3070_v55 = vld [vmem:[#allocation12 + $0x78] sm:$0xff] }
 0x8f6   :  { %v2675_v0 = vmax.f32 %v2674_v62, 0.0  ;;  %v2907_v62 = vld [vmem:[#allocation10 + $0x78] sm:$0xff] }
 0x8f8   :  { %2785 = vmatmul.mubr.f32.vlgmr.msra.gmra.mrb[12].mxu1 %v2675_v0  ;;  %v6405_v0 = vpack.c.bf16 %v2907_v62, %v2905_v61  ;;  %v3069_v62 = vld [vmem:[#allocation12 + $0x70] sm:$0xff] }
 0x8f9   :  { %6371 = vmatpush3.bf16.msra.mxu1 %v6370_v63  ;;  %5406 = vmatprep.mubr.msk.f32.mxu1 %vm7704_vm0, %v7702_v19  ;;  %v6403_v63 = vpack.c.bf16 %v2902_v40, %v2900_v59  ;;  %v3067_v59 = vld [vmem:[#allocation12 + $0x60] sm:$0xff]  ;;  %v3065_v40 = vld [vmem:[#allocation12 + $0x50] sm:$0xff] }
 0x8fa   :  { %6372 = vmatprep.subr.bf16.mxu1 %v7703_v43  ;;  %v6495_v1 = vpack.c.bf16 %v3069_v62, %v3065_v40  ;;  %v3107_v62 = vld [vmem:[#allocation12 + $0x1a0] sm:$0xff] }
 0x8fd   :  { %6374 = vmatpush3.bf16.msra.mxu1 %v6373_v5  ;;  %v2909_v5 = vld [vmem:[#allocation10 + $0x88] sm:$0xff] }
 0x8fe   :  { %6375 = vmatprep.subr.bf16.mxu1 %v7703_v43 }
 0x901   :  { %6377 = vmatpush3.bf16.msra.mxu1 %v6376_v7  ;;  %v6409_v7 = vpack.c.bf16 %v2911_v6, %v2909_v5  ;;  %v3074_v5 = vld [vmem:[#allocation12 + $0x98] sm:$0xff] }
 0x902   :  { %6378 = vmatprep.subr.bf16.mxu1 %v7703_v43  ;;  %v3078_v6 = vld [vmem:[#allocation12 + $0xb8] sm:$0xff] }
 0x905   :  { %6380 = vmatpush3.bf16.msra.mxu1 %v6379_v13  ;;  %v2915_v13 = vld [vmem:[#allocation10 + $0xb8] sm:$0xff] }
 0x906   :  { %6381 = vmatprep.subr.bf16.mxu1 %v7703_v43  ;;  %v6413_v17 = vpack.c.bf16 %v2915_v13, %v2913_v14  ;;  %v3077_v14 = vld [vmem:[#allocation12 + $0xb0] sm:$0xff] }
 0x909   :  { %6383 = vmatpush3.bf16.msra.mxu1 %v6382_v18  ;;  %v2912_v18 = vld [vmem:[#allocation10 + $0xa0] sm:$0xff] }
 0x90a   :  { %6384 = vmatprep.subr.bf16.mxu1 %v7703_v43  ;;  %v6415_v16 = vpack.c.bf16 %v2914_v11, %v2912_v18  ;;  %v3082_v18 = vld [vmem:[#allocation12 + $0xd8] sm:$0xff] }
 0x90d   :  { %6386 = vmatpush3.bf16.msra.mxu1 %v6385_v4  ;;  %v2919_v4 = vld [vmem:[#allocation10 + $0xd8] sm:$0xff] }
 0x90e   :  { %6387 = vmatprep.subr.bf16.mxu1 %v7703_v43  ;;  %v6417_v42 = vpack.c.bf16 %v2919_v4, %v2917_v20  ;;  %v3086_v4 = vld [vmem:[#allocation12 + $0xf8] sm:$0xff] }
 0x911   :  { %6389 = vmatpush3.bf16.msra.mxu1 %v6388_v10  ;;  %v2916_v10 = vld [vmem:[#allocation10 + $0xc0] sm:$0xff] }
 0x912   :  { %6390 = vmatprep.subr.bf16.mxu1 %v7703_v43  ;;  %v6419_v29 = vpack.c.bf16 %v2918_v48, %v2916_v10  ;;  %v6501_v10 = vpack.c.bf16 %v3086_v4, %v3082_v18  ;;  %v3081_v48 = vld [vmem:[#allocation12 + $0xd0] sm:$0xff]  ;;  %v3122_v4 = vld [vmem:[#allocation12 + $0x218] sm:$0xff] }
 0x913   :  { %v3117_v18 = vld [vmem:[#allocation12 + $0x1f0] sm:$0xff] }
 0x915   :  { %6392 = vmatpush3.bf16.msra.mxu1 %v6391_v30  ;;  %v2923_v30 = vld [vmem:[#allocation10 + $0xf8] sm:$0xff] }
 0x916   :  { %6394 = vmatprep.subr.bf16.mxu1 %v6393_v24  ;;  %v6421_v23 = vpack.c.bf16 %v2923_v30, %v2921_v21  ;;  %v2920_v24 = vld [vmem:[#allocation10 + $0xe0] sm:$0xff]  ;;  %v3085_v21 = vld [vmem:[#allocation12 + $0xf0] sm:$0xff]  ;;  %v3088_v30 = vld [vmem:[#allocation12 + $0x108] sm:$0xff] }
 0x9cb   :  { %v2786_v31 = vpop.f32.mrb[12].mxu1 }
 0x9cc   :  { %v2787_v32 = vadd.f32 %v2786_v31, %v2713_v26  ;;  %v2788_v33 = vpop.f32.mrb[13].mxu1  ;;  %v6423_v26 = vpack.c.bf16 %v2922_v25, %v2920_v24  ;;  %v3094_v24 = vld [vmem:[#allocation12 + $0x138] sm:$0xff] }
 0x9cd   :  { %v2789_v34 = vadd.f32 %v2788_v33, %v2717_v12 }
 0x9ce   :  { %2791 = vst [vmem:[%s7898_s4] sm:$0xff] %v2787_v32  ;;  %s8501_s4 = sld [smem:[#allocation33_spill]] }
 0x9cf   :  { %2792 = vst [vmem:[%s7903_s8] sm:$0xff] %v2789_v34  ;;  %v2794_v49 = vmul.f32 0.5, %v2789_v34  ;;  %s8500_s8 = sld [smem:[#allocation32_spill]]  ;;  %v3056_v34 = vld [vmem:[#allocation12 + $0x8] sm:$0xff] }
 0x9d1   :  { %v2795_v35 = vmul.f32 1.442695, %v2794_v49  ;;  %v3060_v49 = vld [vmem:[#allocation12 + $0x28] sm:$0xff] }
 0x9d3   :  { %7431 = vpow2.f32 %v2795_v35  ;;  %v3058_v35 = vld [vmem:[#allocation12 + $0x18] sm:$0xff] }
 0x9d4   :  { %v6489_v37 = vpack.c.bf16 %v3062_v36, %v3058_v35  ;;  %v3096_v35 = vld [vmem:[#allocation12 + $0x148] sm:$0xff]  ;;  %v3098_v36 = vld [vmem:[#allocation12 + $0x158] sm:$0xff] }
 0x9d5   :  { %v5321_v12 = vld [vmem:[%s8500_s8] ss:$0 sm:$0xff] }
 0x9dd   :  { %v7432_v43 = vpop.eup %7431 }
 0x9de   :  { %v2797_v44 = vmul.f32 %v7432_v43, %v2793_v22  ;;  %v6425_v22 = vpack.c.bf16 %v3060_v49, %v3056_v34  ;;  %v3059_v43 = vld [vmem:[#allocation12 + $0x20] sm:$0xff]  ;;  %v3093_v49 = vld [vmem:[#allocation12 + $0x130] sm:$0xff] }
 0x9df   :  { %v6427_v39 = vpack.c.bf16 %v3059_v43, %v3055_v46  ;;  %v3102_v46 = vld [vmem:[#allocation12 + $0x178] sm:$0xff] }
 0x9e0   :  { %v2798_v52 = vadd.f32 %v2797_v44, %v2787_v32  ;;  %v3057_v44 = vld [vmem:[#allocation12 + $0x10] sm:$0xff]  ;;  %6426 = vmatprep.subr.bf16.mxu0 %v6425_v22  ;;  %v3100_v22 = vld [vmem:[#allocation12 + $0x168] sm:$0xff] }
 0x9e1   :  { %6428 = vmatpush1.bf16.msra.mxu0 %v6427_v39  ;;  %v6445_v39 = vpack.c.bf16 %v3100_v22, %v3096_v35 }
 0x9e2   :  { %5407 = vmatmul.mubr.f32.vlgmr.msra.gmra.mrb[14].mxu1 %v2798_v52  ;;  %v3064_v52 = vld [vmem:[#allocation12 + $0x48] sm:$0xff] }
 0x9e3   :  { %6396 = vmatpush1.bf16.msra.mxu1 %v6395_v45  ;;  %3000 = vmatprep.mubr.f32.mxu1 %v7702_v19  ;;  %v2910_v19 = vld [vmem:[#allocation10 + $0x90] sm:$0xff]  ;;  %v6429_v56 = vpack.c.bf16 %v3068_v51, %v3064_v52 }
 0x9e4   :  { %6398 = vmatprep.subr.bf16.mxu1 %v6397_v50  ;;  %v6411_v53 = vpack.c.bf16 %v2910_v19, %v2908_v38  ;;  %v3061_v45 = vld [vmem:[#allocation12 + $0x30] sm:$0xff]  ;;  %v3075_v38 = vld [vmem:[#allocation12 + $0xa0] sm:$0xff] }
 0x9e5   :  { %v6491_v50 = vpack.c.bf16 %v3061_v45, %v3057_v44  ;;  %6430 = vmatprep.subr.bf16.mxu0 %v6429_v56  ;;  %v3073_v19 = vld [vmem:[#allocation12 + $0x90] sm:$0xff]  ;;  %v3095_v44 = vld [vmem:[#allocation12 + $0x140] sm:$0xff]  ;;  %v3106_v56 = vld [vmem:[#allocation12 + $0x198] sm:$0xff] }
 0x9e6   :  { %v6499_v11 = vpack.c.bf16 %v3077_v14, %v3073_v19  ;;  %v3099_v45 = vld [vmem:[#allocation12 + $0x160] sm:$0xff]  ;;  %v3097_v52 = vld [vmem:[#allocation12 + $0x150] sm:$0xff] }
 0x9e7   :  { %6400 = vmatpush1.bf16.msra.mxu1 %v6399_v57  ;;  %v6493_v57 = vpack.c.bf16 %v3070_v55, %v3066_v54  ;;  %v3101_v51 = vld [vmem:[#allocation12 + $0x170] sm:$0xff]  ;;  %v3104_v54 = vld [vmem:[#allocation12 + $0x188] sm:$0xff]  ;;  %v3111_v14 = vld [vmem:[#allocation12 + $0x1c0] sm:$0xff] }
 0x9e8   :  { %6402 = vmatprep.subr.bf16.mxu1 %v6401_v58  ;;  %v3063_v58 = vld [vmem:[#allocation12 + $0x40] sm:$0xff]  ;;  %v3108_v55 = vld [vmem:[#allocation12 + $0x1a8] sm:$0xff] }
 0x9e9   :  { %v6431_v61 = vpack.c.bf16 %v3067_v59, %v3063_v58  ;;  %v6447_v58 = vpack.c.bf16 %v3099_v45, %v3095_v44  ;;  %v6511_v59 = vpack.c.bf16 %v3101_v51, %v3097_v52  ;;  %v6449_v40 = vpack.c.bf16 %v3108_v55, %v3104_v54  ;;  %v3130_v44 = vld [vmem:[#allocation12 + $0x258] sm:$0xff]  ;;  %v3131_v51 = vld [vmem:[#allocation12 + $0x260] sm:$0xff] }
 0x9ea   :  { %v3134_v52 = vld [vmem:[#allocation12 + $0x278] sm:$0xff] }
 0x9eb   :  { %6404 = vmatpush1.bf16.msra.mxu1 %v6403_v63  ;;  %v3072_v63 = vld [vmem:[#allocation12 + $0x88] sm:$0xff]  ;;  %6432 = vmatpush1.bf16.msra.mxu0 %v6431_v61  ;;  %v3103_v61 = vld [vmem:[#allocation12 + $0x180] sm:$0xff]  ;;  %v6525_v54 = vpack.c.bf16 %v3134_v52, %v3130_v44  ;;  %v3161_v44 = vld [vmem:[#allocation12 + $0x350] sm:$0xff] }
 0x9ec   :  { %6406 = vmatprep.subr.bf16.mxu1 %v6405_v0  ;;  %v3076_v0 = vld [vmem:[#allocation12 + $0xa8] sm:$0xff] }
 0x9ed   :  { %v6433_v47 = vpack.c.bf16 %v3076_v0, %v3072_v63  ;;  %v3105_v63 = vld [vmem:[#allocation12 + $0x190] sm:$0xff]  ;;  %v3168_v52 = vld [vmem:[#allocation12 + $0x388] sm:$0xff] }
 0x9ef   :  { %6408 = vmatpush1.bf16.msra.mxu1 %v6407_v60  ;;  %v3071_v60 = vld [vmem:[#allocation12 + $0x80] sm:$0xff]  ;;  %6434 = vmatprep.subr.bf16.mxu0 %v6433_v47  ;;  %v3112_v47 = vld [vmem:[#allocation12 + $0x1c8] sm:$0xff] }
 0x9f0   :  { %6410 = vmatprep.subr.bf16.mxu1 %v6409_v7  ;;  %v6497_v7 = vpack.c.bf16 %v3078_v6, %v3074_v5  ;;  %v6435_v13 = vpack.c.bf16 %v3075_v38, %v3071_v60  ;;  %v3116_v5 = vld [vmem:[#allocation12 + $0x1e8] sm:$0xff]  ;;  %v3114_v6 = vld [vmem:[#allocation12 + $0x1d8] sm:$0xff] }
 0x9f1   :  { %v3118_v60 = vld [vmem:[#allocation12 + $0x1f8] sm:$0xff]  ;;  %v6453_v19 = vpack.c.bf16 %v3116_v5, %v3112_v47 }
 0x9f2   :  { %6436 = vmatpush1.bf16.msra.mxu0 %v6435_v13  ;;  %v3115_v13 = vld [vmem:[#allocation12 + $0x1e0] sm:$0xff] }
 0x9f3   :  { %6412 = vmatpush1.bf16.msra.mxu1 %v6411_v53  ;;  %v3080_v53 = vld [vmem:[#allocation12 + $0xc8] sm:$0xff] }
 0x9f4   :  { %6414 = vmatprep.subr.bf16.mxu1 %v6413_v17  ;;  %v3084_v17 = vld [vmem:[#allocation12 + $0xe8] sm:$0xff] }
 0x9f5   :  { %v6437_v20 = vpack.c.bf16 %v3084_v17, %v3080_v53  ;;  %v3113_v53 = vld [vmem:[#allocation12 + $0x1d0] sm:$0xff]  ;;  %v6517_v17 = vpack.c.bf16 %v3118_v60, %v3114_v6 }
 0x9f6   :  { %v3137_v6 = vld [vmem:[#allocation12 + $0x290] sm:$0xff] }
 0x9f7   :  { %6416 = vmatpush1.bf16.msra.mxu1 %v6415_v16  ;;  %v3079_v16 = vld [vmem:[#allocation12 + $0xc0] sm:$0xff]  ;;  %6438 = vmatprep.subr.bf16.mxu0 %v6437_v20  ;;  %v3124_v20 = vld [vmem:[#allocation12 + $0x228] sm:$0xff]  ;;  %v3141_v60 = vld [vmem:[#allocation12 + $0x2b0] sm:$0xff] }
 0x9f8   :  { %6418 = vmatprep.subr.bf16.mxu1 %v6417_v42  ;;  %v3083_v42 = vld [vmem:[#allocation12 + $0xe0] sm:$0xff] }
 0x9f9   :  { %v6439_v25 = vpack.c.bf16 %v3083_v42, %v3079_v16  ;;  %v3126_v16 = vld [vmem:[#allocation12 + $0x238] sm:$0xff]  ;;  %v6455_v42 = vpack.c.bf16 %v3115_v13, %v3111_v14 }
 0x9fa   :  { %v3146_v14 = vld [vmem:[#allocation12 + $0x2d8] sm:$0xff] }
 0x9fb   :  { %6420 = vmatpush1.bf16.msra.mxu1 %v6419_v29  ;;  %v3092_v29 = vld [vmem:[#allocation12 + $0x128] sm:$0xff]  ;;  %6440 = vmatpush1.bf16.msra.mxu0 %v6439_v25  ;;  %v3150_v13 = vld [vmem:[#allocation12 + $0x2f8] sm:$0xff] }
 0x9fc   :  { %6422 = vmatprep.subr.bf16.mxu1 %v6421_v23  ;;  %v3090_v23 = vld [vmem:[#allocation12 + $0x118] sm:$0xff] }
 0x9fd   :  { %v6505_v34 = vpack.c.bf16 %v3094_v24, %v3090_v23  ;;  %v3121_v23 = vld [vmem:[#allocation12 + $0x210] sm:$0xff] }
 0x9fe   :  { %v3125_v24 = vld [vmem:[#allocation12 + $0x230] sm:$0xff] }
 0x9ff   :  { %6424 = vmatpush1.bf16.msra.mxu1 %v6423_v26  ;;  %v6503_v26 = vpack.c.bf16 %v3085_v21, %v3081_v48  ;;  %v3119_v21 = vld [vmem:[#allocation12 + $0x200] sm:$0xff] }
 0xa00   :  { %6490 = vmatprep.subr.bf16.mxu1 %v6489_v37 }
 0xab5   :  { %v2888_v31 = vpop.f32.mrb[14].mxu1 }
 0xab6   :  { %v2889_v32 = vadd.f32 %v5321_v12, %v2888_v31  ;;  %v5408_v33 = vpop.f32.mrb[15].mxu1  ;;  %v6441_v12 = vpack.c.bf16 %v3092_v29, %v3088_v30  ;;  %v3087_v31 = vld [vmem:[#allocation12 + $0x100] sm:$0xff]  ;;  %v6521_v29 = vpack.c.bf16 %v3126_v16, %v3122_v4  ;;  %v3149_v16 = vld [vmem:[#allocation12 + $0x2f0] sm:$0xff] }
 0xab7   :  { %v3089_v33 = vld [vmem:[#allocation12 + $0x110] sm:$0xff]  ;;  %v3123_v30 = vld [vmem:[#allocation12 + $0x220] sm:$0xff] }
 0xab8   :  { %3001 = vmatmul.mubr.f32.vlgmr.msra.gmra.mrb[16].mxu1 %v2889_v32  ;;  %v3091_v32 = vld [vmem:[#allocation12 + $0x120] sm:$0xff]  ;;  %6442 = vmatprep.subr.bf16.mxu0 %v6441_v12  ;;  %v6507_v37 = vpack.c.bf16 %v3093_v49, %v3089_v33  ;;  %v6459_v25 = vpack.c.bf16 %v3123_v30, %v3119_v21  ;;  %v3154_v30 = vld [vmem:[#allocation12 + $0x318] sm:$0xff] }
 0xab9   :  { %6492 = vmatpush1.bf16.msra.mxu1 %v6491_v50  ;;  %v6443_v43 = vpack.c.bf16 %v3091_v32, %v3087_v31  ;;  %v6509_v50 = vpack.c.bf16 %v3102_v46, %v3098_v36  ;;  %v2924_v12 = vld [vmem:[%s8501_s4] sm:$0x3] }
 0xaba   :  { %6494 = vmatprep.subr.bf16.mxu1 %v6493_v57  ;;  %v3110_v57 = vld [vmem:[#allocation12 + $0x1b8] sm:$0xff]  ;;  %v2929_v31 = vrot.slane %v2924_v12, %v7984_v2  ;;  %v2933_v32 = vrot.slane %v2924_v12, %v7986_v3  ;;  %v3157_v12 = vld [vmem:[#allocation12 + $0x330] sm:$0xff] }
 0xabb   :  { %6444 = vmatpush1.bf16.msra.mxu0 %v6443_v43  ;;  %v6513_v0 = vpack.c.bf16 %v3110_v57, %v3106_v56  ;;  %v3129_v56 = vld [vmem:[#allocation12 + $0x250] sm:$0xff] }
 0xabc   :  { %6446 = vmatprep.subr.bf16.mxu0 %v6445_v39  ;;  %v3132_v39 = vld [vmem:[#allocation12 + $0x268] sm:$0xff]  ;;  %v3133_v57 = vld [vmem:[#allocation12 + $0x270] sm:$0xff] }
 0xabd   :  { %6496 = vmatpush1.bf16.msra.mxu1 %v6495_v1  ;;  %v3109_v1 = vld [vmem:[#allocation12 + $0x1b0] sm:$0xff] }
 0xabe   :  { %6498 = vmatprep.subr.bf16.mxu1 %v6497_v7  ;;  %v6451_v7 = vpack.c.bf16 %v3107_v62, %v3103_v61  ;;  %v6515_v38 = vpack.c.bf16 %v3109_v1, %v3105_v63  ;;  %v3138_v61 = vld [vmem:[#allocation12 + $0x298] sm:$0xff]  ;;  %v3139_v1 = vld [vmem:[#allocation12 + $0x2a0] sm:$0xff] }
 0xabf   :  { %6448 = vmatpush1.bf16.msra.mxu0 %v6447_v58  ;;  %v6527_v58 = vpack.c.bf16 %v3133_v57, %v3129_v56  ;;  %v3142_v63 = vld [vmem:[#allocation12 + $0x2b8] sm:$0xff] }
 0xac0   :  { %6450 = vmatprep.subr.bf16.mxu0 %v6449_v40  ;;  %v3140_v40 = vld [vmem:[#allocation12 + $0x2a8] sm:$0xff]  ;;  %v6529_v47 = vpack.c.bf16 %v3142_v63, %v3138_v61 }
 0xac1   :  { %6500 = vmatpush1.bf16.msra.mxu1 %v6499_v11  ;;  %v3120_v11 = vld [vmem:[#allocation12 + $0x208] sm:$0xff] }
 0xac2   :  { %6502 = vmatprep.subr.bf16.mxu1 %v6501_v10  ;;  %v6519_v10 = vpack.c.bf16 %v3117_v18, %v3113_v53  ;;  %v6457_v48 = vpack.c.bf16 %v3124_v20, %v3120_v11  ;;  %v3143_v18 = vld [vmem:[#allocation12 + $0x2c0] sm:$0xff]  ;;  %v3145_v20 = vld [vmem:[#allocation12 + $0x2d0] sm:$0xff]  ;;  %v3176_v63 = vld [vmem:[#allocation12 + $0x3c8] sm:$0xff] }
 0xac3   :  { %6452 = vmatpush1.bf16.msra.mxu0 %v6451_v7  ;;  %v3144_v7 = vld [vmem:[#allocation12 + $0x2c8] sm:$0xff]  ;;  %v3147_v11 = vld [vmem:[#allocation12 + $0x2e0] sm:$0xff] }
 0xac4   :  { %6454 = vmatprep.subr.bf16.mxu0 %v6453_v19  ;;  %v3148_v19 = vld [vmem:[#allocation12 + $0x2e8] sm:$0xff]  ;;  %v6471_v4 = vpack.c.bf16 %v3147_v11, %v3143_v18 }
 0xac5   :  { %6504 = vmatpush1.bf16.msra.mxu1 %v6503_v26  ;;  %v6523_v26 = vpack.c.bf16 %v3125_v24, %v3121_v23  ;;  %v6469_v53 = vpack.c.bf16 %v3148_v19, %v3144_v7  ;;  %v3151_v23 = vld [vmem:[#allocation12 + $0x300] sm:$0xff] }
 0xac6   :  { %6506 = vmatprep.subr.bf16.mxu1 %v6505_v34  ;;  %v3175_v7 = vld [vmem:[#allocation12 + $0x3c0] sm:$0xff] }
 0xac7   :  { %6456 = vmatpush1.bf16.msra.mxu0 %v6455_v42  ;;  %v3152_v42 = vld [vmem:[#allocation12 + $0x308] sm:$0xff] }
 0xac8   :  { %6458 = vmatprep.subr.bf16.mxu0 %v6457_v48  ;;  %v6535_v48 = vpack.c.bf16 %v3149_v16, %v3145_v20 }
 0xac9   :  { %6508 = vmatpush1.bf16.msra.mxu1 %v6507_v37  ;;  %v3128_v37 = vld [vmem:[#allocation12 + $0x248] sm:$0xff] }
 0xaca   :  { %6510 = vmatprep.subr.bf16.mxu1 %v6509_v50  ;;  %v6461_v45 = vpack.c.bf16 %v3132_v39, %v3128_v37  ;;  %v3127_v50 = vld [vmem:[#allocation12 + $0x240] sm:$0xff] }
 0xacb   :  { %6460 = vmatpush1.bf16.msra.mxu0 %v6459_v25  ;;  %v6463_v55 = vpack.c.bf16 %v3131_v51, %v3127_v50  ;;  %v3155_v25 = vld [vmem:[#allocation12 + $0x320] sm:$0xff]  ;;  %v3172_v50 = vld [vmem:[#allocation12 + $0x3a8] sm:$0xff]  ;;  %v3170_v51 = vld [vmem:[#allocation12 + $0x398] sm:$0xff] }
 0xacc   :  { %6462 = vmatprep.subr.bf16.mxu0 %v6461_v45  ;;  %v3163_v37 = vld [vmem:[#allocation12 + $0x360] sm:$0xff]  ;;  %v3165_v45 = vld [vmem:[#allocation12 + $0x370] sm:$0xff]  ;;  %v6481_v57 = vpack.c.bf16 %v3172_v50, %v3168_v52 }
 0xacd   :  { %6512 = vmatpush1.bf16.msra.mxu1 %v6511_v59  ;;  %v3136_v59 = vld [vmem:[#allocation12 + $0x288] sm:$0xff]  ;;  %v6543_v56 = vpack.c.bf16 %v3165_v45, %v3161_v44  ;;  %v3442_v44 = vld [vmem:[#allocation13 + $0x58] sm:$0xff]  ;;  %v3431_v45 = vld [vmem:[#allocation13] sm:$0xff] }
 0xace   :  { %6514 = vmatprep.subr.bf16.mxu1 %v6513_v0  ;;  %v6465_v62 = vpack.c.bf16 %v3140_v40, %v3136_v59  ;;  %v3135_v0 = vld [vmem:[#allocation12 + $0x280] sm:$0xff]  ;;  %v3169_v40 = vld [vmem:[#allocation12 + $0x390] sm:$0xff] }
 0xacf   :  { %6464 = vmatpush1.bf16.msra.mxu0 %v6463_v55  ;;  %v6467_v5 = vpack.c.bf16 %v3139_v1, %v3135_v0  ;;  %v3171_v59 = vld [vmem:[#allocation12 + $0x3a0] sm:$0xff]  ;;  %v3180_v0 = vld [vmem:[#allocation12 + $0x3e8] sm:$0xff]  ;;  %v3178_v1 = vld [vmem:[#allocation12 + $0x3d8] sm:$0xff] }
 0xad0   :  { %6466 = vmatprep.subr.bf16.mxu0 %v6465_v62  ;;  %v3173_v62 = vld [vmem:[#allocation12 + $0x3b0] sm:$0xff]  ;;  %v3439_v52 = vld [vmem:[#allocation13 + $0x40] sm:$0xff] }
 0xad1   :  { %6516 = vmatpush1.bf16.msra.mxu1 %v6515_v38  ;;  %v6531_v38 = vpack.c.bf16 %v3141_v60, %v3137_v6  ;;  %v6547_v6 = vpack.c.bf16 %v3173_v62, %v3169_v40  ;;  %v6485_v60 = vpack.c.bf16 %v3180_v0, %v3176_v63  ;;  %v3458_v40 = vld [vmem:[#allocation13 + $0xd8] sm:$0xff]  ;;  %v3447_v63 = vld [vmem:[#allocation13 + $0x80] sm:$0xff] }
 0xad2   :  { %6518 = vmatprep.subr.bf16.mxu1 %v6517_v17  ;;  %v6533_v17 = vpack.c.bf16 %v3150_v13, %v3146_v14  ;;  %v3177_v14 = vld [vmem:[#allocation12 + $0x3d0] sm:$0xff]  ;;  %v3455_v0 = vld [vmem:[#allocation13 + $0xc0] sm:$0xff] }
 0xad3   :  { %6468 = vmatpush1.bf16.msra.mxu0 %v6467_v5  ;;  %v3181_v13 = vld [vmem:[#allocation12 + $0x3f0] sm:$0xff] }
 0xad4   :  { %6470 = vmatprep.subr.bf16.mxu0 %v6469_v53 }
 0xad5   :  { %6520 = vmatpush1.bf16.msra.mxu1 %v6519_v10  ;;  %v3156_v10 = vld [vmem:[#allocation12 + $0x328] sm:$0xff] }
 0xad6   :  { %6522 = vmatprep.subr.bf16.mxu1 %v6521_v29  ;;  %v6473_v21 = vpack.c.bf16 %v3156_v10, %v3152_v42  ;;  %v3158_v29 = vld [vmem:[#allocation12 + $0x338] sm:$0xff] }
 0xad7   :  { %v6537_v24 = vpack.c.bf16 %v3158_v29, %v3154_v30  ;;  %6472 = vmatpush1.bf16.msra.mxu0 %v6471_v4 }
 0xad8   :  { %6474 = vmatprep.subr.bf16.mxu0 %v6473_v21  ;;  %v3008_v21 = vld [vmem:[%s8503_s24] sm:$0x3] }
 0xad9   :  { %6524 = vmatpush1.bf16.msra.mxu1 %v6523_v26  ;;  %v3153_v26 = vld [vmem:[#allocation12 + $0x310] sm:$0xff] }
 0xada   :  { %6526 = vmatprep.subr.bf16.mxu1 %v6525_v54  ;;  %v3174_v54 = vld [vmem:[#allocation12 + $0x3b8] sm:$0xff] }
 0xadb   :  { %v6545_v61 = vpack.c.bf16 %v3174_v54, %v3170_v51  ;;  %v6555_v51 = vpack.c.bf16 %v3439_v52, %v3431_v45  ;;  %v3433_v54 = vld [vmem:[#allocation13 + $0x10] sm:$0xff]  ;;  %v3522_v45 = vld [vmem:[#allocation13 + $0x2d8] sm:$0xff] }
 0xadd   :  { %6528 = vmatpush1.bf16.msra.mxu1 %v6527_v58  ;;  %v3167_v58 = vld [vmem:[#allocation12 + $0x380] sm:$0xff] }
 0xade   :  { %6530 = vmatprep.subr.bf16.mxu1 %v6529_v47  ;;  %v3182_v47 = vld [vmem:[#allocation12 + $0x3f8] sm:$0xff]  ;;  %v6483_v5 = vpack.c.bf16 %v3171_v59, %v3167_v58  ;;  %v3456_v58 = vld [vmem:[#allocation13 + $0xc8] sm:$0xff] }
 0xadf   :  { %v6549_v19 = vpack.c.bf16 %v3182_v47, %v3178_v1  ;;  %v3450_v59 = vld [vmem:[#allocation13 + $0x98] sm:$0xff]  ;;  %v3449_v1 = vld [vmem:[#allocation13 + $0x90] sm:$0xff]  ;;  %v6559_v47 = vpack.c.bf16 %v3455_v0, %v3447_v63 }
 0xae0   :  { %v6685_v62 = vpack.c.bf16 %v3458_v40, %v3450_v59  ;;  %v3528_v59 = vld [vmem:[#allocation13 + $0x308] sm:$0xff] }
 0xae1   :  { %6532 = vmatpush1.bf16.msra.mxu1 %v6531_v38  ;;  %v3179_v38 = vld [vmem:[#allocation12 + $0x3e0] sm:$0xff]  ;;  %v3536_v40 = vld [vmem:[#allocation13 + $0x348] sm:$0xff] }
 0xae2   :  { %6534 = vmatprep.subr.bf16.mxu1 %v6533_v17  ;;  %v6487_v53 = vpack.c.bf16 %v3179_v38, %v3175_v7  ;;  %v6551_v17 = vpack.c.bf16 %v3181_v13, %v3177_v14  ;;  %v3474_v14 = vld [vmem:[#allocation13 + $0x158] sm:$0xff]  ;;  %v3463_v13 = vld [vmem:[#allocation13 + $0x100] sm:$0xff] }
 0xae5   :  { %6536 = vmatpush1.bf16.msra.mxu1 %v6535_v48  ;;  %v3007_v48 = vld [vmem:[%s8502_s12] sm:$0x3] }
 0xae6   :  { %6538 = vmatprep.subr.bf16.mxu1 %v6537_v24  ;;  %v3035_v24 = vrot.slane %v3007_v48, %v7986_v3 }
 0xb8b   :  { %v3002_v33 = vpop.f32.mrb[16].mxu1 }
 0xb8c   :  { %v8243_v34 = vadd.f32 %v3002_v33, %v2929_v31  ;;  %v3004_v49 = vpop.f32.mrb[17].mxu1  ;;  %v6475_v31 = vpack.c.bf16 %v3155_v25, %v3151_v23  ;;  %v3164_v33 = vld [vmem:[#allocation12 + $0x368] sm:$0xff]  ;;  %v3031_v23 = vrot.slane %v3007_v48, %v7984_v2 }
 0xb8d   :  { %v8245_v35 = vadd.f32 %v3004_v49, %v2933_v32  ;;  %v3160_v32 = vld [vmem:[#allocation12 + $0x348] sm:$0xff]  ;;  %v3162_v49 = vld [vmem:[#allocation12 + $0x358] sm:$0xff] }
 0xb8e   :  { %v3013_v22 = vmul.f32 %v8243_v34, %v8243_v34  ;;  %6476 = vmatpush1.bf16.msra.mxu0 %v6475_v31  ;;  %v3048_v31 = vrot.slane %v3008_v21, %v7986_v3 }
 0xb8f   :  { %v3009_v36 = vadd.f32 %v8245_v35, %v8243_v34  ;;  %v3014_v46 = vmul.f32 %v8245_v35, %v8245_v35 }
 0xb91   :  { %3010 = vadd.xlane.f32.xlu0 %v3009_v36  ;;  %v3015_v43 = vadd.f32 %v3014_v46, %v3013_v22  ;;  %v6539_v22 = vpack.c.bf16 %v3157_v12, %v3153_v26  ;;  %v6477_v36 = vpack.c.bf16 %v3164_v33, %v3160_v32  ;;  %v3166_v46 = vld [vmem:[#allocation12 + $0x378] sm:$0xff]  ;;  %v3044_v12 = vrot.slane %v3008_v21, %v7984_v2 }
 0xb92   :  { %v6541_v39 = vpack.c.bf16 %v3166_v46, %v3162_v49  ;;  %v3490_v21 = vld [vmem:[#allocation13 + $0x1d8] sm:$0xff] }
 0xb93   :  { %3016 = vadd.xlane.f32.xlu1 %v3015_v43  ;;  %v3159_v43 = vld [vmem:[#allocation12 + $0x340] sm:$0xff]  ;;  %6540 = vmatpush1.bf16.msra.mxu1 %v6539_v22 }
 0xb94   :  { %v6479_v55 = vpack.c.bf16 %v3163_v37, %v3159_v43  ;;  %6478 = vmatprep.subr.bf16.mxu0 %v6477_v36  ;;  %6542 = vmatprep.subr.bf16.mxu1 %v6541_v39  ;;  %v3434_v37 = vld [vmem:[#allocation13 + $0x18] sm:$0xff] }
 0xb95   :  { %v6681_v50 = vpack.c.bf16 %v3442_v44, %v3434_v37  ;;  %v3512_v37 = vld [vmem:[#allocation13 + $0x288] sm:$0xff]  ;;  %v3514_v44 = vld [vmem:[#allocation13 + $0x298] sm:$0xff] }
 0xb96   :  { %6480 = vmatpush1.bf16.msra.mxu0 %v6479_v55  ;;  %v3441_v55 = vld [vmem:[#allocation13 + $0x50] sm:$0xff] }
 0xb97   :  { %6544 = vmatpush1.bf16.msra.mxu1 %v6543_v56  ;;  %6482 = vmatprep.subr.bf16.mxu0 %v6481_v57  ;;  %v3448_v56 = vld [vmem:[#allocation13 + $0x88] sm:$0xff]  ;;  %v6683_v57 = vpack.c.bf16 %v3441_v55, %v3433_v54  ;;  %v3511_v54 = vld [vmem:[#allocation13 + $0x280] sm:$0xff] }
 0xb98   :  { %6546 = vmatprep.subr.bf16.mxu1 %v6545_v61  ;;  %v6557_v61 = vpack.c.bf16 %v3456_v58, %v3448_v56  ;;  %v3519_v55 = vld [vmem:[#allocation13 + $0x2c0] sm:$0xff]  ;;  %v3513_v56 = vld [vmem:[#allocation13 + $0x290] sm:$0xff] }
 0xb99   :  { %v3521_v58 = vld [vmem:[#allocation13 + $0x2d0] sm:$0xff]  ;;  %v6575_v63 = vpack.c.bf16 %v3519_v55, %v3511_v54 }
 0xb9a   :  { %6484 = vmatpush1.bf16.msra.mxu0 %v6483_v5  ;;  %v3457_v5 = vld [vmem:[#allocation13 + $0xd0] sm:$0xff]  ;;  %v6703_v0 = vpack.c.bf16 %v3521_v58, %v3513_v56 }
 0xb9b   :  { %6548 = vmatpush1.bf16.msra.mxu1 %v6547_v6  ;;  %6486 = vmatprep.subr.bf16.mxu0 %v6485_v60  ;;  %v3464_v6 = vld [vmem:[#allocation13 + $0x108] sm:$0xff]  ;;  %v6687_v7 = vpack.c.bf16 %v3457_v5, %v3449_v1  ;;  %v6577_v1 = vpack.c.bf16 %v3536_v40, %v3528_v59  ;;  %v3535_v5 = vld [vmem:[#allocation13 + $0x340] sm:$0xff] }
 0xb9c   :  { %6550 = vmatprep.subr.bf16.mxu1 %v6549_v19  ;;  %v3472_v60 = vld [vmem:[#allocation13 + $0x148] sm:$0xff]  ;;  %v3466_v19 = vld [vmem:[#allocation13 + $0x118] sm:$0xff] }
 0xb9d   :  { %v6561_v38 = vpack.c.bf16 %v3472_v60, %v3464_v6  ;;  %v3529_v6 = vld [vmem:[#allocation13 + $0x310] sm:$0xff] }
 0xb9e   :  { %6488 = vmatpush1.bf16.msra.mxu0 %v6487_v53  ;;  %v6689_v53 = vpack.c.bf16 %v3474_v14, %v3466_v19  ;;  %v3552_v19 = vld [vmem:[#allocation13 + $0x3c8] sm:$0xff]  ;;  %v3546_v14 = vld [vmem:[#allocation13 + $0x398] sm:$0xff] }
 0xb9f   :  { %6552 = vmatpush1.bf16.msra.mxu1 %v6551_v17  ;;  %v3471_v17 = vld [vmem:[#allocation13 + $0x140] sm:$0xff] }
 0xba0   :  { %6682 = vmatprep.subr.bf16.mxu1 %v6681_v50 }
 0xc1e   :  { %v3011_v18 = vpop.xlane.xlu0 %3010 }
 0xc1f   :  { %v3012_v11 = vmul.f32 0.00390625, %v3011_v18  ;;  %v3465_v18 = vld [vmem:[#allocation13 + $0x110] sm:$0xff] }
 0xc20   :  { %v3017_v20 = vpop.xlane.xlu1 %3016 }
 0xc21   :  { %v3018_v4 = vmul.f32 0.00390625, %v3017_v20  ;;  %v3019_v16 = vmul.f32 %v3012_v11, %v3012_v11  ;;  %v3021_v30 = vsub.f32 %v8243_v34, %v3012_v11  ;;  %v3022_v29 = vsub.f32 %v8245_v35, %v3012_v11  ;;  %v3432_v34 = vld [vmem:[#allocation13 + $0x8] sm:$0xff]  ;;  %v3473_v11 = vld [vmem:[#allocation13 + $0x150] sm:$0xff] }
 0xc22   :  { %v3440_v35 = vld [vmem:[#allocation13 + $0x48] sm:$0xff]  ;;  %v6563_v20 = vpack.c.bf16 %v3471_v17, %v3463_v13  ;;  %v3554_v13 = vld [vmem:[#allocation13 + $0x3d8] sm:$0xff] }
 0xc23   :  { %v3020_v42 = vsub.f32 %v3018_v4, %v3019_v16  ;;  %v6553_v39 = vpack.c.bf16 %v3440_v35, %v3432_v34  ;;  %v3480_v4 = vld [vmem:[#allocation13 + $0x188] sm:$0xff]  ;;  %v3505_v35 = vld [vmem:[#allocation13 + $0x250] sm:$0xff] }
 0xc24   :  { %v3488_v16 = vld [vmem:[#allocation13 + $0x1c8] sm:$0xff] }
 0xc25   :  { %v3023_v10 = vadd.f32 1e-05, %v3020_v42  ;;  %6554 = vmatprep.subr.bf16.mxu0 %v6553_v39  ;;  %v3482_v42 = vld [vmem:[#allocation13 + $0x198] sm:$0xff]  ;;  %v6565_v48 = vpack.c.bf16 %v3488_v16, %v3480_v4  ;;  %v3520_v39 = vld [vmem:[#allocation13 + $0x2c8] sm:$0xff]  ;;  %v3545_v4 = vld [vmem:[#allocation13 + $0x390] sm:$0xff]  ;;  %v6709_v16 = vpack.c.bf16 %v3554_v13, %v3546_v14 }
 0xc26   :  { %v3585_v13 = vld [vmem:[#allocation13 + $0x4d0] sm:$0xff] }
 0xc27   :  { %7433 = vrsqrt.f32 %v3023_v10  ;;  %v6691_v10 = vpack.c.bf16 %v3473_v11, %v3465_v18  ;;  %v3543_v11 = vld [vmem:[#allocation13 + $0x380] sm:$0xff] }
 0xc31   :  { %v7434_v25 = vpop.eup %7433 }
 0xc32   :  { %v3026_v26 = vmul.f32 %v7434_v25, %v3022_v29  ;;  %v3025_v32 = vmul.f32 %v7434_v25, %v3021_v30  ;;  %v3479_v30 = vld [vmem:[#allocation13 + $0x180] sm:$0xff]  ;;  %v3489_v25 = vld [vmem:[#allocation13 + $0x1d0] sm:$0xff] }
 0xc33   :  { %v3487_v29 = vld [vmem:[#allocation13 + $0x1c0] sm:$0xff] }
 0xc34   :  { %v3039_v33 = vmul.f32 %v3035_v24, %v3026_v26  ;;  %v3038_v49 = vmul.f32 %v3031_v23, %v3025_v32  ;;  %v6693_v23 = vpack.c.bf16 %v3490_v21, %v3482_v42  ;;  %v3481_v24 = vld [vmem:[#allocation13 + $0x190] sm:$0xff]  ;;  %v3496_v26 = vld [vmem:[#allocation13 + $0x208] sm:$0xff]  ;;  %v3506_v32 = vld [vmem:[#allocation13 + $0x258] sm:$0xff] }
 0xc35   :  { %v3553_v42 = vld [vmem:[#allocation13 + $0x3d0] sm:$0xff]  ;;  %v3562_v21 = vld [vmem:[#allocation13 + $0x418] sm:$0xff] }
 0xc36   :  { %v3052_v22 = vadd.f32 %v3048_v31, %v3039_v33  ;;  %v3051_v36 = vadd.f32 %v3044_v12, %v3038_v49  ;;  %v3504_v12 = vld [vmem:[#allocation13 + $0x248] sm:$0xff]  ;;  %v3498_v31 = vld [vmem:[#allocation13 + $0x218] sm:$0xff]  ;;  %v6567_v33 = vpack.c.bf16 %v3487_v29, %v3479_v30  ;;  %v6695_v49 = vpack.c.bf16 %v3489_v25, %v3481_v24  ;;  %v3559_v25 = vld [vmem:[#allocation13 + $0x400] sm:$0xff] }
 0xc37   :  { %v6697_v34 = vpack.c.bf16 %v3506_v32, %v3498_v31  ;;  %v3570_v30 = vld [vmem:[#allocation13 + $0x458] sm:$0xff]  ;;  %v3569_v32 = vld [vmem:[#allocation13 + $0x450] sm:$0xff] }
 0xc38   :  { %v3054_v46 = vmax.f32 %v3052_v22, 0.0  ;;  %v3053_v43 = vmax.f32 %v3051_v36, 0.0  ;;  %v6569_v22 = vpack.c.bf16 %v3504_v12, %v3496_v26  ;;  %v3495_v36 = vld [vmem:[#allocation13 + $0x200] sm:$0xff]  ;;  %v3561_v12 = vld [vmem:[#allocation13 + $0x410] sm:$0xff]  ;;  %v6713_v31 = vpack.c.bf16 %v3570_v30, %v3562_v21 }
 0xc39   :  { %v3567_v26 = vld [vmem:[#allocation13 + $0x440] sm:$0xff]  ;;  %v3593_v21 = vld [vmem:[#allocation13 + $0x510] sm:$0xff] }
 0xc3a   :  { %3269 = vmatprep.mubr.f32.mxu0 %v3054_v46  ;;  %3340 = vmatprep.mubr.f32.mxu1 %v3054_v46  ;;  %v3503_v46 = vld [vmem:[#allocation13 + $0x240] sm:$0xff]  ;;  %v3601_v30 = vld [vmem:[#allocation13 + $0x550] sm:$0xff] }
 0xc3b   :  { %3270 = vmatmul.mubr.f32.vlgmr.msra.gmra.mrb[4].mxu0 %v3053_v43  ;;  %3341 = vmatmul.mubr.f32.vlgmr.msra.gmra.mrb[18].mxu1 %v3053_v43  ;;  %v3497_v43 = vld [vmem:[#allocation13 + $0x210] sm:$0xff]  ;;  %v6571_v52 = vpack.c.bf16 %v3503_v46, %v3495_v36  ;;  %v3586_v36 = vld [vmem:[#allocation13 + $0x4d8] sm:$0xff]  ;;  %v6587_v46 = vpack.c.bf16 %v3567_v26, %v3559_v25 }
 0xc3c   :  { %6556 = vmatpush1.bf16.msra.mxu0 %v6555_v51  ;;  %6684 = vmatpush1.bf16.msra.mxu1 %v6683_v57  ;;  %v6699_v50 = vpack.c.bf16 %v3505_v35, %v3497_v43  ;;  %v6573_v51 = vpack.c.bf16 %v3520_v39, %v3512_v37  ;;  %v6701_v57 = vpack.c.bf16 %v3522_v45, %v3514_v44  ;;  %v3183_v37 = vld [vmem:[%s8504_s26] sm:$0xf]  ;;  %v3610_v25 = vld [vmem:[#allocation13 + $0x598] sm:$0xff] }
 0xc3d   :  { %6558 = vmatprep.subr.bf16.mxu0 %v6557_v61  ;;  %6686 = vmatprep.subr.bf16.mxu1 %v6685_v62  ;;  %v3530_v61 = vld [vmem:[#allocation13 + $0x318] sm:$0xff]  ;;  %v6715_v43 = vpack.c.bf16 %v3569_v32, %v3561_v12  ;;  %v3188_v39 = vrot.slane %v3183_v37, %v7984_v2  ;;  %v3196_v44 = vrot.slane %v3183_v37, %v7989_v41  ;;  %v3615_v32 = vld [vmem:[#allocation13 + $0x5c0] sm:$0xff] }
 0xc3e   :  { %v3538_v62 = vld [vmem:[#allocation13 + $0x358] sm:$0xff]  ;;  %v3192_v45 = vrot.slane %v3183_v37, %v7986_v3 }
 0xc3f   :  { %v6705_v60 = vpack.c.bf16 %v3538_v62, %v3530_v61  ;;  %v3618_v12 = vld [vmem:[#allocation13 + $0x5d8] sm:$0xff] }
 0xc40   :  { %6560 = vmatpush1.bf16.msra.mxu0 %v6559_v47  ;;  %6688 = vmatpush1.bf16.msra.mxu1 %v6687_v7  ;;  %v3527_v47 = vld [vmem:[#allocation13 + $0x300] sm:$0xff]  ;;  %v3537_v7 = vld [vmem:[#allocation13 + $0x350] sm:$0xff] }
 0xc41   :  { %6562 = vmatprep.subr.bf16.mxu0 %v6561_v38  ;;  %6690 = vmatprep.subr.bf16.mxu1 %v6689_v53  ;;  %v3544_v38 = vld [vmem:[#allocation13 + $0x388] sm:$0xff]  ;;  %v6579_v53 = vpack.c.bf16 %v3535_v5, %v3527_v47  ;;  %v6707_v17 = vpack.c.bf16 %v3537_v7, %v3529_v6  ;;  %v3575_v7 = vld [vmem:[#allocation13 + $0x480] sm:$0xff] }
 0xc42   :  { %v6581_v18 = vpack.c.bf16 %v3552_v19, %v3544_v38  ;;  %v3583_v38 = vld [vmem:[#allocation13 + $0x4c0] sm:$0xff]  ;;  %v3577_v19 = vld [vmem:[#allocation13 + $0x490] sm:$0xff] }
 0xc43   :  { %v6591_v14 = vpack.c.bf16 %v3583_v38, %v3575_v7  ;;  %v3656_v7 = vld [vmem:[#allocation13 + $0x708] sm:$0xff] }
 0xc44   :  { %6564 = vmatpush1.bf16.msra.mxu0 %v6563_v20  ;;  %6692 = vmatpush1.bf16.msra.mxu1 %v6691_v10  ;;  %v3551_v20 = vld [vmem:[#allocation13 + $0x3c0] sm:$0xff]  ;;  %v3560_v10 = vld [vmem:[#allocation13 + $0x408] sm:$0xff] }
 0xc45   :  { %6566 = vmatprep.subr.bf16.mxu0 %v6565_v48  ;;  %6694 = vmatprep.subr.bf16.mxu1 %v6693_v23  ;;  %v3568_v48 = vld [vmem:[#allocation13 + $0x448] sm:$0xff]  ;;  %v6583_v29 = vpack.c.bf16 %v3551_v20, %v3543_v11  ;;  %v6711_v23 = vpack.c.bf16 %v3553_v42, %v3545_v4  ;;  %v3594_v11 = vld [vmem:[#allocation13 + $0x518] sm:$0xff]  ;;  %v3599_v42 = vld [vmem:[#allocation13 + $0x540] sm:$0xff] }
 0xc46   :  { %v6585_v24 = vpack.c.bf16 %v3568_v48, %v3560_v10  ;;  %v3602_v4 = vld [vmem:[#allocation13 + $0x558] sm:$0xff]  ;;  %v3664_v38 = vld [vmem:[#allocation13 + $0x748] sm:$0xff] }
 0xc47   :  { %v6721_v10 = vpack.c.bf16 %v3602_v4, %v3594_v11  ;;  %v3663_v11 = vld [vmem:[#allocation13 + $0x740] sm:$0xff] }
 0xc48   :  { %6568 = vmatpush1.bf16.msra.mxu0 %v6567_v33  ;;  %6696 = vmatpush1.bf16.msra.mxu1 %v6695_v49  ;;  %v3576_v33 = vld [vmem:[#allocation13 + $0x488] sm:$0xff] }
 0xc49   :  { %6570 = vmatprep.subr.bf16.mxu0 %v6569_v22  ;;  %6698 = vmatprep.subr.bf16.mxu1 %v6697_v34  ;;  %v3584_v49 = vld [vmem:[#allocation13 + $0x4c8] sm:$0xff]  ;;  %v3578_v22 = vld [vmem:[#allocation13 + $0x498] sm:$0xff] }
 0xc4a   :  { %v6589_v34 = vpack.c.bf16 %v3584_v49, %v3576_v33  ;;  %v6717_v35 = vpack.c.bf16 %v3586_v36, %v3578_v22  ;;  %v6725_v33 = vpack.c.bf16 %v3618_v12, %v3610_v25  ;;  %v3609_v22 = vld [vmem:[#allocation13 + $0x590] sm:$0xff]  ;;  %v3679_v25 = vld [vmem:[#allocation13 + $0x7c0] sm:$0xff] }
 0xc4b   :  { %v3617_v36 = vld [vmem:[#allocation13 + $0x5d0] sm:$0xff] }
 0xc4c   :  { %6572 = vmatpush1.bf16.msra.mxu0 %v6571_v52  ;;  %6700 = vmatpush1.bf16.msra.mxu1 %v6699_v50  ;;  %v3673_v12 = vld [vmem:[#allocation13 + $0x790] sm:$0xff] }
 0xc4d   :  { %6574 = vmatprep.subr.bf16.mxu0 %v6573_v51  ;;  %6702 = vmatprep.subr.bf16.mxu1 %v6701_v57  ;;  %v3200_v51 = vrot.slane %v3183_v37, %v7994_v8  ;;  %v3634_v37 = vld [vmem:[#allocation13 + $0x658] sm:$0xff] }
 0xc50   :  { %6576 = vmatpush1.bf16.msra.mxu0 %v6575_v63  ;;  %6704 = vmatpush1.bf16.msra.mxu1 %v6703_v0 }
 0xc51   :  { %6578 = vmatprep.subr.bf16.mxu0 %v6577_v1  ;;  %6706 = vmatprep.subr.bf16.mxu1 %v6705_v60 }
 0xc54   :  { %6580 = vmatpush1.bf16.msra.mxu0 %v6579_v53  ;;  %6708 = vmatpush1.bf16.msra.mxu1 %v6707_v17  ;;  %v6719_v53 = vpack.c.bf16 %v3585_v13, %v3577_v19  ;;  %v3592_v17 = vld [vmem:[#allocation13 + $0x508] sm:$0xff]  ;;  %v3658_v19 = vld [vmem:[#allocation13 + $0x718] sm:$0xff] }
 0xc55   :  { %6582 = vmatprep.subr.bf16.mxu0 %v6581_v18  ;;  %6710 = vmatprep.subr.bf16.mxu1 %v6709_v16  ;;  %v3600_v18 = vld [vmem:[#allocation13 + $0x548] sm:$0xff]  ;;  %v3591_v16 = vld [vmem:[#allocation13 + $0x500] sm:$0xff]  ;;  %v3666_v13 = vld [vmem:[#allocation13 + $0x758] sm:$0xff] }
 0xc56   :  { %v6593_v20 = vpack.c.bf16 %v3600_v18, %v3592_v17  ;;  %v6595_v48 = vpack.c.bf16 %v3599_v42, %v3591_v16  ;;  %v6609_v17 = vpack.c.bf16 %v3664_v38, %v3656_v7  ;;  %v3655_v18 = vld [vmem:[#allocation13 + $0x700] sm:$0xff]  ;;  %v6737_v4 = vpack.c.bf16 %v3666_v13, %v3658_v19  ;;  %v3665_v16 = vld [vmem:[#allocation13 + $0x750] sm:$0xff]  ;;  %v3672_v42 = vld [vmem:[#allocation13 + $0x788] sm:$0xff] }
 0xc58   :  { %6584 = vmatpush1.bf16.msra.mxu0 %v6583_v29  ;;  %6712 = vmatpush1.bf16.msra.mxu1 %v6711_v23  ;;  %v6723_v29 = vpack.c.bf16 %v3601_v30, %v3593_v21  ;;  %v3608_v23 = vld [vmem:[#allocation13 + $0x588] sm:$0xff]  ;;  %v3682_v21 = vld [vmem:[#allocation13 + $0x7d8] sm:$0xff]  ;;  %v6611_v30 = vpack.c.bf16 %v3663_v11, %v3655_v18  ;;  %v3695_v11 = vld [vmem:[#allocation13 + $0x840] sm:$0xff] }
 0xc59   :  { %6586 = vmatprep.subr.bf16.mxu0 %v6585_v24  ;;  %6714 = vmatprep.subr.bf16.mxu1 %v6713_v31  ;;  %v3616_v24 = vld [vmem:[#allocation13 + $0x5c8] sm:$0xff]  ;;  %v3607_v31 = vld [vmem:[#allocation13 + $0x580] sm:$0xff] }
 0xc5a   :  { %v6597_v26 = vpack.c.bf16 %v3616_v24, %v3608_v23  ;;  %v6599_v49 = vpack.c.bf16 %v3615_v32, %v3607_v31  ;;  %v3671_v24 = vld [vmem:[#allocation13 + $0x780] sm:$0xff]  ;;  %v3681_v31 = vld [vmem:[#allocation13 + $0x7d0] sm:$0xff] }
 0xc5b   :  { %v6615_v32 = vpack.c.bf16 %v3679_v25, %v3671_v24 }
 0xc5c   :  { %6588 = vmatpush1.bf16.msra.mxu0 %v6587_v46  ;;  %6716 = vmatpush1.bf16.msra.mxu1 %v6715_v43  ;;  %v3624_v46 = vld [vmem:[#allocation13 + $0x608] sm:$0xff]  ;;  %v6727_v43 = vpack.c.bf16 %v3617_v36, %v3609_v22  ;;  %v3690_v36 = vld [vmem:[#allocation13 + $0x818] sm:$0xff] }
 0xc5d   :  { %6590 = vmatprep.subr.bf16.mxu0 %v6589_v34  ;;  %6718 = vmatprep.subr.bf16.mxu1 %v6717_v35  ;;  %v3632_v34 = vld [vmem:[#allocation13 + $0x648] sm:$0xff]  ;;  %v3626_v35 = vld [vmem:[#allocation13 + $0x618] sm:$0xff] }
 0xc5e   :  { %v3696_v22 = vld [vmem:[#allocation13 + $0x848] sm:$0xff] }
 0xc60   :  { %6592 = vmatpush1.bf16.msra.mxu0 %v6591_v14  ;;  %6720 = vmatpush1.bf16.msra.mxu1 %v6719_v53 }
 0xc61   :  { %6594 = vmatprep.subr.bf16.mxu0 %v6593_v20  ;;  %6722 = vmatprep.subr.bf16.mxu1 %v6721_v10  ;;  %v3657_v20 = vld [vmem:[#allocation13 + $0x710] sm:$0xff]  ;;  %v3680_v10 = vld [vmem:[#allocation13 + $0x7c8] sm:$0xff] }
 0xc62   :  { %v6613_v23 = vpack.c.bf16 %v3680_v10, %v3672_v42  ;;  %v3704_v42 = vld [vmem:[#allocation13 + $0x888] sm:$0xff] }
 0xc64   :  { %6596 = vmatpush1.bf16.msra.mxu0 %v6595_v48  ;;  %6724 = vmatpush1.bf16.msra.mxu1 %v6723_v29  ;;  %v3674_v48 = vld [vmem:[#allocation13 + $0x798] sm:$0xff]  ;;  %v6739_v29 = vpack.c.bf16 %v3665_v16, %v3657_v20  ;;  %v3697_v20 = vld [vmem:[#allocation13 + $0x850] sm:$0xff] }
 0xc65   :  { %6598 = vmatprep.subr.bf16.mxu0 %v6597_v26  ;;  %6726 = vmatprep.subr.bf16.mxu1 %v6725_v33  ;;  %v6741_v26 = vpack.c.bf16 %v3682_v21, %v3674_v48  ;;  %v6743_v33 = vpack.c.bf16 %v3681_v31, %v3673_v12  ;;  %v3712_v21 = vld [vmem:[#allocation13 + $0x8c8] sm:$0xff]  ;;  %v3703_v12 = vld [vmem:[#allocation13 + $0x880] sm:$0xff] }
 0xc66   :  { %v3711_v31 = vld [vmem:[#allocation13 + $0x8c0] sm:$0xff] }
 0xc68   :  { %6600 = vmatpush1.bf16.msra.mxu0 %v6599_v49  ;;  %6728 = vmatpush1.bf16.msra.mxu1 %v6727_v43  ;;  %v3688_v49 = vld [vmem:[#allocation13 + $0x808] sm:$0xff]  ;;  %v3698_v43 = vld [vmem:[#allocation13 + $0x858] sm:$0xff] }
 0xd0e   :  { %v3271_v52 = vpop.f32.mrb[4].mxu0  ;;  %v3342_v50 = vpop.f32.mrb[18].mxu1 }
 0xd0f   :  { %v8266_v54 = vadd.f32 %v3271_v52, %v3188_v39  ;;  %v3273_v55 = vpop.f32.mrb[5].mxu0  ;;  %v3344_v56 = vpop.f32.mrb[19].mxu1  ;;  %v8268_v57 = vadd.f32 %v3342_v50, %v3196_v44  ;;  %v6601_v39 = vpack.c.bf16 %v3632_v34, %v3624_v46  ;;  %v6729_v44 = vpack.c.bf16 %v3634_v37, %v3626_v35  ;;  %v3631_v52 = vld [vmem:[#allocation13 + $0x640] sm:$0xff]  ;;  %v3625_v50 = vld [vmem:[#allocation13 + $0x610] sm:$0xff] }
 0xd10   :  { %v8270_v58 = vadd.f32 %v3273_v55, %v3192_v45  ;;  %v8278_v62 = vadd.f32 %v3344_v56, %v3200_v51  ;;  %v3623_v45 = vld [vmem:[#allocation13 + $0x600] sm:$0xff]  ;;  %v3633_v55 = vld [vmem:[#allocation13 + $0x650] sm:$0xff]  ;;  %v3640_v56 = vld [vmem:[#allocation13 + $0x688] sm:$0xff]  ;;  %v6617_v46 = vpack.c.bf16 %v3696_v22, %v3688_v49  ;;  %v6745_v34 = vpack.c.bf16 %v3698_v43, %v3690_v36 }
 0xd11   :  { %v3355_v59 = vmul.f32 %v8266_v54, %v8266_v54  ;;  %v3357_v63 = vmul.f32 %v8268_v57, %v8268_v57  ;;  %v6603_v51 = vpack.c.bf16 %v3631_v52, %v3623_v45  ;;  %6602 = vmatprep.subr.bf16.mxu0 %v6601_v39  ;;  %6730 = vmatprep.subr.bf16.mxu1 %v6729_v44  ;;  %v3720_v49 = vld [vmem:[#allocation13 + $0x908] sm:$0xff]  ;;  %v3722_v43 = vld [vmem:[#allocation13 + $0x918] sm:$0xff] }
 0xd12   :  { %v3349_v40 = vadd.f32 %v8270_v58, %v8266_v54  ;;  %v3356_v61 = vmul.f32 %v8270_v58, %v8270_v58  ;;  %v3358_v5 = vmul.f32 %v8278_v62, %v8278_v62  ;;  %v6621_v22 = vpack.c.bf16 %v3712_v21, %v3704_v42  ;;  %v3778_v42 = vld [vmem:[#allocation13 + $0xad8] sm:$0xff] }
 0xd13   :  { %6604 = vmatpush1.bf16.msra.mxu0 %v6603_v51  ;;  %v3347_v51 = vld [vmem:[%s8505_s28] sm:$0xf] }
 0xd14   :  { %v3350_v0 = vadd.f32 %v3349_v40, %v8268_v57  ;;  %v3359_v1 = vadd.f32 %v3356_v61, %v3355_v59  ;;  %v3648_v59 = vld [vmem:[#allocation13 + $0x6c8] sm:$0xff]  ;;  %v6731_v40 = vpack.c.bf16 %v3633_v55, %v3625_v50  ;;  %v3348_v55 = vld [vmem:[%s8506_s2] sm:$0xf] }
 0xd15   :  { %v6605_v61 = vpack.c.bf16 %v3648_v59, %v3640_v56  ;;  %v3385_v56 = vrot.slane %v3347_v51, %v7986_v3  ;;  %v3381_v59 = vrot.slane %v3347_v51, %v7984_v2  ;;  %v3414_v7 = vrot.slane %v3348_v55, %v7989_v41 }
 0xd16   :  { %v3351_v47 = vadd.f32 %v3350_v0, %v8278_v62  ;;  %v3360_v6 = vadd.f32 %v3359_v1, %v3357_v63  ;;  %v3642_v63 = vld [vmem:[#allocation13 + $0x698] sm:$0xff]  ;;  %v3639_v1 = vld [vmem:[#allocation13 + $0x680] sm:$0xff]  ;;  %6732 = vmatpush1.bf16.msra.mxu1 %v6731_v40  ;;  %v3393_v40 = vrot.slane %v3347_v51, %v7994_v8 }
 0xd17   :  { %v3650_v0 = vld [vmem:[#allocation13 + $0x6d8] sm:$0xff]  ;;  %6606 = vmatprep.subr.bf16.mxu0 %v6605_v61  ;;  %v3389_v61 = vrot.slane %v3347_v51, %v7989_v41  ;;  %v3721_v51 = vld [vmem:[#allocation13 + $0x910] sm:$0xff] }
 0xd18   :  { %3352 = vadd.xlane.f32.xlu0 %v3351_v47  ;;  %v3361_v60 = vadd.f32 %v3360_v6, %v3358_v5  ;;  %v6733_v47 = vpack.c.bf16 %v3650_v0, %v3642_v63  ;;  %v3647_v5 = vld [vmem:[#allocation13 + $0x6c0] sm:$0xff]  ;;  %v3641_v6 = vld [vmem:[#allocation13 + $0x690] sm:$0xff] }
 0xd19   :  { %v6607_v14 = vpack.c.bf16 %v3647_v5, %v3639_v1 }
 0xd1a   :  { %3362 = vadd.xlane.f32.xlu1 %v3361_v60  ;;  %v3649_v60 = vld [vmem:[#allocation13 + $0x6d0] sm:$0xff]  ;;  %6734 = vmatprep.subr.bf16.mxu1 %v6733_v47 }
 0xd1b   :  { %v6735_v53 = vpack.c.bf16 %v3649_v60, %v3641_v6  ;;  %6608 = vmatpush1.bf16.msra.mxu0 %v6607_v14  ;;  %v3410_v6 = vrot.slane %v3348_v55, %v7986_v3  ;;  %v3406_v60 = vrot.slane %v3348_v55, %v7984_v2 }
 0xd1c   :  { %6610 = vmatprep.subr.bf16.mxu0 %v6609_v17 }
 0xd1d   :  { %6736 = vmatpush1.bf16.msra.mxu1 %v6735_v53  ;;  %v3418_v53 = vrot.slane %v3348_v55, %v7994_v8  ;;  %v3729_v55 = vld [vmem:[#allocation13 + $0x950] sm:$0xff] }
 0xd1e   :  { %6738 = vmatprep.subr.bf16.mxu1 %v6737_v4 }
 0xd1f   :  { %6612 = vmatpush1.bf16.msra.mxu0 %v6611_v30  ;;  %v3706_v30 = vld [vmem:[#allocation13 + $0x898] sm:$0xff] }
 0xd20   :  { %6614 = vmatprep.subr.bf16.mxu0 %v6613_v23 }
 0xd21   :  { %6740 = vmatpush1.bf16.msra.mxu1 %v6739_v29  ;;  %v3714_v29 = vld [vmem:[#allocation13 + $0x8d8] sm:$0xff] }
 0xd22   :  { %6742 = vmatprep.subr.bf16.mxu1 %v6741_v26  ;;  %v6749_v36 = vpack.c.bf16 %v3714_v29, %v3706_v30  ;;  %v3767_v30 = vld [vmem:[#allocation13 + $0xa80] sm:$0xff] }
 0xd23   :  { %6616 = vmatpush1.bf16.msra.mxu0 %v6615_v32  ;;  %v3705_v32 = vld [vmem:[#allocation13 + $0x890] sm:$0xff]  ;;  %v3775_v29 = vld [vmem:[#allocation13 + $0xac0] sm:$0xff] }
 0xd24   :  { %6618 = vmatprep.subr.bf16.mxu0 %v6617_v46  ;;  %v3728_v46 = vld [vmem:[#allocation13 + $0x948] sm:$0xff] }
 0xd25   :  { %6744 = vmatpush1.bf16.msra.mxu1 %v6743_v33  ;;  %v3713_v33 = vld [vmem:[#allocation13 + $0x8d0] sm:$0xff] }
 0xd26   :  { %6746 = vmatprep.subr.bf16.mxu1 %v6745_v34  ;;  %v3730_v34 = vld [vmem:[#allocation13 + $0x958] sm:$0xff] }
 0xda5   :  { %v3353_v35 = vpop.xlane.xlu0 %3352 }
 0xda6   :  { %v3354_v37 = vmul.f32 0.001953125, %v3353_v35 }
 0xda7   :  { %v3363_v39 = vpop.xlane.xlu1 %3362 }
 0xda8   :  { %v3364_v44 = vmul.f32 0.001953125, %v3363_v39  ;;  %v3365_v45 = vmul.f32 %v3354_v37, %v3354_v37  ;;  %v3367_v63 = vsub.f32 %v8266_v54, %v3354_v37  ;;  %v3368_v0 = vsub.f32 %v8270_v58, %v3354_v37  ;;  %v3687_v58 = vld [vmem:[#allocation13 + $0x800] sm:$0xff] }
 0xda9   :  { %v3369_v1 = vsub.f32 %v8268_v57, %v3354_v37  ;;  %v3370_v47 = vsub.f32 %v8278_v62, %v3354_v37  ;;  %v3689_v62 = vld [vmem:[#allocation13 + $0x810] sm:$0xff]  ;;  %v6619_v25 = vpack.c.bf16 %v3695_v11, %v3687_v58  ;;  %v6623_v37 = vpack.c.bf16 %v3711_v31, %v3703_v12  ;;  %v3759_v58 = vld [vmem:[#allocation13 + $0xa40] sm:$0xff] }
 0xdaa   :  { %v3366_v52 = vsub.f32 %v3364_v44, %v3365_v45  ;;  %v6747_v26 = vpack.c.bf16 %v3697_v20, %v3689_v62  ;;  %v6751_v39 = vpack.c.bf16 %v3713_v33, %v3705_v32  ;;  %v3719_v44 = vld [vmem:[#allocation13 + $0x900] sm:$0xff]  ;;  %v3753_v11 = vld [vmem:[#allocation13 + $0xa10] sm:$0xff]  ;;  %v3768_v20 = vld [vmem:[#allocation13 + $0xa88] sm:$0xff] }
 0xdab   :  { %v3727_v45 = vld [vmem:[#allocation13 + $0x940] sm:$0xff]  ;;  %v3761_v62 = vld [vmem:[#allocation13 + $0xa50] sm:$0xff]  ;;  %v3784_v32 = vld [vmem:[#allocation13 + $0xb08] sm:$0xff] }
 0xdac   :  { %v3371_v50 = vadd.f32 1e-05, %v3366_v52  ;;  %v6625_v52 = vpack.c.bf16 %v3728_v46, %v3720_v49  ;;  %v6763_v21 = vpack.c.bf16 %v3761_v62, %v3753_v11  ;;  %v3769_v12 = vld [vmem:[#allocation13 + $0xa90] sm:$0xff]  ;;  %v3792_v33 = vld [vmem:[#allocation13 + $0xb48] sm:$0xff]  ;;  %v3786_v49 = vld [vmem:[#allocation13 + $0xb18] sm:$0xff] }
 0xdad   :  { %v3777_v31 = vld [vmem:[#allocation13 + $0xad0] sm:$0xff]  ;;  %v3834_v11 = vld [vmem:[#allocation13 + $0xc98] sm:$0xff] }
 0xdae   :  { %7435 = vrsqrt.f32 %v3371_v50  ;;  %v6753_v50 = vpack.c.bf16 %v3730_v34, %v3722_v43  ;;  %v6767_v46 = vpack.c.bf16 %v3777_v31, %v3769_v12  ;;  %v3783_v43 = vld [vmem:[#allocation13 + $0xb00] sm:$0xff]  ;;  %v3842_v62 = vld [vmem:[#allocation13 + $0xcd8] sm:$0xff] }
 0xdaf   :  { %v3791_v34 = vld [vmem:[#allocation13 + $0xb40] sm:$0xff]  ;;  %v3850_v12 = vld [vmem:[#allocation13 + $0xd18] sm:$0xff] }
 0xdb0   :  { %v3858_v31 = vld [vmem:[#allocation13 + $0xd58] sm:$0xff] }
 0xdb8   :  { %v7436_v5 = vpop.eup %7435 }
 0xdb9   :  { %v3374_v38 = vmul.f32 %v7436_v5, %v3368_v0  ;;  %v3373_v19 = vmul.f32 %v7436_v5, %v3367_v63  ;;  %v3376_v14 = vmul.f32 %v7436_v5, %v3370_v47  ;;  %v3375_v13 = vmul.f32 %v7436_v5, %v3369_v1  ;;  %v3735_v1 = vld [vmem:[#allocation13 + $0x980] sm:$0xff] }
 0xdba   :  { %v6627_v63 = vpack.c.bf16 %v3727_v45, %v3719_v44  ;;  %v6755_v0 = vpack.c.bf16 %v3729_v55, %v3721_v51  ;;  %v3743_v47 = vld [vmem:[#allocation13 + $0x9c0] sm:$0xff]  ;;  %v3785_v44 = vld [vmem:[#allocation13 + $0xb10] sm:$0xff]  ;;  %v3802_v51 = vld [vmem:[#allocation13 + $0xb98] sm:$0xff] }
 0xdbb   :  { %v3399_v54 = vmul.f32 %v3385_v56, %v3374_v38  ;;  %v3398_v17 = vmul.f32 %v3381_v59, %v3373_v19  ;;  %v3401_v18 = vmul.f32 %v3393_v40, %v3376_v14  ;;  %v3400_v57 = vmul.f32 %v3389_v61, %v3375_v13  ;;  %v3736_v56 = vld [vmem:[#allocation13 + $0x988] sm:$0xff]  ;;  %v3738_v40 = vld [vmem:[#allocation13 + $0x998] sm:$0xff]  ;;  %v3793_v45 = vld [vmem:[#allocation13 + $0xb50] sm:$0xff] }
 0xdbc   :  { %v3744_v59 = vld [vmem:[#allocation13 + $0x9c8] sm:$0xff]  ;;  %v3746_v61 = vld [vmem:[#allocation13 + $0x9d8] sm:$0xff] }
 0xdbd   :  { %v3424_v4 = vadd.f32 %v3410_v6, %v3399_v54  ;;  %v3423_v16 = vadd.f32 %v3406_v60, %v3398_v17  ;;  %v8300_v10 = vadd.f32 %v3414_v7, %v3400_v57  ;;  %v3426_v48 = vadd.f32 %v3418_v53, %v3401_v18  ;;  %v3737_v60 = vld [vmem:[#allocation13 + $0x990] sm:$0xff]  ;;  %v3752_v38 = vld [vmem:[#allocation13 + $0xa08] sm:$0xff]  ;;  %v3754_v14 = vld [vmem:[#allocation13 + $0xa18] sm:$0xff] }
 0xdbe   :  { %v6629_v5 = vpack.c.bf16 %v3744_v59, %v3736_v56  ;;  %v6757_v6 = vpack.c.bf16 %v3746_v61, %v3738_v40  ;;  %v3745_v7 = vld [vmem:[#allocation13 + $0x9d0] sm:$0xff]  ;;  %v3760_v19 = vld [vmem:[#allocation13 + $0xa48] sm:$0xff]  ;;  %v3762_v13 = vld [vmem:[#allocation13 + $0xa58] sm:$0xff]  ;;  %v6631_v53 = vpack.c.bf16 %v3743_v47, %v3735_v1  ;;  %v6643_v56 = vpack.c.bf16 %v3791_v34, %v3783_v43 }
 0xdbf   :  { %v8302_v23 = vmax.f32 %v3424_v4, 0.0  ;;  %v8304_v24 = vmax.f32 %v3423_v16, 0.0  ;;  %v8310_v35 = vmax.f32 %v3426_v48, 0.0  ;;  %v6759_v54 = vpack.c.bf16 %v3745_v7, %v3737_v60  ;;  %v3751_v17 = vld [vmem:[#allocation13 + $0xa00] sm:$0xff]  ;;  %v3776_v4 = vld [vmem:[#allocation13 + $0xac8] sm:$0xff]  ;;  %v3770_v16 = vld [vmem:[#allocation13 + $0xa98] sm:$0xff] }
 0xdc0   :  { %v6633_v18 = vpack.c.bf16 %v3760_v19, %v3752_v38  ;;  %v6761_v57 = vpack.c.bf16 %v3762_v13, %v3754_v14  ;;  %v6635_v48 = vpack.c.bf16 %v3759_v58, %v3751_v17  ;;  %v3810_v55 = vld [vmem:[#allocation13 + $0xbd8] sm:$0xff]  ;;  %v6771_v59 = vpack.c.bf16 %v3793_v45, %v3785_v44  ;;  %v3799_v40 = vld [vmem:[#allocation13 + $0xb80] sm:$0xff]  ;;  %v3801_v1 = vld [vmem:[#allocation13 + $0xb90] sm:$0xff] }
 0xdc1   :  { %4049 = vmatprep.mubr.f32.mxu0 %v8302_v23  ;;  %4191 = vmatprep.mubr.f32.mxu1 %v8302_v23  ;;  %v3807_v61 = vld [vmem:[#allocation13 + $0xbc0] sm:$0xff]  ;;  %v3809_v47 = vld [vmem:[#allocation13 + $0xbd0] sm:$0xff]  ;;  %v3818_v60 = vld [vmem:[#allocation13 + $0xc18] sm:$0xff] }
 0xdc2   :  { %4050 = vmatmul.mubr.f32.vlgmr.msra.gmra.mrb[6].mxu0 %v8304_v24  ;;  %4192 = vmatmul.mubr.f32.vlgmr.msra.gmra.mrb[20].mxu1 %v8304_v24  ;;  %v3826_v7 = vld [vmem:[#allocation13 + $0xc58] sm:$0xff]  ;;  %v6647_v38 = vpack.c.bf16 %v3807_v61, %v3799_v40  ;;  %v6775_v19 = vpack.c.bf16 %v3809_v47, %v3801_v1  ;;  %v3815_v14 = vld [vmem:[#allocation13 + $0xc00] sm:$0xff]  ;;  %v3817_v17 = vld [vmem:[#allocation13 + $0xc10] sm:$0xff] }
 0xdc3   :  { %6620 = vmatpush1.bf16.msra.mxu0 %v6619_v25  ;;  %6748 = vmatpush1.bf16.msra.mxu1 %v6747_v26  ;;  %v6637_v25 = vpack.c.bf16 %v3776_v4, %v3768_v20  ;;  %v6765_v26 = vpack.c.bf16 %v3778_v42, %v3770_v16  ;;  %v3823_v13 = vld [vmem:[#allocation13 + $0xc40] sm:$0xff]  ;;  %v3825_v58 = vld [vmem:[#allocation13 + $0xc50] sm:$0xff]  ;;  %v3866_v44 = vld [vmem:[#allocation13 + $0xd98] sm:$0xff] }
 0xdc4   :  { %4120 = vmatprep.mubr.f32.mxu0 %v8310_v35  ;;  %4262 = vmatprep.mubr.f32.mxu1 %v8310_v35  ;;  %v6651_v20 = vpack.c.bf16 %v3823_v13, %v3815_v14  ;;  %v6779_v4 = vpack.c.bf16 %v3825_v58, %v3817_v17  ;;  %v3831_v16 = vld [vmem:[#allocation13 + $0xc80] sm:$0xff]  ;;  %v3849_v43 = vld [vmem:[#allocation13 + $0xd10] sm:$0xff]  ;;  %v3874_v45 = vld [vmem:[#allocation13 + $0xdd8] sm:$0xff] }
 0xdc5   :  { %6622 = vmatprep.subr.bf16.mxu0 %v6621_v22  ;;  %6750 = vmatprep.subr.bf16.mxu1 %v6749_v36  ;;  %v3794_v22 = vld [vmem:[#allocation13 + $0xb58] sm:$0xff]  ;;  %v6639_v36 = vpack.c.bf16 %v3775_v29, %v3767_v30  ;;  %v3839_v42 = vld [vmem:[#allocation13 + $0xcc0] sm:$0xff]  ;;  %v3833_v30 = vld [vmem:[#allocation13 + $0xc90] sm:$0xff] }
 0xdc6   :  { %v3841_v29 = vld [vmem:[#allocation13 + $0xcd0] sm:$0xff]  ;;  %v3882_v1 = vld [vmem:[#allocation13 + $0xe18] sm:$0xff] }
 0xdc7   :  { %6624 = vmatpush1.bf16.msra.mxu0 %v6623_v37  ;;  %6752 = vmatpush1.bf16.msra.mxu1 %v6751_v39  ;;  %v6641_v37 = vpack.c.bf16 %v3792_v33, %v3784_v32  ;;  %v6769_v39 = vpack.c.bf16 %v3794_v22, %v3786_v49  ;;  %v6655_v32 = vpack.c.bf16 %v3839_v42, %v3831_v16  ;;  %v3847_v49 = vld [vmem:[#allocation13 + $0xd00] sm:$0xff]  ;;  %v3857_v34 = vld [vmem:[#allocation13 + $0xd50] sm:$0xff]  ;;  %v3890_v47 = vld [vmem:[#allocation13 + $0xe58] sm:$0xff] }
 0xdc8   :  { %6626 = vmatprep.subr.bf16.mxu0 %v6625_v52  ;;  %6754 = vmatprep.subr.bf16.mxu1 %v6753_v50  ;;  %v3800_v52 = vld [vmem:[#allocation13 + $0xb88] sm:$0xff]  ;;  %v6783_v33 = vpack.c.bf16 %v3841_v29, %v3833_v30  ;;  %v3855_v22 = vld [vmem:[#allocation13 + $0xd40] sm:$0xff]  ;;  %v3865_v40 = vld [vmem:[#allocation13 + $0xd90] sm:$0xff] }
 0xdc9   :  { %v3808_v50 = vld [vmem:[#allocation13 + $0xbc8] sm:$0xff]  ;;  %v3873_v61 = vld [vmem:[#allocation13 + $0xdd0] sm:$0xff]  ;;  %v3898_v17 = vld [vmem:[#allocation13 + $0xe98] sm:$0xff] }
 0xdca   :  { %v3881_v14 = vld [vmem:[#allocation13 + $0xe10] sm:$0xff]  ;;  %v3906_v58 = vld [vmem:[#allocation13 + $0xed8] sm:$0xff] }
 0xdcb   :  { %6628 = vmatpush1.bf16.msra.mxu0 %v6627_v63  ;;  %6756 = vmatpush1.bf16.msra.mxu1 %v6755_v0  ;;  %v6645_v63 = vpack.c.bf16 %v3808_v50, %v3800_v52  ;;  %v6773_v0 = vpack.c.bf16 %v3810_v55, %v3802_v51  ;;  %v6659_v52 = vpack.c.bf16 %v3855_v22, %v3847_v49  ;;  %v3863_v51 = vld [vmem:[#allocation13 + $0xd80] sm:$0xff]  ;;  %v3889_v13 = vld [vmem:[#allocation13 + $0xe50] sm:$0xff]  ;;  %v3914_v30 = vld [vmem:[#allocation13 + $0xf18] sm:$0xff] }
 0xdcc   :  { %6630 = vmatprep.subr.bf16.mxu0 %v6629_v5  ;;  %6758 = vmatprep.subr.bf16.mxu1 %v6757_v6  ;;  %v3816_v5 = vld [vmem:[#allocation13 + $0xc08] sm:$0xff]  ;;  %v6787_v50 = vpack.c.bf16 %v3857_v34, %v3849_v43  ;;  %v3871_v55 = vld [vmem:[#allocation13 + $0xdc0] sm:$0xff]  ;;  %v3897_v16 = vld [vmem:[#allocation13 + $0xe90] sm:$0xff] }
 0xdcd   :  { %v3824_v6 = vld [vmem:[#allocation13 + $0xc48] sm:$0xff]  ;;  %v3905_v42 = vld [vmem:[#allocation13 + $0xed0] sm:$0xff]  ;;  %v3922_v29 = vld [vmem:[#allocation13 + $0xf58] sm:$0xff] }
 0xdce   :  { %v3913_v49 = vld [vmem:[#allocation13 + $0xf10] sm:$0xff]  ;;  %v3930_v43 = vld [vmem:[#allocation13 + $0xf98] sm:$0xff] }
 0xdcf   :  { %6632 = vmatpush1.bf16.msra.mxu0 %v6631_v53  ;;  %6760 = vmatpush1.bf16.msra.mxu1 %v6759_v54  ;;  %v6649_v53 = vpack.c.bf16 %v3824_v6, %v3816_v5  ;;  %v6777_v54 = vpack.c.bf16 %v3826_v7, %v3818_v60  ;;  %v6663_v5 = vpack.c.bf16 %v3871_v55, %v3863_v51  ;;  %v3879_v60 = vld [vmem:[#allocation13 + $0xe00] sm:$0xff]  ;;  %v3921_v22 = vld [vmem:[#allocation13 + $0xf50] sm:$0xff]  ;;  %v3938_v34 = vld [vmem:[#allocation13 + $0xfd8] sm:$0xff] }
 0xdd0   :  { %6634 = vmatprep.subr.bf16.mxu0 %v6633_v18  ;;  %6762 = vmatprep.subr.bf16.mxu1 %v6761_v57  ;;  %v3832_v18 = vld [vmem:[#allocation13 + $0xc88] sm:$0xff]  ;;  %v6791_v6 = vpack.c.bf16 %v3873_v61, %v3865_v40  ;;  %v3887_v7 = vld [vmem:[#allocation13 + $0xe40] sm:$0xff]  ;;  %v3929_v51 = vld [vmem:[#allocation13 + $0xf90] sm:$0xff] }
 0xdd1   :  { %v3840_v57 = vld [vmem:[#allocation13 + $0xcc8] sm:$0xff]  ;;  %v3937_v55 = vld [vmem:[#allocation13 + $0xfd0] sm:$0xff]  ;;  %v3438_v40 = vld [vmem:[#allocation13 + $0x38] sm:$0xff] }
 0xdd2   :  { %v3446_v61 = vld [vmem:[#allocation13 + $0x78] sm:$0xff] }
 0xdd3   :  { %6636 = vmatpush1.bf16.msra.mxu0 %v6635_v48  ;;  %6764 = vmatpush1.bf16.msra.mxu1 %v6763_v21  ;;  %v6653_v48 = vpack.c.bf16 %v3840_v57, %v3832_v18  ;;  %v6781_v21 = vpack.c.bf16 %v3842_v62, %v3834_v11  ;;  %v6667_v18 = vpack.c.bf16 %v3887_v7, %v3879_v60  ;;  %v3895_v11 = vld [vmem:[#allocation13 + $0xe80] sm:$0xff]  ;;  %v3437_v60 = vld [vmem:[#allocation13 + $0x30] sm:$0xff] }
 0xdd4   :  { %6638 = vmatprep.subr.bf16.mxu0 %v6637_v25  ;;  %6766 = vmatprep.subr.bf16.mxu1 %v6765_v26  ;;  %v3848_v25 = vld [vmem:[#allocation13 + $0xd08] sm:$0xff]  ;;  %v6795_v57 = vpack.c.bf16 %v3889_v13, %v3881_v14  ;;  %v3903_v62 = vld [vmem:[#allocation13 + $0xec0] sm:$0xff]  ;;  %v3445_v7 = vld [vmem:[#allocation13 + $0x70] sm:$0xff] }
 0xdd5   :  { %v3856_v26 = vld [vmem:[#allocation13 + $0xd48] sm:$0xff]  ;;  %v3454_v14 = vld [vmem:[#allocation13 + $0xb8] sm:$0xff] }
 0xdd6   :  { %v3462_v13 = vld [vmem:[#allocation13 + $0xf8] sm:$0xff] }
 0xdd7   :  { %6640 = vmatpush1.bf16.msra.mxu0 %v6639_v36  ;;  %6768 = vmatpush1.bf16.msra.mxu1 %v6767_v46  ;;  %v6657_v36 = vpack.c.bf16 %v3856_v26, %v3848_v25  ;;  %v6785_v46 = vpack.c.bf16 %v3858_v31, %v3850_v12  ;;  %v6671_v25 = vpack.c.bf16 %v3903_v62, %v3895_v11  ;;  %v3911_v12 = vld [vmem:[#allocation13 + $0xf00] sm:$0xff] }
 0xdd8   :  { %6642 = vmatprep.subr.bf16.mxu0 %v6641_v37  ;;  %6770 = vmatprep.subr.bf16.mxu1 %v6769_v39  ;;  %v3864_v37 = vld [vmem:[#allocation13 + $0xd88] sm:$0xff]  ;;  %v6799_v26 = vpack.c.bf16 %v3905_v42, %v3897_v16  ;;  %v3919_v31 = vld [vmem:[#allocation13 + $0xf40] sm:$0xff]  ;;  %v6941_v62 = vpack.c.bf16 %v3462_v13, %v3454_v14  ;;  %v3470_v42 = vld [vmem:[#allocation13 + $0x138] sm:$0xff] }
 0xdd9   :  { %v3872_v39 = vld [vmem:[#allocation13 + $0xdc8] sm:$0xff]  ;;  %v3515_v14 = vld [vmem:[#allocation13 + $0x2a0] sm:$0xff] }
 0xdda   :  { %v3476_v16 = vld [vmem:[#allocation13 + $0x168] sm:$0xff]  ;;  %v3523_v13 = vld [vmem:[#allocation13 + $0x2e0] sm:$0xff] }
 0xddb   :  { %6644 = vmatpush1.bf16.msra.mxu0 %v6643_v56  ;;  %6772 = vmatpush1.bf16.msra.mxu1 %v6771_v59  ;;  %v6661_v56 = vpack.c.bf16 %v3872_v39, %v3864_v37  ;;  %v6789_v59 = vpack.c.bf16 %v3874_v45, %v3866_v44  ;;  %v6675_v37 = vpack.c.bf16 %v3919_v31, %v3911_v12  ;;  %v3927_v44 = vld [vmem:[#allocation13 + $0xf80] sm:$0xff]  ;;  %v3477_v31 = vld [vmem:[#allocation13 + $0x170] sm:$0xff] }
 0xddc   :  { %6646 = vmatprep.subr.bf16.mxu0 %v6645_v63  ;;  %6774 = vmatprep.subr.bf16.mxu1 %v6773_v0  ;;  %v3880_v63 = vld [vmem:[#allocation13 + $0xe08] sm:$0xff]  ;;  %v6803_v39 = vpack.c.bf16 %v3921_v22, %v3913_v49  ;;  %v3935_v45 = vld [vmem:[#allocation13 + $0xfc0] sm:$0xff]  ;;  %v3486_v49 = vld [vmem:[#allocation13 + $0x1b8] sm:$0xff] }
 0xddd   :  { %v3888_v0 = vld [vmem:[#allocation13 + $0xe48] sm:$0xff]  ;;  %v3494_v22 = vld [vmem:[#allocation13 + $0x1f8] sm:$0xff] }
 0xddf   :  { %6648 = vmatpush1.bf16.msra.mxu0 %v6647_v38  ;;  %6776 = vmatpush1.bf16.msra.mxu1 %v6775_v19  ;;  %v6665_v38 = vpack.c.bf16 %v3888_v0, %v3880_v63  ;;  %v6793_v19 = vpack.c.bf16 %v3890_v47, %v3882_v1  ;;  %v6679_v63 = vpack.c.bf16 %v3935_v45, %v3927_v44  ;;  %v3493_v44 = vld [vmem:[#allocation13 + $0x1f0] sm:$0xff]  ;;  %v3500_v45 = vld [vmem:[#allocation13 + $0x228] sm:$0xff] }
 0xde0   :  { %6650 = vmatprep.subr.bf16.mxu0 %v6649_v53  ;;  %6778 = vmatprep.subr.bf16.mxu1 %v6777_v54  ;;  %v3896_v53 = vld [vmem:[#allocation13 + $0xe88] sm:$0xff]  ;;  %v6807_v0 = vpack.c.bf16 %v3937_v55, %v3929_v51  ;;  %v6937_v47 = vpack.c.bf16 %v3446_v61, %v3438_v40  ;;  %v3510_v51 = vld [vmem:[#allocation13 + $0x278] sm:$0xff]  ;;  %v3499_v40 = vld [vmem:[#allocation13 + $0x220] sm:$0xff] }
 0xde1   :  { %v3904_v54 = vld [vmem:[#allocation13 + $0xec8] sm:$0xff]  ;;  %v3507_v61 = vld [vmem:[#allocation13 + $0x260] sm:$0xff] }
 0xde3   :  { %6652 = vmatpush1.bf16.msra.mxu0 %v6651_v20  ;;  %6780 = vmatpush1.bf16.msra.mxu1 %v6779_v4  ;;  %v6669_v20 = vpack.c.bf16 %v3904_v54, %v3896_v53  ;;  %v6797_v4 = vpack.c.bf16 %v3906_v58, %v3898_v17  ;;  %v8315_v54 = vmax.f32 %v8300_v10, 0.0  ;;  %v6939_v17 = vpack.c.bf16 %v3445_v7, %v3437_v60  ;;  %v3451_v58 = vld [vmem:[#allocation13 + $0xa0] sm:$0xff]  ;;  %v3526_v60 = vld [vmem:[#allocation13 + $0x2f8] sm:$0xff] }
 0xde4   :  { %6654 = vmatprep.subr.bf16.mxu0 %v6653_v48  ;;  %6782 = vmatprep.subr.bf16.mxu1 %v6781_v21  ;;  %v3912_v48 = vld [vmem:[#allocation13 + $0xf08] sm:$0xff]  ;;  %v6827_v7 = vpack.c.bf16 %v3507_v61, %v3499_v40 }
 0xde5   :  { %v3920_v21 = vld [vmem:[#allocation13 + $0xf48] sm:$0xff] }
 0xde6   :  { %v3580_v40 = vld [vmem:[#allocation13 + $0x4a8] sm:$0xff] }
 0xde7   :  { %6656 = vmatpush1.bf16.msra.mxu0 %v6655_v32  ;;  %6784 = vmatpush1.bf16.msra.mxu1 %v6783_v33  ;;  %v6673_v32 = vpack.c.bf16 %v3920_v21, %v3912_v48  ;;  %v6801_v33 = vpack.c.bf16 %v3922_v29, %v3914_v30  ;;  %v3478_v48 = vld [vmem:[#allocation13 + $0x178] sm:$0xff]  ;;  %v3467_v29 = vld [vmem:[#allocation13 + $0x120] sm:$0xff]  ;;  %v3588_v61 = vld [vmem:[#allocation13 + $0x4e8] sm:$0xff] }
 0xde8   :  { %6658 = vmatprep.subr.bf16.mxu0 %v6657_v36  ;;  %6786 = vmatprep.subr.bf16.mxu1 %v6785_v46  ;;  %v3928_v36 = vld [vmem:[#allocation13 + $0xf88] sm:$0xff]  ;;  %v6945_v12 = vpack.c.bf16 %v3478_v48, %v3470_v42  ;;  %v3531_v42 = vld [vmem:[#allocation13 + $0x320] sm:$0xff] }
 0xde9   :  { %v3936_v46 = vld [vmem:[#allocation13 + $0xfc8] sm:$0xff]  ;;  %v3539_v48 = vld [vmem:[#allocation13 + $0x360] sm:$0xff] }
 0xdeb   :  { %6660 = vmatpush1.bf16.msra.mxu0 %v6659_v52  ;;  %6788 = vmatpush1.bf16.msra.mxu1 %v6787_v50  ;;  %v6677_v52 = vpack.c.bf16 %v3936_v46, %v3928_v36  ;;  %v6805_v50 = vpack.c.bf16 %v3938_v34, %v3930_v43  ;;  %v3491_v34 = vld [vmem:[#allocation13 + $0x1e0] sm:$0xff] }
 0xdec   :  { %6662 = vmatprep.subr.bf16.mxu0 %v6661_v56  ;;  %6790 = vmatprep.subr.bf16.mxu1 %v6789_v59  ;;  %v3436_v56 = vld [vmem:[#allocation13 + $0x28] sm:$0xff] }
 0xded   :  { %v3444_v59 = vld [vmem:[#allocation13 + $0x68] sm:$0xff] }
 0xdee   :  { %v6809_v1 = vpack.c.bf16 %v3444_v59, %v3436_v56 }
 0xdef   :  { %6664 = vmatpush1.bf16.msra.mxu0 %v6663_v5  ;;  %6792 = vmatpush1.bf16.msra.mxu1 %v6791_v6  ;;  %v3435_v5 = vld [vmem:[#allocation13 + $0x20] sm:$0xff] }
 0xdf0   :  { %6666 = vmatprep.subr.bf16.mxu0 %v6665_v38  ;;  %6794 = vmatprep.subr.bf16.mxu1 %v6793_v19  ;;  %v3443_v6 = vld [vmem:[#allocation13 + $0x60] sm:$0xff]  ;;  %v3452_v38 = vld [vmem:[#allocation13 + $0xa8] sm:$0xff] }
 0xdf1   :  { %v3460_v19 = vld [vmem:[#allocation13 + $0xe8] sm:$0xff]  ;;  %v6811_v53 = vpack.c.bf16 %v3443_v6, %v3435_v5  ;;  %v3518_v6 = vld [vmem:[#allocation13 + $0x2b8] sm:$0xff] }
 0xdf2   :  { %v6813_v11 = vpack.c.bf16 %v3460_v19, %v3452_v38  ;;  %v3524_v5 = vld [vmem:[#allocation13 + $0x2e8] sm:$0xff] }
 0xdf3   :  { %6668 = vmatpush1.bf16.msra.mxu0 %v6667_v18  ;;  %6796 = vmatpush1.bf16.msra.mxu1 %v6795_v57  ;;  %v3459_v18 = vld [vmem:[#allocation13 + $0xe0] sm:$0xff]  ;;  %v3453_v57 = vld [vmem:[#allocation13 + $0xb0] sm:$0xff] }
 0xdf4   :  { %6670 = vmatprep.subr.bf16.mxu0 %v6669_v20  ;;  %6798 = vmatprep.subr.bf16.mxu1 %v6797_v4  ;;  %v3461_v20 = vld [vmem:[#allocation13 + $0xf0] sm:$0xff]  ;;  %v3468_v4 = vld [vmem:[#allocation13 + $0x128] sm:$0xff]  ;;  %v6815_v10 = vpack.c.bf16 %v3459_v18, %v3451_v58 }
 0xdf5   :  { %v6943_v21 = vpack.c.bf16 %v3461_v20, %v3453_v57  ;;  %v6817_v30 = vpack.c.bf16 %v3476_v16, %v3468_v4  ;;  %v3525_v58 = vld [vmem:[#allocation13 + $0x2f0] sm:$0xff]  ;;  %v3532_v18 = vld [vmem:[#allocation13 + $0x328] sm:$0xff]  ;;  %v6831_v20 = vpack.c.bf16 %v3523_v13, %v3515_v14 }
 0xdf6   :  { %v3540_v57 = vld [vmem:[#allocation13 + $0x368] sm:$0xff] }
 0xdf7   :  { %6672 = vmatpush1.bf16.msra.mxu0 %v6671_v25  ;;  %6800 = vmatpush1.bf16.msra.mxu1 %v6799_v26  ;;  %v3475_v25 = vld [vmem:[#allocation13 + $0x160] sm:$0xff]  ;;  %v3469_v26 = vld [vmem:[#allocation13 + $0x130] sm:$0xff]  ;;  %v6833_v16 = vpack.c.bf16 %v3540_v57, %v3532_v18  ;;  %v3596_v14 = vld [vmem:[#allocation13 + $0x528] sm:$0xff] }
 0xdf8   :  { %6674 = vmatprep.subr.bf16.mxu0 %v6673_v32  ;;  %6802 = vmatprep.subr.bf16.mxu1 %v6801_v33  ;;  %v3484_v32 = vld [vmem:[#allocation13 + $0x1a8] sm:$0xff]  ;;  %v6819_v36 = vpack.c.bf16 %v3475_v25, %v3467_v29  ;;  %v6947_v46 = vpack.c.bf16 %v3477_v31, %v3469_v26  ;;  %v3550_v26 = vld [vmem:[#allocation13 + $0x3b8] sm:$0xff]  ;;  %v6835_v31 = vpack.c.bf16 %v3539_v48, %v3531_v42 }
 0xdf9   :  { %v3492_v33 = vld [vmem:[#allocation13 + $0x1e8] sm:$0xff] }
 0xdfa   :  { %v6821_v43 = vpack.c.bf16 %v3492_v33, %v3484_v32  ;;  %v3548_v29 = vld [vmem:[#allocation13 + $0x3a8] sm:$0xff] }
 0xdfb   :  { %6676 = vmatpush1.bf16.msra.mxu0 %v6675_v37  ;;  %6804 = vmatpush1.bf16.msra.mxu1 %v6803_v39  ;;  %v3485_v37 = vld [vmem:[#allocation13 + $0x1b0] sm:$0xff]  ;;  %v6949_v39 = vpack.c.bf16 %v3494_v22, %v3486_v49  ;;  %v3556_v25 = vld [vmem:[#allocation13 + $0x3e8] sm:$0xff]  ;;  %v3547_v49 = vld [vmem:[#allocation13 + $0x3a0] sm:$0xff] }
 0xdfc   :  { %6678 = vmatprep.subr.bf16.mxu0 %v6677_v52  ;;  %6806 = vmatprep.subr.bf16.mxu1 %v6805_v50  ;;  %v3508_v52 = vld [vmem:[#allocation13 + $0x268] sm:$0xff]  ;;  %v3502_v50 = vld [vmem:[#allocation13 + $0x238] sm:$0xff]  ;;  %v6951_v56 = vpack.c.bf16 %v3493_v44, %v3485_v37  ;;  %v6837_v33 = vpack.c.bf16 %v3556_v25, %v3548_v29  ;;  %v3555_v22 = vld [vmem:[#allocation13 + $0x3e0] sm:$0xff] }
 0xdfd   :  { %v6825_v59 = vpack.c.bf16 %v3508_v52, %v3500_v45  ;;  %v3566_v37 = vld [vmem:[#allocation13 + $0x438] sm:$0xff]  ;;  %v6839_v44 = vpack.c.bf16 %v3555_v22, %v3547_v49  ;;  %v3604_v13 = vld [vmem:[#allocation13 + $0x568] sm:$0xff] }
 0xdfe   :  { %v6849_v57 = vpack.c.bf16 %v3604_v13, %v3596_v14  ;;  %v3612_v42 = vld [vmem:[#allocation13 + $0x5a8] sm:$0xff] }
 0xdff   :  { %6680 = vmatpush1.bf16.msra.mxu0 %v6679_v63  ;;  %6808 = vmatpush1.bf16.msra.mxu1 %v6807_v0  ;;  %v3501_v63 = vld [vmem:[#allocation13 + $0x230] sm:$0xff]  ;;  %v6953_v0 = vpack.c.bf16 %v3510_v51, %v3502_v50  ;;  %v3563_v50 = vld [vmem:[#allocation13 + $0x420] sm:$0xff]  ;;  %v3620_v48 = vld [vmem:[#allocation13 + $0x5e8] sm:$0xff] }
 0xe00   :  { %6810 = vmatprep.subr.bf16.mxu0 %v6809_v1  ;;  %6938 = vmatprep.subr.bf16.mxu1 %v6937_v47  ;;  %v3509_v1 = vld [vmem:[#allocation13 + $0x270] sm:$0xff]  ;;  %v3516_v47 = vld [vmem:[#allocation13 + $0x2a8] sm:$0xff]  ;;  %v3571_v51 = vld [vmem:[#allocation13 + $0x460] sm:$0xff]  ;;  %v6853_v25 = vpack.c.bf16 %v3620_v48, %v3612_v42 }
 0xe01   :  { %v6955_v38 = vpack.c.bf16 %v3509_v1, %v3501_v63  ;;  %v6829_v19 = vpack.c.bf16 %v3524_v5, %v3516_v47  ;;  %v3582_v63 = vld [vmem:[#allocation13 + $0x4b8] sm:$0xff]  ;;  %v6843_v1 = vpack.c.bf16 %v3571_v51, %v3563_v50  ;;  %v6845_v5 = vpack.c.bf16 %v3588_v61, %v3580_v40  ;;  %v3628_v49 = vld [vmem:[#allocation13 + $0x628] sm:$0xff] }
 0xe02   :  { %4121 = vmatmul.mubr.f32.vlgmr.msra.gmra.mrb[6].mxu0 %v8315_v54  ;;  %4263 = vmatmul.mubr.f32.vlgmr.msra.gmra.mrb[20].mxu1 %v8315_v54  ;;  %v3636_v22 = vld [vmem:[#allocation13 + $0x668] sm:$0xff] }
 0xe03   :  { %6812 = vmatpush1.bf16.msra.mxu0 %v6811_v53  ;;  %4333 = vmatprep.mubr.f32.mxu0 %v8302_v23  ;;  %v3517_v53 = vld [vmem:[#allocation13 + $0x2b0] sm:$0xff]  ;;  %v3644_v50 = vld [vmem:[#allocation13 + $0x6a8] sm:$0xff] }
 0xe04   :  { %6940 = vmatpush1.bf16.msra.mxu1 %v6939_v17  ;;  %4475 = vmatprep.mubr.f32.mxu1 %v8302_v23  ;;  %v3483_v23 = vld [vmem:[#allocation13 + $0x1a0] sm:$0xff]  ;;  %v6957_v17 = vpack.c.bf16 %v3526_v60, %v3518_v6  ;;  %v6959_v4 = vpack.c.bf16 %v3525_v58, %v3517_v53  ;;  %v3598_v53 = vld [vmem:[#allocation13 + $0x538] sm:$0xff]  ;;  %v3652_v51 = vld [vmem:[#allocation13 + $0x6e8] sm:$0xff] }
 0xe05   :  { %6814 = vmatprep.subr.bf16.mxu0 %v6813_v11  ;;  %6942 = vmatprep.subr.bf16.mxu1 %v6941_v62  ;;  %v6823_v55 = vpack.c.bf16 %v3491_v34, %v3483_v23  ;;  %v3534_v11 = vld [vmem:[#allocation13 + $0x338] sm:$0xff]  ;;  %v3564_v23 = vld [vmem:[#allocation13 + $0x428] sm:$0xff]  ;;  %v3579_v6 = vld [vmem:[#allocation13 + $0x4a0] sm:$0xff]  ;;  %v6861_v61 = vpack.c.bf16 %v3652_v51, %v3644_v50 }
 0xe06   :  { %v3542_v62 = vld [vmem:[#allocation13 + $0x378] sm:$0xff]  ;;  %v3572_v34 = vld [vmem:[#allocation13 + $0x468] sm:$0xff]  ;;  %v3587_v60 = vld [vmem:[#allocation13 + $0x4e0] sm:$0xff] }
 0xe07   :  { %6816 = vmatpush1.bf16.msra.mxu0 %v6815_v10  ;;  %v3533_v10 = vld [vmem:[#allocation13 + $0x330] sm:$0xff]  ;;  %v6841_v52 = vpack.c.bf16 %v3572_v34, %v3564_v23  ;;  %v6847_v58 = vpack.c.bf16 %v3587_v60, %v3579_v6  ;;  %v6857_v34 = vpack.c.bf16 %v3636_v22, %v3628_v49  ;;  %v3660_v6 = vld [vmem:[#allocation13 + $0x728] sm:$0xff]  ;;  %v3707_v51 = vld [vmem:[#allocation13 + $0x8a0] sm:$0xff] }
 0xe08   :  { %6944 = vmatpush1.bf16.msra.mxu1 %v6943_v21  ;;  %6818 = vmatprep.subr.bf16.mxu0 %v6817_v30  ;;  %v6961_v21 = vpack.c.bf16 %v3542_v62, %v3534_v11  ;;  %v3541_v30 = vld [vmem:[#allocation13 + $0x370] sm:$0xff]  ;;  %v3595_v11 = vld [vmem:[#allocation13 + $0x520] sm:$0xff]  ;;  %v3668_v60 = vld [vmem:[#allocation13 + $0x768] sm:$0xff] }
 0xe09   :  { %6946 = vmatprep.subr.bf16.mxu1 %v6945_v12  ;;  %v3558_v12 = vld [vmem:[#allocation13 + $0x3f8] sm:$0xff]  ;;  %v6963_v32 = vpack.c.bf16 %v3541_v30, %v3533_v10  ;;  %v3603_v62 = vld [vmem:[#allocation13 + $0x560] sm:$0xff]  ;;  %v6865_v13 = vpack.c.bf16 %v3668_v60, %v3660_v6 }
 0xe0a   :  { %v3614_v10 = vld [vmem:[#allocation13 + $0x5b8] sm:$0xff]  ;;  %v6851_v30 = vpack.c.bf16 %v3603_v62, %v3595_v11  ;;  %v3676_v11 = vld [vmem:[#allocation13 + $0x7a8] sm:$0xff] }
 0xe0b   :  { %6820 = vmatpush1.bf16.msra.mxu0 %v6819_v36  ;;  %v3549_v36 = vld [vmem:[#allocation13 + $0x3b0] sm:$0xff]  ;;  %v3684_v62 = vld [vmem:[#allocation13 + $0x7e8] sm:$0xff] }
 0xe0c   :  { %6948 = vmatpush1.bf16.msra.mxu1 %v6947_v46  ;;  %6822 = vmatprep.subr.bf16.mxu0 %v6821_v43  ;;  %v6965_v46 = vpack.c.bf16 %v3558_v12, %v3550_v26  ;;  %v3557_v43 = vld [vmem:[#allocation13 + $0x3f0] sm:$0xff]  ;;  %v3611_v26 = vld [vmem:[#allocation13 + $0x5a0] sm:$0xff]  ;;  %v6869_v48 = vpack.c.bf16 %v3684_v62, %v3676_v11 }
 0xe0d   :  { %6950 = vmatprep.subr.bf16.mxu1 %v6949_v39  ;;  %v3574_v39 = vld [vmem:[#allocation13 + $0x478] sm:$0xff]  ;;  %v6967_v45 = vpack.c.bf16 %v3557_v43, %v3549_v36  ;;  %v3619_v12 = vld [vmem:[#allocation13 + $0x5e0] sm:$0xff] }
 0xe0e   :  { %v3630_v36 = vld [vmem:[#allocation13 + $0x638] sm:$0xff]  ;;  %v6855_v43 = vpack.c.bf16 %v3619_v12, %v3611_v26  ;;  %v3692_v26 = vld [vmem:[#allocation13 + $0x828] sm:$0xff]  ;;  %v3739_v62 = vld [vmem:[#allocation13 + $0x9a0] sm:$0xff] }
 0xe0f   :  { %6824 = vmatpush1.bf16.msra.mxu0 %v6823_v55  ;;  %v3565_v55 = vld [vmem:[#allocation13 + $0x430] sm:$0xff]  ;;  %v3700_v12 = vld [vmem:[#allocation13 + $0x868] sm:$0xff] }
 0xe10   :  { %6952 = vmatpush1.bf16.msra.mxu1 %v6951_v56  ;;  %6826 = vmatprep.subr.bf16.mxu0 %v6825_v59  ;;  %v6969_v56 = vpack.c.bf16 %v3574_v39, %v3566_v37  ;;  %v3573_v59 = vld [vmem:[#allocation13 + $0x470] sm:$0xff]  ;;  %v3627_v37 = vld [vmem:[#allocation13 + $0x620] sm:$0xff]  ;;  %v6873_v22 = vpack.c.bf16 %v3700_v12, %v3692_v26 }
 0xe11   :  { %6954 = vmatprep.subr.bf16.mxu1 %v6953_v0  ;;  %v3590_v0 = vld [vmem:[#allocation13 + $0x4f8] sm:$0xff]  ;;  %v6971_v47 = vpack.c.bf16 %v3573_v59, %v3565_v55  ;;  %v3635_v39 = vld [vmem:[#allocation13 + $0x660] sm:$0xff] }
 0xe12   :  { %v3646_v55 = vld [vmem:[#allocation13 + $0x6b8] sm:$0xff]  ;;  %v6859_v59 = vpack.c.bf16 %v3635_v39, %v3627_v37  ;;  %v3708_v37 = vld [vmem:[#allocation13 + $0x8a8] sm:$0xff]  ;;  %v3755_v26 = vld [vmem:[#allocation13 + $0xa20] sm:$0xff] }
 0xe13   :  { %6828 = vmatpush1.bf16.msra.mxu0 %v6827_v7  ;;  %v3581_v7 = vld [vmem:[#allocation13 + $0x4b0] sm:$0xff]  ;;  %v3716_v39 = vld [vmem:[#allocation13 + $0x8e8] sm:$0xff]  ;;  %v3763_v12 = vld [vmem:[#allocation13 + $0xa60] sm:$0xff] }
 0xe14   :  { %6956 = vmatpush1.bf16.msra.mxu1 %v6955_v38  ;;  %6830 = vmatprep.subr.bf16.mxu0 %v6829_v19  ;;  %v6973_v38 = vpack.c.bf16 %v3590_v0, %v3582_v63  ;;  %v3589_v19 = vld [vmem:[#allocation13 + $0x4f0] sm:$0xff]  ;;  %v3643_v63 = vld [vmem:[#allocation13 + $0x6a0] sm:$0xff] }
 0xe15   :  { %6958 = vmatprep.subr.bf16.mxu1 %v6957_v17  ;;  %v3606_v17 = vld [vmem:[#allocation13 + $0x578] sm:$0xff]  ;;  %v6975_v18 = vpack.c.bf16 %v3589_v19, %v3581_v7  ;;  %v3651_v0 = vld [vmem:[#allocation13 + $0x6e0] sm:$0xff] }
 0xe16   :  { %v3662_v7 = vld [vmem:[#allocation13 + $0x738] sm:$0xff]  ;;  %v6863_v19 = vpack.c.bf16 %v3651_v0, %v3643_v63  ;;  %v3732_v63 = vld [vmem:[#allocation13 + $0x968] sm:$0xff] }
 0xe17   :  { %6832 = vmatpush1.bf16.msra.mxu0 %v6831_v20  ;;  %v3597_v20 = vld [vmem:[#allocation13 + $0x530] sm:$0xff] }
 0xe18   :  { %6960 = vmatpush1.bf16.msra.mxu1 %v6959_v4  ;;  %6834 = vmatprep.subr.bf16.mxu0 %v6833_v16  ;;  %v6977_v4 = vpack.c.bf16 %v3606_v17, %v3598_v53  ;;  %v3605_v16 = vld [vmem:[#allocation13 + $0x570] sm:$0xff]  ;;  %v3659_v53 = vld [vmem:[#allocation13 + $0x720] sm:$0xff] }
 0xe19   :  { %6962 = vmatprep.subr.bf16.mxu1 %v6961_v21  ;;  %v3622_v21 = vld [vmem:[#allocation13 + $0x5f8] sm:$0xff]  ;;  %v6979_v29 = vpack.c.bf16 %v3605_v16, %v3597_v20  ;;  %v3667_v17 = vld [vmem:[#allocation13 + $0x760] sm:$0xff] }
 0xe1a   :  { %v3678_v20 = vld [vmem:[#allocation13 + $0x7b8] sm:$0xff]  ;;  %v6867_v16 = vpack.c.bf16 %v3667_v17, %v3659_v53  ;;  %v3740_v53 = vld [vmem:[#allocation13 + $0x9a8] sm:$0xff] }
 0xe1b   :  { %6836 = vmatpush1.bf16.msra.mxu0 %v6835_v31  ;;  %v3613_v31 = vld [vmem:[#allocation13 + $0x5b0] sm:$0xff]  ;;  %v3748_v17 = vld [vmem:[#allocation13 + $0x9e8] sm:$0xff] }
 0xe1c   :  { %6964 = vmatpush1.bf16.msra.mxu1 %v6963_v32  ;;  %6838 = vmatprep.subr.bf16.mxu0 %v6837_v33  ;;  %v6981_v32 = vpack.c.bf16 %v3622_v21, %v3614_v10  ;;  %v3621_v33 = vld [vmem:[#allocation13 + $0x5f0] sm:$0xff]  ;;  %v3675_v10 = vld [vmem:[#allocation13 + $0x7a0] sm:$0xff]  ;;  %v6885_v11 = vpack.c.bf16 %v3748_v17, %v3740_v53 }
 0xe1d   :  { %6966 = vmatprep.subr.bf16.mxu1 %v6965_v46  ;;  %v3638_v46 = vld [vmem:[#allocation13 + $0x678] sm:$0xff]  ;;  %v6983_v23 = vpack.c.bf16 %v3621_v33, %v3613_v31  ;;  %v3683_v21 = vld [vmem:[#allocation13 + $0x7e0] sm:$0xff] }
 0xe1e   :  { %v3694_v31 = vld [vmem:[#allocation13 + $0x838] sm:$0xff]  ;;  %v6871_v33 = vpack.c.bf16 %v3683_v21, %v3675_v10  ;;  %v3803_v53 = vld [vmem:[#allocation13 + $0xba0] sm:$0xff] }
 0xe1f   :  { %6840 = vmatpush1.bf16.msra.mxu0 %v6839_v44  ;;  %v3629_v44 = vld [vmem:[#allocation13 + $0x630] sm:$0xff]  ;;  %v3758_v10 = vld [vmem:[#allocation13 + $0xa38] sm:$0xff]  ;;  %v3811_v17 = vld [vmem:[#allocation13 + $0xbe0] sm:$0xff] }
 0xe20   :  { %6968 = vmatpush1.bf16.msra.mxu1 %v6967_v45  ;;  %6842 = vmatprep.subr.bf16.mxu0 %v6841_v52  ;;  %v6985_v45 = vpack.c.bf16 %v3638_v46, %v3630_v36  ;;  %v3637_v52 = vld [vmem:[#allocation13 + $0x670] sm:$0xff]  ;;  %v3691_v36 = vld [vmem:[#allocation13 + $0x820] sm:$0xff]  ;;  %v3766_v21 = vld [vmem:[#allocation13 + $0xa78] sm:$0xff] }
 0xe21   :  { %6970 = vmatprep.subr.bf16.mxu1 %v6969_v56  ;;  %v3654_v56 = vld [vmem:[#allocation13 + $0x6f8] sm:$0xff]  ;;  %v6987_v40 = vpack.c.bf16 %v3637_v52, %v3629_v44  ;;  %v3699_v46 = vld [vmem:[#allocation13 + $0x860] sm:$0xff] }
 0xe22   :  { %v6875_v44 = vpack.c.bf16 %v3699_v46, %v3691_v36  ;;  %v3718_v52 = vld [vmem:[#allocation13 + $0x8f8] sm:$0xff] }
 0xe23   :  { %6844 = vmatpush1.bf16.msra.mxu0 %v6843_v1  ;;  %v3645_v1 = vld [vmem:[#allocation13 + $0x6b0] sm:$0xff]  ;;  %v3774_v36 = vld [vmem:[#allocation13 + $0xab8] sm:$0xff] }
 0xe24   :  { %6972 = vmatpush1.bf16.msra.mxu1 %v6971_v47  ;;  %6846 = vmatprep.subr.bf16.mxu0 %v6845_v5  ;;  %v6989_v47 = vpack.c.bf16 %v3654_v56, %v3646_v55  ;;  %v3653_v5 = vld [vmem:[#allocation13 + $0x6f0] sm:$0xff]  ;;  %v3715_v55 = vld [vmem:[#allocation13 + $0x8e0] sm:$0xff]  ;;  %v3782_v46 = vld [vmem:[#allocation13 + $0xaf8] sm:$0xff] }
 0xe25   :  { %6974 = vmatprep.subr.bf16.mxu1 %v6973_v38  ;;  %v3670_v38 = vld [vmem:[#allocation13 + $0x778] sm:$0xff]  ;;  %v6991_v14 = vpack.c.bf16 %v3653_v5, %v3645_v1  ;;  %v3709_v56 = vld [vmem:[#allocation13 + $0x8b0] sm:$0xff]  ;;  %v6879_v5 = vpack.c.bf16 %v3715_v55, %v3707_v51  ;;  %v3796_v51 = vld [vmem:[#allocation13 + $0xb68] sm:$0xff] }
 0xe26   :  { %v3726_v1 = vld [vmem:[#allocation13 + $0x938] sm:$0xff] }
 0xe27   :  { %6848 = vmatpush1.bf16.msra.mxu0 %v6847_v58  ;;  %v3661_v58 = vld [vmem:[#allocation13 + $0x730] sm:$0xff]  ;;  %v3790_v55 = vld [vmem:[#allocation13 + $0xb38] sm:$0xff] }
 0xe28   :  { %6976 = vmatpush1.bf16.msra.mxu1 %v6975_v18  ;;  %6850 = vmatprep.subr.bf16.mxu0 %v6849_v57  ;;  %v6993_v18 = vpack.c.bf16 %v3670_v38, %v3662_v7  ;;  %v3669_v57 = vld [vmem:[#allocation13 + $0x770] sm:$0xff]  ;;  %v3723_v7 = vld [vmem:[#allocation13 + $0x920] sm:$0xff] }
 0xe29   :  { %6978 = vmatprep.subr.bf16.mxu1 %v6977_v4  ;;  %v3686_v4 = vld [vmem:[#allocation13 + $0x7f8] sm:$0xff]  ;;  %v6995_v42 = vpack.c.bf16 %v3669_v57, %v3661_v58  ;;  %v3731_v38 = vld [vmem:[#allocation13 + $0x960] sm:$0xff] }
 0xe2a   :  { %v3742_v58 = vld [vmem:[#allocation13 + $0x9b8] sm:$0xff] }
 0xe2b   :  { %6852 = vmatpush1.bf16.msra.mxu0 %v6851_v30  ;;  %v3677_v30 = vld [vmem:[#allocation13 + $0x7b0] sm:$0xff] }
 0xe2c   :  { %6980 = vmatpush1.bf16.msra.mxu1 %v6979_v29  ;;  %6854 = vmatprep.subr.bf16.mxu0 %v6853_v25  ;;  %v6997_v29 = vpack.c.bf16 %v3686_v4, %v3678_v20  ;;  %v3685_v25 = vld [vmem:[#allocation13 + $0x7f0] sm:$0xff]  ;;  %v3747_v20 = vld [vmem:[#allocation13 + $0x9e0] sm:$0xff] }
 0xe2d   :  { %6982 = vmatprep.subr.bf16.mxu1 %v6981_v32  ;;  %v3702_v32 = vld [vmem:[#allocation13 + $0x878] sm:$0xff]  ;;  %v6999_v49 = vpack.c.bf16 %v3685_v25, %v3677_v30  ;;  %v3741_v4 = vld [vmem:[#allocation13 + $0x9b0] sm:$0xff]  ;;  %v6887_v30 = vpack.c.bf16 %v3747_v20, %v3739_v62 }
 0xe2e   :  { %v3822_v62 = vld [vmem:[#allocation13 + $0xc38] sm:$0xff] }
 0xe2f   :  { %6856 = vmatpush1.bf16.msra.mxu0 %v6855_v43  ;;  %v7001_v43 = vpack.c.bf16 %v3702_v32, %v3694_v31  ;;  %v3757_v31 = vld [vmem:[#allocation13 + $0xa30] sm:$0xff]  ;;  %v7017_v32 = vpack.c.bf16 %v3766_v21, %v3758_v10  ;;  %v3830_v20 = vld [vmem:[#allocation13 + $0xc78] sm:$0xff] }
 0xe30   :  { %6984 = vmatpush1.bf16.msra.mxu1 %v6983_v23  ;;  %6858 = vmatprep.subr.bf16.mxu0 %v6857_v34  ;;  %v3693_v23 = vld [vmem:[#allocation13 + $0x830] sm:$0xff]  ;;  %v7033_v21 = vpack.c.bf16 %v3830_v20, %v3822_v62 }
 0xe31   :  { %6986 = vmatprep.subr.bf16.mxu1 %v6985_v45  ;;  %v3701_v34 = vld [vmem:[#allocation13 + $0x870] sm:$0xff]  ;;  %v3710_v45 = vld [vmem:[#allocation13 + $0x8b8] sm:$0xff] }
 0xe32   :  { %v7003_v50 = vpack.c.bf16 %v3701_v34, %v3693_v23  ;;  %v7005_v0 = vpack.c.bf16 %v3718_v52, %v3710_v45  ;;  %v7021_v45 = vpack.c.bf16 %v3782_v46, %v3774_v36  ;;  %v3781_v52 = vld [vmem:[#allocation13 + $0xaf0] sm:$0xff] }
 0xe33   :  { %6860 = vmatpush1.bf16.msra.mxu0 %v6859_v59  ;;  %v6877_v59 = vpack.c.bf16 %v3716_v39, %v3708_v37  ;;  %v3771_v37 = vld [vmem:[#allocation13 + $0xaa0] sm:$0xff]  ;;  %v3821_v10 = vld [vmem:[#allocation13 + $0xc30] sm:$0xff] }
 0xe34   :  { %6988 = vmatpush1.bf16.msra.mxu1 %v6987_v40  ;;  %6862 = vmatprep.subr.bf16.mxu0 %v6861_v61  ;;  %v3717_v40 = vld [vmem:[#allocation13 + $0x8f0] sm:$0xff]  ;;  %v3724_v61 = vld [vmem:[#allocation13 + $0x928] sm:$0xff]  ;;  %v3779_v39 = vld [vmem:[#allocation13 + $0xae0] sm:$0xff] }
 0xe35   :  { %6990 = vmatprep.subr.bf16.mxu1 %v6989_v47  ;;  %v3734_v47 = vld [vmem:[#allocation13 + $0x978] sm:$0xff]  ;;  %v7007_v6 = vpack.c.bf16 %v3717_v40, %v3709_v56  ;;  %v6881_v60 = vpack.c.bf16 %v3732_v63, %v3724_v61  ;;  %v3787_v63 = vld [vmem:[#allocation13 + $0xb20] sm:$0xff]  ;;  %v3837_v36 = vld [vmem:[#allocation13 + $0xcb0] sm:$0xff] }
 0xe36   :  { %v3798_v56 = vld [vmem:[#allocation13 + $0xb78] sm:$0xff]  ;;  %v3885_v62 = vld [vmem:[#allocation13 + $0xe30] sm:$0xff] }
 0xe37   :  { %6864 = vmatpush1.bf16.msra.mxu0 %v6863_v19  ;;  %v3725_v19 = vld [vmem:[#allocation13 + $0x930] sm:$0xff] }
 0xe38   :  { %6992 = vmatpush1.bf16.msra.mxu1 %v6991_v14  ;;  %6866 = vmatprep.subr.bf16.mxu0 %v6865_v13  ;;  %v7009_v14 = vpack.c.bf16 %v3734_v47, %v3726_v1  ;;  %v3733_v13 = vld [vmem:[#allocation13 + $0x970] sm:$0xff]  ;;  %v7025_v47 = vpack.c.bf16 %v3798_v56, %v3790_v55 }
 0xe39   :  { %6994 = vmatprep.subr.bf16.mxu1 %v6993_v18  ;;  %v6883_v18 = vpack.c.bf16 %v3731_v38, %v3723_v7  ;;  %v7011_v57 = vpack.c.bf16 %v3733_v13, %v3725_v19  ;;  %v3789_v1 = vld [vmem:[#allocation13 + $0xb30] sm:$0xff]  ;;  %v3806_v7 = vld [vmem:[#allocation13 + $0xbb8] sm:$0xff] }
 0xe3a   :  { %v3814_v38 = vld [vmem:[#allocation13 + $0xbf8] sm:$0xff]  ;;  %v3853_v55 = vld [vmem:[#allocation13 + $0xd30] sm:$0xff] }
 0xe3b   :  { %6868 = vmatpush1.bf16.msra.mxu0 %v6867_v16 }
 0xe3c   :  { %6996 = vmatpush1.bf16.msra.mxu1 %v6995_v42  ;;  %6870 = vmatprep.subr.bf16.mxu0 %v6869_v48  ;;  %v3756_v42 = vld [vmem:[#allocation13 + $0xa28] sm:$0xff] }
 0xe3d   :  { %6998 = vmatprep.subr.bf16.mxu1 %v6997_v29  ;;  %v3764_v48 = vld [vmem:[#allocation13 + $0xa68] sm:$0xff] }
 0xe3e   :  { %v6889_v25 = vpack.c.bf16 %v3764_v48, %v3756_v42  ;;  %v3819_v42 = vld [vmem:[#allocation13 + $0xc20] sm:$0xff] }
 0xe3f   :  { %6872 = vmatpush1.bf16.msra.mxu0 %v6871_v33  ;;  %v3765_v33 = vld [vmem:[#allocation13 + $0xa70] sm:$0xff]  ;;  %v3827_v48 = vld [vmem:[#allocation13 + $0xc60] sm:$0xff] }
 0xe40   :  { %7000 = vmatpush1.bf16.msra.mxu1 %v6999_v49  ;;  %6874 = vmatprep.subr.bf16.mxu0 %v6873_v22  ;;  %v3772_v49 = vld [vmem:[#allocation13 + $0xaa8] sm:$0xff]  ;;  %v7019_v23 = vpack.c.bf16 %v3765_v33, %v3757_v31  ;;  %v6907_v31 = vpack.c.bf16 %v3827_v48, %v3819_v42  ;;  %v3902_v42 = vld [vmem:[#allocation13 + $0xeb8] sm:$0xff] }
 0xe41   :  { %7002 = vmatprep.subr.bf16.mxu1 %v7001_v43  ;;  %v3780_v22 = vld [vmem:[#allocation13 + $0xae8] sm:$0xff]  ;;  %v6891_v43 = vpack.c.bf16 %v3763_v12, %v3755_v26  ;;  %v3838_v26 = vld [vmem:[#allocation13 + $0xcb8] sm:$0xff] }
 0xe42   :  { %4334 = vmatmul.mubr.f32.vlgmr.msra.gmra.mrb[8].mxu0 %v8304_v24  ;;  %v6893_v34 = vpack.c.bf16 %v3780_v22, %v3772_v49  ;;  %v3846_v12 = vld [vmem:[#allocation13 + $0xcf8] sm:$0xff]  ;;  %v3835_v49 = vld [vmem:[#allocation13 + $0xca0] sm:$0xff] }
 0xe43   :  { %4476 = vmatmul.mubr.f32.vlgmr.msra.gmra.mrb[22].mxu1 %v8304_v24  ;;  %6876 = vmatpush1.bf16.msra.mxu0 %v6875_v44  ;;  %v3750_v24 = vld [vmem:[#allocation13 + $0x9f8] sm:$0xff]  ;;  %v3773_v44 = vld [vmem:[#allocation13 + $0xab0] sm:$0xff]  ;;  %v3843_v22 = vld [vmem:[#allocation13 + $0xce0] sm:$0xff]  ;;  %v7037_v46 = vpack.c.bf16 %v3846_v12, %v3838_v26 }
 0xe44   :  { %4404 = vmatprep.mubr.f32.mxu0 %v8310_v35  ;;  %7004 = vmatpush1.bf16.msra.mxu1 %v7003_v50  ;;  %v7013_v16 = vpack.c.bf16 %v3750_v24, %v3742_v58  ;;  %v3788_v50 = vld [vmem:[#allocation13 + $0xb28] sm:$0xff]  ;;  %v7023_v40 = vpack.c.bf16 %v3781_v52, %v3773_v44  ;;  %v3805_v58 = vld [vmem:[#allocation13 + $0xbb0] sm:$0xff]  ;;  %v7029_v24 = vpack.c.bf16 %v3814_v38, %v3806_v7  ;;  %v3910_v48 = vld [vmem:[#allocation13 + $0xef8] sm:$0xff] }
 0xe45   :  { %4546 = vmatprep.mubr.f32.mxu1 %v8310_v35  ;;  %6878 = vmatprep.subr.bf16.mxu0 %v6877_v59  ;;  %v3749_v35 = vld [vmem:[#allocation13 + $0x9f0] sm:$0xff]  ;;  %v6895_v59 = vpack.c.bf16 %v3779_v39, %v3771_v37  ;;  %v6897_v61 = vpack.c.bf16 %v3796_v51, %v3788_v50  ;;  %v3854_v37 = vld [vmem:[#allocation13 + $0xd38] sm:$0xff]  ;;  %v6911_v44 = vpack.c.bf16 %v3843_v22, %v3835_v49  ;;  %v3851_v50 = vld [vmem:[#allocation13 + $0xd20] sm:$0xff] }
 0xe46   :  { %7006 = vmatprep.subr.bf16.mxu1 %v7005_v0  ;;  %v7015_v29 = vpack.c.bf16 %v3749_v35, %v3741_v4  ;;  %v3795_v0 = vld [vmem:[#allocation13 + $0xb60] sm:$0xff]  ;;  %v6903_v4 = vpack.c.bf16 %v3811_v17, %v3803_v53  ;;  %v3862_v39 = vld [vmem:[#allocation13 + $0xd78] sm:$0xff]  ;;  %v3869_v7 = vld [vmem:[#allocation13 + $0xdb0] sm:$0xff]  ;;  %v7053_v12 = vpack.c.bf16 %v3910_v48, %v3902_v42 }
 0xe47   :  { %6880 = vmatpush1.bf16.msra.mxu0 %v6879_v5  ;;  %v3797_v5 = vld [vmem:[#allocation13 + $0xb70] sm:$0xff]  ;;  %v6899_v19 = vpack.c.bf16 %v3795_v0, %v3787_v63  ;;  %v3859_v51 = vld [vmem:[#allocation13 + $0xd60] sm:$0xff]  ;;  %v7041_v56 = vpack.c.bf16 %v3862_v39, %v3854_v37  ;;  %v3870_v63 = vld [vmem:[#allocation13 + $0xdb8] sm:$0xff] }
 0xe48   :  { %7008 = vmatpush1.bf16.msra.mxu1 %v7007_v6  ;;  %6882 = vmatprep.subr.bf16.mxu0 %v6881_v60  ;;  %v3804_v6 = vld [vmem:[#allocation13 + $0xba8] sm:$0xff]  ;;  %v3878_v0 = vld [vmem:[#allocation13 + $0xdf8] sm:$0xff]  ;;  %v3901_v26 = vld [vmem:[#allocation13 + $0xeb0] sm:$0xff] }
 0xe49   :  { %7010 = vmatprep.subr.bf16.mxu1 %v7009_v14  ;;  %v3812_v60 = vld [vmem:[#allocation13 + $0xbe8] sm:$0xff]  ;;  %v7027_v14 = vpack.c.bf16 %v3797_v5, %v3789_v1  ;;  %v6915_v1 = vpack.c.bf16 %v3859_v51, %v3851_v50  ;;  %v7045_v38 = vpack.c.bf16 %v3878_v0, %v3870_v63  ;;  %v3886_v53 = vld [vmem:[#allocation13 + $0xe38] sm:$0xff]  ;;  %v3917_v37 = vld [vmem:[#allocation13 + $0xf30] sm:$0xff] }
 0xe4a   :  { %v6901_v13 = vpack.c.bf16 %v3812_v60, %v3804_v6  ;;  %v3867_v6 = vld [vmem:[#allocation13 + $0xda0] sm:$0xff]  ;;  %v3894_v17 = vld [vmem:[#allocation13 + $0xe78] sm:$0xff]  ;;  %v3933_v0 = vld [vmem:[#allocation13 + $0xfb0] sm:$0xff] }
 0xe4b   :  { %6884 = vmatpush1.bf16.msra.mxu0 %v6883_v18  ;;  %v3813_v18 = vld [vmem:[#allocation13 + $0xbf0] sm:$0xff]  ;;  %v3875_v60 = vld [vmem:[#allocation13 + $0xde0] sm:$0xff]  ;;  %v7049_v20 = vpack.c.bf16 %v3894_v17, %v3886_v53  ;;  %v3918_v49 = vld [vmem:[#allocation13 + $0xf38] sm:$0xff] }
 0xe4c   :  { %7012 = vmatpush1.bf16.msra.mxu1 %v7011_v57  ;;  %6886 = vmatprep.subr.bf16.mxu0 %v6885_v11  ;;  %v3820_v57 = vld [vmem:[#allocation13 + $0xc28] sm:$0xff]  ;;  %v3926_v22 = vld [vmem:[#allocation13 + $0xf78] sm:$0xff]  ;;  %v4711_v17 = vld [vmem:[#allocation15 + $0x10] sm:$0xff] }
 0xe4d   :  { %7014 = vmatprep.subr.bf16.mxu1 %v7013_v16  ;;  %v3828_v11 = vld [vmem:[#allocation13 + $0xc68] sm:$0xff]  ;;  %v7031_v16 = vpack.c.bf16 %v3813_v18, %v3805_v58  ;;  %v6919_v58 = vpack.c.bf16 %v3875_v60, %v3867_v6  ;;  %v7057_v39 = vpack.c.bf16 %v3926_v22, %v3918_v49  ;;  %v3934_v50 = vld [vmem:[#allocation13 + $0xfb8] sm:$0xff]  ;;  %v4719_v42 = vld [vmem:[#allocation15 + $0x50] sm:$0xff] }
 0xe4e   :  { %v6905_v35 = vpack.c.bf16 %v3828_v11, %v3820_v57  ;;  %v3883_v57 = vld [vmem:[#allocation13 + $0xe20] sm:$0xff]  ;;  %v3942_v51 = vld [vmem:[#allocation13 + $0xff8] sm:$0xff]  ;;  %v4722_v48 = vld [vmem:[#allocation15 + $0x68] sm:$0xff] }
 0xe4f   :  { %6888 = vmatpush1.bf16.msra.mxu0 %v6887_v30  ;;  %v3829_v30 = vld [vmem:[#allocation13 + $0xc70] sm:$0xff]  ;;  %v3891_v11 = vld [vmem:[#allocation13 + $0xe60] sm:$0xff]  ;;  %v7061_v63 = vpack.c.bf16 %v3942_v51, %v3934_v50  ;;  %v4730_v22 = vld [vmem:[#allocation15 + $0xa8] sm:$0xff] }
 0xe50   :  { %7016 = vmatpush1.bf16.msra.mxu1 %v7015_v29  ;;  %6890 = vmatprep.subr.bf16.mxu0 %v6889_v25  ;;  %v3836_v29 = vld [vmem:[#allocation13 + $0xca8] sm:$0xff]  ;;  %v4727_v49 = vld [vmem:[#allocation15 + $0x90] sm:$0xff] }
 0xe51   :  { %7018 = vmatprep.subr.bf16.mxu1 %v7017_v32  ;;  %v3844_v25 = vld [vmem:[#allocation13 + $0xce8] sm:$0xff]  ;;  %v7035_v32 = vpack.c.bf16 %v3829_v30, %v3821_v10  ;;  %v6923_v10 = vpack.c.bf16 %v3891_v11, %v3883_v57  ;;  %v4713_v11 = vld [vmem:[#allocation15 + $0x20] sm:$0xff]  ;;  %v4735_v50 = vld [vmem:[#allocation15 + $0xd0] sm:$0xff] }
 0xe52   :  { %v6909_v33 = vpack.c.bf16 %v3844_v25, %v3836_v29  ;;  %v3899_v29 = vld [vmem:[#allocation13 + $0xea0] sm:$0xff]  ;;  %v4738_v51 = vld [vmem:[#allocation15 + $0xe8] sm:$0xff] }
 0xe53   :  { %6892 = vmatpush1.bf16.msra.mxu0 %v6891_v43  ;;  %v3845_v43 = vld [vmem:[#allocation13 + $0xcf0] sm:$0xff]  ;;  %v3907_v25 = vld [vmem:[#allocation13 + $0xee0] sm:$0xff] }
 0xe54   :  { %7020 = vmatpush1.bf16.msra.mxu1 %v7019_v23  ;;  %6894 = vmatprep.subr.bf16.mxu0 %v6893_v34  ;;  %v3852_v23 = vld [vmem:[#allocation13 + $0xd28] sm:$0xff] }
 0xe55   :  { %7022 = vmatprep.subr.bf16.mxu1 %v7021_v45  ;;  %v3860_v34 = vld [vmem:[#allocation13 + $0xd68] sm:$0xff]  ;;  %v7039_v45 = vpack.c.bf16 %v3845_v43, %v3837_v36  ;;  %v6927_v36 = vpack.c.bf16 %v3907_v25, %v3899_v29  ;;  %v4721_v29 = vld [vmem:[#allocation15 + $0x60] sm:$0xff]  ;;  %v4723_v25 = vld [vmem:[#allocation15 + $0x70] sm:$0xff] }
 0xe56   :  { %v6913_v52 = vpack.c.bf16 %v3860_v34, %v3852_v23  ;;  %v3915_v23 = vld [vmem:[#allocation13 + $0xf20] sm:$0xff] }
 0xe57   :  { %6896 = vmatpush1.bf16.msra.mxu0 %v6895_v59  ;;  %v3861_v59 = vld [vmem:[#allocation13 + $0xd70] sm:$0xff]  ;;  %v3923_v34 = vld [vmem:[#allocation13 + $0xf60] sm:$0xff] }
 0xe58   :  { %7024 = vmatpush1.bf16.msra.mxu1 %v7023_v40  ;;  %6898 = vmatprep.subr.bf16.mxu0 %v6897_v61  ;;  %v3868_v40 = vld [vmem:[#allocation13 + $0xda8] sm:$0xff] }
 0xe59   :  { %7026 = vmatprep.subr.bf16.mxu1 %v7025_v47  ;;  %v3876_v61 = vld [vmem:[#allocation13 + $0xde8] sm:$0xff]  ;;  %v7043_v47 = vpack.c.bf16 %v3861_v59, %v3853_v55  ;;  %v6931_v55 = vpack.c.bf16 %v3923_v34, %v3915_v23  ;;  %v4729_v23 = vld [vmem:[#allocation15 + $0xa0] sm:$0xff]  ;;  %v4731_v34 = vld [vmem:[#allocation15 + $0xb0] sm:$0xff] }
 0xe5a   :  { %v6917_v5 = vpack.c.bf16 %v3876_v61, %v3868_v40  ;;  %v3931_v40 = vld [vmem:[#allocation13 + $0xfa0] sm:$0xff] }
 0xe5b   :  { %6900 = vmatpush1.bf16.msra.mxu0 %v6899_v19  ;;  %v3877_v19 = vld [vmem:[#allocation13 + $0xdf0] sm:$0xff]  ;;  %v3939_v61 = vld [vmem:[#allocation13 + $0xfe0] sm:$0xff] }
 0xe5c   :  { %7028 = vmatpush1.bf16.msra.mxu1 %v7027_v14  ;;  %6902 = vmatprep.subr.bf16.mxu0 %v6901_v13  ;;  %v3884_v14 = vld [vmem:[#allocation13 + $0xe28] sm:$0xff] }
 0xe5d   :  { %7030 = vmatprep.subr.bf16.mxu1 %v7029_v24  ;;  %v3892_v13 = vld [vmem:[#allocation13 + $0xe68] sm:$0xff]  ;;  %v7047_v24 = vpack.c.bf16 %v3877_v19, %v3869_v7 }
 0xe5e   :  { %v6921_v18 = vpack.c.bf16 %v3892_v13, %v3884_v14  ;;  %v4710_v19 = vld [vmem:[#allocation15 + $0x8] sm:$0xff]  ;;  %v4712_v14 = vld [vmem:[#allocation15 + $0x18] sm:$0xff]  ;;  %v4709_v13 = vld [vmem:[#allocation15] sm:$0xff] }
 0xe5f   :  { %6904 = vmatpush1.bf16.msra.mxu0 %v6903_v4  ;;  %v3893_v4 = vld [vmem:[#allocation13 + $0xe70] sm:$0xff]  ;;  %v7065_v53 = vpack.c.bf16 %v4712_v14, %v4710_v19  ;;  %v4746_v14 = vld [vmem:[#allocation15 + $0x128] sm:$0xff] }
 0xe60   :  { %7032 = vmatpush1.bf16.msra.mxu1 %v7031_v16  ;;  %6906 = vmatprep.subr.bf16.mxu0 %v6905_v35  ;;  %v3900_v16 = vld [vmem:[#allocation13 + $0xea8] sm:$0xff]  ;;  %v4743_v19 = vld [vmem:[#allocation15 + $0x110] sm:$0xff] }
 0xe61   :  { %7034 = vmatprep.subr.bf16.mxu1 %v7033_v21  ;;  %v3908_v35 = vld [vmem:[#allocation13 + $0xee8] sm:$0xff]  ;;  %v7051_v21 = vpack.c.bf16 %v3893_v4, %v3885_v62  ;;  %v4715_v62 = vld [vmem:[#allocation15 + $0x30] sm:$0xff] }
 0xe62   :  { %v6925_v30 = vpack.c.bf16 %v3908_v35, %v3900_v16  ;;  %v7071_v4 = vpack.c.bf16 %v4715_v62, %v4713_v11  ;;  %v4717_v35 = vld [vmem:[#allocation15 + $0x40] sm:$0xff] }
 0xe63   :  { %6908 = vmatpush1.bf16.msra.mxu0 %v6907_v31  ;;  %v3909_v31 = vld [vmem:[#allocation13 + $0xef0] sm:$0xff] }
 0xe64   :  { %7036 = vmatpush1.bf16.msra.mxu1 %v7035_v32  ;;  %6910 = vmatprep.subr.bf16.mxu0 %v6909_v33  ;;  %v3916_v32 = vld [vmem:[#allocation13 + $0xf28] sm:$0xff] }
 0xe65   :  { %7038 = vmatprep.subr.bf16.mxu1 %v7037_v46  ;;  %v3924_v33 = vld [vmem:[#allocation13 + $0xf68] sm:$0xff]  ;;  %v7055_v46 = vpack.c.bf16 %v3909_v31, %v3901_v26  ;;  %v7079_v31 = vpack.c.bf16 %v4723_v25, %v4721_v29 }
 0xe66   :  { %v6929_v43 = vpack.c.bf16 %v3924_v33, %v3916_v32  ;;  %v4726_v26 = vld [vmem:[#allocation15 + $0x88] sm:$0xff]  ;;  %v4725_v33 = vld [vmem:[#allocation15 + $0x80] sm:$0xff] }
 0xe67   :  { %6912 = vmatpush1.bf16.msra.mxu0 %v6911_v44  ;;  %v3925_v44 = vld [vmem:[#allocation13 + $0xf70] sm:$0xff] }
 0xe68   :  { %7040 = vmatpush1.bf16.msra.mxu1 %v7039_v45  ;;  %6914 = vmatprep.subr.bf16.mxu0 %v6913_v52  ;;  %v3932_v45 = vld [vmem:[#allocation13 + $0xfa8] sm:$0xff] }
 0xe69   :  { %7042 = vmatprep.subr.bf16.mxu1 %v7041_v56  ;;  %v3940_v52 = vld [vmem:[#allocation13 + $0xfe8] sm:$0xff]  ;;  %v7059_v56 = vpack.c.bf16 %v3925_v44, %v3917_v37  ;;  %v7087_v44 = vpack.c.bf16 %v4731_v34, %v4729_v23 }
 0xe6a   :  { %v6933_v59 = vpack.c.bf16 %v3940_v52, %v3932_v45  ;;  %v4734_v37 = vld [vmem:[#allocation15 + $0xc8] sm:$0xff]  ;;  %v4733_v52 = vld [vmem:[#allocation15 + $0xc0] sm:$0xff] }
 0xe6b   :  { %6916 = vmatpush1.bf16.msra.mxu0 %v6915_v1  ;;  %v3941_v1 = vld [vmem:[#allocation13 + $0xff0] sm:$0xff] }
 0xe6c   :  { %7044 = vmatpush1.bf16.msra.mxu1 %v7043_v47  ;;  %6918 = vmatprep.subr.bf16.mxu0 %v6917_v5  ;;  %v6935_v47 = vpack.c.bf16 %v3939_v61, %v3931_v40  ;;  %v7063_v5 = vpack.c.bf16 %v3941_v1, %v3933_v0  ;;  %v4737_v40 = vld [vmem:[#allocation15 + $0xe0] sm:$0xff]  ;;  %v4739_v61 = vld [vmem:[#allocation15 + $0xf0] sm:$0xff]  ;;  %v4744_v0 = vld [vmem:[#allocation15 + $0x118] sm:$0xff] }
 0xe6d   :  { %7046 = vmatprep.subr.bf16.mxu1 %v7045_v38  ;;  %v7095_v1 = vpack.c.bf16 %v4739_v61, %v4737_v40  ;;  %v4747_v40 = vld [vmem:[#allocation15 + $0x130] sm:$0xff] }
 0xe6f   :  { %6920 = vmatpush1.bf16.msra.mxu0 %v6919_v58  ;;  %v4714_v58 = vld [vmem:[#allocation15 + $0x28] sm:$0xff] }
 0xe70   :  { %7048 = vmatpush1.bf16.msra.mxu1 %v7047_v24  ;;  %6922 = vmatprep.subr.bf16.mxu0 %v6921_v18  ;;  %v4716_v24 = vld [vmem:[#allocation15 + $0x38] sm:$0xff]  ;;  %v7067_v18 = vpack.c.bf16 %v4711_v17, %v4709_v13 }
 0xe71   :  { %7050 = vmatprep.subr.bf16.mxu1 %v7049_v20  ;;  %v7069_v57 = vpack.c.bf16 %v4716_v24, %v4714_v58  ;;  %v4720_v20 = vld [vmem:[#allocation15 + $0x58] sm:$0xff]  ;;  %v3943_v58 = vld [vmem:[%s8507_s10] sm:$0xff] }
 0xe72   :  { %v4748_v13 = vld [vmem:[#allocation15 + $0x138] sm:$0xff]  ;;  %v3948_v24 = vrot.slane %v3943_v58, %v7984_v2  ;;  %v3956_v62 = vrot.slane %v3943_v58, %v7989_v41 }
 0xe73   :  { %6924 = vmatpush1.bf16.msra.mxu0 %v6923_v10  ;;  %v4724_v10 = vld [vmem:[#allocation15 + $0x78] sm:$0xff]  ;;  %v7101_v17 = vpack.c.bf16 %v4748_v13, %v4746_v14  ;;  %v4754_v14 = vld [vmem:[#allocation15 + $0x168] sm:$0xff] }
 0xe74   :  { %7052 = vmatpush1.bf16.msra.mxu1 %v7051_v21  ;;  %6926 = vmatprep.subr.bf16.mxu0 %v6925_v30  ;;  %v7075_v21 = vpack.c.bf16 %v4719_v42, %v4717_v35  ;;  %v7077_v30 = vpack.c.bf16 %v4724_v10, %v4722_v48  ;;  %v3964_v10 = vrot.slane %v3943_v58, %v8002_v15  ;;  %v4756_v13 = vld [vmem:[#allocation15 + $0x178] sm:$0xff] }
 0xe75   :  { %7054 = vmatprep.subr.bf16.mxu1 %v7053_v12  ;;  %v4728_v12 = vld [vmem:[#allocation15 + $0x98] sm:$0xff] }
 0xe76   :  { %v7081_v32 = vpack.c.bf16 %v4728_v12, %v4726_v26 }
 0xe77   :  { %6928 = vmatpush1.bf16.msra.mxu0 %v6927_v36  ;;  %v4732_v36 = vld [vmem:[#allocation15 + $0xb8] sm:$0xff] }
 0xe78   :  { %7056 = vmatpush1.bf16.msra.mxu1 %v7055_v46  ;;  %6930 = vmatprep.subr.bf16.mxu0 %v6929_v43  ;;  %v7083_v46 = vpack.c.bf16 %v4727_v49, %v4725_v33  ;;  %v7085_v43 = vpack.c.bf16 %v4732_v36, %v4730_v22 }
 0xe79   :  { %7058 = vmatprep.subr.bf16.mxu1 %v7057_v39  ;;  %v4736_v39 = vld [vmem:[#allocation15 + $0xd8] sm:$0xff] }
 0xe7a   :  { %v7089_v45 = vpack.c.bf16 %v4736_v39, %v4734_v37 }
 0xe7b   :  { %6932 = vmatpush1.bf16.msra.mxu0 %v6931_v55  ;;  %v4740_v55 = vld [vmem:[#allocation15 + $0xf8] sm:$0xff] }
 0xe7c   :  { %7060 = vmatpush1.bf16.msra.mxu1 %v7059_v56  ;;  %6934 = vmatprep.subr.bf16.mxu0 %v6933_v59  ;;  %v7091_v56 = vpack.c.bf16 %v4735_v50, %v4733_v52  ;;  %v7093_v59 = vpack.c.bf16 %v4740_v55, %v4738_v51 }
 0xe7d   :  { %7062 = vmatprep.subr.bf16.mxu1 %v7061_v63  ;;  %v4742_v63 = vld [vmem:[#allocation15 + $0x108] sm:$0xff] }
 0xe7f   :  { %6936 = vmatpush1.bf16.msra.mxu0 %v6935_v47  ;;  %v7097_v47 = vpack.c.bf16 %v4744_v0, %v4742_v63  ;;  %v4750_v63 = vld [vmem:[#allocation15 + $0x148] sm:$0xff]  ;;  %v4752_v0 = vld [vmem:[#allocation15 + $0x158] sm:$0xff] }
 0xe80   :  { %7064 = vmatpush1.bf16.msra.mxu1 %v7063_v5  ;;  %7066 = vmatprep.subr.bf16.mxu0 %v7065_v53  ;;  %v4741_v5 = vld [vmem:[#allocation15 + $0x100] sm:$0xff] }
 0xe81   :  { %v7099_v53 = vpack.c.bf16 %v4743_v19, %v4741_v5  ;;  %v4751_v5 = vld [vmem:[#allocation15 + $0x150] sm:$0xff] }
 0xe82   :  { %4405 = vmatmul.mubr.f32.vlgmr.msra.gmra.mrb[8].mxu0 %v8315_v54 }
 0xe83   :  { %4547 = vmatmul.mubr.f32.vlgmr.msra.gmra.mrb[22].mxu1 %v8315_v54  ;;  %v4718_v54 = vld [vmem:[#allocation15 + $0x48] sm:$0xff]  ;;  %7068 = vmatpush1.bf16.msra.mxu0 %v7067_v18  ;;  %v3952_v18 = vrot.slane %v3943_v58, %v7986_v3 }
 0xe84   :  { %7070 = vmatprep.subr.bf16.mxu0 %v7069_v57  ;;  %v7073_v16 = vpack.c.bf16 %v4720_v20, %v4718_v54 }
 0xe87   :  { %7072 = vmatpush1.bf16.msra.mxu0 %v7071_v4 }
 0xe88   :  { %7074 = vmatprep.subr.bf16.mxu0 %v7073_v16 }
 0xe8b   :  { %7076 = vmatpush1.bf16.msra.mxu0 %v7075_v21  ;;  %v3968_v21 = vrot.slane %v3943_v58, %v8013_v9 }
 0xe8c   :  { %7078 = vmatprep.subr.bf16.mxu0 %v7077_v30  ;;  %v3972_v30 = vrot.slane %v3943_v58, %v8028_v27 }
 0xe8f   :  { %7080 = vmatpush1.bf16.msra.mxu0 %v7079_v31 }
 0xe90   :  { %7082 = vmatprep.subr.bf16.mxu0 %v7081_v32  ;;  %v3976_v32 = vrot.slane %v3943_v58, %v8030_v28 }
 0xe93   :  { %7084 = vmatpush1.bf16.msra.mxu0 %v7083_v46 }
 0xe94   :  { %7086 = vmatprep.subr.bf16.mxu0 %v7085_v43 }
 0xe97   :  { %7088 = vmatpush1.bf16.msra.mxu0 %v7087_v44 }
 0xe98   :  { %7090 = vmatprep.subr.bf16.mxu0 %v7089_v45 }
 0xe9b   :  { %7092 = vmatpush1.bf16.msra.mxu0 %v7091_v56 }
 0xe9c   :  { %7094 = vmatprep.subr.bf16.mxu0 %v7093_v59  ;;  %v4745_v59 = vld [vmem:[#allocation15 + $0x120] sm:$0xff] }
 0xe9d   :  { %v7103_v61 = vpack.c.bf16 %v4747_v40, %v4745_v59  ;;  %v8393_v40 = vld [vmem:[%s8508_s13] sm:$0xff] }
 0xe9f   :  { %7096 = vmatpush1.bf16.msra.mxu0 %v7095_v1  ;;  %v7105_v1 = vpack.c.bf16 %v4752_v0, %v4750_v63  ;;  %v4611_v63 = vrot.slane %v8393_v40, %v7986_v3 }
 0xea0   :  { %7098 = vmatprep.subr.bf16.mxu0 %v7097_v47  ;;  %v4749_v47 = vld [vmem:[#allocation15 + $0x140] sm:$0xff] }
 0xea1   :  { %v7107_v19 = vpack.c.bf16 %v4751_v5, %v4749_v47  ;;  %v4619_v47 = vrot.slane %v8393_v40, %v7994_v8  ;;  %v4615_v5 = vrot.slane %v8393_v40, %v7989_v41 }
 0xea3   :  { %7100 = vmatpush1.bf16.msra.mxu0 %v7099_v53  ;;  %v4753_v53 = vld [vmem:[#allocation15 + $0x160] sm:$0xff] }
 0xea4   :  { %7102 = vmatprep.subr.bf16.mxu0 %v7101_v17  ;;  %v7109_v17 = vpack.c.bf16 %v4756_v13, %v4754_v14  ;;  %v4623_v14 = vrot.slane %v8393_v40, %v8002_v15  ;;  %v4635_v13 = vrot.slane %v8393_v40, %v8030_v28 }
 0xea7   :  { %7104 = vmatpush1.bf16.msra.mxu0 %v7103_v61  ;;  %v8396_v61 = vld [vmem:[%s8509_s1] sm:$0xff] }
 0xea8   :  { %7106 = vmatprep.subr.bf16.mxu0 %v7105_v1  ;;  %v4660_v0 = vrot.slane %v8396_v61, %v7986_v3  ;;  %v4607_v1 = vrot.slane %v8393_v40, %v7984_v2 }
 0xeab   :  { %7108 = vmatpush1.bf16.msra.mxu0 %v7107_v19  ;;  %v4627_v19 = vrot.slane %v8393_v40, %v8013_v9 }
 0xeac   :  { %7110 = vmatprep.subr.bf16.mxu0 %v7109_v17  ;;  %v4668_v17 = vrot.slane %v8396_v61, %v7994_v8 }
 0xed5   :  { %v8327_v6 = vpop.f32.mrb[6].mxu0  ;;  %v8329_v60 = vpop.f32.mrb[20].mxu1 }
 0xed6   :  { %v8331_v7 = vpop.f32.mrb[7].mxu0  ;;  %v8333_v38 = vpop.f32.mrb[21].mxu1  ;;  %v8339_v57 = vadd.f32 %v8327_v6, %v3948_v24  ;;  %v8350_v4 = vadd.f32 %v8329_v60, %v3956_v62  ;;  %v3960_v6 = vrot.slane %v3943_v58, %v7994_v8  ;;  %v4755_v58 = vld [vmem:[#allocation15 + $0x170] sm:$0xff]  ;;  %v4758_v24 = vld [vmem:[#allocation15 + $0x188] sm:$0xff] }
 0xed7   :  { %v8342_v11 = vadd.f32 %v8331_v7, %v3952_v18  ;;  %v4760_v18 = vld [vmem:[#allocation15 + $0x198] sm:$0xff]  ;;  %v7111_v62 = vpack.c.bf16 %v4755_v58, %v4753_v53  ;;  %v4656_v53 = vrot.slane %v8396_v61, %v7984_v2  ;;  %v4664_v58 = vrot.slane %v8396_v61, %v7989_v41 }
 0xed8   :  { %v4565_v54 = vmul.f32 %v8339_v57, %v8339_v57  ;;  %v4567_v7 = vmul.f32 %v8350_v4, %v8350_v4  ;;  %v8358_v42 = vadd.f32 %v8333_v38, %v3960_v6  ;;  %v4762_v6 = vld [vmem:[#allocation15 + $0x1a8] sm:$0xff] }
 0xed9   :  { %v4566_v20 = vmul.f32 %v8342_v11, %v8342_v11  ;;  %v4555_v16 = vadd.f32 %v8342_v11, %v8339_v57  ;;  %7112 = vmatpush1.bf16.msra.mxu0 %v7111_v62 }
 0xeda   :  { %v4568_v26 = vmul.f32 %v8358_v42, %v8358_v42 }
 0xedb   :  { %v4573_v35 = vadd.f32 %v4566_v20, %v4565_v54  ;;  %v4556_v48 = vadd.f32 %v8350_v4, %v4555_v16  ;;  %v7113_v54 = vpack.c.bf16 %v4760_v18, %v4758_v24  ;;  %v4757_v20 = vld [vmem:[#allocation15 + $0x180] sm:$0xff]  ;;  %v4759_v16 = vld [vmem:[#allocation15 + $0x190] sm:$0xff]  ;;  %v4676_v24 = vrot.slane %v8396_v61, %v8013_v9 }
 0xedc   :  { %v4672_v9 = vrot.slane %v8396_v61, %v8002_v15 }
 0xedd   :  { %v4574_v60 = vadd.f32 %v4573_v35, %v4567_v7  ;;  %v4557_v25 = vadd.f32 %v8358_v42, %v4556_v48  ;;  %v4764_v35 = vld [vmem:[#allocation15 + $0x1b8] sm:$0xff]  ;;  %v7115_v7 = vpack.c.bf16 %v4759_v16, %v4757_v20  ;;  %7114 = vmatprep.subr.bf16.mxu0 %v7113_v54 }
 0xede   :  { %v7117_v48 = vpack.c.bf16 %v4764_v35, %v4762_v6 }
 0xedf   :  { %v4575_v22 = vadd.f32 %v4574_v60, %v4568_v26  ;;  %v4766_v60 = vld [vmem:[#allocation15 + $0x1c8] sm:$0xff]  ;;  %7116 = vmatpush1.bf16.msra.mxu0 %v7115_v7  ;;  %v4765_v26 = vld [vmem:[#allocation15 + $0x1c0] sm:$0xff] }
 0xee0   :  { %7118 = vmatprep.subr.bf16.mxu0 %v7117_v48 }
 0xf55   :  { %v4406_v29 = vpop.f32.mrb[8].mxu0 }
 0xf56   :  { %v8367_v12 = vadd.f32 %v4406_v29, %v3964_v10  ;;  %v4548_v31 = vpop.f32.mrb[22].mxu1  ;;  %v4408_v38 = vpop.f32.mrb[9].mxu0  ;;  %v4761_v10 = vld [vmem:[#allocation15 + $0x1a0] sm:$0xff] }
 0xf57   :  { %v8370_v33 = vadd.f32 %v4408_v38, %v3968_v21  ;;  %v4550_v49 = vpop.f32.mrb[23].mxu1  ;;  %v8375_v43 = vadd.f32 %v4548_v31, %v3972_v30  ;;  %v4763_v21 = vld [vmem:[#allocation15 + $0x1b0] sm:$0xff]  ;;  %v4768_v30 = vld [vmem:[#allocation15 + $0x1d8] sm:$0xff]  ;;  %v4770_v38 = vld [vmem:[#allocation15 + $0x1e8] sm:$0xff] }
 0xf58   :  { %v4558_v36 = vadd.f32 %v8367_v12, %v4557_v25  ;;  %v4569_v46 = vmul.f32 %v8367_v12, %v8367_v12  ;;  %v8380_v39 = vadd.f32 %v4550_v49, %v3976_v32  ;;  %v7119_v29 = vpack.c.bf16 %v4763_v21, %v4761_v10  ;;  %v4767_v31 = vld [vmem:[#allocation15 + $0x1d0] sm:$0xff]  ;;  %v4772_v32 = vld [vmem:[#allocation15 + $0x1f8] sm:$0xff] }
 0xf59   :  { %v4570_v23 = vmul.f32 %v8370_v33, %v8370_v33  ;;  %v4571_v44 = vmul.f32 %v8375_v43, %v8375_v43  ;;  %v7121_v25 = vpack.c.bf16 %v4768_v30, %v4766_v60  ;;  %v7123_v49 = vpack.c.bf16 %v4767_v31, %v4765_v26  ;;  %v4773_v30 = vld [vmem:[#allocation15 + $0x200] sm:$0xff] }
 0xf5a   :  { %v4576_v34 = vadd.f32 %v4575_v22, %v4569_v46  ;;  %v4559_v37 = vadd.f32 %v8370_v33, %v4558_v36  ;;  %v4572_v51 = vmul.f32 %v8380_v39, %v8380_v39  ;;  %7120 = vmatpush1.bf16.msra.mxu0 %v7119_v29  ;;  %v7125_v22 = vpack.c.bf16 %v4772_v32, %v4770_v38  ;;  %v4769_v36 = vld [vmem:[#allocation15 + $0x1e0] sm:$0xff]  ;;  %v4771_v46 = vld [vmem:[#allocation15 + $0x1f0] sm:$0xff] }
 0xf5b   :  { %7122 = vmatprep.subr.bf16.mxu0 %v7121_v25  ;;  %v4684_v10 = vrot.slane %v8396_v61, %v8030_v28  ;;  %v4775_v29 = vld [vmem:[#allocation15 + $0x210] sm:$0xff] }
 0xf5c   :  { %v4560_v45 = vadd.f32 %v8375_v43, %v4559_v37  ;;  %v4577_v52 = vadd.f32 %v4576_v34, %v4570_v23  ;;  %v7127_v23 = vpack.c.bf16 %v4771_v46, %v4769_v36  ;;  %v4774_v34 = vld [vmem:[#allocation15 + $0x208] sm:$0xff]  ;;  %v4776_v37 = vld [vmem:[#allocation15 + $0x218] sm:$0xff] }
 0xf5e   :  { %v4561_v50 = vadd.f32 %v8380_v39, %v4560_v45  ;;  %v4578_v55 = vadd.f32 %v4577_v52, %v4571_v44  ;;  %7124 = vmatpush1.bf16.msra.mxu0 %v7123_v49  ;;  %v7129_v44 = vpack.c.bf16 %v4776_v37, %v4774_v34  ;;  %v4778_v49 = vld [vmem:[#allocation15 + $0x228] sm:$0xff] }
 0xf5f   :  { %7126 = vmatprep.subr.bf16.mxu0 %v7125_v22  ;;  %v4780_v22 = vld [vmem:[#allocation15 + $0x238] sm:$0xff] }
 0xf60   :  { %4562 = vadd.xlane.f32.xlu0 %v4561_v50  ;;  %v4579_v56 = vadd.f32 %v4578_v55, %v4572_v51 }
 0xf62   :  { %4580 = vadd.xlane.f32.xlu1 %v4579_v56  ;;  %7128 = vmatpush1.bf16.msra.mxu0 %v7127_v23 }
 0xf63   :  { %7130 = vmatprep.subr.bf16.mxu0 %v7129_v44 }
 0xfed   :  { %v4563_v45 = vpop.xlane.xlu0 %4562 }
 0xfee   :  { %v8388_v52 = vmul.f32 0.0009765625, %v4563_v45  ;;  %v7131_v45 = vpack.c.bf16 %v4775_v29, %v4773_v30  ;;  %v4803_v30 = vld [vmem:[#allocation15 + $0x2f0] sm:$0xff]  ;;  %v4806_v29 = vld [vmem:[#allocation15 + $0x308] sm:$0xff] }
 0xfef   :  { %v4581_v50 = vpop.xlane.xlu1 %4580 }
 0xff0   :  { %v4582_v51 = vmul.f32 0.0009765625, %v4581_v50  ;;  %v4583_v55 = vmul.f32 %v8388_v52, %v8388_v52  ;;  %v4586_v18 = vsub.f32 %v8342_v11, %v8388_v52  ;;  %v4585_v62 = vsub.f32 %v8339_v57, %v8388_v52 }
 0xff1   :  { %v4588_v54 = vsub.f32 %v8358_v42, %v8388_v52  ;;  %v4587_v20 = vsub.f32 %v8350_v4, %v8388_v52  ;;  %v4590_v8 = vsub.f32 %v8370_v33, %v8388_v52  ;;  %v4589_v41 = vsub.f32 %v8367_v12, %v8388_v52 }
 0xff2   :  { %v4584_v56 = vsub.f32 %v4582_v51, %v4583_v55  ;;  %v4592_v11 = vsub.f32 %v8380_v39, %v8388_v52  ;;  %v4631_v39 = vrot.slane %v8393_v40, %v8028_v27  ;;  %v4591_v34 = vsub.f32 %v8375_v43, %v8388_v52  ;;  %v4777_v51 = vld [vmem:[#allocation15 + $0x220] sm:$0xff]  ;;  %v4779_v55 = vld [vmem:[#allocation15 + $0x230] sm:$0xff] }
 0xff3   :  { %v7133_v50 = vpack.c.bf16 %v4780_v22, %v4778_v49  ;;  %v4781_v52 = vld [vmem:[#allocation15 + $0x240] sm:$0xff] }
 0xff4   :  { %v4593_v59 = vadd.f32 1e-05, %v4584_v56 }
 0xff6   :  { %7437 = vrsqrt.f32 %v4593_v59  ;;  %v4680_v59 = vrot.slane %v8396_v61, %v8028_v27  ;;  %v4785_v61 = vld [vmem:[#allocation15 + $0x260] sm:$0xff] }
0x1000   :  { %v7438_v16 = vpop.eup %7437 }
0x1001   :  { %v4596_v57 = vmul.f32 %v7438_v16, %v4586_v18  ;;  %v4595_v6 = vmul.f32 %v7438_v16, %v4585_v62  ;;  %v4598_v35 = vmul.f32 %v7438_v16, %v4588_v54  ;;  %v4597_v42 = vmul.f32 %v7438_v16, %v4587_v20  ;;  %v4789_v54 = vld [vmem:[#allocation15 + $0x280] sm:$0xff]  ;;  %v4791_v20 = vld [vmem:[#allocation15 + $0x290] sm:$0xff] }
0x1002   :  { %v4600_v7 = vmul.f32 %v7438_v16, %v4590_v8  ;;  %v4599_v48 = vmul.f32 %v7438_v16, %v4589_v41  ;;  %v4602_v4 = vmul.f32 %v7438_v16, %v4592_v11  ;;  %v4601_v56 = vmul.f32 %v7438_v16, %v4591_v34  ;;  %v4794_v16 = vld [vmem:[#allocation15 + $0x2a8] sm:$0xff]  ;;  %v4796_v8 = vld [vmem:[#allocation15 + $0x2b8] sm:$0xff]  ;;  %v4793_v11 = vld [vmem:[#allocation15 + $0x2a0] sm:$0xff] }
0x1003   :  { %v4645_v33 = vmul.f32 %v4611_v63, %v4596_v57  ;;  %v4644_v21 = vmul.f32 %v4607_v1, %v4595_v6  ;;  %v4647_v60 = vmul.f32 %v4619_v47, %v4598_v35  ;;  %v4646_v12 = vmul.f32 %v4615_v5, %v4597_v42  ;;  %v4782_v63 = vld [vmem:[#allocation15 + $0x248] sm:$0xff]  ;;  %v4783_v5 = vld [vmem:[#allocation15 + $0x250] sm:$0xff]  ;;  %v4800_v35 = vld [vmem:[#allocation15 + $0x2d8] sm:$0xff] }
0x1004   :  { %v4649_v15 = vmul.f32 %v4627_v19, %v4600_v7  ;;  %v4648_v25 = vmul.f32 %v4623_v14, %v4599_v48  ;;  %v4651_v26 = vmul.f32 %v4635_v13, %v4602_v4  ;;  %v4650_v1 = vmul.f32 %v4631_v39, %v4601_v56  ;;  %v4786_v14 = vld [vmem:[#allocation15 + $0x268] sm:$0xff]  ;;  %v4788_v13 = vld [vmem:[#allocation15 + $0x278] sm:$0xff]  ;;  %v4795_v57 = vld [vmem:[#allocation15 + $0x2b0] sm:$0xff] }
0x1005   :  { %v4694_v31 = vadd.f32 %v4660_v0, %v4645_v33  ;;  %v4693_v38 = vadd.f32 %v4656_v53, %v4644_v21  ;;  %v4696_v32 = vadd.f32 %v4668_v17, %v4647_v60  ;;  %v8442_v36 = vadd.f32 %v4664_v58, %v4646_v12  ;;  %v4784_v0 = vld [vmem:[#allocation15 + $0x258] sm:$0xff]  ;;  %v4787_v17 = vld [vmem:[#allocation15 + $0x270] sm:$0xff]  ;;  %v4790_v58 = vld [vmem:[#allocation15 + $0x288] sm:$0xff] }
0x1006   :  { %v8444_v28 = vadd.f32 %v4676_v24, %v4649_v15  ;;  %v8446_v46 = vadd.f32 %v4672_v9, %v4648_v25  ;;  %v8448_v23 = vadd.f32 %v4684_v10, %v4651_v26  ;;  %v7135_v47 = vpack.c.bf16 %v4779_v55, %v4777_v51  ;;  %v4792_v24 = vld [vmem:[#allocation15 + $0x298] sm:$0xff]  ;;  %v4798_v6 = vld [vmem:[#allocation15 + $0x2c8] sm:$0xff]  ;;  %v4797_v48 = vld [vmem:[#allocation15 + $0x2c0] sm:$0xff] }
0x1007   :  { %v4702_v37 = vmax.f32 %v4694_v31, 0.0  ;;  %v4701_v44 = vmax.f32 %v4693_v38, 0.0  ;;  %v4704_v40 = vmax.f32 %v4696_v32, 0.0  ;;  %v7137_v43 = vpack.c.bf16 %v4784_v0, %v4782_v63  ;;  %v4799_v4 = vld [vmem:[#allocation15 + $0x2d0] sm:$0xff]  ;;  %v4802_v10 = vld [vmem:[#allocation15 + $0x2e8] sm:$0xff]  ;;  %v4804_v33 = vld [vmem:[#allocation15 + $0x2f8] sm:$0xff] }
0x1008   :  { %v8454_v19 = vadd.f32 %v4680_v59, %v4650_v1  ;;  %v7139_v53 = vpack.c.bf16 %v4783_v5, %v4781_v52  ;;  %v7141_v27 = vpack.c.bf16 %v4788_v13, %v4786_v14  ;;  %v7143_v18 = vpack.c.bf16 %v4787_v17, %v4785_v61  ;;  %v4801_v12 = vld [vmem:[#allocation15 + $0x2e0] sm:$0xff]  ;;  %v4808_v15 = vld [vmem:[#allocation15 + $0x318] sm:$0xff]  ;;  %v4807_v31 = vld [vmem:[#allocation15 + $0x310] sm:$0xff] }
0x1009   :  { %5041 = vmatprep.mubr.f32.mxu0 %v4702_v37  ;;  %v7145_v62 = vpack.c.bf16 %v4792_v24, %v4790_v58  ;;  %v7147_v41 = vpack.c.bf16 %v4791_v20, %v4789_v54  ;;  %v7149_v9 = vpack.c.bf16 %v4796_v8, %v4794_v16  ;;  %v7151_v42 = vpack.c.bf16 %v4795_v57, %v4793_v11  ;;  %v4805_v39 = vld [vmem:[#allocation15 + $0x300] sm:$0xff]  ;;  %v4810_v38 = vld [vmem:[#allocation15 + $0x328] sm:$0xff]  ;;  %v4812_v32 = vld [vmem:[#allocation15 + $0x338] sm:$0xff] }
0x100a   :  { %5042 = vmatmul.mubr.f32.vlgmr.msra.gmra.mrb[10].mxu0 %v4701_v44  ;;  %v7153_v7 = vpack.c.bf16 %v4800_v35, %v4798_v6  ;;  %v7155_v21 = vpack.c.bf16 %v4799_v4, %v4797_v48  ;;  %v7157_v60 = vpack.c.bf16 %v4804_v33, %v4802_v10  ;;  %v7159_v25 = vpack.c.bf16 %v4803_v30, %v4801_v12  ;;  %v4809_v34 = vld [vmem:[#allocation15 + $0x320] sm:$0xff]  ;;  %v4811_v37 = vld [vmem:[#allocation15 + $0x330] sm:$0xff]  ;;  %v4814_v44 = vld [vmem:[#allocation15 + $0x348] sm:$0xff] }
0x100b   :  { %7132 = vmatpush1.bf16.msra.mxu0 %v7131_v45  ;;  %5112 = vmatprep.mubr.f32.mxu0 %v4704_v40  ;;  %v7161_v26 = vpack.c.bf16 %v4808_v15, %v4806_v29  ;;  %v7163_v49 = vpack.c.bf16 %v4807_v31, %v4805_v39  ;;  %v7165_v22 = vpack.c.bf16 %v4812_v32, %v4810_v38  ;;  %v4816_v45 = vld [vmem:[#allocation15 + $0x358] sm:$0xff]  ;;  %v4813_v55 = vld [vmem:[#allocation15 + $0x340] sm:$0xff]  ;;  %v4815_v56 = vld [vmem:[#allocation15 + $0x350] sm:$0xff]  ;;  %v4703_v29 = vmax.f32 %v8442_v36, 0.0 }
0x100c   :  { %7134 = vmatprep.subr.bf16.mxu0 %v7133_v50  ;;  %v7167_v50 = vpack.c.bf16 %v4811_v37, %v4809_v34  ;;  %v7169_v51 = vpack.c.bf16 %v4816_v45, %v4814_v44  ;;  %v4818_v59 = vld [vmem:[#allocation15 + $0x368] sm:$0xff]  ;;  %v4820_v40 = vld [vmem:[#allocation15 + $0x378] sm:$0xff]  ;;  %v7171_v63 = vpack.c.bf16 %v4815_v56, %v4813_v55  ;;  %v4817_v1 = vld [vmem:[#allocation15 + $0x360] sm:$0xff]  ;;  %v4706_v39 = vmax.f32 %v8444_v28, 0.0 }
0x100d   :  { %v7173_v0 = vpack.c.bf16 %v4820_v40, %v4818_v59  ;;  %v4824_v52 = vld [vmem:[#allocation15 + $0x398] sm:$0xff]  ;;  %v4821_v13 = vld [vmem:[#allocation15 + $0x380] sm:$0xff]  ;;  %v4846_v31 = vld [vmem:[#allocation15 + $0x448] sm:$0xff] }
0x100e   :  { %v4828_v61 = vld [vmem:[#allocation15 + $0x3b8] sm:$0xff]  ;;  %v4825_v24 = vld [vmem:[#allocation15 + $0x3a0] sm:$0xff]  ;;  %v4847_v34 = vld [vmem:[#allocation15 + $0x450] sm:$0xff] }
0x100f   :  { %7136 = vmatpush1.bf16.msra.mxu0 %v7135_v47  ;;  %v4819_v47 = vld [vmem:[#allocation15 + $0x370] sm:$0xff]  ;;  %v4832_v54 = vld [vmem:[#allocation15 + $0x3d8] sm:$0xff]  ;;  %v4829_v8 = vld [vmem:[#allocation15 + $0x3c0] sm:$0xff] }
0x1010   :  { %7138 = vmatprep.subr.bf16.mxu0 %v7137_v43  ;;  %v4822_v43 = vld [vmem:[#allocation15 + $0x388] sm:$0xff]  ;;  %v7175_v5 = vpack.c.bf16 %v4819_v47, %v4817_v1  ;;  %v4836_v11 = vld [vmem:[#allocation15 + $0x3f8] sm:$0xff]  ;;  %v4833_v35 = vld [vmem:[#allocation15 + $0x3e0] sm:$0xff] }
0x1011   :  { %v7177_v14 = vpack.c.bf16 %v4824_v52, %v4822_v43  ;;  %v4840_v48 = vld [vmem:[#allocation15 + $0x418] sm:$0xff]  ;;  %v4837_v33 = vld [vmem:[#allocation15 + $0x400] sm:$0xff]  ;;  %v4850_v37 = vld [vmem:[#allocation15 + $0x468] sm:$0xff] }
0x1012   :  { %v4844_v12 = vld [vmem:[#allocation15 + $0x438] sm:$0xff]  ;;  %v4854_v55 = vld [vmem:[#allocation15 + $0x488] sm:$0xff]  ;;  %v4853_v40 = vld [vmem:[#allocation15 + $0x480] sm:$0xff] }
0x1013   :  { %7140 = vmatpush1.bf16.msra.mxu0 %v7139_v53  ;;  %v4823_v53 = vld [vmem:[#allocation15 + $0x390] sm:$0xff]  ;;  %v4848_v38 = vld [vmem:[#allocation15 + $0x458] sm:$0xff]  ;;  %v4857_v52 = vld [vmem:[#allocation15 + $0x4a0] sm:$0xff] }
0x1014   :  { %7142 = vmatprep.subr.bf16.mxu0 %v7141_v27  ;;  %v4826_v27 = vld [vmem:[#allocation15 + $0x3a8] sm:$0xff]  ;;  %v7179_v17 = vpack.c.bf16 %v4823_v53, %v4821_v13  ;;  %v4852_v44 = vld [vmem:[#allocation15 + $0x478] sm:$0xff] }
0x1015   :  { %v7181_v58 = vpack.c.bf16 %v4828_v61, %v4826_v27  ;;  %v7205_v45 = vpack.c.bf16 %v4852_v44, %v4850_v37  ;;  %v4856_v28 = vld [vmem:[#allocation15 + $0x498] sm:$0xff]  ;;  %v4861_v61 = vld [vmem:[#allocation15 + $0x4c0] sm:$0xff]  ;;  %v4887_v37 = vld [vmem:[#allocation15 + $0x590] sm:$0xff] }
0x1016   :  { %v7209_v59 = vpack.c.bf16 %v4856_v28, %v4854_v55  ;;  %v4860_v1 = vld [vmem:[#allocation15 + $0x4b8] sm:$0xff]  ;;  %v4890_v44 = vld [vmem:[#allocation15 + $0x5a8] sm:$0xff]  ;;  %v4891_v55 = vld [vmem:[#allocation15 + $0x5b0] sm:$0xff] }
0x1017   :  { %7144 = vmatpush1.bf16.msra.mxu0 %v7143_v18  ;;  %v4827_v18 = vld [vmem:[#allocation15 + $0x3b0] sm:$0xff]  ;;  %v4864_v13 = vld [vmem:[#allocation15 + $0x4d8] sm:$0xff]  ;;  %v4894_v28 = vld [vmem:[#allocation15 + $0x5c8] sm:$0xff] }
0x1018   :  { %7146 = vmatprep.subr.bf16.mxu0 %v7145_v62  ;;  %v4830_v62 = vld [vmem:[#allocation15 + $0x3c8] sm:$0xff]  ;;  %v7183_v20 = vpack.c.bf16 %v4827_v18, %v4825_v24  ;;  %v4868_v24 = vld [vmem:[#allocation15 + $0x4f8] sm:$0xff] }
0x1019   :  { %v7185_v16 = vpack.c.bf16 %v4832_v54, %v4830_v62  ;;  %v4865_v54 = vld [vmem:[#allocation15 + $0x4e0] sm:$0xff] }
0x101b   :  { %7148 = vmatpush1.bf16.msra.mxu0 %v7147_v41  ;;  %v4831_v41 = vld [vmem:[#allocation15 + $0x3d0] sm:$0xff] }
0x101c   :  { %7150 = vmatprep.subr.bf16.mxu0 %v7149_v9  ;;  %v4834_v9 = vld [vmem:[#allocation15 + $0x3e8] sm:$0xff]  ;;  %v7187_v57 = vpack.c.bf16 %v4831_v41, %v4829_v8  ;;  %v4872_v8 = vld [vmem:[#allocation15 + $0x518] sm:$0xff] }
0x101d   :  { %v7189_v6 = vpack.c.bf16 %v4836_v11, %v4834_v9  ;;  %v4869_v11 = vld [vmem:[#allocation15 + $0x500] sm:$0xff] }
0x101f   :  { %7152 = vmatpush1.bf16.msra.mxu0 %v7151_v42  ;;  %v4835_v42 = vld [vmem:[#allocation15 + $0x3f0] sm:$0xff] }
0x1020   :  { %7154 = vmatprep.subr.bf16.mxu0 %v7153_v7  ;;  %v4838_v7 = vld [vmem:[#allocation15 + $0x408] sm:$0xff]  ;;  %v7191_v4 = vpack.c.bf16 %v4835_v42, %v4833_v35  ;;  %v4876_v35 = vld [vmem:[#allocation15 + $0x538] sm:$0xff] }
0x1021   :  { %v7193_v10 = vpack.c.bf16 %v4840_v48, %v4838_v7  ;;  %v4873_v48 = vld [vmem:[#allocation15 + $0x520] sm:$0xff] }
0x1023   :  { %7156 = vmatpush1.bf16.msra.mxu0 %v7155_v21  ;;  %v4839_v21 = vld [vmem:[#allocation15 + $0x410] sm:$0xff] }
0x1024   :  { %7158 = vmatprep.subr.bf16.mxu0 %v7157_v60  ;;  %v4842_v60 = vld [vmem:[#allocation15 + $0x428] sm:$0xff]  ;;  %v7195_v30 = vpack.c.bf16 %v4839_v21, %v4837_v33  ;;  %v4880_v33 = vld [vmem:[#allocation15 + $0x558] sm:$0xff] }
0x1025   :  { %v7197_v15 = vpack.c.bf16 %v4844_v12, %v4842_v60  ;;  %v4877_v12 = vld [vmem:[#allocation15 + $0x540] sm:$0xff] }
0x1027   :  { %7160 = vmatpush1.bf16.msra.mxu0 %v7159_v25  ;;  %v4841_v25 = vld [vmem:[#allocation15 + $0x420] sm:$0xff] }
0x1028   :  { %7162 = vmatprep.subr.bf16.mxu0 %v7161_v26  ;;  %v4843_v26 = vld [vmem:[#allocation15 + $0x430] sm:$0xff] }
0x1029   :  { %v7199_v32 = vpack.c.bf16 %v4843_v26, %v4841_v25 }
0x102b   :  { %7164 = vmatpush1.bf16.msra.mxu0 %v7163_v49  ;;  %v7201_v49 = vpack.c.bf16 %v4848_v38, %v4846_v31  ;;  %v4883_v31 = vld [vmem:[#allocation15 + $0x570] sm:$0xff]  ;;  %v4886_v38 = vld [vmem:[#allocation15 + $0x588] sm:$0xff] }
0x102c   :  { %7166 = vmatprep.subr.bf16.mxu0 %v7165_v22  ;;  %v4845_v22 = vld [vmem:[#allocation15 + $0x440] sm:$0xff] }
0x102d   :  { %v7203_v36 = vpack.c.bf16 %v4847_v34, %v4845_v22  ;;  %v4885_v34 = vld [vmem:[#allocation15 + $0x580] sm:$0xff] }
0x102f   :  { %7168 = vmatpush1.bf16.msra.mxu0 %v7167_v50  ;;  %v4849_v50 = vld [vmem:[#allocation15 + $0x460] sm:$0xff] }
0x1030   :  { %7170 = vmatprep.subr.bf16.mxu0 %v7169_v51  ;;  %v4851_v51 = vld [vmem:[#allocation15 + $0x470] sm:$0xff] }
0x1031   :  { %v7207_v56 = vpack.c.bf16 %v4851_v51, %v4849_v50  ;;  %v4889_v51 = vld [vmem:[#allocation15 + $0x5a0] sm:$0xff] }
0x1033   :  { %7172 = vmatpush1.bf16.msra.mxu0 %v7171_v63  ;;  %v4855_v63 = vld [vmem:[#allocation15 + $0x490] sm:$0xff] }
0x1034   :  { %7174 = vmatprep.subr.bf16.mxu0 %v7173_v0  ;;  %v4858_v0 = vld [vmem:[#allocation15 + $0x4a8] sm:$0xff]  ;;  %v7211_v47 = vpack.c.bf16 %v4855_v63, %v4853_v40  ;;  %v4893_v63 = vld [vmem:[#allocation15 + $0x5c0] sm:$0xff] }
0x1035   :  { %v7213_v43 = vpack.c.bf16 %v4860_v1, %v4858_v0  ;;  %v4895_v0 = vld [vmem:[#allocation15 + $0x5d0] sm:$0xff]  ;;  %v4898_v1 = vld [vmem:[#allocation15 + $0x5e8] sm:$0xff] }
0x1037   :  { %7176 = vmatpush1.bf16.msra.mxu0 %v7175_v5  ;;  %v4859_v5 = vld [vmem:[#allocation15 + $0x4b0] sm:$0xff] }
0x1038   :  { %7178 = vmatprep.subr.bf16.mxu0 %v7177_v14  ;;  %v4862_v14 = vld [vmem:[#allocation15 + $0x4c8] sm:$0xff]  ;;  %v7215_v53 = vpack.c.bf16 %v4859_v5, %v4857_v52  ;;  %v4897_v5 = vld [vmem:[#allocation15 + $0x5e0] sm:$0xff] }
0x1039   :  { %v7217_v27 = vpack.c.bf16 %v4864_v13, %v4862_v14  ;;  %v4899_v14 = vld [vmem:[#allocation15 + $0x5f0] sm:$0xff]  ;;  %v4902_v13 = vld [vmem:[#allocation15 + $0x608] sm:$0xff] }
0x103b   :  { %7180 = vmatpush1.bf16.msra.mxu0 %v7179_v17  ;;  %v4863_v17 = vld [vmem:[#allocation15 + $0x4d0] sm:$0xff] }
0x103c   :  { %7182 = vmatprep.subr.bf16.mxu0 %v7181_v58  ;;  %v4866_v58 = vld [vmem:[#allocation15 + $0x4e8] sm:$0xff]  ;;  %v7219_v18 = vpack.c.bf16 %v4863_v17, %v4861_v61  ;;  %v4901_v17 = vld [vmem:[#allocation15 + $0x600] sm:$0xff] }
0x103d   :  { %v7221_v62 = vpack.c.bf16 %v4868_v24, %v4866_v58  ;;  %v4903_v58 = vld [vmem:[#allocation15 + $0x610] sm:$0xff]  ;;  %v4906_v24 = vld [vmem:[#allocation15 + $0x628] sm:$0xff] }
0x103f   :  { %7184 = vmatpush1.bf16.msra.mxu0 %v7183_v20  ;;  %v4867_v20 = vld [vmem:[#allocation15 + $0x4f0] sm:$0xff] }
0x1040   :  { %7186 = vmatprep.subr.bf16.mxu0 %v7185_v16  ;;  %v4870_v16 = vld [vmem:[#allocation15 + $0x508] sm:$0xff]  ;;  %v7223_v41 = vpack.c.bf16 %v4867_v20, %v4865_v54  ;;  %v4705_v54 = vmax.f32 %v8446_v46, 0.0 }
0x1041   :  { %v7225_v9 = vpack.c.bf16 %v4872_v8, %v4870_v16  ;;  %v4905_v16 = vld [vmem:[#allocation15 + $0x620] sm:$0xff]  ;;  %v4907_v8 = vld [vmem:[#allocation15 + $0x630] sm:$0xff] }
0x1043   :  { %7188 = vmatpush1.bf16.msra.mxu0 %v7187_v57  ;;  %v4871_v57 = vld [vmem:[#allocation15 + $0x510] sm:$0xff] }
0x1044   :  { %7190 = vmatprep.subr.bf16.mxu0 %v7189_v6  ;;  %v4874_v6 = vld [vmem:[#allocation15 + $0x528] sm:$0xff]  ;;  %v7227_v42 = vpack.c.bf16 %v4871_v57, %v4869_v11  ;;  %v4912_v11 = vld [vmem:[#allocation15 + $0x658] sm:$0xff]  ;;  %v7263_v57 = vpack.c.bf16 %v4907_v8, %v4905_v16  ;;  %v4945_v16 = vld [vmem:[#allocation15 + $0x760] sm:$0xff] }
0x1045   :  { %v7229_v7 = vpack.c.bf16 %v4876_v35, %v4874_v6  ;;  %v4909_v35 = vld [vmem:[#allocation15 + $0x640] sm:$0xff]  ;;  %v4947_v8 = vld [vmem:[#allocation15 + $0x770] sm:$0xff] }
0x1047   :  { %7192 = vmatpush1.bf16.msra.mxu0 %v7191_v4  ;;  %v4875_v4 = vld [vmem:[#allocation15 + $0x530] sm:$0xff] }
0x1048   :  { %7194 = vmatprep.subr.bf16.mxu0 %v7193_v10  ;;  %v4878_v10 = vld [vmem:[#allocation15 + $0x548] sm:$0xff]  ;;  %v7231_v21 = vpack.c.bf16 %v4875_v4, %v4873_v48  ;;  %v4916_v48 = vld [vmem:[#allocation15 + $0x678] sm:$0xff] }
0x1049   :  { %v7233_v60 = vpack.c.bf16 %v4880_v33, %v4878_v10  ;;  %v4913_v10 = vld [vmem:[#allocation15 + $0x660] sm:$0xff]  ;;  %v4915_v33 = vld [vmem:[#allocation15 + $0x670] sm:$0xff] }
0x104a   :  { %5113 = vmatmul.mubr.f32.vlgmr.msra.gmra.mrb[10].mxu0 %v4703_v29  ;;  %v4882_v29 = vld [vmem:[#allocation15 + $0x568] sm:$0xff] }
0x104b   :  { %7196 = vmatpush1.bf16.msra.mxu0 %v7195_v30  ;;  %5183 = vmatprep.mubr.f32.mxu0 %v4706_v39  ;;  %v4879_v30 = vld [vmem:[#allocation15 + $0x550] sm:$0xff]  ;;  %v4881_v39 = vld [vmem:[#allocation15 + $0x560] sm:$0xff] }
0x104c   :  { %7198 = vmatprep.subr.bf16.mxu0 %v7197_v15  ;;  %v4884_v15 = vld [vmem:[#allocation15 + $0x578] sm:$0xff]  ;;  %v7235_v25 = vpack.c.bf16 %v4879_v30, %v4877_v12  ;;  %v4917_v30 = vld [vmem:[#allocation15 + $0x680] sm:$0xff] }
0x104d   :  { %v7237_v26 = vpack.c.bf16 %v4884_v15, %v4882_v29  ;;  %v4919_v29 = vld [vmem:[#allocation15 + $0x690] sm:$0xff]  ;;  %v4922_v15 = vld [vmem:[#allocation15 + $0x6a8] sm:$0xff] }
0x104f   :  { %7200 = vmatpush1.bf16.msra.mxu0 %v7199_v32  ;;  %v4888_v32 = vld [vmem:[#allocation15 + $0x598] sm:$0xff] }
0x1050   :  { %7202 = vmatprep.subr.bf16.mxu0 %v7201_v49  ;;  %v7239_v49 = vpack.c.bf16 %v4883_v31, %v4881_v39  ;;  %v7241_v22 = vpack.c.bf16 %v4888_v32, %v4886_v38  ;;  %v4921_v31 = vld [vmem:[#allocation15 + $0x6a0] sm:$0xff]  ;;  %v4923_v38 = vld [vmem:[#allocation15 + $0x6b0] sm:$0xff]  ;;  %v4926_v32 = vld [vmem:[#allocation15 + $0x6c8] sm:$0xff] }
0x1053   :  { %7204 = vmatpush1.bf16.msra.mxu0 %v7203_v36  ;;  %v4892_v36 = vld [vmem:[#allocation15 + $0x5b8] sm:$0xff] }
0x1054   :  { %7206 = vmatprep.subr.bf16.mxu0 %v7205_v45  ;;  %v7243_v45 = vpack.c.bf16 %v4887_v37, %v4885_v34  ;;  %v7245_v50 = vpack.c.bf16 %v4892_v36, %v4890_v44  ;;  %v4925_v37 = vld [vmem:[#allocation15 + $0x6c0] sm:$0xff]  ;;  %v4927_v44 = vld [vmem:[#allocation15 + $0x6d0] sm:$0xff]  ;;  %v4930_v36 = vld [vmem:[#allocation15 + $0x6e8] sm:$0xff] }
0x1057   :  { %7208 = vmatpush1.bf16.msra.mxu0 %v7207_v56  ;;  %v4896_v56 = vld [vmem:[#allocation15 + $0x5d8] sm:$0xff] }
0x1058   :  { %7210 = vmatprep.subr.bf16.mxu0 %v7209_v59  ;;  %v7247_v59 = vpack.c.bf16 %v4891_v55, %v4889_v51  ;;  %v7249_v40 = vpack.c.bf16 %v4896_v56, %v4894_v28  ;;  %v4929_v55 = vld [vmem:[#allocation15 + $0x6e0] sm:$0xff]  ;;  %v4931_v28 = vld [vmem:[#allocation15 + $0x6f0] sm:$0xff]  ;;  %v4934_v56 = vld [vmem:[#allocation15 + $0x708] sm:$0xff] }
0x105b   :  { %7212 = vmatpush1.bf16.msra.mxu0 %v7211_v47  ;;  %v4900_v47 = vld [vmem:[#allocation15 + $0x5f8] sm:$0xff] }
0x105c   :  { %7214 = vmatprep.subr.bf16.mxu0 %v7213_v43  ;;  %v7251_v43 = vpack.c.bf16 %v4895_v0, %v4893_v63  ;;  %v7253_v52 = vpack.c.bf16 %v4900_v47, %v4898_v1  ;;  %v4933_v0 = vld [vmem:[#allocation15 + $0x700] sm:$0xff]  ;;  %v4935_v1 = vld [vmem:[#allocation15 + $0x710] sm:$0xff]  ;;  %v4938_v47 = vld [vmem:[#allocation15 + $0x728] sm:$0xff] }
0x105f   :  { %7216 = vmatpush1.bf16.msra.mxu0 %v7215_v53  ;;  %v4904_v53 = vld [vmem:[#allocation15 + $0x618] sm:$0xff] }
0x1060   :  { %7218 = vmatprep.subr.bf16.mxu0 %v7217_v27  ;;  %v7255_v27 = vpack.c.bf16 %v4899_v14, %v4897_v5  ;;  %v7257_v61 = vpack.c.bf16 %v4904_v53, %v4902_v13  ;;  %v4937_v14 = vld [vmem:[#allocation15 + $0x720] sm:$0xff]  ;;  %v4939_v13 = vld [vmem:[#allocation15 + $0x730] sm:$0xff]  ;;  %v4942_v53 = vld [vmem:[#allocation15 + $0x748] sm:$0xff] }
0x1063   :  { %7220 = vmatpush1.bf16.msra.mxu0 %v7219_v18  ;;  %v4908_v18 = vld [vmem:[#allocation15 + $0x638] sm:$0xff] }
0x1064   :  { %7222 = vmatprep.subr.bf16.mxu0 %v7221_v62  ;;  %v7259_v62 = vpack.c.bf16 %v4903_v58, %v4901_v17  ;;  %v7261_v20 = vpack.c.bf16 %v4908_v18, %v4906_v24  ;;  %v4941_v58 = vld [vmem:[#allocation15 + $0x740] sm:$0xff]  ;;  %v4943_v24 = vld [vmem:[#allocation15 + $0x750] sm:$0xff]  ;;  %v4946_v18 = vld [vmem:[#allocation15 + $0x768] sm:$0xff] }
0x1067   :  { %7224 = vmatpush1.bf16.msra.mxu0 %v7223_v41  ;;  %v4708_v41 = vmax.f32 %v8448_v23, 0.0  ;;  %v4920_v23 = vld [vmem:[#allocation15 + $0x698] sm:$0xff] }
0x1068   :  { %7226 = vmatprep.subr.bf16.mxu0 %v7225_v9  ;;  %v4910_v9 = vld [vmem:[#allocation15 + $0x648] sm:$0xff] }
0x1069   :  { %v7265_v6 = vpack.c.bf16 %v4912_v11, %v4910_v9  ;;  %v4952_v9 = vld [vmem:[#allocation15 + $0x798] sm:$0xff]  ;;  %v7303_v11 = vpack.c.bf16 %v4947_v8, %v4945_v16 }
0x106b   :  { %7228 = vmatpush1.bf16.msra.mxu0 %v7227_v42  ;;  %v4911_v42 = vld [vmem:[#allocation15 + $0x650] sm:$0xff] }
0x106c   :  { %7230 = vmatprep.subr.bf16.mxu0 %v7229_v7  ;;  %v4914_v7 = vld [vmem:[#allocation15 + $0x668] sm:$0xff]  ;;  %v7267_v46 = vpack.c.bf16 %v4911_v42, %v4909_v35  ;;  %v4951_v35 = vld [vmem:[#allocation15 + $0x790] sm:$0xff] }
0x106d   :  { %v7269_v4 = vpack.c.bf16 %v4916_v48, %v4914_v7  ;;  %v4954_v42 = vld [vmem:[#allocation15 + $0x7a8] sm:$0xff]  ;;  %v4956_v7 = vld [vmem:[#allocation15 + $0x7b8] sm:$0xff] }
0x106f   :  { %7232 = vmatpush1.bf16.msra.mxu0 %v7231_v21  ;;  %v4918_v21 = vld [vmem:[#allocation15 + $0x688] sm:$0xff] }
0x1070   :  { %7234 = vmatprep.subr.bf16.mxu0 %v7233_v60  ;;  %v7271_v60 = vpack.c.bf16 %v4915_v33, %v4913_v10  ;;  %v7273_v12 = vpack.c.bf16 %v4920_v23, %v4918_v21  ;;  %v4955_v10 = vld [vmem:[#allocation15 + $0x7b0] sm:$0xff]  ;;  %v4958_v33 = vld [vmem:[#allocation15 + $0x7c8] sm:$0xff]  ;;  %v4960_v21 = vld [vmem:[#allocation15 + $0x7d8] sm:$0xff] }
0x1073   :  { %7236 = vmatpush1.bf16.msra.mxu0 %v7235_v25  ;;  %v4924_v25 = vld [vmem:[#allocation15 + $0x6b8] sm:$0xff] }
0x1074   :  { %7238 = vmatprep.subr.bf16.mxu0 %v7237_v26  ;;  %v7275_v26 = vpack.c.bf16 %v4919_v29, %v4917_v30  ;;  %v7277_v39 = vpack.c.bf16 %v4924_v25, %v4922_v15  ;;  %v4959_v30 = vld [vmem:[#allocation15 + $0x7d0] sm:$0xff]  ;;  %v4962_v29 = vld [vmem:[#allocation15 + $0x7e8] sm:$0xff]  ;;  %v4964_v15 = vld [vmem:[#allocation15 + $0x7f8] sm:$0xff] }
0x1077   :  { %7240 = vmatpush1.bf16.msra.mxu0 %v7239_v49  ;;  %v4928_v49 = vld [vmem:[#allocation15 + $0x6d8] sm:$0xff] }
0x1078   :  { %7242 = vmatprep.subr.bf16.mxu0 %v7241_v22  ;;  %v7279_v22 = vpack.c.bf16 %v4923_v38, %v4921_v31  ;;  %v7281_v34 = vpack.c.bf16 %v4928_v49, %v4926_v32  ;;  %v4963_v31 = vld [vmem:[#allocation15 + $0x7f0] sm:$0xff]  ;;  %v4707_v32 = vmax.f32 %v8454_v19, 0.0  ;;  %v4965_v49 = vld [vmem:[%s7888_s20] sm:$0x3] }
0x107b   :  { %7244 = vmatpush1.bf16.msra.mxu0 %v7243_v45  ;;  %v4932_v45 = vld [vmem:[#allocation15 + $0x6f8] sm:$0xff] }
0x107c   :  { %7246 = vmatprep.subr.bf16.mxu0 %v7245_v50  ;;  %v7283_v50 = vpack.c.bf16 %v4927_v44, %v4925_v37  ;;  %v7285_v51 = vpack.c.bf16 %v4932_v45, %v4930_v36 }
0x107f   :  { %7248 = vmatpush1.bf16.msra.mxu0 %v7247_v59  ;;  %v4936_v59 = vld [vmem:[#allocation15 + $0x718] sm:$0xff] }
0x1080   :  { %7250 = vmatprep.subr.bf16.mxu0 %v7249_v40  ;;  %v7287_v40 = vpack.c.bf16 %v4931_v28, %v4929_v55  ;;  %v7289_v63 = vpack.c.bf16 %v4936_v59, %v4934_v56 }
0x1083   :  { %7252 = vmatpush1.bf16.msra.mxu0 %v7251_v43  ;;  %v4940_v43 = vld [vmem:[#allocation15 + $0x738] sm:$0xff] }
0x1084   :  { %7254 = vmatprep.subr.bf16.mxu0 %v7253_v52  ;;  %v7291_v52 = vpack.c.bf16 %v4935_v1, %v4933_v0  ;;  %v7293_v5 = vpack.c.bf16 %v4940_v43, %v4938_v47 }
0x1087   :  { %7256 = vmatpush1.bf16.msra.mxu0 %v7255_v27  ;;  %v4944_v27 = vld [vmem:[#allocation15 + $0x758] sm:$0xff] }
0x1088   :  { %7258 = vmatprep.subr.bf16.mxu0 %v7257_v61  ;;  %v7295_v61 = vpack.c.bf16 %v4939_v13, %v4937_v14  ;;  %v7297_v17 = vpack.c.bf16 %v4944_v27, %v4942_v53 }
0x108a   :  { %5184 = vmatmul.mubr.f32.vlgmr.msra.gmra.mrb[10].mxu0 %v4705_v54  ;;  %v7299_v54 = vpack.c.bf16 %v4943_v24, %v4941_v58 }
0x108b   :  { %7260 = vmatpush1.bf16.msra.mxu0 %v7259_v62  ;;  %5254 = vmatprep.mubr.f32.mxu0 %v4708_v41  ;;  %v4948_v62 = vld [vmem:[#allocation15 + $0x778] sm:$0xff]  ;;  %v4950_v41 = vld [vmem:[#allocation15 + $0x788] sm:$0xff] }
0x108c   :  { %7262 = vmatprep.subr.bf16.mxu0 %v7261_v20  ;;  %v7301_v20 = vpack.c.bf16 %v4948_v62, %v4946_v18 }
0x108f   :  { %7264 = vmatpush1.bf16.msra.mxu0 %v7263_v57  ;;  %v7305_v57 = vpack.c.bf16 %v4952_v9, %v4950_v41 }
0x1090   :  { %7266 = vmatprep.subr.bf16.mxu0 %v7265_v6  ;;  %v4949_v6 = vld [vmem:[#allocation15 + $0x780] sm:$0xff] }
0x1091   :  { %v7307_v48 = vpack.c.bf16 %v4951_v35, %v4949_v6 }
0x1093   :  { %7268 = vmatpush1.bf16.msra.mxu0 %v7267_v46  ;;  %v7309_v46 = vpack.c.bf16 %v4956_v7, %v4954_v42 }
0x1094   :  { %7270 = vmatprep.subr.bf16.mxu0 %v7269_v4  ;;  %v4953_v4 = vld [vmem:[#allocation15 + $0x7a0] sm:$0xff] }
0x1095   :  { %v7311_v23 = vpack.c.bf16 %v4955_v10, %v4953_v4 }
0x1097   :  { %7272 = vmatpush1.bf16.msra.mxu0 %v7271_v60  ;;  %v7313_v60 = vpack.c.bf16 %v4960_v21, %v4958_v33 }
0x1098   :  { %7274 = vmatprep.subr.bf16.mxu0 %v7273_v12  ;;  %v4957_v12 = vld [vmem:[#allocation15 + $0x7c0] sm:$0xff] }
0x1099   :  { %v7315_v25 = vpack.c.bf16 %v4959_v30, %v4957_v12 }
0x109b   :  { %7276 = vmatpush1.bf16.msra.mxu0 %v7275_v26  ;;  %v7317_v26 = vpack.c.bf16 %v4964_v15, %v4962_v29 }
0x109c   :  { %7278 = vmatprep.subr.bf16.mxu0 %v7277_v39  ;;  %v4961_v39 = vld [vmem:[#allocation15 + $0x7e0] sm:$0xff] }
0x109d   :  { %v7319_v38 = vpack.c.bf16 %v4963_v31, %v4961_v39 }
0x109f   :  { %7280 = vmatpush1.bf16.msra.mxu0 %v7279_v22  ;;  %v4970_v22 = vrot.slane %v4965_v49, %v7984_v2 }
0x10a0   :  { %7282 = vmatprep.subr.bf16.mxu0 %v7281_v34  ;;  %v4974_v34 = vrot.slane %v4965_v49, %v7986_v3 }
0x10a3   :  { %7284 = vmatpush1.bf16.msra.mxu0 %v7283_v50 }
0x10a4   :  { %7286 = vmatprep.subr.bf16.mxu0 %v7285_v51 }
0x10a7   :  { %7288 = vmatpush1.bf16.msra.mxu0 %v7287_v40 }
0x10a8   :  { %7290 = vmatprep.subr.bf16.mxu0 %v7289_v63 }
0x10ab   :  { %7292 = vmatpush1.bf16.msra.mxu0 %v7291_v52 }
0x10ac   :  { %7294 = vmatprep.subr.bf16.mxu0 %v7293_v5 }
0x10af   :  { %7296 = vmatpush1.bf16.msra.mxu0 %v7295_v61 }
0x10b0   :  { %7298 = vmatprep.subr.bf16.mxu0 %v7297_v17 }
0x10b3   :  { %7300 = vmatpush1.bf16.msra.mxu0 %v7299_v54 }
0x10b4   :  { %7302 = vmatprep.subr.bf16.mxu0 %v7301_v20 }
0x10b7   :  { %7304 = vmatpush1.bf16.msra.mxu0 %v7303_v11 }
0x10b8   :  { %7306 = vmatprep.subr.bf16.mxu0 %v7305_v57 }
0x10bb   :  { %7308 = vmatpush1.bf16.msra.mxu0 %v7307_v48 }
0x10bc   :  { %7310 = vmatprep.subr.bf16.mxu0 %v7309_v46 }
0x10bf   :  { %7312 = vmatpush1.bf16.msra.mxu0 %v7311_v23 }
0x10c0   :  { %7314 = vmatprep.subr.bf16.mxu0 %v7313_v60 }
0x10c3   :  { %7316 = vmatpush1.bf16.msra.mxu0 %v7315_v25 }
0x10c4   :  { %7318 = vmatprep.subr.bf16.mxu0 %v7317_v26 }
0x10c7   :  { %7320 = vmatpush1.bf16.msra.mxu0 %v7319_v38 }
0x10ca   :  { %5255 = vmatmul.mubr.f32.vlgmr.msra.gmra.mrb[10].mxu0 %v4707_v32 }
0x119d   :  { %v5256_v37 = vpop.f32.mrb[10].mxu0 }
0x119e   :  { %v7335_v44 = vadd.f32 %v5256_v37, %v4970_v22  ;;  %v5258_v36 = vpop.f32.mrb[11].mxu0 }
0x119f   :  { %v7336_v45 = vadd.f32 %v5258_v36, %v4974_v34 }
0x11a0   :  { %5261 = vst [vmem:[%s7893_s6] sm:$0xff] %v7335_v44 }
0x11a1   :  { %5262 = vst [vmem:[%s7893_s6 + $0x8] sm:$0xff] %v7336_v45 }
0x11a2   :  { %5275 = vsyncpa [#allocation3], 1 }
0x11a3   :  { %5276 = vsyncpa [#allocation5], 1 }
0x11a4   :  { %5277 = vsyncpa [#allocation8], 1 }
0x11a5   :  { %5278 = vsyncpa [#allocation11], 1 }
0x11a6   :  { %5279 = vsyncpa [#allocation14], 1 }

</bundles_post_ra>
